<compile_context>
chip_gen: v7x
topology: tpu7x:2x2x1
jax: 0.10.0
libtpu: 0.0.40
codegen_flags: <defaults>
</compile_context>

<pallas_src>
import jax
import jax.numpy as jnp
from jax.experimental import pallas as pl
from jax.experimental.pallas import tpu as pltpu

DIM = 32                      # model dim (divisible by NUM_HEADS)
NUM_HEADS = 8
HEAD_DIM = DIM // NUM_HEADS   # 4
SEQ = 16                      # tokens per sequence
LN_EPS = 1e-5
SCALE = HEAD_DIM ** -0.5

PACK = 4                      # sequences packed on the lane axis (PC = 128 lanes)
PC = PACK * DIM               # 128
NMASK = PACK * NUM_HEADS      # one mask row per (sequence-in-pack, head) = 32
TGROUPS = 8                   # lane-groups stacked on sublanes per grid step
TROWS = TGROUPS * SEQ         # 128 rows per block
SEQS_PER_STEP = PACK * TGROUPS  # 32 sequences per grid step

# set to jnp.bfloat16 on v6e/v7x: halves MXU passes + VMEM bytes of the attention
# matmuls (accumulation stays f32); loosen the tolerance below to ~1e-2 if you do.
ATTN_DTYPE = jnp.float32


def hdaf_kernel(x_ref, mask_ref, e_ref, mavg_ref, gamma_ref, beta_ref,
                wqkv_ref, bqkv_ref, wp_ref, bp_ref, o_ref,
                qkv_ref, attn_ref):
    x = x_ref[...].astype(jnp.float32)            # (TROWS, PC) lane-dense block
    mavg = mavg_ref[...]                          # block-diag group-mean matrix

    # ---- per-sequence LayerNorm: two full 128x128x128 MXU matmuls ----
    mean = jnp.dot(x, mavg, preferred_element_type=jnp.float32)
    xc = x - mean
    var = jnp.dot(xc * xc, mavg, preferred_element_type=jnp.float32)
    xn = xc * jax.lax.rsqrt(var + LN_EPS) * gamma_ref[...] + beta_ref[...]

    # ---- fused q/k/v projection: one (128, 128) x (128, 384) matmul ----
    qkv_ref[...] = (jnp.dot(xn, wqkv_ref[...], preferred_element_type=jnp.float32)
                    + bqkv_ref[...])

    mask = mask_ref[...]                          # (NMASK, PC)      0/1
    e = e_ref[...]                                # (NMASK*SEQ, PC)  0/1 (segment->lane map)

    # ---- attention per lane-packed group (16 tokens x 4 sequences x 8 heads) ----
    def attend(t, carry):
        r0 = pl.multiple_of(t * SEQ, SEQ)
        qkv_t = qkv_ref[pl.ds(r0, SEQ), :]        # (SEQ, 3*PC)
        q_t = qkv_t[:, :PC]                       # scale already folded in
        k_t = qkv_t[:, PC:2 * PC]
        v_t = qkv_t[:, 2 * PC:]

        # masked lane-stacked K' / V': (NMASK*SEQ, PC); segment m only keeps the
        # 4 lanes of its (pack, head), so the MXU does the head bookkeeping.
        kp = (mask[:, None, :] * k_t[None, :, :]).reshape(NMASK * SEQ, PC)
        vp = (mask[:, None, :] * v_t[None, :, :]).reshape(NMASK * SEQ, PC)

        # lane-dense scores: (SEQ, NMASK*SEQ) = (16, 512), contraction K=128
        s = jax.lax.dot_general(q_t.astype(ATTN_DTYPE), kp.astype(ATTN_DTYPE),
                                (((1,), (1,)), ((), ())),
                                preferred_element_type=jnp.float32)
        # softmax over 16-lane segments: the per-row max is a constant within
        # every segment -> softmax-invariant (only fails on >80 score spread).
        p = jnp.exp(s - jnp.max(s, axis=-1, keepdims=True))
        pb = p.astype(ATTN_DTYPE)

        # segment denominators broadcast back to lanes via the MXU (p @ E), K=512
        denom = jnp.dot(pb, e, preferred_element_type=jnp.float32)        # (SEQ, PC)
        out_raw = jnp.dot(pb, vp.astype(ATTN_DTYPE),
                          preferred_element_type=jnp.float32)             # (SEQ, PC)
        attn_ref[pl.ds(r0, SEQ), :] = out_raw * pl.reciprocal(
            jnp.maximum(denom, 1e-30), approx=True)
        return carry

    jax.lax.fori_loop(0, TGROUPS, attend, 0, unroll=True)

    # ---- output projection + residual on the full 128-row block ----
    y = jnp.dot(attn_ref[...], wp_ref[...], preferred_element_type=jnp.float32) + bp_ref[...]
    o_ref[...] = (x + y).astype(o_ref.dtype)


def _packed_params(gamma, beta, wq, wk, wv, bq, bk, bv, wp, bp):
    """Lane-packed (block-diagonal / tiled) parameters, built once in the wrapper."""
    f32 = jnp.float32
    eye = jnp.eye(PACK, dtype=f32)
    bd = lambda w: jnp.kron(eye, w.astype(f32))                            # (PC, PC)
    row = lambda b: jnp.tile(b.astype(f32).reshape(-1), PACK).reshape(1, PC)
    m_avg = jnp.kron(eye, jnp.full((DIM, DIM), 1.0 / DIM, f32))            # group mean

    lane = jnp.arange(PC)
    m = jnp.arange(NMASK)
    mask = ((lane[None, :] // DIM == m[:, None] // NUM_HEADS) &
            ((lane[None, :] % DIM) // HEAD_DIM == m[:, None] % NUM_HEADS)).astype(f32)
    # E[m*SEQ + j, l] = mask[m, l]  -> segment-sum / lane-broadcast matrix
    e = jnp.broadcast_to(mask[:, None, :], (NMASK, SEQ, PC)).reshape(
        NMASK * SEQ, PC).astype(ATTN_DTYPE)

    # fused QKV with the attention scale folded into the q weights/bias (free)
    wqkv = jnp.concatenate([bd(wq * SCALE), bd(wk), bd(wv)], axis=1)       # (PC, 3*PC)
    bqkv = jnp.concatenate([row(bq * SCALE), row(bk), row(bv)], axis=1)    # (1, 3*PC)
    return (mask, e, m_avg, row(gamma), row(beta), wqkv, bqkv, bd(wp), row(bp))


@jax.jit
def hdaf_forward(x, gamma, beta, wq, wk, wv, bq, bk, bv, wp, bp):
    """x: (B, N, C) float32 -- B independent sequences, each run through HDAF.
    Linear weights are (in, out) (transposed vs. PyTorch); biases/LN params are 1-D."""
    B, N, C = x.shape
    assert N == SEQ and C == DIM
    pad = (-B) % SEQS_PER_STEP
    if pad:
        x = jnp.concatenate([x, jnp.zeros((pad, N, C), x.dtype)], axis=0)
    Bp = B + pad
    G = Bp // SEQS_PER_STEP

    # pack 32 sequences per grid step:
    #   (G, TGROUPS, PACK, SEQ, DIM) -> rows = (group, token), lanes = (pack, ch)
    xp = (x.reshape(G, TGROUPS, PACK, SEQ, DIM)
           .transpose(0, 1, 3, 2, 4)
           .reshape(G, TROWS, PC))

    params = _packed_params(gamma, beta, wq, wk, wv, bq, bk, bv, wp, bp)
    resident = lambda shape: pl.BlockSpec(shape, lambda g: (0, 0))   # stays in VMEM

    out = pl.pallas_call(
        hdaf_kernel,
        out_shape=jax.ShapeDtypeStruct((G, TROWS, PC), x.dtype),
        grid=(G,),
        in_specs=[
            pl.BlockSpec((None, TROWS, PC), lambda g: (g, 0, 0)),    # packed x block
            resident((NMASK, PC)),                                   # (pack, head) lane masks
            resident((NMASK * SEQ, PC)),                             # segment->lane matrix E
            resident((PC, PC)),                                      # group-mean matrix
            resident((1, PC)), resident((1, PC)),                    # gamma, beta
            resident((PC, 3 * PC)), resident((1, 3 * PC)),           # fused Wqkv, bqkv
            resident((PC, PC)), resident((1, PC)),                   # Wproj, bproj
        ],
        out_specs=pl.BlockSpec((None, TROWS, PC), lambda g: (g, 0, 0)),
        scratch_shapes=[pltpu.VMEM((TROWS, 3 * PC), jnp.float32),    # qkv for the block
                        pltpu.VMEM((TROWS, PC), jnp.float32)],       # per-group attn out
        compiler_params=pltpu.CompilerParams(dimension_semantics=("parallel",)),
    )(xp, *params)

    # un-pack: (G, TROWS, PC) -> (B, N, C)
    out = (out.reshape(G, TGROUPS, SEQ, PACK, DIM)
              .transpose(0, 1, 3, 2, 4)
              .reshape(Bp, N, C))
    return out[:B]


def hdaf_reference(x, gamma, beta, wq, wk, wv, bq, bk, bv, wp, bp):
    """Pure-JAX per-sequence reference mirroring the PyTorch HDAF forward."""
    mean = jnp.mean(x, axis=-1, keepdims=True)
    var = jnp.mean((x - mean) ** 2, axis=-1, keepdims=True)
    xn = (x - mean) / jnp.sqrt(var + LN_EPS) * gamma + beta
    q = xn @ wq + bq
    k = xn @ wk + bk
    v = xn @ wv + bv
    qh = q.reshape(SEQ, NUM_HEADS, HEAD_DIM).transpose(1, 0, 2)
    kh = k.reshape(SEQ, NUM_HEADS, HEAD_DIM).transpose(1, 0, 2)
    vh = v.reshape(SEQ, NUM_HEADS, HEAD_DIM).transpose(1, 0, 2)
    attn = jax.nn.softmax(jnp.einsum('hnd,hmd->hnm', qh, kh) * SCALE, axis=-1)
    out = jnp.einsum('hnm,hmd->hnd', attn, vh).transpose(1, 0, 2).reshape(SEQ, DIM)
    return x + out @ wp + bp


if __name__ == "__main__":
    key = jax.random.PRNGKey(0)
    ks = jax.random.split(key, 12)
    B = 48        # pads to 64 packed sequences -> grid of 2 steps (both v7x cores busy)

    # deterministic synthetic inputs/params (shapes from HDAF.__init__ with dim=32)
    x = jax.random.normal(ks[0], (B, SEQ, DIM), dtype=jnp.float32)
    gamma = 1.0 + 0.1 * jax.random.normal(ks[1], (DIM,), jnp.float32)   # LN weight
    beta = 0.1 * jax.random.normal(ks[2], (DIM,), jnp.float32)          # LN bias
    wq = jax.random.normal(ks[3], (DIM, DIM), jnp.float32) * 0.1        # (in, out)
    wk = jax.random.normal(ks[4], (DIM, DIM), jnp.float32) * 0.1
    wv = jax.random.normal(ks[5], (DIM, DIM), jnp.float32) * 0.1
    bq = jax.random.normal(ks[6], (DIM,), jnp.float32) * 0.1
    bk = jax.random.normal(ks[7], (DIM,), jnp.float32) * 0.1
    bv = jax.random.normal(ks[8], (DIM,), jnp.float32) * 0.1
    wp = jax.random.normal(ks[9], (DIM, DIM), jnp.float32) * 0.1
    bp = jax.random.normal(ks[10], (DIM,), jnp.float32) * 0.1

    out = hdaf_forward(x, gamma, beta, wq, wk, wv, bq, bk, bv, wp, bp)
    out = jax.block_until_ready(out)

    ref = jax.vmap(lambda xs: hdaf_reference(xs, gamma, beta,
                                             wq, wk, wv, bq, bk, bv, wp, bp))(x)
    assert out.shape == (B, SEQ, DIM)
    # approx reciprocal in softmax -> slightly looser tolerance than exact path
    assert jnp.allclose(out, ref, atol=2e-3, rtol=2e-3), "mismatch vs reference"

    print("KERNEL_OK")
</pallas_src>

<mosaic_0001>
module attributes {stable_mosaic.version = 11 : i64} {
  func.func @hdaf_kernel(%arg0: i32, %arg1: memref<1x128x128xf32, #tpu.memory_space<vmem>>, %arg2: memref<32x128xf32, #tpu.memory_space<vmem>>, %arg3: memref<512x128xf32, #tpu.memory_space<vmem>>, %arg4: memref<128x128xf32, #tpu.memory_space<vmem>>, %arg5: memref<1x128xf32, #tpu.memory_space<vmem>>, %arg6: memref<1x128xf32, #tpu.memory_space<vmem>>, %arg7: memref<128x384xf32, #tpu.memory_space<vmem>>, %arg8: memref<1x384xf32, #tpu.memory_space<vmem>>, %arg9: memref<128x128xf32, #tpu.memory_space<vmem>>, %arg10: memref<1x128xf32, #tpu.memory_space<vmem>>, %arg11: memref<1x128x128xf32, #tpu.memory_space<vmem>>, %arg12: memref<128x384xf32, #tpu.memory_space<vmem>>, %arg13: memref<128x128xf32, #tpu.memory_space<vmem>>) attributes {dimension_semantics = [#tpu.dimension_semantics<parallel>], iteration_bounds = array<i64: 2>, scalar_prefetch = 0 : i64, scratch_operands = 2 : i64, tpu.core_type = #tpu.core_type<tc>, window_params = [{transform_indices = @transform_0, window_bounds = array<i64: 1, 128, 128>}, {pipeline_mode = #tpu.pipeline_mode<synchronous>, transform_indices = @transform_1, window_bounds = array<i64: 32, 128>}, {pipeline_mode = #tpu.pipeline_mode<synchronous>, transform_indices = @transform_2, window_bounds = array<i64: 512, 128>}, {pipeline_mode = #tpu.pipeline_mode<synchronous>, transform_indices = @transform_3, window_bounds = array<i64: 128, 128>}, {pipeline_mode = #tpu.pipeline_mode<synchronous>, transform_indices = @transform_4, window_bounds = array<i64: 1, 128>}, {pipeline_mode = #tpu.pipeline_mode<synchronous>, transform_indices = @transform_5, window_bounds = array<i64: 1, 128>}, {pipeline_mode = #tpu.pipeline_mode<synchronous>, transform_indices = @transform_6, window_bounds = array<i64: 128, 384>}, {pipeline_mode = #tpu.pipeline_mode<synchronous>, transform_indices = @transform_7, window_bounds = array<i64: 1, 384>}, {pipeline_mode = #tpu.pipeline_mode<synchronous>, transform_indices = @transform_8, window_bounds = array<i64: 128, 128>}, {pipeline_mode = #tpu.pipeline_mode<synchronous>, transform_indices = @transform_9, window_bounds = array<i64: 1, 128>}, {transform_indices = @transform_10, window_bounds = array<i64: 1, 128, 128>}]} {
    %c0 = arith.constant 0 : index
    %c0_0 = arith.constant 0 : index
    %c0_1 = arith.constant 0 : index
    %0 = vector.load %arg1[%c0, %c0_0, %c0_1] : memref<1x128x128xf32, #tpu.memory_space<vmem>>, vector<1x128x128xf32>
    %1 = vector.shape_cast %0 : vector<1x128x128xf32> to vector<128x128xf32>
    %c0_2 = arith.constant 0 : index
    %c0_3 = arith.constant 0 : index
    %2 = vector.load %arg4[%c0_2, %c0_3] : memref<128x128xf32, #tpu.memory_space<vmem>>, vector<128x128xf32>
    %cst = arith.constant dense<0.000000e+00> : vector<128x128xf32>
    %3 = tpu.matmul %1, %2, %cst {dimension_numbers = #tpu.dot_dimension_numbers<[1], [0], [0], [1], [0, 0, 1, 1], [], []>} : vector<128x128xf32>, vector<128x128xf32>, vector<128x128xf32> -> vector<128x128xf32>
    %4 = arith.subf %1, %3 : vector<128x128xf32>
    %5 = arith.mulf %4, %4 : vector<128x128xf32>
    %cst_4 = arith.constant dense<0.000000e+00> : vector<128x128xf32>
    %6 = tpu.matmul %5, %2, %cst_4 {dimension_numbers = #tpu.dot_dimension_numbers<[1], [0], [0], [1], [0, 0, 1, 1], [], []>} : vector<128x128xf32>, vector<128x128xf32>, vector<128x128xf32> -> vector<128x128xf32>
    %cst_5 = arith.constant 9.99999974E-6 : f32
    %7 = vector.broadcast %cst_5 : f32 to vector<128x128xf32>
    %8 = arith.addf %6, %7 : vector<128x128xf32>
    %9 = math.rsqrt %8 : vector<128x128xf32>
    %10 = arith.mulf %4, %9 : vector<128x128xf32>
    %c0_6 = arith.constant 0 : index
    %c0_7 = arith.constant 0 : index
    %11 = vector.load %arg5[%c0_6, %c0_7] : memref<1x128xf32, #tpu.memory_space<vmem>>, vector<1x128xf32>
    %12 = vector.broadcast %11 : vector<1x128xf32> to vector<128x128xf32>
    %13 = arith.mulf %10, %12 : vector<128x128xf32>
    %c0_8 = arith.constant 0 : index
    %c0_9 = arith.constant 0 : index
    %14 = vector.load %arg6[%c0_8, %c0_9] : memref<1x128xf32, #tpu.memory_space<vmem>>, vector<1x128xf32>
    %15 = vector.broadcast %14 : vector<1x128xf32> to vector<128x128xf32>
    %16 = arith.addf %13, %15 : vector<128x128xf32>
    %c0_10 = arith.constant 0 : index
    %c0_11 = arith.constant 0 : index
    %17 = vector.load %arg7[%c0_10, %c0_11] : memref<128x384xf32, #tpu.memory_space<vmem>>, vector<128x384xf32>
    %cst_12 = arith.constant dense<0.000000e+00> : vector<128x384xf32>
    %18 = tpu.matmul %16, %17, %cst_12 {dimension_numbers = #tpu.dot_dimension_numbers<[1], [0], [0], [1], [0, 0, 1, 1], [], []>} : vector<128x128xf32>, vector<128x384xf32>, vector<128x384xf32> -> vector<128x384xf32>
    %c0_13 = arith.constant 0 : index
    %c0_14 = arith.constant 0 : index
    %19 = vector.load %arg8[%c0_13, %c0_14] : memref<1x384xf32, #tpu.memory_space<vmem>>, vector<1x384xf32>
    %20 = vector.broadcast %19 : vector<1x384xf32> to vector<128x384xf32>
    %21 = arith.addf %18, %20 : vector<128x384xf32>
    %c0_15 = arith.constant 0 : index
    %c0_16 = arith.constant 0 : index
    %22 = vector.load %arg12[%c0_15, %c0_16] : memref<128x384xf32, #tpu.memory_space<vmem>>, vector<128x384xf32>
    tpu.vector_store %arg12[%c0_15, %c0_16], %21 {strides = array<i32>} : memref<128x384xf32, #tpu.memory_space<vmem>>, vector<128x384xf32>,
    %c0_17 = arith.constant 0 : index
    %c0_18 = arith.constant 0 : index
    %23 = vector.load %arg2[%c0_17, %c0_18] : memref<32x128xf32, #tpu.memory_space<vmem>>, vector<32x128xf32>
    %c0_19 = arith.constant 0 : index
    %c0_20 = arith.constant 0 : index
    %24 = vector.load %arg3[%c0_19, %c0_20] : memref<512x128xf32, #tpu.memory_space<vmem>>, vector<512x128xf32>
    %c0_i32 = arith.constant 0 : i32
    %c16_i32 = arith.constant 16 : i32
    %25 = arith.muli %c0_i32, %c16_i32 : i32
    %26 = tpu.assume_multiple %25, 16 : i32
    %27 = arith.index_cast %26 : i32 to index
    %c0_21 = arith.constant 0 : index
    %28 = vector.load %arg12[%27, %c0_21] : memref<128x384xf32, #tpu.memory_space<vmem>>, vector<16x384xf32>
    %29 = vector.extract_strided_slice %28 {offsets = [0, 0], sizes = [16, 128], strides = [1, 1]} : vector<16x384xf32> to vector<16x128xf32>
    %30 = vector.extract_strided_slice %28 {offsets = [0, 128], sizes = [16, 128], strides = [1, 1]} : vector<16x384xf32> to vector<16x128xf32>
    %31 = vector.extract_strided_slice %28 {offsets = [0, 256], sizes = [16, 128], strides = [1, 1]} : vector<16x384xf32> to vector<16x128xf32>
    %32 = vector.shape_cast %23 : vector<32x128xf32> to vector<32x1x128xf32>
    %33 = vector.shape_cast %30 : vector<16x128xf32> to vector<1x16x128xf32>
    %34 = vector.broadcast %32 : vector<32x1x128xf32> to vector<32x16x128xf32>
    %35 = vector.broadcast %33 : vector<1x16x128xf32> to vector<32x16x128xf32>
    %36 = arith.mulf %34, %35 : vector<32x16x128xf32>
    %37 = vector.shape_cast %36 : vector<32x16x128xf32> to vector<512x128xf32>
    %38 = vector.shape_cast %23 : vector<32x128xf32> to vector<32x1x128xf32>
    %39 = vector.shape_cast %31 : vector<16x128xf32> to vector<1x16x128xf32>
    %40 = vector.broadcast %38 : vector<32x1x128xf32> to vector<32x16x128xf32>
    %41 = vector.broadcast %39 : vector<1x16x128xf32> to vector<32x16x128xf32>
    %42 = arith.mulf %40, %41 : vector<32x16x128xf32>
    %43 = vector.shape_cast %42 : vector<32x16x128xf32> to vector<512x128xf32>
    %cst_22 = arith.constant dense<0.000000e+00> : vector<16x512xf32>
    %44 = tpu.matmul %29, %37, %cst_22 {dimension_numbers = #tpu.dot_dimension_numbers<[1], [1], [0], [0], [0, 0, 1, 0], [], []>} : vector<16x128xf32>, vector<512x128xf32>, vector<16x512xf32> -> vector<16x512xf32>
    %cst_23 = arith.constant dense<0xFF800000> : vector<16xf32>
    %45 = vector.multi_reduction <maximumf>, %44, %cst_23 [1] : vector<16x512xf32> to vector<16xf32>
    %46 = vector.shape_cast %45 : vector<16xf32> to vector<16x1xf32>
    %47 = vector.broadcast %46 : vector<16x1xf32> to vector<16x512xf32>
    %48 = arith.subf %44, %47 : vector<16x512xf32>
    %49 = math.exp %48 : vector<16x512xf32>
    %cst_24 = arith.constant dense<0.000000e+00> : vector<16x128xf32>
    %50 = tpu.matmul %49, %24, %cst_24 {dimension_numbers = #tpu.dot_dimension_numbers<[1], [0], [0], [1], [0, 0, 1, 1], [], []>} : vector<16x512xf32>, vector<512x128xf32>, vector<16x128xf32> -> vector<16x128xf32>
    %cst_25 = arith.constant dense<0.000000e+00> : vector<16x128xf32>
    %51 = tpu.matmul %49, %43, %cst_25 {dimension_numbers = #tpu.dot_dimension_numbers<[1], [0], [0], [1], [0, 0, 1, 1], [], []>} : vector<16x512xf32>, vector<512x128xf32>, vector<16x128xf32> -> vector<16x128xf32>
    %cst_26 = arith.constant 1.000000e-30 : f32
    %52 = vector.broadcast %cst_26 : f32 to vector<16x128xf32>
    %53 = arith.maximumf %50, %52 : vector<16x128xf32>
    %54 = tpu.reciprocal %53 {approx = true} : vector<16x128xf32> -> vector<16x128xf32>
    %55 = arith.mulf %51, %54 : vector<16x128xf32>
    %56 = arith.index_cast %26 : i32 to index
    %c0_27 = arith.constant 0 : index
    %57 = vector.load %arg13[%56, %c0_27] : memref<128x128xf32, #tpu.memory_space<vmem>>, vector<16x128xf32>
    tpu.vector_store %arg13[%56, %c0_27], %55 {strides = array<i32>} : memref<128x128xf32, #tpu.memory_space<vmem>>, vector<16x128xf32>,
    %c1_i32 = arith.constant 1 : i32
    %c16_i32_28 = arith.constant 16 : i32
    %58 = arith.muli %c1_i32, %c16_i32_28 : i32
    %59 = tpu.assume_multiple %58, 16 : i32
    %60 = arith.index_cast %59 : i32 to index
    %c0_29 = arith.constant 0 : index
    %61 = vector.load %arg12[%60, %c0_29] : memref<128x384xf32, #tpu.memory_space<vmem>>, vector<16x384xf32>
    %62 = vector.extract_strided_slice %61 {offsets = [0, 0], sizes = [16, 128], strides = [1, 1]} : vector<16x384xf32> to vector<16x128xf32>
    %63 = vector.extract_strided_slice %61 {offsets = [0, 128], sizes = [16, 128], strides = [1, 1]} : vector<16x384xf32> to vector<16x128xf32>
    %64 = vector.extract_strided_slice %61 {offsets = [0, 256], sizes = [16, 128], strides = [1, 1]} : vector<16x384xf32> to vector<16x128xf32>
    %65 = vector.shape_cast %23 : vector<32x128xf32> to vector<32x1x128xf32>
    %66 = vector.shape_cast %63 : vector<16x128xf32> to vector<1x16x128xf32>
    %67 = vector.broadcast %65 : vector<32x1x128xf32> to vector<32x16x128xf32>
    %68 = vector.broadcast %66 : vector<1x16x128xf32> to vector<32x16x128xf32>
    %69 = arith.mulf %67, %68 : vector<32x16x128xf32>
    %70 = vector.shape_cast %69 : vector<32x16x128xf32> to vector<512x128xf32>
    %71 = vector.shape_cast %23 : vector<32x128xf32> to vector<32x1x128xf32>
    %72 = vector.shape_cast %64 : vector<16x128xf32> to vector<1x16x128xf32>
    %73 = vector.broadcast %71 : vector<32x1x128xf32> to vector<32x16x128xf32>
    %74 = vector.broadcast %72 : vector<1x16x128xf32> to vector<32x16x128xf32>
    %75 = arith.mulf %73, %74 : vector<32x16x128xf32>
    %76 = vector.shape_cast %75 : vector<32x16x128xf32> to vector<512x128xf32>
    %cst_30 = arith.constant dense<0.000000e+00> : vector<16x512xf32>
    %77 = tpu.matmul %62, %70, %cst_30 {dimension_numbers = #tpu.dot_dimension_numbers<[1], [1], [0], [0], [0, 0, 1, 0], [], []>} : vector<16x128xf32>, vector<512x128xf32>, vector<16x512xf32> -> vector<16x512xf32>
    %cst_31 = arith.constant dense<0xFF800000> : vector<16xf32>
    %78 = vector.multi_reduction <maximumf>, %77, %cst_31 [1] : vector<16x512xf32> to vector<16xf32>
    %79 = vector.shape_cast %78 : vector<16xf32> to vector<16x1xf32>
    %80 = vector.broadcast %79 : vector<16x1xf32> to vector<16x512xf32>
    %81 = arith.subf %77, %80 : vector<16x512xf32>
    %82 = math.exp %81 : vector<16x512xf32>
    %cst_32 = arith.constant dense<0.000000e+00> : vector<16x128xf32>
    %83 = tpu.matmul %82, %24, %cst_32 {dimension_numbers = #tpu.dot_dimension_numbers<[1], [0], [0], [1], [0, 0, 1, 1], [], []>} : vector<16x512xf32>, vector<512x128xf32>, vector<16x128xf32> -> vector<16x128xf32>
    %cst_33 = arith.constant dense<0.000000e+00> : vector<16x128xf32>
    %84 = tpu.matmul %82, %76, %cst_33 {dimension_numbers = #tpu.dot_dimension_numbers<[1], [0], [0], [1], [0, 0, 1, 1], [], []>} : vector<16x512xf32>, vector<512x128xf32>, vector<16x128xf32> -> vector<16x128xf32>
    %cst_34 = arith.constant 1.000000e-30 : f32
    %85 = vector.broadcast %cst_34 : f32 to vector<16x128xf32>
    %86 = arith.maximumf %83, %85 : vector<16x128xf32>
    %87 = tpu.reciprocal %86 {approx = true} : vector<16x128xf32> -> vector<16x128xf32>
    %88 = arith.mulf %84, %87 : vector<16x128xf32>
    %89 = arith.index_cast %59 : i32 to index
    %c0_35 = arith.constant 0 : index
    %90 = vector.load %arg13[%89, %c0_35] : memref<128x128xf32, #tpu.memory_space<vmem>>, vector<16x128xf32>
    tpu.vector_store %arg13[%89, %c0_35], %88 {strides = array<i32>} : memref<128x128xf32, #tpu.memory_space<vmem>>, vector<16x128xf32>,
    %c2_i32 = arith.constant 2 : i32
    %c16_i32_36 = arith.constant 16 : i32
    %91 = arith.muli %c2_i32, %c16_i32_36 : i32
    %92 = tpu.assume_multiple %91, 16 : i32
    %93 = arith.index_cast %92 : i32 to index
    %c0_37 = arith.constant 0 : index
    %94 = vector.load %arg12[%93, %c0_37] : memref<128x384xf32, #tpu.memory_space<vmem>>, vector<16x384xf32>
    %95 = vector.extract_strided_slice %94 {offsets = [0, 0], sizes = [16, 128], strides = [1, 1]} : vector<16x384xf32> to vector<16x128xf32>
    %96 = vector.extract_strided_slice %94 {offsets = [0, 128], sizes = [16, 128], strides = [1, 1]} : vector<16x384xf32> to vector<16x128xf32>
    %97 = vector.extract_strided_slice %94 {offsets = [0, 256], sizes = [16, 128], strides = [1, 1]} : vector<16x384xf32> to vector<16x128xf32>
    %98 = vector.shape_cast %23 : vector<32x128xf32> to vector<32x1x128xf32>
    %99 = vector.shape_cast %96 : vector<16x128xf32> to vector<1x16x128xf32>
    %100 = vector.broadcast %98 : vector<32x1x128xf32> to vector<32x16x128xf32>
    %101 = vector.broadcast %99 : vector<1x16x128xf32> to vector<32x16x128xf32>
    %102 = arith.mulf %100, %101 : vector<32x16x128xf32>
    %103 = vector.shape_cast %102 : vector<32x16x128xf32> to vector<512x128xf32>
    %104 = vector.shape_cast %23 : vector<32x128xf32> to vector<32x1x128xf32>
    %105 = vector.shape_cast %97 : vector<16x128xf32> to vector<1x16x128xf32>
    %106 = vector.broadcast %104 : vector<32x1x128xf32> to vector<32x16x128xf32>
    %107 = vector.broadcast %105 : vector<1x16x128xf32> to vector<32x16x128xf32>
    %108 = arith.mulf %106, %107 : vector<32x16x128xf32>
    %109 = vector.shape_cast %108 : vector<32x16x128xf32> to vector<512x128xf32>
    %cst_38 = arith.constant dense<0.000000e+00> : vector<16x512xf32>
    %110 = tpu.matmul %95, %103, %cst_38 {dimension_numbers = #tpu.dot_dimension_numbers<[1], [1], [0], [0], [0, 0, 1, 0], [], []>} : vector<16x128xf32>, vector<512x128xf32>, vector<16x512xf32> -> vector<16x512xf32>
    %cst_39 = arith.constant dense<0xFF800000> : vector<16xf32>
    %111 = vector.multi_reduction <maximumf>, %110, %cst_39 [1] : vector<16x512xf32> to vector<16xf32>
    %112 = vector.shape_cast %111 : vector<16xf32> to vector<16x1xf32>
    %113 = vector.broadcast %112 : vector<16x1xf32> to vector<16x512xf32>
    %114 = arith.subf %110, %113 : vector<16x512xf32>
    %115 = math.exp %114 : vector<16x512xf32>
    %cst_40 = arith.constant dense<0.000000e+00> : vector<16x128xf32>
    %116 = tpu.matmul %115, %24, %cst_40 {dimension_numbers = #tpu.dot_dimension_numbers<[1], [0], [0], [1], [0, 0, 1, 1], [], []>} : vector<16x512xf32>, vector<512x128xf32>, vector<16x128xf32> -> vector<16x128xf32>
    %cst_41 = arith.constant dense<0.000000e+00> : vector<16x128xf32>
    %117 = tpu.matmul %115, %109, %cst_41 {dimension_numbers = #tpu.dot_dimension_numbers<[1], [0], [0], [1], [0, 0, 1, 1], [], []>} : vector<16x512xf32>, vector<512x128xf32>, vector<16x128xf32> -> vector<16x128xf32>
    %cst_42 = arith.constant 1.000000e-30 : f32
    %118 = vector.broadcast %cst_42 : f32 to vector<16x128xf32>
    %119 = arith.maximumf %116, %118 : vector<16x128xf32>
    %120 = tpu.reciprocal %119 {approx = true} : vector<16x128xf32> -> vector<16x128xf32>
    %121 = arith.mulf %117, %120 : vector<16x128xf32>
    %122 = arith.index_cast %92 : i32 to index
    %c0_43 = arith.constant 0 : index
    %123 = vector.load %arg13[%122, %c0_43] : memref<128x128xf32, #tpu.memory_space<vmem>>, vector<16x128xf32>
    tpu.vector_store %arg13[%122, %c0_43], %121 {strides = array<i32>} : memref<128x128xf32, #tpu.memory_space<vmem>>, vector<16x128xf32>,
    %c3_i32 = arith.constant 3 : i32
    %c16_i32_44 = arith.constant 16 : i32
    %124 = arith.muli %c3_i32, %c16_i32_44 : i32
    %125 = tpu.assume_multiple %124, 16 : i32
    %126 = arith.index_cast %125 : i32 to index
    %c0_45 = arith.constant 0 : index
    %127 = vector.load %arg12[%126, %c0_45] : memref<128x384xf32, #tpu.memory_space<vmem>>, vector<16x384xf32>
    %128 = vector.extract_strided_slice %127 {offsets = [0, 0], sizes = [16, 128], strides = [1, 1]} : vector<16x384xf32> to vector<16x128xf32>
    %129 = vector.extract_strided_slice %127 {offsets = [0, 128], sizes = [16, 128], strides = [1, 1]} : vector<16x384xf32> to vector<16x128xf32>
    %130 = vector.extract_strided_slice %127 {offsets = [0, 256], sizes = [16, 128], strides = [1, 1]} : vector<16x384xf32> to vector<16x128xf32>
    %131 = vector.shape_cast %23 : vector<32x128xf32> to vector<32x1x128xf32>
    %132 = vector.shape_cast %129 : vector<16x128xf32> to vector<1x16x128xf32>
    %133 = vector.broadcast %131 : vector<32x1x128xf32> to vector<32x16x128xf32>
    %134 = vector.broadcast %132 : vector<1x16x128xf32> to vector<32x16x128xf32>
    %135 = arith.mulf %133, %134 : vector<32x16x128xf32>
    %136 = vector.shape_cast %135 : vector<32x16x128xf32> to vector<512x128xf32>
    %137 = vector.shape_cast %23 : vector<32x128xf32> to vector<32x1x128xf32>
    %138 = vector.shape_cast %130 : vector<16x128xf32> to vector<1x16x128xf32>
    %139 = vector.broadcast %137 : vector<32x1x128xf32> to vector<32x16x128xf32>
    %140 = vector.broadcast %138 : vector<1x16x128xf32> to vector<32x16x128xf32>
    %141 = arith.mulf %139, %140 : vector<32x16x128xf32>
    %142 = vector.shape_cast %141 : vector<32x16x128xf32> to vector<512x128xf32>
    %cst_46 = arith.constant dense<0.000000e+00> : vector<16x512xf32>
    %143 = tpu.matmul %128, %136, %cst_46 {dimension_numbers = #tpu.dot_dimension_numbers<[1], [1], [0], [0], [0, 0, 1, 0], [], []>} : vector<16x128xf32>, vector<512x128xf32>, vector<16x512xf32> -> vector<16x512xf32>
    %cst_47 = arith.constant dense<0xFF800000> : vector<16xf32>
    %144 = vector.multi_reduction <maximumf>, %143, %cst_47 [1] : vector<16x512xf32> to vector<16xf32>
    %145 = vector.shape_cast %144 : vector<16xf32> to vector<16x1xf32>
    %146 = vector.broadcast %145 : vector<16x1xf32> to vector<16x512xf32>
    %147 = arith.subf %143, %146 : vector<16x512xf32>
    %148 = math.exp %147 : vector<16x512xf32>
    %cst_48 = arith.constant dense<0.000000e+00> : vector<16x128xf32>
    %149 = tpu.matmul %148, %24, %cst_48 {dimension_numbers = #tpu.dot_dimension_numbers<[1], [0], [0], [1], [0, 0, 1, 1], [], []>} : vector<16x512xf32>, vector<512x128xf32>, vector<16x128xf32> -> vector<16x128xf32>
    %cst_49 = arith.constant dense<0.000000e+00> : vector<16x128xf32>
    %150 = tpu.matmul %148, %142, %cst_49 {dimension_numbers = #tpu.dot_dimension_numbers<[1], [0], [0], [1], [0, 0, 1, 1], [], []>} : vector<16x512xf32>, vector<512x128xf32>, vector<16x128xf32> -> vector<16x128xf32>
    %cst_50 = arith.constant 1.000000e-30 : f32
    %151 = vector.broadcast %cst_50 : f32 to vector<16x128xf32>
    %152 = arith.maximumf %149, %151 : vector<16x128xf32>
    %153 = tpu.reciprocal %152 {approx = true} : vector<16x128xf32> -> vector<16x128xf32>
    %154 = arith.mulf %150, %153 : vector<16x128xf32>
    %155 = arith.index_cast %125 : i32 to index
    %c0_51 = arith.constant 0 : index
    %156 = vector.load %arg13[%155, %c0_51] : memref<128x128xf32, #tpu.memory_space<vmem>>, vector<16x128xf32>
    tpu.vector_store %arg13[%155, %c0_51], %154 {strides = array<i32>} : memref<128x128xf32, #tpu.memory_space<vmem>>, vector<16x128xf32>,
    %c4_i32 = arith.constant 4 : i32
    %c16_i32_52 = arith.constant 16 : i32
    %157 = arith.muli %c4_i32, %c16_i32_52 : i32
    %158 = tpu.assume_multiple %157, 16 : i32
    %159 = arith.index_cast %158 : i32 to index
    %c0_53 = arith.constant 0 : index
    %160 = vector.load %arg12[%159, %c0_53] : memref<128x384xf32, #tpu.memory_space<vmem>>, vector<16x384xf32>
    %161 = vector.extract_strided_slice %160 {offsets = [0, 0], sizes = [16, 128], strides = [1, 1]} : vector<16x384xf32> to vector<16x128xf32>
    %162 = vector.extract_strided_slice %160 {offsets = [0, 128], sizes = [16, 128], strides = [1, 1]} : vector<16x384xf32> to vector<16x128xf32>
    %163 = vector.extract_strided_slice %160 {offsets = [0, 256], sizes = [16, 128], strides = [1, 1]} : vector<16x384xf32> to vector<16x128xf32>
    %164 = vector.shape_cast %23 : vector<32x128xf32> to vector<32x1x128xf32>
    %165 = vector.shape_cast %162 : vector<16x128xf32> to vector<1x16x128xf32>
    %166 = vector.broadcast %164 : vector<32x1x128xf32> to vector<32x16x128xf32>
    %167 = vector.broadcast %165 : vector<1x16x128xf32> to vector<32x16x128xf32>
    %168 = arith.mulf %166, %167 : vector<32x16x128xf32>
    %169 = vector.shape_cast %168 : vector<32x16x128xf32> to vector<512x128xf32>
    %170 = vector.shape_cast %23 : vector<32x128xf32> to vector<32x1x128xf32>
    %171 = vector.shape_cast %163 : vector<16x128xf32> to vector<1x16x128xf32>
    %172 = vector.broadcast %170 : vector<32x1x128xf32> to vector<32x16x128xf32>
    %173 = vector.broadcast %171 : vector<1x16x128xf32> to vector<32x16x128xf32>
    %174 = arith.mulf %172, %173 : vector<32x16x128xf32>
    %175 = vector.shape_cast %174 : vector<32x16x128xf32> to vector<512x128xf32>
    %cst_54 = arith.constant dense<0.000000e+00> : vector<16x512xf32>
    %176 = tpu.matmul %161, %169, %cst_54 {dimension_numbers = #tpu.dot_dimension_numbers<[1], [1], [0], [0], [0, 0, 1, 0], [], []>} : vector<16x128xf32>, vector<512x128xf32>, vector<16x512xf32> -> vector<16x512xf32>
    %cst_55 = arith.constant dense<0xFF800000> : vector<16xf32>
    %177 = vector.multi_reduction <maximumf>, %176, %cst_55 [1] : vector<16x512xf32> to vector<16xf32>
    %178 = vector.shape_cast %177 : vector<16xf32> to vector<16x1xf32>
    %179 = vector.broadcast %178 : vector<16x1xf32> to vector<16x512xf32>
    %180 = arith.subf %176, %179 : vector<16x512xf32>
    %181 = math.exp %180 : vector<16x512xf32>
    %cst_56 = arith.constant dense<0.000000e+00> : vector<16x128xf32>
    %182 = tpu.matmul %181, %24, %cst_56 {dimension_numbers = #tpu.dot_dimension_numbers<[1], [0], [0], [1], [0, 0, 1, 1], [], []>} : vector<16x512xf32>, vector<512x128xf32>, vector<16x128xf32> -> vector<16x128xf32>
    %cst_57 = arith.constant dense<0.000000e+00> : vector<16x128xf32>
    %183 = tpu.matmul %181, %175, %cst_57 {dimension_numbers = #tpu.dot_dimension_numbers<[1], [0], [0], [1], [0, 0, 1, 1], [], []>} : vector<16x512xf32>, vector<512x128xf32>, vector<16x128xf32> -> vector<16x128xf32>
    %cst_58 = arith.constant 1.000000e-30 : f32
    %184 = vector.broadcast %cst_58 : f32 to vector<16x128xf32>
    %185 = arith.maximumf %182, %184 : vector<16x128xf32>
    %186 = tpu.reciprocal %185 {approx = true} : vector<16x128xf32> -> vector<16x128xf32>
    %187 = arith.mulf %183, %186 : vector<16x128xf32>
    %188 = arith.index_cast %158 : i32 to index
    %c0_59 = arith.constant 0 : index
    %189 = vector.load %arg13[%188, %c0_59] : memref<128x128xf32, #tpu.memory_space<vmem>>, vector<16x128xf32>
    tpu.vector_store %arg13[%188, %c0_59], %187 {strides = array<i32>} : memref<128x128xf32, #tpu.memory_space<vmem>>, vector<16x128xf32>,
    %c5_i32 = arith.constant 5 : i32
    %c16_i32_60 = arith.constant 16 : i32
    %190 = arith.muli %c5_i32, %c16_i32_60 : i32
    %191 = tpu.assume_multiple %190, 16 : i32
    %192 = arith.index_cast %191 : i32 to index
    %c0_61 = arith.constant 0 : index
    %193 = vector.load %arg12[%192, %c0_61] : memref<128x384xf32, #tpu.memory_space<vmem>>, vector<16x384xf32>
    %194 = vector.extract_strided_slice %193 {offsets = [0, 0], sizes = [16, 128], strides = [1, 1]} : vector<16x384xf32> to vector<16x128xf32>
    %195 = vector.extract_strided_slice %193 {offsets = [0, 128], sizes = [16, 128], strides = [1, 1]} : vector<16x384xf32> to vector<16x128xf32>
    %196 = vector.extract_strided_slice %193 {offsets = [0, 256], sizes = [16, 128], strides = [1, 1]} : vector<16x384xf32> to vector<16x128xf32>
    %197 = vector.shape_cast %23 : vector<32x128xf32> to vector<32x1x128xf32>
    %198 = vector.shape_cast %195 : vector<16x128xf32> to vector<1x16x128xf32>
    %199 = vector.broadcast %197 : vector<32x1x128xf32> to vector<32x16x128xf32>
    %200 = vector.broadcast %198 : vector<1x16x128xf32> to vector<32x16x128xf32>
    %201 = arith.mulf %199, %200 : vector<32x16x128xf32>
    %202 = vector.shape_cast %201 : vector<32x16x128xf32> to vector<512x128xf32>
    %203 = vector.shape_cast %23 : vector<32x128xf32> to vector<32x1x128xf32>
    %204 = vector.shape_cast %196 : vector<16x128xf32> to vector<1x16x128xf32>
    %205 = vector.broadcast %203 : vector<32x1x128xf32> to vector<32x16x128xf32>
    %206 = vector.broadcast %204 : vector<1x16x128xf32> to vector<32x16x128xf32>
    %207 = arith.mulf %205, %206 : vector<32x16x128xf32>
    %208 = vector.shape_cast %207 : vector<32x16x128xf32> to vector<512x128xf32>
    %cst_62 = arith.constant dense<0.000000e+00> : vector<16x512xf32>
    %209 = tpu.matmul %194, %202, %cst_62 {dimension_numbers = #tpu.dot_dimension_numbers<[1], [1], [0], [0], [0, 0, 1, 0], [], []>} : vector<16x128xf32>, vector<512x128xf32>, vector<16x512xf32> -> vector<16x512xf32>
    %cst_63 = arith.constant dense<0xFF800000> : vector<16xf32>
    %210 = vector.multi_reduction <maximumf>, %209, %cst_63 [1] : vector<16x512xf32> to vector<16xf32>
    %211 = vector.shape_cast %210 : vector<16xf32> to vector<16x1xf32>
    %212 = vector.broadcast %211 : vector<16x1xf32> to vector<16x512xf32>
    %213 = arith.subf %209, %212 : vector<16x512xf32>
    %214 = math.exp %213 : vector<16x512xf32>
    %cst_64 = arith.constant dense<0.000000e+00> : vector<16x128xf32>
    %215 = tpu.matmul %214, %24, %cst_64 {dimension_numbers = #tpu.dot_dimension_numbers<[1], [0], [0], [1], [0, 0, 1, 1], [], []>} : vector<16x512xf32>, vector<512x128xf32>, vector<16x128xf32> -> vector<16x128xf32>
    %cst_65 = arith.constant dense<0.000000e+00> : vector<16x128xf32>
    %216 = tpu.matmul %214, %208, %cst_65 {dimension_numbers = #tpu.dot_dimension_numbers<[1], [0], [0], [1], [0, 0, 1, 1], [], []>} : vector<16x512xf32>, vector<512x128xf32>, vector<16x128xf32> -> vector<16x128xf32>
    %cst_66 = arith.constant 1.000000e-30 : f32
    %217 = vector.broadcast %cst_66 : f32 to vector<16x128xf32>
    %218 = arith.maximumf %215, %217 : vector<16x128xf32>
    %219 = tpu.reciprocal %218 {approx = true} : vector<16x128xf32> -> vector<16x128xf32>
    %220 = arith.mulf %216, %219 : vector<16x128xf32>
    %221 = arith.index_cast %191 : i32 to index
    %c0_67 = arith.constant 0 : index
    %222 = vector.load %arg13[%221, %c0_67] : memref<128x128xf32, #tpu.memory_space<vmem>>, vector<16x128xf32>
    tpu.vector_store %arg13[%221, %c0_67], %220 {strides = array<i32>} : memref<128x128xf32, #tpu.memory_space<vmem>>, vector<16x128xf32>,
    %c6_i32 = arith.constant 6 : i32
    %c16_i32_68 = arith.constant 16 : i32
    %223 = arith.muli %c6_i32, %c16_i32_68 : i32
    %224 = tpu.assume_multiple %223, 16 : i32
    %225 = arith.index_cast %224 : i32 to index
    %c0_69 = arith.constant 0 : index
    %226 = vector.load %arg12[%225, %c0_69] : memref<128x384xf32, #tpu.memory_space<vmem>>, vector<16x384xf32>
    %227 = vector.extract_strided_slice %226 {offsets = [0, 0], sizes = [16, 128], strides = [1, 1]} : vector<16x384xf32> to vector<16x128xf32>
    %228 = vector.extract_strided_slice %226 {offsets = [0, 128], sizes = [16, 128], strides = [1, 1]} : vector<16x384xf32> to vector<16x128xf32>
    %229 = vector.extract_strided_slice %226 {offsets = [0, 256], sizes = [16, 128], strides = [1, 1]} : vector<16x384xf32> to vector<16x128xf32>
    %230 = vector.shape_cast %23 : vector<32x128xf32> to vector<32x1x128xf32>
    %231 = vector.shape_cast %228 : vector<16x128xf32> to vector<1x16x128xf32>
    %232 = vector.broadcast %230 : vector<32x1x128xf32> to vector<32x16x128xf32>
    %233 = vector.broadcast %231 : vector<1x16x128xf32> to vector<32x16x128xf32>
    %234 = arith.mulf %232, %233 : vector<32x16x128xf32>
    %235 = vector.shape_cast %234 : vector<32x16x128xf32> to vector<512x128xf32>
    %236 = vector.shape_cast %23 : vector<32x128xf32> to vector<32x1x128xf32>
    %237 = vector.shape_cast %229 : vector<16x128xf32> to vector<1x16x128xf32>
    %238 = vector.broadcast %236 : vector<32x1x128xf32> to vector<32x16x128xf32>
    %239 = vector.broadcast %237 : vector<1x16x128xf32> to vector<32x16x128xf32>
    %240 = arith.mulf %238, %239 : vector<32x16x128xf32>
    %241 = vector.shape_cast %240 : vector<32x16x128xf32> to vector<512x128xf32>
    %cst_70 = arith.constant dense<0.000000e+00> : vector<16x512xf32>
    %242 = tpu.matmul %227, %235, %cst_70 {dimension_numbers = #tpu.dot_dimension_numbers<[1], [1], [0], [0], [0, 0, 1, 0], [], []>} : vector<16x128xf32>, vector<512x128xf32>, vector<16x512xf32> -> vector<16x512xf32>
    %cst_71 = arith.constant dense<0xFF800000> : vector<16xf32>
    %243 = vector.multi_reduction <maximumf>, %242, %cst_71 [1] : vector<16x512xf32> to vector<16xf32>
    %244 = vector.shape_cast %243 : vector<16xf32> to vector<16x1xf32>
    %245 = vector.broadcast %244 : vector<16x1xf32> to vector<16x512xf32>
    %246 = arith.subf %242, %245 : vector<16x512xf32>
    %247 = math.exp %246 : vector<16x512xf32>
    %cst_72 = arith.constant dense<0.000000e+00> : vector<16x128xf32>
    %248 = tpu.matmul %247, %24, %cst_72 {dimension_numbers = #tpu.dot_dimension_numbers<[1], [0], [0], [1], [0, 0, 1, 1], [], []>} : vector<16x512xf32>, vector<512x128xf32>, vector<16x128xf32> -> vector<16x128xf32>
    %cst_73 = arith.constant dense<0.000000e+00> : vector<16x128xf32>
    %249 = tpu.matmul %247, %241, %cst_73 {dimension_numbers = #tpu.dot_dimension_numbers<[1], [0], [0], [1], [0, 0, 1, 1], [], []>} : vector<16x512xf32>, vector<512x128xf32>, vector<16x128xf32> -> vector<16x128xf32>
    %cst_74 = arith.constant 1.000000e-30 : f32
    %250 = vector.broadcast %cst_74 : f32 to vector<16x128xf32>
    %251 = arith.maximumf %248, %250 : vector<16x128xf32>
    %252 = tpu.reciprocal %251 {approx = true} : vector<16x128xf32> -> vector<16x128xf32>
    %253 = arith.mulf %249, %252 : vector<16x128xf32>
    %254 = arith.index_cast %224 : i32 to index
    %c0_75 = arith.constant 0 : index
    %255 = vector.load %arg13[%254, %c0_75] : memref<128x128xf32, #tpu.memory_space<vmem>>, vector<16x128xf32>
    tpu.vector_store %arg13[%254, %c0_75], %253 {strides = array<i32>} : memref<128x128xf32, #tpu.memory_space<vmem>>, vector<16x128xf32>,
    %c7_i32 = arith.constant 7 : i32
    %c16_i32_76 = arith.constant 16 : i32
    %256 = arith.muli %c7_i32, %c16_i32_76 : i32
    %257 = tpu.assume_multiple %256, 16 : i32
    %258 = arith.index_cast %257 : i32 to index
    %c0_77 = arith.constant 0 : index
    %259 = vector.load %arg12[%258, %c0_77] : memref<128x384xf32, #tpu.memory_space<vmem>>, vector<16x384xf32>
    %260 = vector.extract_strided_slice %259 {offsets = [0, 0], sizes = [16, 128], strides = [1, 1]} : vector<16x384xf32> to vector<16x128xf32>
    %261 = vector.extract_strided_slice %259 {offsets = [0, 128], sizes = [16, 128], strides = [1, 1]} : vector<16x384xf32> to vector<16x128xf32>
    %262 = vector.extract_strided_slice %259 {offsets = [0, 256], sizes = [16, 128], strides = [1, 1]} : vector<16x384xf32> to vector<16x128xf32>
    %263 = vector.shape_cast %23 : vector<32x128xf32> to vector<32x1x128xf32>
    %264 = vector.shape_cast %261 : vector<16x128xf32> to vector<1x16x128xf32>
    %265 = vector.broadcast %263 : vector<32x1x128xf32> to vector<32x16x128xf32>
    %266 = vector.broadcast %264 : vector<1x16x128xf32> to vector<32x16x128xf32>
    %267 = arith.mulf %265, %266 : vector<32x16x128xf32>
    %268 = vector.shape_cast %267 : vector<32x16x128xf32> to vector<512x128xf32>
    %269 = vector.shape_cast %23 : vector<32x128xf32> to vector<32x1x128xf32>
    %270 = vector.shape_cast %262 : vector<16x128xf32> to vector<1x16x128xf32>
    %271 = vector.broadcast %269 : vector<32x1x128xf32> to vector<32x16x128xf32>
    %272 = vector.broadcast %270 : vector<1x16x128xf32> to vector<32x16x128xf32>
    %273 = arith.mulf %271, %272 : vector<32x16x128xf32>
    %274 = vector.shape_cast %273 : vector<32x16x128xf32> to vector<512x128xf32>
    %cst_78 = arith.constant dense<0.000000e+00> : vector<16x512xf32>
    %275 = tpu.matmul %260, %268, %cst_78 {dimension_numbers = #tpu.dot_dimension_numbers<[1], [1], [0], [0], [0, 0, 1, 0], [], []>} : vector<16x128xf32>, vector<512x128xf32>, vector<16x512xf32> -> vector<16x512xf32>
    %cst_79 = arith.constant dense<0xFF800000> : vector<16xf32>
    %276 = vector.multi_reduction <maximumf>, %275, %cst_79 [1] : vector<16x512xf32> to vector<16xf32>
    %277 = vector.shape_cast %276 : vector<16xf32> to vector<16x1xf32>
    %278 = vector.broadcast %277 : vector<16x1xf32> to vector<16x512xf32>
    %279 = arith.subf %275, %278 : vector<16x512xf32>
    %280 = math.exp %279 : vector<16x512xf32>
    %cst_80 = arith.constant dense<0.000000e+00> : vector<16x128xf32>
    %281 = tpu.matmul %280, %24, %cst_80 {dimension_numbers = #tpu.dot_dimension_numbers<[1], [0], [0], [1], [0, 0, 1, 1], [], []>} : vector<16x512xf32>, vector<512x128xf32>, vector<16x128xf32> -> vector<16x128xf32>
    %cst_81 = arith.constant dense<0.000000e+00> : vector<16x128xf32>
    %282 = tpu.matmul %280, %274, %cst_81 {dimension_numbers = #tpu.dot_dimension_numbers<[1], [0], [0], [1], [0, 0, 1, 1], [], []>} : vector<16x512xf32>, vector<512x128xf32>, vector<16x128xf32> -> vector<16x128xf32>
    %cst_82 = arith.constant 1.000000e-30 : f32
    %283 = vector.broadcast %cst_82 : f32 to vector<16x128xf32>
    %284 = arith.maximumf %281, %283 : vector<16x128xf32>
    %285 = tpu.reciprocal %284 {approx = true} : vector<16x128xf32> -> vector<16x128xf32>
    %286 = arith.mulf %282, %285 : vector<16x128xf32>
    %287 = arith.index_cast %257 : i32 to index
    %c0_83 = arith.constant 0 : index
    %288 = vector.load %arg13[%287, %c0_83] : memref<128x128xf32, #tpu.memory_space<vmem>>, vector<16x128xf32>
    tpu.vector_store %arg13[%287, %c0_83], %286 {strides = array<i32>} : memref<128x128xf32, #tpu.memory_space<vmem>>, vector<16x128xf32>,
    %c8_i32 = arith.constant 8 : i32
    %c0_84 = arith.constant 0 : index
    %c0_85 = arith.constant 0 : index
    %289 = vector.load %arg13[%c0_84, %c0_85] : memref<128x128xf32, #tpu.memory_space<vmem>>, vector<128x128xf32>
    %c0_86 = arith.constant 0 : index
    %c0_87 = arith.constant 0 : index
    %290 = vector.load %arg9[%c0_86, %c0_87] : memref<128x128xf32, #tpu.memory_space<vmem>>, vector<128x128xf32>
    %cst_88 = arith.constant dense<0.000000e+00> : vector<128x128xf32>
    %291 = tpu.matmul %289, %290, %cst_88 {dimension_numbers = #tpu.dot_dimension_numbers<[1], [0], [0], [1], [0, 0, 1, 1], [], []>} : vector<128x128xf32>, vector<128x128xf32>, vector<128x128xf32> -> vector<128x128xf32>
    %c0_89 = arith.constant 0 : index
    %c0_90 = arith.constant 0 : index
    %292 = vector.load %arg10[%c0_89, %c0_90] : memref<1x128xf32, #tpu.memory_space<vmem>>, vector<1x128xf32>
    %293 = vector.broadcast %292 : vector<1x128xf32> to vector<128x128xf32>
    %294 = arith.addf %291, %293 : vector<128x128xf32>
    %295 = arith.addf %1, %294 : vector<128x128xf32>
    %c0_91 = arith.constant 0 : index
    %c0_92 = arith.constant 0 : index
    %c0_93 = arith.constant 0 : index
    %296 = vector.load %arg11[%c0_91, %c0_92, %c0_93] : memref<1x128x128xf32, #tpu.memory_space<vmem>>, vector<1x128x128xf32>
    %297 = vector.shape_cast %296 : vector<1x128x128xf32> to vector<128x128xf32>
    %298 = vector.shape_cast %295 : vector<128x128xf32> to vector<1x128x128xf32>
    tpu.vector_store %arg11[%c0_91, %c0_92, %c0_93], %298 {strides = array<i32>} : memref<1x128x128xf32, #tpu.memory_space<vmem>>, vector<1x128x128xf32>,
    return
  }
  func.func @transform_0(%arg0: i32) -> (i32, i32, i32) {
    %c0_i32 = arith.constant 0 : i32
    %c0_i32_0 = arith.constant 0 : i32
    %c0_i32_1 = arith.constant 0 : i32
    return %arg0, %c0_i32, %c0_i32_0 : i32, i32, i32
  }
  func.func @transform_1(%arg0: i32) -> (i32, i32) {
    %c0_i32 = arith.constant 0 : i32
    %c0_i32_0 = arith.constant 0 : i32
    %c0_i32_1 = arith.constant 0 : i32
    return %c0_i32, %c0_i32_0 : i32, i32
  }
  func.func @transform_2(%arg0: i32) -> (i32, i32) {
    %c0_i32 = arith.constant 0 : i32
    %c0_i32_0 = arith.constant 0 : i32
    %c0_i32_1 = arith.constant 0 : i32
    return %c0_i32, %c0_i32_0 : i32, i32
  }
  func.func @transform_3(%arg0: i32) -> (i32, i32) {
    %c0_i32 = arith.constant 0 : i32
    %c0_i32_0 = arith.constant 0 : i32
    %c0_i32_1 = arith.constant 0 : i32
    return %c0_i32, %c0_i32_0 : i32, i32
  }
  func.func @transform_4(%arg0: i32) -> (i32, i32) {
    %c0_i32 = arith.constant 0 : i32
    %c0_i32_0 = arith.constant 0 : i32
    %c0_i32_1 = arith.constant 0 : i32
    return %c0_i32, %c0_i32_0 : i32, i32
  }
  func.func @transform_5(%arg0: i32) -> (i32, i32) {
    %c0_i32 = arith.constant 0 : i32
    %c0_i32_0 = arith.constant 0 : i32
    %c0_i32_1 = arith.constant 0 : i32
    return %c0_i32, %c0_i32_0 : i32, i32
  }
  func.func @transform_6(%arg0: i32) -> (i32, i32) {
    %c0_i32 = arith.constant 0 : i32
    %c0_i32_0 = arith.constant 0 : i32
    %c0_i32_1 = arith.constant 0 : i32
    return %c0_i32, %c0_i32_0 : i32, i32
  }
  func.func @transform_7(%arg0: i32) -> (i32, i32) {
    %c0_i32 = arith.constant 0 : i32
    %c0_i32_0 = arith.constant 0 : i32
    %c0_i32_1 = arith.constant 0 : i32
    return %c0_i32, %c0_i32_0 : i32, i32
  }
  func.func @transform_8(%arg0: i32) -> (i32, i32) {
    %c0_i32 = arith.constant 0 : i32
    %c0_i32_0 = arith.constant 0 : i32
    %c0_i32_1 = arith.constant 0 : i32
    return %c0_i32, %c0_i32_0 : i32, i32
  }
  func.func @transform_9(%arg0: i32) -> (i32, i32) {
    %c0_i32 = arith.constant 0 : i32
    %c0_i32_0 = arith.constant 0 : i32
    %c0_i32_1 = arith.constant 0 : i32
    return %c0_i32, %c0_i32_0 : i32, i32
  }
  func.func @transform_10(%arg0: i32) -> (i32, i32, i32) {
    %c0_i32 = arith.constant 0 : i32
    %c0_i32_0 = arith.constant 0 : i32
    %c0_i32_1 = arith.constant 0 : i32
    return %arg0, %c0_i32, %c0_i32_0 : i32, i32, i32
  }
}

</mosaic_0001>

<bundles_post_ra>
// kernel: tile.33
= control target key start
LH: loop header
LB: loop body
LE: loop exit
PB: predicated region body
PF: predicated region fallthrough
CT: control target
= control target key end

     0   :  { %s22_s0 = inlined_call_operand.vmem [shape: f32[32], index: 0, kind: input, shape index: {}]   ;;  %s23_s1 = inlined_call_operand.vmem [shape: f32[4,32], index: 1, kind: output, shape index: {}]  }
   0x1   :  { %v4_v0 = vld [vmem:[%s22_s0] ss:$0 sm:$0xff] }
   0x2   :  { %5 = vst [vmem:[%s23_s1] sm:$0xf] %v4_v0 }

// kernel: tile.34
= control target key start
LH: loop header
LB: loop body
LE: loop exit
PB: predicated region body
PF: predicated region fallthrough
CT: control target
= control target key end

     0   :  { %vm7_vm0 = vcmask 261120   ;;  %s37_s8 = smov 32   ;;  %s38_s9 = smov 64   ;;  %vm13_vm1 = vcmask 1048320   ;;  %vm19_vm2 = vcmask 785920   ;;  %vm25_vm3 = vcmask 523520   ;;  %s55_s0 = inlined_call_operand.vmem [shape: f32[4,32], index: 0, kind: input, shape index: {}]   ;;  %s56_s1 = inlined_call_operand.vmem [shape: f32[1,128], index: 1, kind: output, shape index: {}]  }
   0x1   :  { %v4_v0 = vld [vmem:[%s55_s0] sm:$0xf]  ;;  %s36_s0 = smov 96  }
   0x2   :  { %5 = vst [vmem:[#allocation1] sm:$0xf] %v4_v0 }
   0x9   :  { %v10_v1 = vld [vmem:[#allocation1 + $0x3] sm:$0x1]   ;;  %v22_v2 = vld [vmem:[#allocation1 + $0x1] sm:$0x1]   ;;  %v6_v3 = vld [vmem:[#allocation1] sm:$0x1]  }
   0xa   :  { %11 = vrot.lane.b32.xlu0 %v10_v1, %s36_s0  ;;  %23 = vrot.lane.b32.xlu1 %v22_v2, %s37_s8  ;;  %v16_v4 = vld [vmem:[#allocation1 + $0x2] sm:$0x1]   ;;  %8 = vst.msk [vmem:[#allocation0] sm:$0x1] %vm7_vm0, %v6_v3  }
   0xe   :  { %17 = vrot.lane.b32.xlu0 %v16_v4, %s38_s9 }
  0x7c   :  { %v12_v5 = vpop.permute.xlu0 %11   ;;  %v24_v6 = vpop.permute.xlu1 %23  }
  0x7d   :  { %14 = vst.msk [vmem:[#allocation0] sm:$0x1] %vm13_vm1, %v12_v5  }
  0x80   :  { %v18_v7 = vpop.permute.xlu0 %17  }
  0x81   :  { %20 = vst.msk [vmem:[#allocation0] sm:$0x1] %vm19_vm2, %v18_v7  }
  0x82   :  { %26 = vst.msk [vmem:[#allocation0] sm:$0x1] %vm25_vm3, %v24_v6  }
  0x89   :  { %v30_v8 = vld [vmem:[#allocation0] sm:$0x1] }
  0x8a   :  { %32 = vst [vmem:[%s56_s1] sm:$0x1] %v30_v8 }

// kernel: hdaf_forward.1
= control target key start
LH: loop header
LB: loop body
LE: loop exit
PB: predicated region body
PF: predicated region fallthrough
CT: control target
= control target key end

     0   :  { %s11131_s13 = smov 0   ;;  %s19225_s0 = inlined_call_operand.vmem [shape: f32[2,128,128], index: 0, kind: input, shape index: {}]   ;;  %s19226_s1 = inlined_call_operand.vmem [shape: f32[32,128], index: 1, kind: input, shape index: {}]   ;;  %s19227_s2 = inlined_call_operand.vmem [shape: f32[512,128], index: 2, kind: input, shape index: {}]   ;;  %s19228_s3 = inlined_call_operand.vmem [shape: f32[128,128], index: 3, kind: input, shape index: {}]   ;;  %s19229_s4 = inlined_call_operand.vmem [shape: f32[1,128], index: 4, kind: input, shape index: {}]   ;;  %s19230_s5 = inlined_call_operand.vmem [shape: f32[1,128], index: 5, kind: input, shape index: {}]   ;;  %s19231_s6 = inlined_call_operand.vmem [shape: f32[128,384], index: 6, kind: input, shape index: {}]   ;;  %s19232_s7 = inlined_call_operand.vmem [shape: f32[1,384], index: 7, kind: input, shape index: {}]   ;;  %s19233_s8 = inlined_call_operand.vmem [shape: f32[128,128], index: 8, kind: input, shape index: {}]   ;;  %s19234_s9 = inlined_call_operand.vmem [shape: f32[1,128], index: 9, kind: input, shape index: {}]   ;;  %s19235_s10 = inlined_call_operand.vmem [shape: f32[2,128,128], index: 10, kind: output, shape index: {}]  }
   0x1 LB: > { %s6988_s14 = sadd.s32 4294967295, %s11072_s13   ;;  %p6992_p0 = scmp.ge.s32.totalorder %s11072_s13, 1  ;;  %s11072_s13 = sphi %s11131_s13, %s20_s13  }
   0x2   : > { %p312_p1 = scmp.lt.s32.totalorder %s11072_s13, 3 }
   0x4   : > { %p313_p2 = pnand %p6992_p0, %p312_p1 }
   0x6   : > { %316 = sbr.rel (%p313_p2) target bundleno = 5071 (0x13cf), region = 60 }
   0xd   : > { %v376_v0 = vld [vmem:[%s19228_s3] sm:$0xff]  ;;  %v377_v1 = vld [vmem:[%s19228_s3 + $0x8] sm:$0xff]  ;;  %v378_v2 = vld [vmem:[%s19228_s3 + $0x10] sm:$0xff]  ;;  %p350_p3 = scmp.lt.s32.totalorder %s6988_s14, 1 }
   0xe   : > { %v9148_v3 = vpack.c.bf16 %v377_v1, %v376_v0  ;;  %v379_v4 = vld [vmem:[%s19228_s3 + $0x18] sm:$0xff]  ;;  %v380_v6 = vld [vmem:[%s19228_s3 + $0x20] sm:$0xff]  ;;  %v381_v7 = vld [vmem:[%s19228_s3 + $0x28] sm:$0xff] }
   0xf   : > { %v9152_v5 = vpack.c.bf16 %v379_v4, %v378_v2  ;;  %s22952_s14 = smov (!%p350_p3, %s6988_s14), 1  ;;  %v9156_v8 = vpack.c.bf16 %v381_v7, %v380_v6  ;;  %v382_v9 = vld [vmem:[%s19228_s3 + $0x30] sm:$0xff]  ;;  %v383_v10 = vld [vmem:[%s19228_s3 + $0x38] sm:$0xff]  ;;  %v384_v13 = vld [vmem:[%s19228_s3 + $0x40] sm:$0xff] }
  0x10   : > { %9149 = vmatprep.subr.bf16.mxu1 %v9148_v3  ;;  %s7002_s27 = sshll.u32 %s22952_s14, 7  ;;  %v9160_v12 = vpack.c.bf16 %v383_v10, %v382_v9  ;;  %v385_v14 = vld [vmem:[%s19228_s3 + $0x48] sm:$0xff]  ;;  %v386_v16 = vld [vmem:[%s19228_s3 + $0x50] sm:$0xff]  ;;  %v387_v17 = vld [vmem:[%s19228_s3 + $0x58] sm:$0xff] }
  0x11   : > { %9151 = vmatpush3.bf16.msra.mxu1 %v9148_v3  ;;  %s11165_s30 = scalar_lea.vmem %s19225_s0, %s7002_s27  ;;  %v9164_v15 = vpack.c.bf16 %v385_v14, %v384_v13  ;;  %v9168_v18 = vpack.c.bf16 %v387_v17, %v386_v16  ;;  %v388_v19 = vld [vmem:[%s19228_s3 + $0x60] sm:$0xff]  ;;  %v389_v20 = vld [vmem:[%s19228_s3 + $0x68] sm:$0xff]  ;;  %v390_v22 = vld [vmem:[%s19228_s3 + $0x70] sm:$0xff]  ;;  %s19173_s19 = scalar_lea.vmem %s19235_s10, %s7002_s27 }
  0x12   : > { %9153 = vmatprep.subr.bf16.mxu1 %v9152_v5  ;;  %v11174_v11 = vld [vmem:[%s11165_s30] sm:$0xff]  ;;  %v9172_v21 = vpack.c.bf16 %v389_v20, %v388_v19  ;;  %v391_v23 = vld [vmem:[%s19228_s3 + $0x78] sm:$0xff]  ;;  %v11202_v25 = vld [vmem:[%s11165_s30 + $0x8] sm:$0xff] }
  0x13   : > { %8956 = vmatprep.mubr.f32.mxu1 %v11174_v11  ;;  %v9176_v24 = vpack.c.bf16 %v391_v23, %v390_v22  ;;  %v11205_v26 = vld [vmem:[%s11165_s30 + $0x10] sm:$0xff]  ;;  %v11210_v27 = vld [vmem:[%s11165_s30 + $0x18] sm:$0xff]  ;;  %v11213_v28 = vld [vmem:[%s11165_s30 + $0x20] sm:$0xff] }
  0x14   : > { %v11218_v29 = vld [vmem:[%s11165_s30 + $0x28] sm:$0xff]  ;;  %v11221_v30 = vld [vmem:[%s11165_s30 + $0x30] sm:$0xff]  ;;  %v11226_v31 = vld [vmem:[%s11165_s30 + $0x38] sm:$0xff] }
  0x15   : > { %9155 = vmatpush3.bf16.msra.mxu1 %v9152_v5  ;;  %v11229_v32 = vld [vmem:[%s11165_s30 + $0x40] sm:$0xff]  ;;  %v11234_v33 = vld [vmem:[%s11165_s30 + $0x48] sm:$0xff]  ;;  %v11237_v34 = vld [vmem:[%s11165_s30 + $0x50] sm:$0xff] }
  0x16   : > { %9157 = vmatprep.subr.bf16.mxu1 %v9156_v8  ;;  %v11242_v35 = vld [vmem:[%s11165_s30 + $0x58] sm:$0xff]  ;;  %v11245_v36 = vld [vmem:[%s11165_s30 + $0x60] sm:$0xff]  ;;  %v11250_v37 = vld [vmem:[%s11165_s30 + $0x68] sm:$0xff] }
  0x17   : > { %v11253_v38 = vld [vmem:[%s11165_s30 + $0x70] sm:$0xff]  ;;  %v11258_v39 = vld [vmem:[%s11165_s30 + $0x78] sm:$0xff]  ;;  %v793_v40 = vld [vmem:[%s19231_s6 + $0x8] sm:$0xff] }
  0x18   : > { %v796_v41 = vld [vmem:[%s19231_s6 + $0x20] sm:$0xff]  ;;  %v795_v44 = vld [vmem:[%s19231_s6 + $0x18] sm:$0xff]  ;;  %v794_v45 = vld [vmem:[%s19231_s6 + $0x10] sm:$0xff] }
  0x19   : > { %9159 = vmatpush3.bf16.msra.mxu1 %v9156_v8  ;;  %v792_v42 = vld [vmem:[%s19231_s6] sm:$0xff]  ;;  %v9212_v43 = vpack.c.bf16 %v796_v41, %v793_v40  ;;  %v797_v46 = vld [vmem:[%s19231_s6 + $0x28] sm:$0xff]  ;;  %v799_v49 = vld [vmem:[%s19231_s6 + $0x38] sm:$0xff] }
  0x1a   : > { %9161 = vmatprep.subr.bf16.mxu1 %v9160_v12  ;;  %v9214_v47 = vpack.c.bf16 %v795_v44, %v792_v42  ;;  %v9244_v48 = vpack.c.bf16 %v797_v46, %v794_v45  ;;  %v802_v50 = vld [vmem:[%s19231_s6 + $0x50] sm:$0xff]  ;;  %v801_v53 = vld [vmem:[%s19231_s6 + $0x48] sm:$0xff]  ;;  %v808_v56 = vld [vmem:[%s19231_s6 + $0x80] sm:$0xff] }
  0x1b   : > { %v798_v51 = vld [vmem:[%s19231_s6 + $0x30] sm:$0xff]  ;;  %9213 = vmatprep.subr.bf16.mxu0 %v9212_v43  ;;  %v9216_v52 = vpack.c.bf16 %v802_v50, %v799_v49  ;;  %v805_v55 = vld [vmem:[%s19231_s6 + $0x68] sm:$0xff]  ;;  %v804_v58 = vld [vmem:[%s19231_s6 + $0x60] sm:$0xff] }
  0x1c   : > { %9215 = vmatpush1.bf16.msra.mxu0 %v9214_v47  ;;  %v9218_v54 = vpack.c.bf16 %v801_v53, %v798_v51  ;;  %v9220_v57 = vpack.c.bf16 %v808_v56, %v805_v55  ;;  %v807_v59 = vld [vmem:[%s19231_s6 + $0x78] sm:$0xff]  ;;  %v800_v1 = vld [vmem:[%s19231_s6 + $0x40] sm:$0xff]  ;;  %v806_v10 = vld [vmem:[%s19231_s6 + $0x70] sm:$0xff] }
  0x1d   : > { %9163 = vmatpush3.bf16.msra.mxu1 %v9160_v12  ;;  %9217 = vmatprep.subr.bf16.mxu0 %v9216_v52  ;;  %v9222_v60 = vpack.c.bf16 %v807_v59, %v804_v58  ;;  %v803_v2 = vld [vmem:[%s19231_s6 + $0x58] sm:$0xff]  ;;  %v813_v55 = vld [vmem:[%s19231_s6 + $0xa8] sm:$0xff]  ;;  %v812_v56 = vld [vmem:[%s19231_s6 + $0xa0] sm:$0xff] }
  0x1e   : > { %9165 = vmatprep.subr.bf16.mxu1 %v9164_v15  ;;  %v811_v53 = vld [vmem:[%s19231_s6 + $0x98] sm:$0xff] }
  0x1f   : > { %v815_v58 = vld [vmem:[%s19231_s6 + $0xb8] sm:$0xff] }
  0x20   : > { %9219 = vmatpush1.bf16.msra.mxu0 %v9218_v54  ;;  %v810_v54 = vld [vmem:[%s19231_s6 + $0x90] sm:$0xff]  ;;  %v9256_v59 = vpack.c.bf16 %v815_v58, %v812_v56 }
  0x21   : > { %9167 = vmatpush3.bf16.msra.mxu1 %v9164_v15  ;;  %9221 = vmatprep.subr.bf16.mxu0 %v9220_v57  ;;  %v9226_v57 = vpack.c.bf16 %v813_v55, %v810_v54 }
  0x22   : > { %9169 = vmatprep.subr.bf16.mxu1 %v9168_v18 }
  0x24   : > { %9223 = vmatpush1.bf16.msra.mxu0 %v9222_v60  ;;  %v817_v60 = vld [vmem:[%s19231_s6 + $0xc8] sm:$0xff] }
  0x25   : > { %9171 = vmatpush3.bf16.msra.mxu1 %v9168_v18 }
  0x26   : > { %9173 = vmatprep.subr.bf16.mxu1 %v9172_v21 }
  0x29   : > { %9175 = vmatpush3.bf16.msra.mxu1 %v9172_v21 }
  0x2a   : > { %9177 = vmatprep.subr.bf16.mxu1 %v9176_v24 }
  0x2d   : > { %9179 = vmatpush3.bf16.msra.mxu1 %v9176_v24 }
  0x2e   : > { %9181 = vmatprep.subr.bf16.mxu1 %v9148_v3 }
  0x30   : > { %8957 = vmatmul.mubr.f32.vlgmr.msra.gmra.mrb[0].mxu1 %v11202_v25 }
  0x31   : > { %8959 = vmatprep.mubr.f32.mxu1 %v11205_v26  ;;  %9183 = vmatpush3.bf16.msra.mxu1 %v9148_v3 }
  0x32   : > { %9185 = vmatprep.subr.bf16.mxu1 %v9152_v5 }
  0x34   : > { %8960 = vmatmul.mubr.f32.gmra.mrb[2].mxu1 %v11210_v27 }
  0x35   : > { %8962 = vmatprep.mubr.f32.mxu1 %v11213_v28  ;;  %9187 = vmatpush3.bf16.msra.mxu1 %v9152_v5 }
  0x36   : > { %9189 = vmatprep.subr.bf16.mxu1 %v9156_v8 }
  0x38   : > { %8963 = vmatmul.mubr.f32.gmra.mrb[4].mxu1 %v11218_v29 }
  0x39   : > { %8965 = vmatprep.mubr.f32.mxu1 %v11221_v30  ;;  %9191 = vmatpush3.bf16.msra.mxu1 %v9156_v8  ;;  %v9248_v8 = vpack.c.bf16 %v803_v2, %v800_v1  ;;  %v816_v1 = vld [vmem:[%s19231_s6 + $0xc0] sm:$0xff]  ;;  %v819_v2 = vld [vmem:[%s19231_s6 + $0xd8] sm:$0xff] }
  0x3a   : > { %9193 = vmatprep.subr.bf16.mxu1 %v9160_v12 }
  0x3c   : > { %8966 = vmatmul.mubr.f32.gmra.mrb[6].mxu1 %v11226_v31 }
  0x3d   : > { %8968 = vmatprep.mubr.f32.mxu1 %v11229_v32  ;;  %9195 = vmatpush3.bf16.msra.mxu1 %v9160_v12 }
  0x3e   : > { %9197 = vmatprep.subr.bf16.mxu1 %v9164_v15 }
  0x40   : > { %8969 = vmatmul.mubr.f32.gmra.mrb[8].mxu1 %v11234_v33 }
  0x41   : > { %8971 = vmatprep.mubr.f32.mxu1 %v11237_v34  ;;  %9199 = vmatpush3.bf16.msra.mxu1 %v9164_v15 }
  0x42   : > { %9201 = vmatprep.subr.bf16.mxu1 %v9168_v18 }
  0x44   : > { %8972 = vmatmul.mubr.f32.gmra.mrb[10].mxu1 %v11242_v35 }
  0x45   : > { %8974 = vmatprep.mubr.f32.mxu1 %v11245_v36  ;;  %9203 = vmatpush3.bf16.msra.mxu1 %v9168_v18 }
  0x46   : > { %9205 = vmatprep.subr.bf16.mxu1 %v9172_v21 }
  0x48   : > { %8975 = vmatmul.mubr.f32.gmra.mrb[12].mxu1 %v11250_v37 }
  0x49   : > { %8977 = vmatprep.mubr.f32.mxu1 %v11253_v38  ;;  %9207 = vmatpush3.bf16.msra.mxu1 %v9172_v21 }
  0x4a   : > { %9209 = vmatprep.subr.bf16.mxu1 %v9176_v24 }
  0x4c   : > { %8978 = vmatmul.mubr.f32.gmra.mrb[14].mxu1 %v11258_v39 }
  0x4d   : > { %9211 = vmatpush3.bf16.msra.mxu1 %v9176_v24 }
  0x4e   : > { %9245 = vmatprep.subr.bf16.mxu1 %v9244_v48 }
 0x103   : > { %v8958_v61 = vpop.f32.mrb[0].mxu1 }
 0x104   : > { %v11304_v62 = vsub.f32 %v11202_v25, %v8958_v61  ;;  %v458_v63 = vpop.f32.mrb[1].mxu1  ;;  %v820_v61 = vld [vmem:[%s19231_s6 + $0xe0] sm:$0xff] }
 0x105   : > { %v11307_v0 = vsub.f32 %v11174_v11, %v458_v63  ;;  %v809_v11 = vld [vmem:[%s19231_s6 + $0x88] sm:$0xff]  ;;  %v9228_v63 = vpack.c.bf16 %v820_v61, %v817_v60 }
 0x106   : > { %v554_v5 = vmul.f32 %v11304_v62, %v11304_v62  ;;  %v9252_v17 = vpack.c.bf16 %v809_v11, %v806_v10  ;;  %v826_v10 = vld [vmem:[%s19231_s6 + $0x110] sm:$0xff] }
 0x107   : > { %v553_v3 = vmul.f32 %v11307_v0, %v11307_v0  ;;  %v8961_v4 = vpop.f32.mrb[2].mxu1 }
 0x108   : > { %v11320_v6 = vsub.f32 %v11210_v27, %v8961_v4  ;;  %v468_v7 = vpop.f32.mrb[3].mxu1  ;;  %v9230_v4 = vpack.c.bf16 %v819_v2, %v816_v1 }
 0x109   : > { %v11323_v9 = vsub.f32 %v11205_v26, %v468_v7  ;;  %9012 = vmatprep.mubr.f32.mxu1 %v553_v3  ;;  %v818_v3 = vld [vmem:[%s19231_s6 + $0xd0] sm:$0xff] }
 0x10a   : > { %v556_v12 = vmul.f32 %v11320_v6, %v11320_v6  ;;  %9013 = vmatmul.mubr.f32.vlgmr.msra.gmra.mrb[16].mxu1 %v554_v5  ;;  %v821_v5 = vld [vmem:[%s19231_s6 + $0xe8] sm:$0xff] }
 0x10b   : > { %v555_v13 = vmul.f32 %v11323_v9, %v11323_v9  ;;  %v8964_v14 = vpop.f32.mrb[4].mxu1  ;;  %9247 = vmatpush3.bf16.msra.mxu1 %v9244_v48  ;;  %v9260_v7 = vpack.c.bf16 %v821_v5, %v818_v3  ;;  %v11489_v3 = vld [vmem:[%s19229_s4] ss:$0 sm:$0xff] }
 0x10c   : > { %v11336_v15 = vsub.f32 %v11218_v29, %v8964_v14  ;;  %v478_v16 = vpop.f32.mrb[5].mxu1  ;;  %9249 = vmatprep.subr.bf16.mxu1 %v9248_v8  ;;  %v824_v14 = vld [vmem:[%s19231_s6 + $0x100] sm:$0xff] }
 0x10d   : > { %v11339_v18 = vsub.f32 %v11213_v28, %v478_v16  ;;  %9015 = vmatprep.mubr.f32.mxu1 %v555_v13  ;;  %v825_v13 = vld [vmem:[%s19231_s6 + $0x108] sm:$0xff] }
 0x10e   : > { %v558_v19 = vmul.f32 %v11336_v15, %v11336_v15  ;;  %9016 = vmatmul.mubr.f32.gmra.mrb[18].mxu1 %v556_v12  ;;  %v822_v12 = vld [vmem:[%s19231_s6 + $0xf0] sm:$0xff] }
 0x10f   : > { %v557_v20 = vmul.f32 %v11339_v18, %v11339_v18  ;;  %v8967_v21 = vpop.f32.mrb[6].mxu1  ;;  %9251 = vmatpush3.bf16.msra.mxu1 %v9248_v8  ;;  %v823_v8 = vld [vmem:[%s19231_s6 + $0xf8] sm:$0xff]  ;;  %v9234_v16 = vpack.c.bf16 %v825_v13, %v822_v12 }
 0x110   : > { %v11346_v22 = vsub.f32 %v11226_v31, %v8967_v21  ;;  %v488_v23 = vpop.f32.mrb[7].mxu1  ;;  %9253 = vmatprep.subr.bf16.mxu1 %v9252_v17  ;;  %v9232_v11 = vpack.c.bf16 %v826_v10, %v823_v8  ;;  %v832_v21 = vld [vmem:[%s19231_s6 + $0x140] sm:$0xff] }
 0x111   : > { %v11349_v24 = vsub.f32 %v11221_v30, %v488_v23  ;;  %9018 = vmatprep.mubr.f32.mxu1 %v557_v20  ;;  %v829_v20 = vld [vmem:[%s19231_s6 + $0x128] sm:$0xff] }
 0x112   : > { %v560_v25 = vmul.f32 %v11346_v22, %v11346_v22  ;;  %9019 = vmatmul.mubr.f32.gmra.mrb[20].mxu1 %v558_v19  ;;  %v9236_v23 = vpack.c.bf16 %v832_v21, %v829_v20 }
 0x113   : > { %v559_v26 = vmul.f32 %v11349_v24, %v11349_v24  ;;  %v8970_v27 = vpop.f32.mrb[8].mxu1  ;;  %9255 = vmatpush3.bf16.msra.mxu1 %v9252_v17  ;;  %v827_v17 = vld [vmem:[%s19231_s6 + $0x118] sm:$0xff] }
 0x114   : > { %v11356_v28 = vsub.f32 %v11234_v33, %v8970_v27  ;;  %v498_v29 = vpop.f32.mrb[9].mxu1  ;;  %9257 = vmatprep.subr.bf16.mxu1 %v9256_v59  ;;  %v9264_v19 = vpack.c.bf16 %v827_v17, %v824_v14  ;;  %v830_v27 = vld [vmem:[%s19231_s6 + $0x130] sm:$0xff] }
 0x115   : > { %v11359_v31 = vsub.f32 %v11229_v32, %v498_v29  ;;  %9021 = vmatprep.mubr.f32.mxu1 %v559_v26  ;;  %v831_v26 = vld [vmem:[%s19231_s6 + $0x138] sm:$0xff] }
 0x116   : > { %v562_v30 = vmul.f32 %v11356_v28, %v11356_v28  ;;  %9022 = vmatmul.mubr.f32.gmra.mrb[22].mxu1 %v560_v25  ;;  %v828_v25 = vld [vmem:[%s19231_s6 + $0x120] sm:$0xff] }
 0x117   : > { %v561_v40 = vmul.f32 %v11359_v31, %v11359_v31  ;;  %v8973_v41 = vpop.f32.mrb[10].mxu1  ;;  %9259 = vmatpush3.bf16.msra.mxu1 %v9256_v59  ;;  %v9238_v29 = vpack.c.bf16 %v831_v26, %v828_v25 }
 0x118   : > { %v11366_v42 = vsub.f32 %v11242_v35, %v8973_v41  ;;  %v508_v43 = vpop.f32.mrb[11].mxu1  ;;  %9261 = vmatprep.subr.bf16.mxu1 %v9260_v7  ;;  %v835_v41 = vld [vmem:[%s19231_s6 + $0x158] sm:$0xff] }
 0x119   : > { %v11369_v33 = vsub.f32 %v11237_v34, %v508_v43  ;;  %9024 = vmatprep.mubr.f32.mxu1 %v561_v40  ;;  %v838_v43 = vld [vmem:[%s19231_s6 + $0x170] sm:$0xff] }
 0x11a   : > { %v564_v32 = vmul.f32 %v11366_v42, %v11366_v42  ;;  %9025 = vmatmul.mubr.f32.gmra.mrb[24].mxu1 %v562_v30  ;;  %v833_v30 = vld [vmem:[%s19231_s6 + $0x148] sm:$0xff] }
 0x11b   : > { %v563_v44 = vmul.f32 %v11369_v33, %v11369_v33  ;;  %v8976_v45 = vpop.f32.mrb[12].mxu1  ;;  %9263 = vmatpush3.bf16.msra.mxu1 %v9260_v7  ;;  %v9268_v40 = vpack.c.bf16 %v833_v30, %v830_v27 }
 0x11c   : > { %v11376_v46 = vsub.f32 %v11250_v37, %v8976_v45  ;;  %v518_v47 = vpop.f32.mrb[13].mxu1  ;;  %9265 = vmatprep.subr.bf16.mxu1 %v9264_v19  ;;  %v837_v45 = vld [vmem:[%s19231_s6 + $0x168] sm:$0xff] }
 0x11d   : > { %v11379_v35 = vsub.f32 %v11245_v36, %v518_v47  ;;  %9027 = vmatprep.mubr.f32.mxu1 %v563_v44  ;;  %v834_v44 = vld [vmem:[%s19231_s6 + $0x150] sm:$0xff]  ;;  %v836_v47 = vld [vmem:[%s19231_s6 + $0x160] sm:$0xff] }
 0x11e   : > { %v566_v34 = vmul.f32 %v11376_v46, %v11376_v46  ;;  %9028 = vmatmul.mubr.f32.gmra.mrb[26].mxu1 %v564_v32  ;;  %v9240_v32 = vpack.c.bf16 %v838_v43, %v835_v41 }
 0x11f   : > { %v565_v48 = vmul.f32 %v11379_v35, %v11379_v35  ;;  %v8979_v49 = vpop.f32.mrb[14].mxu1  ;;  %9267 = vmatpush3.bf16.msra.mxu1 %v9264_v19 }
 0x120   : > { %v11386_v50 = vsub.f32 %v11258_v39, %v8979_v49  ;;  %v528_v51 = vpop.f32.mrb[15].mxu1  ;;  %v814_v39 = vld [vmem:[%s19231_s6 + $0xb0] sm:$0xff]  ;;  %9269 = vmatprep.subr.bf16.mxu1 %v9268_v40 }
 0x121   : > { %v11389_v37 = vsub.f32 %v11253_v38, %v528_v51  ;;  %9030 = vmatprep.mubr.f32.mxu1 %v565_v48  ;;  %v9224_v38 = vpack.c.bf16 %v814_v39, %v811_v53  ;;  %v839_v48 = vld [vmem:[%s19231_s6 + $0x178] sm:$0xff]  ;;  %v11074_v51 = vmov 0.0  }
 0x122   : > { %v568_v36 = vmul.f32 %v11386_v50, %v11386_v50  ;;  %9031 = vmatmul.mubr.f32.gmra.mrb[28].mxu1 %v566_v34  ;;  %v9242_v34 = vpack.c.bf16 %v837_v45, %v834_v44  ;;  %v9272_v49 = vpack.c.bf16 %v839_v48, %v836_v47  ;;  %921 = vmatprep.mubr.f32.mxu0 %v11074_v51 }
 0x123   : > { %v567_v52 = vmul.f32 %v11389_v37, %v11389_v37  ;;  %9225 = vmatprep.subr.bf16.mxu0 %v9224_v38  ;;  %9271 = vmatpush3.bf16.msra.mxu1 %v9268_v40 }
 0x124   : > { %9227 = vmatpush1.bf16.msra.mxu0 %v9226_v57  ;;  %9273 = vmatprep.subr.bf16.mxu1 %v9272_v49 }
 0x125   : > { %9033 = vmatprep.mubr.f32.mxu1 %v567_v52  ;;  %9229 = vmatprep.subr.bf16.mxu0 %v9228_v63 }
 0x126   : > { %9034 = vmatmul.mubr.f32.gmra.mrb[30].mxu1 %v568_v36 }
 0x127   : > { %9275 = vmatpush3.bf16.msra.mxu1 %v9272_v49 }
 0x128   : > { %9231 = vmatpush1.bf16.msra.mxu0 %v9230_v4 }
 0x129   : > { %9233 = vmatprep.subr.bf16.mxu0 %v9232_v11  ;;  %v11496_v11 = vld [vmem:[%s19230_s5] ss:$0 sm:$0xff] }
 0x12c   : > { %9235 = vmatpush1.bf16.msra.mxu0 %v9234_v16 }
 0x12d   : > { %9237 = vmatprep.subr.bf16.mxu0 %v9236_v23 }
 0x130   : > { %9239 = vmatpush1.bf16.msra.mxu0 %v9238_v29 }
 0x131   : > { %9241 = vmatprep.subr.bf16.mxu0 %v9240_v32 }
 0x134   : > { %9243 = vmatpush1.bf16.msra.mxu0 %v9242_v34 }
 0x1dd   : > { %v9014_v36 = vpop.f32.mrb[16].mxu1 }
 0x1de   : > { %v641_v52 = vadd.f32 1e-05, %v9014_v36  ;;  %v635_v53 = vpop.f32.mrb[17].mxu1 }
 0x1df   : > { %v636_v39 = vadd.f32 1e-05, %v635_v53 }
 0x1e0   : > { %10858 = vrsqrt.f32 %v641_v52 }
 0x1e1   : > { %10860 = vrsqrt.f32 %v636_v39  ;;  %v9017_v38 = vpop.f32.mrb[18].mxu1 }
 0x1e2   : > { %v651_v54 = vadd.f32 1e-05, %v9017_v38  ;;  %v645_v55 = vpop.f32.mrb[19].mxu1 }
 0x1e3   : > { %v646_v56 = vadd.f32 1e-05, %v645_v55 }
 0x1e4   : > { %10862 = vrsqrt.f32 %v651_v54 }
 0x1e5   : > { %10864 = vrsqrt.f32 %v646_v56  ;;  %v9020_v57 = vpop.f32.mrb[20].mxu1 }
 0x1e6   : > { %v661_v58 = vadd.f32 1e-05, %v9020_v57  ;;  %v655_v59 = vpop.f32.mrb[21].mxu1 }
 0x1e7   : > { %v656_v60 = vadd.f32 1e-05, %v655_v59 }
 0x1e8   : > { %10866 = vrsqrt.f32 %v661_v58 }
 0x1e9   : > { %10868 = vrsqrt.f32 %v656_v60  ;;  %v9023_v61 = vpop.f32.mrb[22].mxu1 }
 0x1ea   : > { %v10859_v63 = vpop.eup %10858  ;;  %v671_v1 = vadd.f32 1e-05, %v9023_v61  ;;  %v665_v2 = vpop.f32.mrb[23].mxu1 }
 0x1eb   : > { %v10861_v4 = vpop.eup %10860  ;;  %v731_v5 = vmul.f32 %v10859_v63, %v11304_v62  ;;  %v666_v7 = vadd.f32 1e-05, %v665_v2 }
 0x1ec   : > { %10870 = vrsqrt.f32 %v671_v1  ;;  %v730_v8 = vmul.f32 %v10861_v4, %v11307_v0 }
 0x1ed   : > { %10872 = vrsqrt.f32 %v666_v7  ;;  %v9026_v10 = vpop.f32.mrb[24].mxu1  ;;  %v754_v12 = vmul.f32 %v11489_v3, %v731_v5 }
 0x1ee   : > { %v10863_v13 = vpop.eup %10862  ;;  %v681_v14 = vadd.f32 1e-05, %v9026_v10  ;;  %v675_v16 = vpop.f32.mrb[25].mxu1  ;;  %v753_v17 = vmul.f32 %v11489_v3, %v730_v8 }
 0x1ef   : > { %v10865_v19 = vpop.eup %10864  ;;  %v676_v62 = vadd.f32 1e-05, %v675_v16  ;;  %v733_v20 = vmul.f32 %v10863_v13, %v11320_v6  ;;  %v777_v25 = vadd.f32 %v11496_v11, %v754_v12 }
 0x1f0   : > { %10874 = vrsqrt.f32 %v681_v14  ;;  %v776_v0 = vadd.f32 %v11496_v11, %v753_v17  ;;  %v732_v21 = vmul.f32 %v10865_v19, %v11323_v9 }
 0x1f1   : > { %10876 = vrsqrt.f32 %v676_v62  ;;  %v9029_v23 = vpop.f32.mrb[26].mxu1  ;;  %v756_v26 = vmul.f32 %v11489_v3, %v733_v20 }
 0x1f2   : > { %v10867_v27 = vpop.eup %10866  ;;  %v691_v29 = vadd.f32 1e-05, %v9029_v23  ;;  %v685_v30 = vpop.f32.mrb[27].mxu1  ;;  %922 = vmatmul.mubr.f32.vlgmr.msra.gmra.mrb[0].mxu0 %v776_v0  ;;  %9068 = vmatprep.mubr.f32.mxu1 %v776_v0  ;;  %v755_v40 = vmul.f32 %v11489_v3, %v732_v21 }
 0x1f3   : > { %v10869_v41 = vpop.eup %10868  ;;  %v686_v6 = vadd.f32 1e-05, %v685_v30  ;;  %9069 = vmatmul.mubr.f32.vlgmr.msra.gmra.mrb[32].mxu1 %v777_v25  ;;  %927 = vmatprep.mubr.f32.mxu0 %v11074_v51  ;;  %v735_v9 = vmul.f32 %v10867_v27, %v11336_v15  ;;  %v779_v45 = vadd.f32 %v11496_v11, %v756_v26 }
 0x1f4   : > { %10878 = vrsqrt.f32 %v691_v29  ;;  %v778_v43 = vadd.f32 %v11496_v11, %v755_v40  ;;  %v734_v32 = vmul.f32 %v10869_v41, %v11339_v18  ;;  %v1211_v41 = vld [vmem:[%s19226_s1] sm:$0xff] }
 0x1f5   : > { %10880 = vrsqrt.f32 %v686_v6  ;;  %v9032_v44 = vpop.f32.mrb[28].mxu1  ;;  %v758_v47 = vmul.f32 %v11489_v3, %v735_v9  ;;  %v1212_v6 = vld [vmem:[%s19226_s1 + $0x8] sm:$0xff]  ;;  %v1213_v9 = vld [vmem:[%s19226_s1 + $0x10] sm:$0xff] }
 0x1f6   : > { %v10871_v34 = vpop.eup %10870  ;;  %v701_v48 = vadd.f32 1e-05, %v9032_v44  ;;  %v695_v49 = vpop.f32.mrb[29].mxu1  ;;  %928 = vmatmul.mubr.f32.gmra.mrb[2].mxu0 %v777_v25  ;;  %9071 = vmatprep.mubr.f32.mxu1 %v778_v43  ;;  %v757_v36 = vmul.f32 %v11489_v3, %v734_v32  ;;  %v1341_v44 = vcombine.high %v1212_v6, %v1212_v6 }
 0x1f7   : > { %v10873_v52 = vpop.eup %10872  ;;  %v696_v15 = vadd.f32 1e-05, %v695_v49  ;;  %9072 = vmatmul.mubr.f32.gmra.mrb[34].mxu1 %v779_v45  ;;  %933 = vmatprep.mubr.f32.mxu0 %v11074_v51  ;;  %v737_v18 = vmul.f32 %v10871_v34, %v11346_v22  ;;  %v781_v54 = vadd.f32 %v11496_v11, %v758_v47 }
 0x1f8   : > { %10882 = vrsqrt.f32 %v701_v48  ;;  %v780_v53 = vadd.f32 %v11496_v11, %v757_v36  ;;  %v736_v39 = vmul.f32 %v10873_v52, %v11349_v24 }
 0x1f9   : > { %10884 = vrsqrt.f32 %v696_v15  ;;  %v9035_v38 = vpop.f32.mrb[30].mxu1  ;;  %v760_v55 = vmul.f32 %v11489_v3, %v737_v18 }
 0x1fa   : > { %v10875_v56 = vpop.eup %10874  ;;  %v711_v57 = vadd.f32 1e-05, %v9035_v38  ;;  %v705_v58 = vpop.f32.mrb[31].mxu1  ;;  %934 = vmatmul.mubr.f32.gmra.mrb[4].mxu0 %v778_v43  ;;  %9074 = vmatprep.mubr.f32.mxu1 %v780_v53  ;;  %v759_v59 = vmul.f32 %v11489_v3, %v736_v39  ;;  %v1292_v43 = vcombine.high %v1211_v41, %v1211_v41  ;;  %v840_v39 = vld [vmem:[%s19232_s7] sm:$0x7] }
 0x1fb   : > { %v10877_v60 = vpop.eup %10876  ;;  %v706_v22 = vadd.f32 1e-05, %v705_v58  ;;  %9075 = vmatmul.mubr.f32.gmra.mrb[36].mxu1 %v781_v54  ;;  %939 = vmatprep.mubr.f32.mxu0 %v11074_v51  ;;  %v739_v24 = vmul.f32 %v10875_v56, %v11356_v28  ;;  %v783_v1 = vadd.f32 %v11496_v11, %v760_v55 }
 0x1fc   : > { %10886 = vrsqrt.f32 %v711_v57  ;;  %v782_v61 = vadd.f32 %v11496_v11, %v759_v59  ;;  %v738_v63 = vmul.f32 %v10877_v60, %v11359_v31 }
 0x1fd   : > { %10888 = vrsqrt.f32 %v706_v22  ;;  %v762_v2 = vmul.f32 %v11489_v3, %v739_v24 }
 0x1fe   : > { %v10879_v4 = vpop.eup %10878  ;;  %940 = vmatmul.mubr.f32.gmra.mrb[6].mxu0 %v779_v45  ;;  %9077 = vmatprep.mubr.f32.mxu1 %v782_v61  ;;  %v761_v5 = vmul.f32 %v11489_v3, %v738_v63  ;;  %v1390_v45 = vcombine.high %v1213_v9, %v1213_v9 }
 0x1ff   : > { %v10881_v7 = vpop.eup %10880  ;;  %9078 = vmatmul.mubr.f32.gmra.mrb[38].mxu1 %v783_v1  ;;  %945 = vmatprep.mubr.f32.mxu0 %v11074_v51  ;;  %v741_v28 = vmul.f32 %v10879_v4, %v11366_v42  ;;  %v785_v10 = vadd.f32 %v11496_v11, %v762_v2 }
 0x200   : > { %v784_v8 = vadd.f32 %v11496_v11, %v761_v5  ;;  %v740_v31 = vmul.f32 %v10881_v7, %v11369_v33 }
 0x201   : > { %v764_v12 = vmul.f32 %v11489_v3, %v741_v28 }
 0x202   : > { %v10883_v13 = vpop.eup %10882  ;;  %946 = vmatmul.mubr.f32.gmra.mrb[8].mxu0 %v780_v53  ;;  %9080 = vmatprep.mubr.f32.mxu1 %v784_v8  ;;  %v763_v14 = vmul.f32 %v11489_v3, %v740_v31 }
 0x203   : > { %v10885_v16 = vpop.eup %10884  ;;  %9081 = vmatmul.mubr.f32.gmra.mrb[40].mxu1 %v785_v10  ;;  %951 = vmatprep.mubr.f32.mxu0 %v11074_v51  ;;  %v743_v17 = vmul.f32 %v10883_v13, %v11376_v46  ;;  %v787_v33 = vadd.f32 %v11496_v11, %v764_v12 }
 0x204   : > { %v786_v42 = vadd.f32 %v11496_v11, %v763_v14  ;;  %v742_v19 = vmul.f32 %v10885_v16, %v11379_v35 }
 0x205   : > { %v766_v62 = vmul.f32 %v11489_v3, %v743_v17 }
 0x206   : > { %v10887_v20 = vpop.eup %10886  ;;  %952 = vmatmul.mubr.f32.gmra.mrb[10].mxu0 %v781_v54  ;;  %9083 = vmatprep.mubr.f32.mxu1 %v786_v42  ;;  %v765_v0 = vmul.f32 %v11489_v3, %v742_v19 }
 0x207   : > { %v10889_v21 = vpop.eup %10888  ;;  %9084 = vmatmul.mubr.f32.gmra.mrb[42].mxu1 %v787_v33  ;;  %957 = vmatprep.mubr.f32.mxu0 %v11074_v51  ;;  %v745_v23 = vmul.f32 %v10887_v20, %v11386_v50  ;;  %v789_v35 = vadd.f32 %v11496_v11, %v766_v62  ;;  %v842_v50 = vlaneseq }
 0x208   : > { %v788_v46 = vadd.f32 %v11496_v11, %v765_v0  ;;  %v744_v25 = vmul.f32 %v10889_v21, %v11389_v37  ;;  %v11075_v37 = vmov 1966171168  }
 0x209   : > { %v768_v26 = vmul.f32 %v11489_v3, %v745_v23 }
 0x20a   : > { %958 = vmatmul.mubr.f32.gmra.mrb[12].mxu0 %v782_v61  ;;  %9086 = vmatprep.mubr.f32.mxu1 %v788_v46  ;;  %v767_v27 = vmul.f32 %v11489_v3, %v744_v25  ;;  %v1294_v3 = vunpack.c.l.s4 %v11075_v37 }
 0x20b   : > { %9087 = vmatmul.mubr.f32.gmra.mrb[44].mxu1 %v789_v35  ;;  %963 = vmatprep.mubr.f32.mxu0 %v11074_v51  ;;  %v791_v30 = vadd.f32 %v11496_v11, %v768_v26 }
 0x20c   : > { %v790_v29 = vadd.f32 %v11496_v11, %v767_v27  ;;  %v843_v11 = vshrl.u32 %v842_v50, 7  ;;  %v1295_v40 = vunpack.c.0.s8 %v1294_v3 }
 0x20e   : > { %964 = vmatmul.mubr.f32.gmra.mrb[14].mxu0 %v783_v1  ;;  %9089 = vmatprep.mubr.f32.mxu1 %v790_v29  ;;  %v1298_v32 = vsub.s32 %v1295_v40, %v843_v11  ;;  %v11571_v52 = vsub.s32 0, %v843_v11  ;;  %v848_v15 = vsub.s32 1, %v843_v11  ;;  %v852_v38 = vsub.s32 2, %v843_v11 }
 0x20f   : > { %9090 = vmatmul.mubr.f32.gmra.mrb[46].mxu1 %v791_v30  ;;  %969 = vmatprep.mubr.f32.mxu0 %v11074_v51 }
 0x210   : > { %v1299_v34 = vrot.slane %v1211_v41, %v1298_v32  ;;  %v1306_v48 = vrot.slane %v1292_v43, %v1298_v32  ;;  %v1348_v49 = vrot.slane %v1212_v6, %v1298_v32  ;;  %v1355_v36 = vrot.slane %v1341_v44, %v1298_v32 }
 0x211   : > { %v1397_v18 = vrot.slane %v1213_v9, %v1298_v32  ;;  %v1404_v53 = vrot.slane %v1390_v45, %v1298_v32  ;;  %v11577_v60 = vrot.slane %v840_v39, %v11571_v52  ;;  %v11579_v22 = vrot.slane %v840_v39, %v848_v15  ;;  %v1231_v15 = vld [vmem:[%s19227_s2 + $0x80] sm:$0xff] }
 0x212   : > { %970 = vmatmul.mubr.f32.gmra.mrb[16].mxu0 %v784_v8  ;;  %v1307_v56 = vcombine.high %v1299_v34, %v1299_v34  ;;  %v1308_v57 = vcombine.high %v1306_v48, %v1306_v48  ;;  %v1356_v58 = vcombine.high %v1348_v49, %v1348_v49  ;;  %v1357_v59 = vcombine.high %v1355_v36, %v1355_v36 }
 0x213   : > { %975 = vmatprep.mubr.f32.mxu0 %v11074_v51  ;;  %v1405_v24 = vcombine.high %v1397_v18, %v1397_v18  ;;  %v1406_v61 = vcombine.high %v1404_v53, %v1404_v53  ;;  %v11581_v63 = vrot.slane %v840_v39, %v852_v38  ;;  %v1315_v1 = vrot.slane %v1299_v34, %v1298_v32 }
 0x214   : > { %v1322_v5 = vrot.slane %v1306_v48, %v1298_v32  ;;  %v1329_v7 = vrot.slane %v1307_v56, %v1298_v32  ;;  %v1336_v28 = vrot.slane %v1308_v57, %v1298_v32  ;;  %v1364_v8 = vrot.slane %v1348_v49, %v1298_v32  ;;  %v1264_v56 = vld [vmem:[%s19227_s2 + $0x188] sm:$0xff]  ;;  %v1215_v57 = vld [vmem:[%s19227_s2] sm:$0xff] }
 0x215   : > { %v1371_v31 = vrot.slane %v1355_v36, %v1298_v32  ;;  %v1385_v12 = vrot.slane %v1357_v59, %v1298_v32  ;;  %v1413_v13 = vrot.slane %v1397_v18, %v1298_v32  ;;  %v11583_v14 = vrot.slane %v1404_v53, %v1298_v32  ;;  %v1232_v18 = vld [vmem:[%s19227_s2 + $0x88] sm:$0xff]  ;;  %v1247_v59 = vld [vmem:[%s19227_s2 + $0x100] sm:$0xff] }
 0x216   : > { %976 = vmatmul.mubr.f32.gmra.mrb[18].mxu0 %v785_v10  ;;  %v1378_v10 = vrot.slane %v1356_v58, %v1298_v32  ;;  %v1427_v16 = vrot.slane %v1405_v24, %v1298_v32  ;;  %v11585_v17 = vrot.slane %v1406_v61, %v1298_v32  ;;  %v1337_v19 = vcombine.high %v1315_v1, %v1315_v1  ;;  %v1216_v58 = vld [vmem:[%s19227_s2 + $0x8] sm:$0xff]  ;;  %v1233_v61 = vld [vmem:[%s19227_s2 + $0x90] sm:$0xff] }
 0x217   : > { %981 = vmatprep.mubr.f32.mxu0 %v11074_v51  ;;  %v1338_v0 = vcombine.high %v1322_v5, %v1322_v5  ;;  %v1339_v21 = vcombine.high %v1329_v7, %v1329_v7  ;;  %v1340_v23 = vcombine.high %v1336_v28, %v1336_v28  ;;  %v1387_v25 = vcombine.high %v1371_v31, %v1371_v31  ;;  %v1248_v24 = vld [vmem:[%s19227_s2 + $0x108] sm:$0xff] }
 0x218   : > { %v1389_v26 = vcombine.high %v1385_v12, %v1385_v12  ;;  %v1435_v27 = vcombine.high %v1413_v13, %v1413_v13  ;;  %v1438_v50 = vcombine.high %v11585_v17, %v11585_v17  ;;  %v11608_v41 = vrot.slane %v1315_v1, %v11571_v52  ;;  %v1234_v1 = vld [vmem:[%s19227_s2 + $0x98] sm:$0xff] }
 0x219   : > { %v11611_v6 = vrot.slane %v1329_v7, %v11571_v52  ;;  %v11614_v9 = vrot.slane %v1337_v19, %v11571_v52  ;;  %v11620_v43 = vrot.slane %v1322_v5, %v11571_v52  ;;  %v11626_v44 = vrot.slane %v1338_v0, %v11571_v52 }
 0x21a   : > { %982 = vmatmul.mubr.f32.gmra.mrb[20].mxu0 %v786_v42  ;;  %v11629_v45 = vrot.slane %v1340_v23, %v11571_v52  ;;  %v11635_v34 = vrot.slane %v1378_v10, %v11571_v52  ;;  %v11644_v36 = vrot.slane %v1371_v31, %v11571_v52  ;;  %v11653_v53 = vrot.slane %v1385_v12, %v11571_v52  ;;  %v1217_v31 = vld [vmem:[%s19227_s2 + $0x10] sm:$0xff] }
 0x21b   : > { %987 = vmatprep.mubr.f32.mxu0 %v11074_v51  ;;  %20298 = vst [vmem:[#allocation5_spill] sm:$0xff] %v11620_v43  ;;  %20300 = vst [vmem:[#allocation7_spill] sm:$0xff] %v11626_v44  ;;  %v11656_v39 = vrot.slane %v1387_v25, %v11571_v52  ;;  %v11659_v38 = vrot.slane %v1389_v26, %v11571_v52  ;;  %v11699_v7 = vrot.slane %v11583_v14, %v11571_v52  ;;  %v1249_v12 = vld [vmem:[%s19227_s2 + $0x110] sm:$0xff]  ;;  %v1268_v25 = vld [vmem:[%s19227_s2 + $0x1a8] sm:$0xff] }
 0x21c   : > { %20301 = vst [vmem:[#allocation8_spill] sm:$0xff] %v11629_v45  ;;  %20303 = vst [vmem:[#allocation10_spill] sm:$0xff] %v11644_v36  ;;  %v11727_v19 = vrot.slane %v11585_v17, %v11571_v52  ;;  %v1219_v17 = vld [vmem:[%s19227_s2 + $0x20] sm:$0xff]  ;;  %v1252_v26 = vld [vmem:[%s19227_s2 + $0x128] sm:$0xff]  ;;  %v11817_v43 = vpack.c.bf16 %v1232_v18, %v1231_v15 }
 0x21d   : > { %20304 = vst [vmem:[#allocation11_spill] sm:$0xff] %v11653_v53  ;;  %20305 = vst [vmem:[#allocation12_spill] sm:$0xff] %v11656_v39  ;;  %v1270_v45 = vld [vmem:[%s19227_s2 + $0x1b8] sm:$0xff]  ;;  %v1240_v44 = vld [vmem:[%s19227_s2 + $0xc8] sm:$0xff] }
 0x21e   : > { %988 = vmatmul.mubr.f32.gmra.mrb[22].mxu0 %v787_v33  ;;  %20306 = vst [vmem:[#allocation13_spill] sm:$0xff] %v11659_v38  ;;  %20308 = vst [vmem:[#allocation15_spill] sm:$0xff] %v11699_v7  ;;  %v1254_v38 = vld [vmem:[%s19227_s2 + $0x138] sm:$0xff]  ;;  %v1256_v15 = vld [vmem:[%s19227_s2 + $0x148] sm:$0xff] }
 0x21f   : > { %993 = vmatprep.mubr.f32.mxu0 %v11074_v51  ;;  %20309 = vst [vmem:[#allocation16_spill] sm:$0xff] %v11727_v19  ;;  %20318 = vst [vmem:[#allocation23_spill] sm:$0xff] %v11817_v43  ;;  %v1241_v18 = vld [vmem:[%s19227_s2 + $0xd0] sm:$0xff]  ;;  %v11845_v43 = vpack.c.bf16 %v1216_v58, %v1215_v57  ;;  %v1258_v57 = vld [vmem:[%s19227_s2 + $0x158] sm:$0xff] }
 0x220   : > { %v1273_v36 = vld [vmem:[%s19227_s2 + $0x1d0] sm:$0xff]  ;;  %v1243_v58 = vld [vmem:[%s19227_s2 + $0xe0] sm:$0xff] }
 0x221   : > { %20320 = vst [vmem:[#allocation25_spill] sm:$0xff] %v11845_v43  ;;  %v1276_v43 = vld [vmem:[%s19227_s2 + $0x1e8] sm:$0xff] }
 0x222   : > { %994 = vmatmul.mubr.f32.gmra.mrb[24].mxu0 %v788_v46  ;;  %v1386_v46 = vcombine.high %v1364_v8, %v1364_v8 }
 0x223   : > { %999 = vmatprep.mubr.f32.mxu0 %v11074_v51 }
 0x224   : > { %v11638_v48 = vrot.slane %v1386_v46, %v11571_v52  ;;  %v1267_v46 = vld [vmem:[%s19227_s2 + $0x1a0] sm:$0xff] }
 0x226   : > { %1000 = vmatmul.mubr.f32.gmra.mrb[26].mxu0 %v789_v35  ;;  %v1388_v35 = vcombine.high %v1378_v10, %v1378_v10  ;;  %v1218_v10 = vld [vmem:[%s19227_s2 + $0x18] sm:$0xff] }
 0x227   : > { %1005 = vmatprep.mubr.f32.mxu0 %v11074_v51 }
 0x228   : > { %v11641_v49 = vrot.slane %v1388_v35, %v11571_v52  ;;  %v1220_v35 = vld [vmem:[%s19227_s2 + $0x28] sm:$0xff] }
 0x22a   : > { %1006 = vmatmul.mubr.f32.gmra.mrb[28].mxu0 %v790_v29  ;;  %v1436_v29 = vcombine.high %v11583_v14, %v11583_v14  ;;  %v1235_v14 = vld [vmem:[%s19227_s2 + $0xa0] sm:$0xff] }
 0x22b   : > { %1011 = vmatprep.mubr.f32.mxu0 %v11074_v51  ;;  %v1214_v51 = vld [vmem:[%s19226_s1 + $0x18] sm:$0xff] }
 0x22c   : > { %v1439_v47 = vcombine.high %v1214_v51, %v1214_v51  ;;  %v1446_v54 = vrot.slane %v1214_v51, %v1298_v32  ;;  %v11617_v51 = vrot.slane %v1339_v21, %v11571_v52  ;;  %v11730_v0 = vrot.slane %v1436_v29, %v11571_v52  ;;  %v1238_v29 = vld [vmem:[%s19227_s2 + $0xb8] sm:$0xff] }
 0x22d   : > { %v11733_v21 = vrot.slane %v1438_v50, %v11571_v52 }
 0x22e   : > { %1012 = vmatmul.mubr.f32.gmra.mrb[30].mxu0 %v791_v30  ;;  %v1453_v55 = vrot.slane %v1439_v47, %v1298_v32  ;;  %v1454_v2 = vcombine.high %v1446_v54, %v1446_v54  ;;  %v11587_v42 = vrot.slane %v1446_v54, %v1298_v32  ;;  %v1437_v30 = vcombine.high %v1427_v16, %v1427_v16 }
 0x22f   : > { %20297 = vst [vmem:[#allocation4_spill] sm:$0xff] %v11617_v51  ;;  %v11632_v47 = vrot.slane %v1364_v8, %v11571_v52  ;;  %v11662_v54 = vrot.slane %v1413_v13, %v11571_v52  ;;  %v1266_v8 = vld [vmem:[%s19227_s2 + $0x198] sm:$0xff]  ;;  %20310 = vst [vmem:[#allocation17_spill] sm:$0xff] %v11730_v0  ;;  %v1239_v0 = vld [vmem:[%s19227_s2 + $0xc0] sm:$0xff] }
 0x230   : > { %v1455_v4 = vcombine.high %v1453_v55, %v1453_v55  ;;  %v11589_v33 = vrot.slane %v1453_v55, %v1298_v32  ;;  %v11591_v62 = vrot.slane %v1454_v2, %v1298_v32  ;;  %v1484_v37 = vcombine.high %v11587_v42, %v11587_v42  ;;  %v1263_v55 = vld [vmem:[%s19227_s2 + $0x180] sm:$0xff]  ;;  %v1250_v13 = vld [vmem:[%s19227_s2 + $0x118] sm:$0xff]  ;;  %20311 = vst [vmem:[#allocation18_spill] sm:$0xff] %v11733_v21  ;;  %v1269_v21 = vld [vmem:[%s19227_s2 + $0x1b0] sm:$0xff] }
 0x231   : > { %20302 = vst [vmem:[#allocation9_spill] sm:$0xff] %v11632_v47  ;;  %v11689_v2 = vrot.slane %v1427_v16, %v11571_v52  ;;  %v11695_v5 = vrot.slane %v1437_v30, %v11571_v52  ;;  %v1236_v16 = vld [vmem:[%s19227_s2 + $0xa8] sm:$0xff]  ;;  %v11737_v23 = vrot.slane %v11587_v42, %v11571_v52  ;;  %v1251_v42 = vld [vmem:[%s19227_s2 + $0x120] sm:$0xff]  ;;  %v1225_v51 = vld [vmem:[%s19227_s2 + $0x50] sm:$0xff] }
 0x232   : > { %v11593_v20 = vrot.slane %v1455_v4, %v1298_v32  ;;  %v1486_v11 = vcombine.high %v11591_v62, %v11591_v62  ;;  %v11623_v32 = vrot.slane %v1336_v28, %v11571_v52  ;;  %v11692_v4 = vrot.slane %v1435_v27, %v11571_v52  ;;  %v1265_v28 = vld [vmem:[%s19227_s2 + $0x190] sm:$0xff] }
 0x233   : > { %20307 = vst [vmem:[#allocation14_spill] sm:$0xff] %v11695_v5  ;;  %v1237_v27 = vld [vmem:[%s19227_s2 + $0xb0] sm:$0xff]  ;;  %v11765_v30 = vrot.slane %v11591_v62, %v11571_v52  ;;  %v11768_v50 = vrot.slane %v1484_v37, %v11571_v52  ;;  %v11775_v3 = vrot.slane %v11589_v33, %v11571_v52  ;;  %v1222_v37 = vld [vmem:[%s19227_s2 + $0x38] sm:$0xff]  ;;  %v20314_v19 = vcombine.high %v11589_v33, %v11589_v33  ;;  %v1223_v33 = vld [vmem:[%s19227_s2 + $0x40] sm:$0xff] }
 0x234   : > { %20299 = vst [vmem:[#allocation6_spill] sm:$0xff] %v11623_v32  ;;  %v11771_v40 = vrot.slane %v1486_v11, %v11571_v52  ;;  %v1221_v62 = vld [vmem:[%s19227_s2 + $0x30] sm:$0xff]  ;;  %v11803_v39 = vrot.slane %v11593_v20, %v11571_v52  ;;  %v20316_v53 = vcombine.high %v11593_v20, %v11593_v20  ;;  %v1224_v20 = vld [vmem:[%s19227_s2 + $0x48] sm:$0xff]  ;;  %v1274_v5 = vld [vmem:[%s19227_s2 + $0x1d8] sm:$0xff] }
 0x235   : > { %20312 = vst [vmem:[#allocation19_spill] sm:$0xff] %v11775_v3  ;;  %v1253_v11 = vld [vmem:[%s19227_s2 + $0x130] sm:$0xff]  ;;  %v11809_v32 = vrot.slane %v20314_v19, %v11571_v52  ;;  %v1271_v3 = vld [vmem:[%s19227_s2 + $0x1c0] sm:$0xff]  ;;  %v11843_v19 = vpack.c.bf16 %v1264_v56, %v1263_v55  ;;  %v1226_v55 = vld [vmem:[%s19227_s2 + $0x58] sm:$0xff] }
 0x236   : > { %20313 = vst [vmem:[#allocation20_spill] sm:$0xff] %v11803_v39  ;;  %v11815_v7 = vrot.slane %v20316_v53, %v11571_v52  ;;  %v1272_v39 = vld [vmem:[%s19227_s2 + $0x1c8] sm:$0xff]  ;;  %v1255_v52 = vld [vmem:[%s19227_s2 + $0x140] sm:$0xff]  ;;  %v1242_v53 = vld [vmem:[%s19227_s2 + $0xd8] sm:$0xff] }
 0x237   : > { %20315 = vst [vmem:[#allocation21_spill] sm:$0xff] %v11809_v32  ;;  %20319 = vst [vmem:[#allocation24_spill] sm:$0xff] %v11843_v19  ;;  %v11849_v32 = vpack.c.bf16 %v1234_v1, %v1233_v61  ;;  %v1257_v56 = vld [vmem:[%s19227_s2 + $0x150] sm:$0xff]  ;;  %v11876_v61 = vpack.c.bf16 %v1250_v13, %v1249_v12  ;;  %v11878_v1 = vpack.c.bf16 %v1236_v16, %v1235_v14  ;;  %v1227_v12 = vld [vmem:[%s19227_s2 + $0x60] sm:$0xff] }
 0x238   : > { %20317 = vst [vmem:[#allocation22_spill] sm:$0xff] %v11815_v7  ;;  %v11847_v7 = vpack.c.bf16 %v1248_v24, %v1247_v59  ;;  %v11872_v59 = vpack.c.bf16 %v1266_v8, %v1265_v28  ;;  %v11874_v24 = vpack.c.bf16 %v1218_v10, %v1217_v31  ;;  %v11889_v28 = vpack.c.bf16 %v1268_v25, %v1267_v46  ;;  %v1228_v13 = vld [vmem:[%s19227_s2 + $0x68] sm:$0xff]  ;;  %v1259_v14 = vld [vmem:[%s19227_s2 + $0x160] sm:$0xff] }
 0x239   : > { %20322 = vst [vmem:[#allocation27_spill] sm:$0xff] %v11849_v32  ;;  %20325 = vst [vmem:[#allocation30_spill] sm:$0xff] %v11876_v61  ;;  %v1244_v32 = vld [vmem:[%s19227_s2 + $0xe8] sm:$0xff]  ;;  %v11891_v8 = vpack.c.bf16 %v1220_v35, %v1219_v17  ;;  %v11893_v31 = vpack.c.bf16 %v1252_v26, %v1251_v42  ;;  %v11895_v10 = vpack.c.bf16 %v1238_v29, %v1237_v27  ;;  %v1245_v42 = vld [vmem:[%s19227_s2 + $0xf0] sm:$0xff] }
 0x23a   : > { %20321 = vst [vmem:[#allocation26_spill] sm:$0xff] %v11847_v7  ;;  %20323 = vst [vmem:[#allocation28_spill] sm:$0xff] %v11872_v59  ;;  %v1275_v7 = vld [vmem:[%s19227_s2 + $0x1e0] sm:$0xff]  ;;  %v11906_v16 = vpack.c.bf16 %v1270_v45, %v1269_v21  ;;  %v11908_v46 = vpack.c.bf16 %v1222_v37, %v1221_v62  ;;  %v11910_v25 = vpack.c.bf16 %v1254_v38, %v1253_v11  ;;  %v1260_v35 = vld [vmem:[%s19227_s2 + $0x168] sm:$0xff] }
 0x23b   : > { %20324 = vst [vmem:[#allocation29_spill] sm:$0xff] %v11874_v24  ;;  %20326 = vst [vmem:[#allocation31_spill] sm:$0xff] %v11878_v1  ;;  %v11912_v17 = vpack.c.bf16 %v1240_v44, %v1239_v0  ;;  %v1246_v26 = vld [vmem:[%s19227_s2 + $0xf8] sm:$0xff]  ;;  %v11923_v45 = vpack.c.bf16 %v1272_v39, %v1271_v3  ;;  %v11925_v21 = vpack.c.bf16 %v1224_v20, %v1223_v33  ;;  %v1277_v0 = vld [vmem:[%s19227_s2 + $0x1f0] sm:$0xff] }
 0x23c   : > { %20327 = vst [vmem:[#allocation32_spill] sm:$0xff] %v11889_v28  ;;  %20328 = vst [vmem:[#allocation33_spill] sm:$0xff] %v11891_v8  ;;  %v11927_v38 = vpack.c.bf16 %v1256_v15, %v1255_v52  ;;  %v11929_v44 = vpack.c.bf16 %v1242_v53, %v1241_v18  ;;  %v1278_v27 = vld [vmem:[%s19227_s2 + $0x1f8] sm:$0xff]  ;;  %v1229_v29 = vld [vmem:[%s19227_s2 + $0x70] sm:$0xff]  ;;  %v11940_v39 = vpack.c.bf16 %v1274_v5, %v1273_v36 }
 0x23d   : > { %20329 = vst [vmem:[#allocation34_spill] sm:$0xff] %v11893_v31  ;;  %20330 = vst [vmem:[#allocation35_spill] sm:$0xff] %v11895_v10  ;;  %v11942_v62 = vpack.c.bf16 %v1226_v55, %v1225_v51  ;;  %v11944_v37 = vpack.c.bf16 %v1258_v57, %v1257_v56  ;;  %v11946_v11 = vpack.c.bf16 %v1244_v32, %v1243_v58  ;;  %v1230_v33 = vld [vmem:[%s19227_s2 + $0x78] sm:$0xff]  ;;  %v1261_v20 = vld [vmem:[%s19227_s2 + $0x170] sm:$0xff] }
 0x23e   : > { %20331 = vst [vmem:[#allocation36_spill] sm:$0xff] %v11906_v16  ;;  %20332 = vst [vmem:[#allocation37_spill] sm:$0xff] %v11908_v46  ;;  %v1262_v52 = vld [vmem:[%s19227_s2 + $0x178] sm:$0xff]  ;;  %v11960_v15 = vpack.c.bf16 %v1276_v43, %v1275_v7  ;;  %v11962_v32 = vpack.c.bf16 %v1228_v13, %v1227_v12  ;;  %v11964_v18 = vpack.c.bf16 %v1260_v35, %v1259_v14  ;;  %v20383_v1 = vld [vmem:[#allocation16_spill] sm:$0xff] }
 0x23f   : > { %20333 = vst [vmem:[#allocation38_spill] sm:$0xff] %v11910_v25  ;;  %20334 = vst [vmem:[#allocation39_spill] sm:$0xff] %v11912_v17  ;;  %v11972_v57 = vpack.c.bf16 %v1246_v26, %v1245_v42  ;;  %v11974_v58 = vpack.c.bf16 %v1278_v27, %v1277_v0  ;;  %v11981_v43 = vpack.c.bf16 %v1230_v33, %v1229_v29  ;;  %v20384_v24 = vld [vmem:[#allocation12_spill] sm:$0xff] }
 0x240   : > { %20335 = vst [vmem:[#allocation40_spill] sm:$0xff] %v11923_v45  ;;  %20336 = vst [vmem:[#allocation41_spill] sm:$0xff] %v11925_v21  ;;  %v11983_v7 = vpack.c.bf16 %v1262_v52, %v1261_v20 }
 0x241   : > { %20337 = vst [vmem:[#allocation42_spill] sm:$0xff] %v11927_v38  ;;  %20338 = vst [vmem:[#allocation43_spill] sm:$0xff] %v11929_v44 }
 0x242   : > { %20339 = vst [vmem:[#allocation44_spill] sm:$0xff] %v11940_v39  ;;  %20340 = vst [vmem:[#allocation45_spill] sm:$0xff] %v11942_v62 }
 0x243   : > { %20341 = vst [vmem:[#allocation46_spill] sm:$0xff] %v11944_v37  ;;  %20342 = vst [vmem:[#allocation47_spill] sm:$0xff] %v11946_v11 }
 0x244   : > { %20344 = vst [vmem:[#allocation49_spill] sm:$0xff] %v11960_v15  ;;  %20345 = vst [vmem:[#allocation50_spill] sm:$0xff] %v11962_v32 }
 0x245   : > { %20346 = vst [vmem:[#allocation51_spill] sm:$0xff] %v11964_v18  ;;  %20347 = vst [vmem:[#allocation52_spill] sm:$0xff] %v11972_v57 }
 0x246   : > { %20348 = vst [vmem:[#allocation53_spill] sm:$0xff] %v11974_v58  ;;  %20349 = vst [vmem:[#allocation54_spill] sm:$0xff] %v11981_v43 }
 0x247   : > { %20350 = vst [vmem:[#allocation55_spill] sm:$0xff] %v11983_v7 }
 0x2c5   : > { %v923_v3 = vpop.f32.mrb[0].mxu0 }
 0x2c6   : > { %v11958_v36 = vadd.f32 %v923_v3, %v11577_v60  ;;  %v925_v51 = vpop.f32.mrb[1].mxu0  ;;  %v9070_v5 = vpop.f32.mrb[32].mxu1 }
 0x2c7   : > { %v11967_v53 = vadd.f32 %v925_v51, %v11579_v22  ;;  %v11970_v55 = vadd.f32 %v9070_v5, %v11581_v63  ;;  %v1084_v56 = vpop.f32.mrb[33].mxu1 }
 0x2c8   : > { %20343 = vst [vmem:[#allocation48_spill] sm:$0xff] %v11958_v36  ;;  %v11977_v3 = vadd.f32 %v1084_v56, %v11581_v63  ;;  %7132 = vmatprep.mubr.f32.mxu0 %v11958_v36  ;;  %7168 = vmatprep.mubr.f32.mxu1 %v11958_v36 }
 0x2c9   : > { %v929_v12 = vpop.f32.mrb[2].mxu0  ;;  %v1664_v13 = vmul.f32 %v11632_v47, %v11967_v53  ;;  %v1696_v14 = vmul.f32 %v11737_v23, %v11967_v53  ;;  %v1648_v35 = vmul.f32 %v11608_v41, %v11967_v53  ;;  %v1680_v42 = vmul.f32 %v11662_v54, %v11967_v53 }
 0x2ca   : > { %v11994_v26 = vadd.f32 %v929_v12, %v11577_v60  ;;  %v931_v0 = vpop.f32.mrb[3].mxu0  ;;  %v9073_v27 = vpop.f32.mrb[34].mxu1  ;;  %v1666_v29 = vmul.f32 %v11635_v34, %v11967_v53  ;;  %v1698_v33 = vmul.f32 %v11765_v30, %v11967_v53  ;;  %v12002_v20 = vmul.f32 %v11611_v6, %v11967_v53 }
 0x2cb   : > { %v12005_v52 = vadd.f32 %v931_v0, %v11579_v22  ;;  %v12008_v51 = vadd.f32 %v9073_v27, %v11581_v63  ;;  %v1094_v5 = vpop.f32.mrb[35].mxu1  ;;  %v12012_v56 = vmul.f32 %v11689_v2, %v11967_v53  ;;  %v12016_v12 = vmul.f32 %v11638_v48, %v11967_v53 }
 0x2cc   : > { %20351 = vst [vmem:[#allocation56_spill] sm:$0xff] %v11994_v26  ;;  %v12019_v7 = vadd.f32 %v1094_v5, %v11581_v63  ;;  %v12023_v43 = vmul.f32 %v11768_v50, %v11967_v53  ;;  %v12027_v0 = vmul.f32 %v11614_v9, %v11967_v53  ;;  %v12031_v27 = vmul.f32 %v11692_v4, %v11967_v53 }
 0x2cd   : > { %20352 = vst [vmem:[#allocation57_spill] sm:$0xff] %v12008_v51  ;;  %v935_v58 = vpop.f32.mrb[4].mxu0  ;;  %v1665_v57 = vmul.f32 %v11632_v47, %v12005_v52  ;;  %v1697_v5 = vmul.f32 %v11737_v23, %v12005_v52  ;;  %v1649_v18 = vmul.f32 %v11608_v41, %v12005_v52  ;;  %v1681_v32 = vmul.f32 %v11662_v54, %v12005_v52 }
 0x2ce   : > { %20353 = vst [vmem:[#allocation58_spill] sm:$0xff] %v12019_v7  ;;  %v12042_v15 = vadd.f32 %v935_v58, %v11577_v60  ;;  %v937_v11 = vpop.f32.mrb[5].mxu0  ;;  %v9076_v37 = vpop.f32.mrb[36].mxu1  ;;  %v1667_v62 = vmul.f32 %v11635_v34, %v12005_v52  ;;  %v1699_v39 = vmul.f32 %v11765_v30, %v12005_v52  ;;  %v1651_v44 = vmul.f32 %v11611_v6, %v12005_v52 }
 0x2cf   : > { %v12051_v38 = vadd.f32 %v937_v11, %v11579_v22  ;;  %v12054_v21 = vadd.f32 %v9076_v37, %v11581_v63  ;;  %v1104_v51 = vpop.f32.mrb[37].mxu1  ;;  %v9276_v58 = vpack.c.bf16 %v1665_v57, %v1664_v13  ;;  %v9278_v45 = vpack.c.bf16 %v1649_v18, %v1648_v35 }
 0x2d0   : > { %20354 = vst [vmem:[#allocation59_spill] sm:$0xff] %v12042_v15  ;;  %v9308_v15 = vpack.c.bf16 %v1697_v5, %v1696_v14  ;;  %v12057_v7 = vadd.f32 %v1104_v51, %v11581_v63  ;;  %v9310_v17 = vpack.c.bf16 %v1681_v32, %v1680_v42  ;;  %v9280_v25 = vpack.c.bf16 %v1667_v62, %v1666_v29 }
 0x2d1   : > { %20355 = vst [vmem:[#allocation60_spill] sm:$0xff] %v12051_v38  ;;  %20356 = vst [vmem:[#allocation61_spill] sm:$0xff] %v12054_v21  ;;  %v941_v46 = vpop.f32.mrb[6].mxu0  ;;  %9277 = vmatprep.subr.bf16.mxu0 %v9276_v58  ;;  %v9312_v16 = vpack.c.bf16 %v1699_v39, %v1698_v33  ;;  %v9282_v10 = vpack.c.bf16 %v1651_v44, %v12002_v20  ;;  %v1683_v11 = vmul.f32 %v11689_v2, %v12005_v52 }
 0x2d2   : > { %20357 = vst [vmem:[#allocation62_spill] sm:$0xff] %v12057_v7  ;;  %9309 = vmatprep.subr.bf16.mxu1 %v9308_v15  ;;  %v12063_v37 = vadd.f32 %v941_v46, %v11577_v60  ;;  %v943_v57 = vpop.f32.mrb[7].mxu0  ;;  %v9079_v13 = vpop.f32.mrb[38].mxu1  ;;  %9279 = vmatpush3.bf16.xpose.msra.mxu0 %v9278_v45  ;;  %v1669_v32 = vmul.f32 %v11638_v48, %v12005_v52 }
 0x2d3   : > { %9311 = vmatpush3.bf16.xpose.msra.mxu1 %v9310_v17  ;;  %v1701_v62 = vmul.f32 %v11768_v50, %v12005_v52  ;;  %v12070_v39 = vadd.f32 %v943_v57, %v11579_v22  ;;  %v12073_v44 = vadd.f32 %v9079_v13, %v11581_v63  ;;  %v1114_v15 = vpop.f32.mrb[39].mxu1  ;;  %9281 = vmatprep.subr.bf16.mxu0 %v9280_v25 }
 0x2d4   : > { %20358 = vst [vmem:[#allocation63_spill] sm:$0xff] %v12063_v37  ;;  %9313 = vmatprep.subr.bf16.mxu1 %v9312_v16  ;;  %v9314_v46 = vpack.c.bf16 %v1683_v11, %v12012_v56  ;;  %v12077_v45 = vadd.f32 %v1114_v15, %v11581_v63  ;;  %v9284_v17 = vpack.c.bf16 %v1669_v32, %v12016_v12  ;;  %v20363_v12 = vld [vmem:[#allocation4_spill] sm:$0xff] }
 0x2d5   : > { %20359 = vst [vmem:[#allocation64_spill] sm:$0xff] %v12070_v39  ;;  %20360 = vst [vmem:[#allocation65_spill] sm:$0xff] %v12073_v44  ;;  %v9316_v18 = vpack.c.bf16 %v1701_v62, %v12023_v43  ;;  %v12083_v14 = vmul.f32 %v11614_v9, %v12005_v52  ;;  %v947_v35 = vpop.f32.mrb[8].mxu0  ;;  %v12087_v42 = vmul.f32 %v11692_v4, %v12005_v52  ;;  %v20386_v39 = vld [vmem:[#allocation21_spill] sm:$0xff] }
 0x2d6   : > { %20361 = vst [vmem:[#allocation66_spill] sm:$0xff] %v12077_v45  ;;  %v12091_v16 = vmul.f32 %v11641_v49, %v11967_v53  ;;  %v12095_v25 = vmul.f32 %v11641_v49, %v12005_v52  ;;  %v12099_v43 = vmul.f32 %v11771_v40, %v11967_v53  ;;  %v12102_v29 = vadd.f32 %v947_v35, %v11577_v60  ;;  %v949_v33 = vpop.f32.mrb[9].mxu0  ;;  %v9082_v20 = vpop.f32.mrb[40].mxu1 }
 0x2d7   : > { %v9286_v51 = vpack.c.bf16 %v12083_v14, %v12027_v0  ;;  %v12108_v56 = vmul.f32 %v11771_v40, %v12005_v52  ;;  %v12112_v5 = vmul.f32 %v20363_v12, %v11967_v53  ;;  %v12115_v58 = vadd.f32 %v949_v33, %v11579_v22  ;;  %v1124_v57 = vpop.f32.mrb[41].mxu1  ;;  %v20367_v14 = vld [vmem:[#allocation14_spill] sm:$0xff] }
 0x2d8   : > { %20362 = vst [vmem:[#allocation67_spill] sm:$0xff] %v12102_v29  ;;  %v12118_v11 = vadd.f32 %v9082_v20, %v11581_v63  ;;  %v9318_v13 = vpack.c.bf16 %v12087_v42, %v12031_v27  ;;  %v9288_v0 = vpack.c.bf16 %v12095_v25, %v12091_v16  ;;  %v12125_v32 = vadd.f32 %v1124_v57, %v11581_v63  ;;  %v20368_v42 = vld [vmem:[#allocation10_spill] sm:$0xff] }
 0x2d9   : > { %20364 = vst [vmem:[#allocation4_spill] sm:$0xff] %v12115_v58  ;;  %v9320_v62 = vpack.c.bf16 %v12108_v56, %v12099_v43  ;;  %v12131_v15 = vmul.f32 %v20363_v12, %v12005_v52  ;;  %v12135_v35 = vmul.f32 %v20367_v14, %v11967_v53  ;;  %v953_v33 = vpop.f32.mrb[10].mxu0  ;;  %v12139_v27 = vmul.f32 %v20367_v14, %v12005_v52  ;;  %v20369_v43 = vld [vmem:[#allocation19_spill] sm:$0xff] }
 0x2da   : > { %20365 = vst [vmem:[#allocation68_spill] sm:$0xff] %v12118_v11  ;;  %20366 = vst [vmem:[#allocation69_spill] sm:$0xff] %v12125_v32  ;;  %v12143_v16 = vmul.f32 %v20368_v42, %v11967_v53  ;;  %v12147_v25 = vmul.f32 %v20368_v42, %v12005_v52  ;;  %v12151_v20 = vmul.f32 %v20369_v43, %v11967_v53  ;;  %v955_v57 = vpop.f32.mrb[11].mxu0  ;;  %v9085_v29 = vpop.f32.mrb[42].mxu1  ;;  %9283 = vmatpush3.bf16.xpose.msra.mxu0 %v9282_v10 }
 0x2db   : > { %v12154_v56 = vadd.f32 %v953_v33, %v11577_v60  ;;  %9315 = vmatpush3.bf16.xpose.msra.mxu1 %v9314_v46  ;;  %v12160_v11 = vmul.f32 %v20369_v43, %v12005_v52  ;;  %v12163_v32 = vadd.f32 %v955_v57, %v11579_v22  ;;  %v12166_v44 = vadd.f32 %v9085_v29, %v11581_v63  ;;  %v1134_v45 = vpop.f32.mrb[43].mxu1  ;;  %v20374_v57 = vld [vmem:[#allocation5_spill] sm:$0xff]  ;;  %v20376_v33 = vld [vmem:[#allocation11_spill] sm:$0xff] }
 0x2dc   : > { %9285 = vmatprep.subr.bf16.mxu0 %v9284_v17  ;;  %9317 = vmatprep.subr.bf16.mxu1 %v9316_v18  ;;  %v12171_v46 = vadd.f32 %v1134_v45, %v11581_v63  ;;  %v12183_v17 = vmul.f32 %v20374_v57, %v12005_v52  ;;  %v20375_v18 = vld [vmem:[#allocation15_spill] sm:$0xff]  ;;  %v12195_v37 = vmul.f32 %v20376_v33, %v11967_v53 }
 0x2dd   : > { %20370 = vst [vmem:[#allocation14_spill] sm:$0xff] %v12154_v56  ;;  %20371 = vst [vmem:[#allocation10_spill] sm:$0xff] %v12163_v32  ;;  %v12179_v56 = vmul.f32 %v20374_v57, %v11967_v53  ;;  %v959_v29 = vpop.f32.mrb[12].mxu0  ;;  %v12187_v10 = vmul.f32 %v20375_v18, %v11967_v53  ;;  %v12191_v45 = vmul.f32 %v20375_v18, %v12005_v52  ;;  %v20378_v32 = vld [vmem:[#allocation20_spill] sm:$0xff] }
 0x2de   : > { %20372 = vst [vmem:[#allocation19_spill] sm:$0xff] %v12166_v44  ;;  %20373 = vst [vmem:[#allocation70_spill] sm:$0xff] %v12171_v46  ;;  %v12198_v44 = vadd.f32 %v959_v29, %v11577_v60  ;;  %v961_v46 = vpop.f32.mrb[13].mxu0  ;;  %v9088_v21 = vpop.f32.mrb[44].mxu1  ;;  %v12202_v7 = vmul.f32 %v20376_v33, %v12005_v52  ;;  %v12206_v58 = vmul.f32 %v20378_v32, %v11967_v53 }
 0x2df   : > { %v12210_v31 = vmul.f32 %v20378_v32, %v12005_v52  ;;  %v12213_v8 = vadd.f32 %v961_v46, %v11579_v22  ;;  %v12216_v29 = vadd.f32 %v9088_v21, %v11581_v63  ;;  %v12239_v59 = vmul.f32 %v20383_v1, %v11967_v53 }
 0x2e0   : > { %20377 = vst [vmem:[#allocation5_spill] sm:$0xff] %v12198_v44  ;;  %v1144_v44 = vpop.f32.mrb[45].mxu1  ;;  %v12247_v46 = vmul.f32 %v20384_v24, %v11967_v53  ;;  %v12254_v19 = vmul.f32 %v20384_v24, %v12005_v52  ;;  %v12258_v38 = vmul.f32 %v20386_v39, %v11967_v53 }
 0x2e1   : > { %20379 = vst [vmem:[#allocation15_spill] sm:$0xff] %v12213_v8  ;;  %20380 = vst [vmem:[#allocation71_spill] sm:$0xff] %v12216_v29  ;;  %v12223_v61 = vadd.f32 %v1144_v44, %v11581_v63  ;;  %v20382_v8 = vld [vmem:[#allocation6_spill] sm:$0xff]  ;;  %v965_v29 = vpop.f32.mrb[14].mxu0  ;;  %v12243_v44 = vmul.f32 %v20383_v1, %v12005_v52 }
 0x2e2   : > { %v12231_v21 = vmul.f32 %v20382_v8, %v11967_v53  ;;  %v12235_v28 = vmul.f32 %v20382_v8, %v12005_v52  ;;  %v967_v26 = vpop.f32.mrb[15].mxu0  ;;  %v9091_v36 = vpop.f32.mrb[46].mxu1  ;;  %9287 = vmatpush3.bf16.xpose.msra.mxu0 %v9286_v51 }
 0x2e3   : > { %20381 = vst [vmem:[#allocation72_spill] sm:$0xff] %v12223_v61  ;;  %v12250_v61 = vadd.f32 %v965_v29, %v11577_v60  ;;  %9319 = vmatpush3.bf16.xpose.msra.mxu1 %v9318_v13  ;;  %v12261_v1 = vadd.f32 %v967_v26, %v11579_v22  ;;  %v12264_v8 = vadd.f32 %v9091_v36, %v11581_v63  ;;  %v1154_v29 = vpop.f32.mrb[47].mxu1 }
 0x2e4   : > { %9289 = vmatprep.subr.bf16.mxu0 %v9288_v0  ;;  %9321 = vmatprep.subr.bf16.mxu1 %v9320_v62  ;;  %v12269_v13 = vadd.f32 %v1154_v29, %v11581_v63  ;;  %v12277_v26 = vmul.f32 %v20386_v39, %v12005_v52  ;;  %v20390_v0 = vld [vmem:[#allocation7_spill] sm:$0xff]  ;;  %v20392_v63 = vld [vmem:[#allocation17_spill] sm:$0xff] }
 0x2e5   : > { %20385 = vst [vmem:[#allocation73_spill] sm:$0xff] %v12250_v61  ;;  %20387 = vst [vmem:[#allocation74_spill] sm:$0xff] %v12261_v1  ;;  %v971_v36 = vpop.f32.mrb[16].mxu0  ;;  %v12281_v62 = vmul.f32 %v20390_v0, %v11967_v53  ;;  %v12285_v51 = vmul.f32 %v20390_v0, %v12005_v52  ;;  %v12289_v29 = vmul.f32 %v20392_v63, %v11967_v53  ;;  %v20396_v1 = vld [vmem:[#allocation13_spill] sm:$0xff] }
 0x2e6   : > { %20388 = vst [vmem:[#allocation75_spill] sm:$0xff] %v12264_v8  ;;  %20389 = vst [vmem:[#allocation76_spill] sm:$0xff] %v12269_v13  ;;  %v12293_v24 = vmul.f32 %v20392_v63, %v12005_v52  ;;  %v12296_v61 = vadd.f32 %v971_v36, %v11577_v60  ;;  %v973_v8 = vpop.f32.mrb[17].mxu0  ;;  %v12302_v39 = vmul.f32 %v20396_v1, %v11967_v53 }
 0x2e7   : > { %20391 = vst [vmem:[#allocation77_spill] sm:$0xff] %v12281_v62  ;;  %20393 = vst [vmem:[#allocation78_spill] sm:$0xff] %v12289_v29  ;;  %v12306_v0 = vmul.f32 %v20396_v1, %v12005_v52  ;;  %v12309_v32 = vadd.f32 %v973_v8, %v11579_v22  ;;  %v20401_v8 = vld [vmem:[#allocation8_spill] sm:$0xff]  ;;  %v20402_v29 = vld [vmem:[#allocation18_spill] sm:$0xff]  ;;  %v12431_v62 = vmul.f32 %v11611_v6, %v11977_v3 }
 0x2e8   : > { %20394 = vst [vmem:[#allocation79_spill] sm:$0xff] %v12293_v24  ;;  %20395 = vst [vmem:[#allocation80_spill] sm:$0xff] %v12296_v61  ;;  %v20400_v61 = vld [vmem:[#allocation22_spill] sm:$0xff]  ;;  %v12331_v63 = vmul.f32 %v20401_v8, %v12005_v52  ;;  %v12335_v24 = vmul.f32 %v20402_v29, %v11967_v53  ;;  %v12339_v33 = vmul.f32 %v20402_v29, %v12005_v52 }
 0x2e9   : > { %20397 = vst [vmem:[#allocation81_spill] sm:$0xff] %v12302_v39  ;;  %20398 = vst [vmem:[#allocation82_spill] sm:$0xff] %v12306_v0  ;;  %v12317_v13 = vmul.f32 %v20400_v61, %v11967_v53  ;;  %v12323_v1 = vmul.f32 %v20400_v61, %v12005_v52  ;;  %v977_v36 = vpop.f32.mrb[18].mxu0  ;;  %v12343_v61 = vmul.f32 %v11632_v47, %v11977_v3 }
 0x2ea   : > { %20399 = vst [vmem:[#allocation83_spill] sm:$0xff] %v12309_v32  ;;  %v12327_v32 = vmul.f32 %v20401_v8, %v11967_v53  ;;  %v12347_v39 = vmul.f32 %v11632_v47, %v11970_v55  ;;  %v12350_v8 = vadd.f32 %v977_v36, %v11577_v60  ;;  %v979_v0 = vpop.f32.mrb[19].mxu0  ;;  %v20404_v53 = vpack.c.bf16 %v12131_v15, %v12112_v5 }
 0x2eb   : > { %v20405_v52 = vpack.c.bf16 %v12139_v27, %v12135_v35  ;;  %v12363_v47 = vadd.f32 %v979_v0, %v11579_v22  ;;  %v20407_v36 = vpack.c.bf16 %v12147_v25, %v12143_v16  ;;  %v20408_v5 = vpack.c.bf16 %v12160_v11, %v12151_v20  ;;  %20420 = vst [vmem:[#allocation97_spill] sm:$0xff] %v12431_v62 }
 0x2ec   : > { %20403 = vst [vmem:[#allocation84_spill] sm:$0xff] %v12350_v8  ;;  %9291 = vmatpush3.bf16.xpose.msra.mxu0 %v20404_v53  ;;  %v12377_v27 = vmul.f32 %v11737_v23, %v11977_v3  ;;  %v12381_v0 = vmul.f32 %v11737_v23, %v11970_v55  ;;  %v12385_v16 = vmul.f32 %v11608_v41, %v11977_v3 }
 0x2ed   : > { %9323 = vmatpush3.bf16.xpose.msra.mxu1 %v20405_v52  ;;  %20406 = vst [vmem:[#allocation85_spill] sm:$0xff] %v12363_v47  ;;  %9293 = vmatprep.subr.bf16.mxu0 %v20407_v36  ;;  %v12389_v11 = vmul.f32 %v11608_v41, %v11970_v55  ;;  %v983_v25 = vpop.f32.mrb[20].mxu0  ;;  %v12393_v20 = vmul.f32 %v11662_v54, %v11977_v3 }
 0x2ee   : > { %9325 = vmatprep.subr.bf16.mxu1 %v20408_v5  ;;  %20409 = vst [vmem:[#allocation86_spill] sm:$0xff] %v12377_v27  ;;  %20410 = vst [vmem:[#allocation87_spill] sm:$0xff] %v12385_v16  ;;  %v12397_v53 = vmul.f32 %v11662_v54, %v11970_v55  ;;  %v12401_v52 = vmul.f32 %v11635_v34, %v11977_v3  ;;  %v12405_v36 = vmul.f32 %v11635_v34, %v11970_v55  ;;  %v985_v35 = vpop.f32.mrb[21].mxu0 }
 0x2ef   : > { %20411 = vst [vmem:[#allocation88_spill] sm:$0xff] %v12389_v11  ;;  %20412 = vst [vmem:[#allocation89_spill] sm:$0xff] %v12393_v20  ;;  %v12408_v5 = vadd.f32 %v983_v25, %v11577_v60  ;;  %v12416_v29 = vmul.f32 %v11765_v30, %v11977_v3  ;;  %v12419_v8 = vadd.f32 %v985_v35, %v11579_v22 }
 0x2f0   : > { %20413 = vst [vmem:[#allocation90_spill] sm:$0xff] %v12397_v53  ;;  %20414 = vst [vmem:[#allocation91_spill] sm:$0xff] %v12401_v52  ;;  %v12435_v15 = vmul.f32 %v11611_v6, %v11970_v55  ;;  %v12439_v35 = vmul.f32 %v11689_v2, %v11977_v3  ;;  %v12443_v47 = vmul.f32 %v11689_v2, %v11970_v55 }
 0x2f1   : > { %20415 = vst [vmem:[#allocation92_spill] sm:$0xff] %v12405_v36  ;;  %20416 = vst [vmem:[#allocation93_spill] sm:$0xff] %v12408_v5  ;;  %v12427_v5 = vmul.f32 %v11765_v30, %v11970_v55  ;;  %v989_v25 = vpop.f32.mrb[22].mxu0  ;;  %v12449_v53 = vmul.f32 %v11638_v48, %v11977_v3  ;;  %v12453_v52 = vmul.f32 %v11638_v48, %v11970_v55 }
 0x2f2   : > { %20417 = vst [vmem:[#allocation94_spill] sm:$0xff] %v12416_v29  ;;  %20418 = vst [vmem:[#allocation95_spill] sm:$0xff] %v12419_v8  ;;  %v12457_v36 = vmul.f32 %v11768_v50, %v11977_v3  ;;  %v12460_v16 = vadd.f32 %v989_v25, %v11577_v60  ;;  %v991_v11 = vpop.f32.mrb[23].mxu0  ;;  %v20427_v8 = vpack.c.bf16 %v12183_v17, %v12179_v56 }
 0x2f3   : > { %20419 = vst [vmem:[#allocation96_spill] sm:$0xff] %v12427_v5  ;;  %20421 = vst [vmem:[#allocation98_spill] sm:$0xff] %v12439_v35  ;;  %v20428_v20 = vpack.c.bf16 %v12191_v45, %v12187_v10  ;;  %v12473_v27 = vadd.f32 %v991_v11, %v11579_v22  ;;  %v20429_v25 = vpack.c.bf16 %v12202_v7, %v12195_v37  ;;  %v20482_v35 = vld [vmem:[#allocation78_spill] sm:$0xff] }
 0x2f4   : > { %20422 = vst [vmem:[#allocation99_spill] sm:$0xff] %v12443_v47  ;;  %20423 = vst [vmem:[#allocation100_spill] sm:$0xff] %v12449_v53  ;;  %9295 = vmatpush3.bf16.xpose.msra.mxu0 %v20427_v8  ;;  %v20430_v56 = vpack.c.bf16 %v12210_v31, %v12206_v58  ;;  %v12485_v17 = vmul.f32 %v11768_v50, %v11970_v55  ;;  %v12489_v45 = vmul.f32 %v11614_v9, %v11977_v3 }
 0x2f5   : > { %20424 = vst [vmem:[#allocation101_spill] sm:$0xff] %v12453_v52  ;;  %20425 = vst [vmem:[#allocation102_spill] sm:$0xff] %v12457_v36  ;;  %9327 = vmatpush3.bf16.xpose.msra.mxu1 %v20428_v20  ;;  %9297 = vmatprep.subr.bf16.mxu0 %v20429_v25  ;;  %v12493_v8 = vmul.f32 %v11614_v9, %v11970_v55  ;;  %v12497_v7 = vmul.f32 %v11692_v4, %v11977_v3  ;;  %v995_v37 = vpop.f32.mrb[24].mxu0  ;;  %v20500_v52 = vld [vmem:[#allocation18_spill] sm:$0xff] }
 0x2f6   : > { %20426 = vst [vmem:[#allocation103_spill] sm:$0xff] %v12460_v16  ;;  %9329 = vmatprep.subr.bf16.mxu1 %v20430_v56  ;;  %20431 = vst [vmem:[#allocation104_spill] sm:$0xff] %v12485_v17  ;;  %v12501_v31 = vmul.f32 %v11692_v4, %v11970_v55  ;;  %v12507_v11 = vmul.f32 %v11641_v49, %v11977_v3  ;;  %v12511_v20 = vmul.f32 %v11641_v49, %v11970_v55  ;;  %v997_v5 = vpop.f32.mrb[25].mxu0  ;;  %v20481_v17 = vld [vmem:[#allocation79_spill] sm:$0xff] }
 0x2f7   : > { %20432 = vst [vmem:[#allocation105_spill] sm:$0xff] %v12489_v45  ;;  %20433 = vst [vmem:[#allocation106_spill] sm:$0xff] %v12493_v8  ;;  %v12515_v25 = vmul.f32 %v11771_v40, %v11977_v3  ;;  %v12518_v56 = vadd.f32 %v995_v37, %v11577_v60  ;;  %v12526_v29 = vmul.f32 %v11771_v40, %v11970_v55 }
 0x2f8   : > { %20434 = vst [vmem:[#allocation107_spill] sm:$0xff] %v12497_v7  ;;  %20435 = vst [vmem:[#allocation108_spill] sm:$0xff] %v12501_v31  ;;  %v12529_v16 = vadd.f32 %v997_v5, %v11579_v22  ;;  %v12535_v37 = vmul.f32 %v20363_v12, %v11977_v3  ;;  %v12539_v10 = vmul.f32 %v20363_v12, %v11970_v55 }
 0x2f9   : > { %20436 = vst [vmem:[#allocation109_spill] sm:$0xff] %v12507_v11  ;;  %20437 = vst [vmem:[#allocation110_spill] sm:$0xff] %v12511_v20  ;;  %v12549_v5 = vmul.f32 %v20367_v14, %v11970_v55  ;;  %v12553_v36 = vmul.f32 %v20368_v42, %v11977_v3  ;;  %v1001_v7 = vpop.f32.mrb[26].mxu0  ;;  %v12559_v11 = vmul.f32 %v20368_v42, %v11970_v55 }
 0x2fa   : > { %20438 = vst [vmem:[#allocation111_spill] sm:$0xff] %v12515_v25  ;;  %20439 = vst [vmem:[#allocation112_spill] sm:$0xff] %v12518_v56  ;;  %v12545_v56 = vmul.f32 %v20367_v14, %v11977_v3  ;;  %v12563_v58 = vmul.f32 %v20369_v43, %v11977_v3  ;;  %v12567_v25 = vmul.f32 %v20369_v43, %v11970_v55  ;;  %v1003_v20 = vpop.f32.mrb[27].mxu0 }
 0x2fb   : > { %20440 = vst [vmem:[#allocation113_spill] sm:$0xff] %v12526_v29  ;;  %20441 = vst [vmem:[#allocation114_spill] sm:$0xff] %v12535_v37  ;;  %v12570_v29 = vadd.f32 %v1001_v7, %v11577_v60  ;;  %v20450_v45 = vpack.c.bf16 %v12235_v28, %v12231_v21  ;;  %v20451_v31 = vpack.c.bf16 %v12243_v44, %v12239_v59  ;;  %v20464_v21 = vld [vmem:[#allocation6_spill] sm:$0xff] }
 0x2fc   : > { %20442 = vst [vmem:[#allocation115_spill] sm:$0xff] %v12539_v10  ;;  %20443 = vst [vmem:[#allocation116_spill] sm:$0xff] %v12545_v56  ;;  %v12582_v10 = vmul.f32 %v20374_v57, %v11977_v3  ;;  %v12585_v8 = vadd.f32 %v1003_v20, %v11579_v22  ;;  %v20453_v7 = vpack.c.bf16 %v12254_v19, %v12247_v46  ;;  %v20461_v20 = vld [vmem:[#allocation20_spill] sm:$0xff] }
 0x2fd   : > { %20444 = vst [vmem:[#allocation117_spill] sm:$0xff] %v12549_v5  ;;  %20445 = vst [vmem:[#allocation118_spill] sm:$0xff] %v12553_v36  ;;  %9299 = vmatpush3.bf16.xpose.msra.mxu0 %v20450_v45  ;;  %9331 = vmatpush3.bf16.xpose.msra.mxu1 %v20451_v31  ;;  %v20454_v28 = vpack.c.bf16 %v12277_v26, %v12258_v38  ;;  %v12599_v44 = vmul.f32 %v20374_v57, %v11970_v55  ;;  %v20458_v38 = vld [vmem:[#allocation11_spill] sm:$0xff]  ;;  %v1007_v26 = vpop.f32.mrb[28].mxu0 }
 0x2fe   : > { %20446 = vst [vmem:[#allocation119_spill] sm:$0xff] %v12559_v11  ;;  %20447 = vst [vmem:[#allocation120_spill] sm:$0xff] %v12563_v58  ;;  %9301 = vmatprep.subr.bf16.mxu0 %v20453_v7  ;;  %v12603_v45 = vmul.f32 %v20375_v18, %v11977_v3  ;;  %v12607_v19 = vmul.f32 %v20375_v18, %v11970_v55  ;;  %v12611_v46 = vmul.f32 %v20458_v38, %v11977_v3 }
 0x2ff   : > { %20448 = vst [vmem:[#allocation121_spill] sm:$0xff] %v12567_v25  ;;  %20449 = vst [vmem:[#allocation122_spill] sm:$0xff] %v12570_v29  ;;  %9333 = vmatprep.subr.bf16.mxu1 %v20454_v28  ;;  %v12615_v31 = vmul.f32 %v20458_v38, %v11970_v55  ;;  %v12619_v7 = vmul.f32 %v20461_v20, %v11977_v3  ;;  %v12623_v28 = vmul.f32 %v20461_v20, %v11970_v55  ;;  %v1009_v29 = vpop.f32.mrb[29].mxu0 }
 0x300   : > { %20452 = vst [vmem:[#allocation123_spill] sm:$0xff] %v12582_v10  ;;  %20455 = vst [vmem:[#allocation124_spill] sm:$0xff] %v12599_v44  ;;  %v12627_v37 = vmul.f32 %v20464_v21, %v11977_v3  ;;  %v12630_v59 = vadd.f32 %v1007_v26, %v11577_v60  ;;  %v12638_v56 = vmul.f32 %v20464_v21, %v11970_v55  ;;  %v20479_v10 = vld [vmem:[#allocation77_spill] sm:$0xff] }
 0x301   : > { %20456 = vst [vmem:[#allocation125_spill] sm:$0xff] %v12603_v45  ;;  %20457 = vst [vmem:[#allocation126_spill] sm:$0xff] %v12607_v19  ;;  %v12641_v5 = vadd.f32 %v1009_v29, %v11579_v22  ;;  %v20471_v29 = vld [vmem:[#allocation12_spill] sm:$0xff]  ;;  %v1013_v26 = vpop.f32.mrb[30].mxu0  ;;  %v20480_v44 = vpack.c.bf16 %v12285_v51, %v20479_v10  ;;  %v20483_v47 = vpack.c.bf16 %v20481_v17, %v20482_v35  ;;  %v20488_v10 = vld [vmem:[#allocation17_spill] sm:$0xff] }
 0x302   : > { %20459 = vst [vmem:[#allocation11_spill] sm:$0xff] %v12611_v46  ;;  %20460 = vst [vmem:[#allocation127_spill] sm:$0xff] %v12615_v31  ;;  %v12659_v45 = vmul.f32 %v20471_v29, %v11977_v3  ;;  %v12663_v36 = vmul.f32 %v20471_v29, %v11970_v55  ;;  %v12682_v46 = vadd.f32 %v1013_v26, %v11577_v60  ;;  %v1015_v31 = vpop.f32.mrb[31].mxu0  ;;  %v20484_v60 = vld [vmem:[#allocation82_spill] sm:$0xff]  ;;  %v20485_v26 = vld [vmem:[#allocation81_spill] sm:$0xff] }
 0x303   : > { %20462 = vst [vmem:[#allocation20_spill] sm:$0xff] %v12619_v7  ;;  %20463 = vst [vmem:[#allocation128_spill] sm:$0xff] %v12623_v28  ;;  %v20472_v7 = vld [vmem:[#allocation21_spill] sm:$0xff]  ;;  %v12695_v62 = vadd.f32 %v1015_v31, %v11579_v22  ;;  %v20487_v51 = vpack.c.bf16 %v12323_v1, %v12317_v13  ;;  %v12709_v17 = vmul.f32 %v20488_v10, %v11977_v3  ;;  %v20494_v13 = vld [vmem:[#allocation22_spill] sm:$0xff] }
 0x304   : > { %20465 = vst [vmem:[#allocation6_spill] sm:$0xff] %v12627_v37  ;;  %20466 = vst [vmem:[#allocation129_spill] sm:$0xff] %v12630_v59  ;;  %v20468_v59 = vld [vmem:[#allocation16_spill] sm:$0xff]  ;;  %v12667_v28 = vmul.f32 %v20472_v7, %v11977_v3  ;;  %v12671_v25 = vmul.f32 %v20472_v7, %v11970_v55  ;;  %v20475_v37 = vld [vmem:[#allocation7_spill] sm:$0xff]  ;;  %v12713_v22 = vmul.f32 %v20488_v10, %v11970_v55 }
 0x305   : > { %20467 = vst [vmem:[#allocation130_spill] sm:$0xff] %v12638_v56  ;;  %v12649_v11 = vmul.f32 %v20468_v59, %v11977_v3  ;;  %v12655_v58 = vmul.f32 %v20468_v59, %v11970_v55  ;;  %v12675_v56 = vmul.f32 %v20475_v37, %v11977_v3  ;;  %v12679_v19 = vmul.f32 %v20475_v37, %v11970_v55 }
 0x306   : > { %20473 = vst [vmem:[#allocation12_spill] sm:$0xff] %v12667_v28  ;;  %20474 = vst [vmem:[#allocation21_spill] sm:$0xff] %v12671_v25  ;;  %9303 = vmatpush3.bf16.xpose.msra.mxu0 %v20480_v44  ;;  %9335 = vmatpush3.bf16.xpose.msra.mxu1 %v20483_v47  ;;  %v20491_v44 = vld [vmem:[#allocation13_spill] sm:$0xff]  ;;  %v12725_v31 = vmul.f32 %v20494_v13, %v11977_v3 }
 0x307   : > { %20469 = vst [vmem:[#allocation16_spill] sm:$0xff] %v12649_v11  ;;  %20470 = vst [vmem:[#allocation131_spill] sm:$0xff] %v12655_v58  ;;  %9337 = vmatprep.subr.bf16.mxu1 %v20487_v51  ;;  %v12721_v1 = vmul.f32 %v20491_v44, %v11970_v55  ;;  %v20503_v11 = vld [vmem:[#allocation60_spill] sm:$0xff]  ;;  %v20504_v58 = vld [vmem:[#allocation9_spill] sm:$0xff] }
 0x308   : > { %20476 = vst [vmem:[#allocation7_spill] sm:$0xff] %v12675_v56  ;;  %20477 = vst [vmem:[#allocation132_spill] sm:$0xff] %v12679_v19  ;;  %v12745_v56 = vmul.f32 %v20500_v52, %v11977_v3  ;;  %v12749_v19 = vmul.f32 %v20500_v52, %v11970_v55  ;;  %v12757_v47 = vmul.f32 %v20504_v58, %v20503_v11 }
 0x309   : > { %20478 = vst [vmem:[#allocation133_spill] sm:$0xff] %v12682_v46  ;;  %v20486_v46 = vpack.c.bf16 %v20484_v60, %v20485_v26  ;;  %20489 = vst [vmem:[#allocation77_spill] sm:$0xff] %v12709_v17  ;;  %v12729_v60 = vmul.f32 %v20494_v13, %v11970_v55  ;;  %v20497_v26 = vld [vmem:[#allocation8_spill] sm:$0xff]  ;;  %v12775_v25 = vmul.f32 %v11608_v41, %v20503_v11 }
 0x30a   : > { %20490 = vst [vmem:[#allocation79_spill] sm:$0xff] %v12713_v22  ;;  %20493 = vst [vmem:[#allocation82_spill] sm:$0xff] %v12721_v1  ;;  %v12733_v51 = vmul.f32 %v20497_v26, %v11977_v3  ;;  %v12737_v35 = vmul.f32 %v20497_v26, %v11970_v55  ;;  %v20506_v17 = vld [vmem:[#allocation64_spill] sm:$0xff]  ;;  %v12767_v55 = vmul.f32 %v11737_v23, %v20503_v11 }
 0x30b   : > { %9305 = vmatprep.subr.bf16.mxu0 %v20486_v46  ;;  %v12717_v46 = vmul.f32 %v20491_v44, %v11977_v3  ;;  %20495 = vst [vmem:[#allocation81_spill] sm:$0xff] %v12725_v31  ;;  %20496 = vst [vmem:[#allocation17_spill] sm:$0xff] %v12729_v60  ;;  %v12761_v53 = vmul.f32 %v20504_v58, %v20506_v17  ;;  %v12771_v28 = vmul.f32 %v11737_v23, %v20506_v17  ;;  %v20518_v60 = vld [vmem:[#allocation23_spill] sm:$0xff]  ;;  %v20519_v22 = vld [vmem:[#allocation24_spill] sm:$0xff] }
 0x30c   : > { %20498 = vst [vmem:[#allocation13_spill] sm:$0xff] %v12733_v51  ;;  %20499 = vst [vmem:[#allocation22_spill] sm:$0xff] %v12737_v35  ;;  %v12781_v35 = vmul.f32 %v11608_v41, %v20506_v17  ;;  %v12785_v3 = vmul.f32 %v11662_v54, %v20503_v11  ;;  %v20515_v31 = vpack.c.bf16 %v12339_v33, %v12335_v24 }
 0x30d   : > { %20492 = vst [vmem:[#allocation78_spill] sm:$0xff] %v12717_v46  ;;  %20501 = vst [vmem:[#allocation8_spill] sm:$0xff] %v12745_v56  ;;  %v12789_v56 = vmul.f32 %v11662_v54, %v20506_v17  ;;  %v12815_v33 = vmul.f32 %v11765_v30, %v20503_v11  ;;  %v12833_v24 = vmul.f32 %v11689_v2, %v20503_v11 }
 0x30e   : > { %20502 = vst [vmem:[#allocation18_spill] sm:$0xff] %v12749_v19  ;;  %20505 = vst [vmem:[#allocation60_spill] sm:$0xff] %v12757_v47  ;;  %v20514_v19 = vpack.c.bf16 %v12331_v63, %v12327_v32  ;;  %9339 = vmatpush3.bf16.xpose.msra.mxu1 %v20515_v31  ;;  %v12801_v47 = vmul.f32 %v11635_v34, %v20503_v11  ;;  %v12825_v31 = vmul.f32 %v11611_v6, %v20503_v11 }
 0x30f   : > { %20507 = vst [vmem:[#allocation9_spill] sm:$0xff] %v12761_v53  ;;  %20508 = vst [vmem:[#allocation64_spill] sm:$0xff] %v12767_v55  ;;  %v12805_v53 = vmul.f32 %v11635_v34, %v20506_v17  ;;  %9373 = vmatprep.subr.bf16.mxu1 %v20519_v22  ;;  %v12829_v32 = vmul.f32 %v11611_v6, %v20506_v17  ;;  %v12837_v51 = vmul.f32 %v11689_v2, %v20506_v17 }
 0x310   : > { %20509 = vst [vmem:[#allocation134_spill] sm:$0xff] %v12771_v28  ;;  %20510 = vst [vmem:[#allocation135_spill] sm:$0xff] %v12775_v25  ;;  %9307 = vmatpush3.bf16.xpose.msra.mxu0 %v20514_v19  ;;  %v12821_v19 = vmul.f32 %v11765_v30, %v20506_v17  ;;  %v12841_v63 = vmul.f32 %v11638_v48, %v20503_v11  ;;  %v12845_v22 = vmul.f32 %v11638_v48, %v20506_v17 }
 0x311   : > { %20511 = vst [vmem:[#allocation136_spill] sm:$0xff] %v12781_v35  ;;  %20512 = vst [vmem:[#allocation137_spill] sm:$0xff] %v12785_v3  ;;  %9341 = vmatprep.subr.bf16.mxu0 %v20518_v60  ;;  %v12865_v60 = vmul.f32 %v11614_v9, %v20503_v11  ;;  %v12869_v3 = vmul.f32 %v11614_v9, %v20506_v17  ;;  %v12883_v25 = vmul.f32 %v11641_v49, %v20503_v11  ;;  %v20572_v35 = vld [vmem:[#allocation36_spill] sm:$0xff] }
 0x312   : > { %20513 = vst [vmem:[#allocation138_spill] sm:$0xff] %v12789_v56  ;;  %20516 = vst [vmem:[#allocation139_spill] sm:$0xff] %v12801_v47  ;;  %v12853_v56 = vmul.f32 %v11768_v50, %v20503_v11  ;;  %v12857_v47 = vmul.f32 %v11768_v50, %v20506_v17  ;;  %v13045_v55 = vmul.f32 %v20475_v37, %v20506_v17 }
 0x313   : > { %20517 = vst [vmem:[#allocation140_spill] sm:$0xff] %v12805_v53  ;;  %20520 = vst [vmem:[#allocation141_spill] sm:$0xff] %v12815_v33  ;;  %v12879_v53 = vmul.f32 %v11692_v4, %v20506_v17  ;;  %v12915_v33 = vmul.f32 %v20363_v12, %v20506_v17 }
 0x314   : > { %20521 = vst [vmem:[#allocation142_spill] sm:$0xff] %v12821_v19  ;;  %20522 = vst [vmem:[#allocation143_spill] sm:$0xff] %v12825_v31  ;;  %v12891_v31 = vmul.f32 %v11641_v49, %v20506_v17  ;;  %v20571_v19 = vld [vmem:[#allocation35_spill] sm:$0xff] }
 0x315   : > { %20523 = vst [vmem:[#allocation144_spill] sm:$0xff] %v12829_v32  ;;  %20524 = vst [vmem:[#allocation145_spill] sm:$0xff] %v12833_v24  ;;  %v12875_v32 = vmul.f32 %v11692_v4, %v20503_v11  ;;  %v20535_v24 = vld [vmem:[#allocation48_spill] sm:$0xff] }
 0x316   : > { %20525 = vst [vmem:[#allocation146_spill] sm:$0xff] %v12837_v51  ;;  %20526 = vst [vmem:[#allocation147_spill] sm:$0xff] %v12841_v63  ;;  %7169 = vmatmul.mubr.f32.vlgmr.msra.gmra.mrb[48].mxu1 %v20535_v24  ;;  %v12907_v51 = vmul.f32 %v20363_v12, %v20503_v11  ;;  %v12919_v63 = vmul.f32 %v20367_v14, %v20503_v11 }
 0x317   : > { %20527 = vst [vmem:[#allocation148_spill] sm:$0xff] %v12845_v22  ;;  %20528 = vst [vmem:[#allocation149_spill] sm:$0xff] %v12853_v56  ;;  %7133 = vmatmul.mubr.f32.vlgmr.msra.gmra.mrb[32].mxu0 %v20535_v24  ;;  %v12895_v56 = vmul.f32 %v11771_v40, %v20503_v11  ;;  %v12903_v24 = vmul.f32 %v11771_v40, %v20506_v17  ;;  %v12931_v22 = vmul.f32 %v20368_v42, %v20503_v11 }
 0x318   : > { %20529 = vst [vmem:[#allocation150_spill] sm:$0xff] %v12857_v47  ;;  %20530 = vst [vmem:[#allocation151_spill] sm:$0xff] %v12865_v60  ;;  %v20538_v47 = vld [vmem:[#allocation56_spill] sm:$0xff]  ;;  %v20541_v60 = vld [vmem:[#allocation25_spill] sm:$0xff] }
 0x319   : > { %20531 = vst [vmem:[#allocation152_spill] sm:$0xff] %v12869_v3  ;;  %20532 = vst [vmem:[#allocation153_spill] sm:$0xff] %v12875_v32  ;;  %7134 = vmatprep.mubr.f32.mxu0 %v20538_v47  ;;  %7170 = vmatprep.mubr.f32.mxu1 %v20538_v47  ;;  %v20542_v3 = vld [vmem:[#allocation26_spill] sm:$0xff]  ;;  %v20545_v32 = vld [vmem:[#allocation27_spill] sm:$0xff] }
 0x31a   : > { %20533 = vst [vmem:[#allocation154_spill] sm:$0xff] %v12879_v53  ;;  %20534 = vst [vmem:[#allocation155_spill] sm:$0xff] %v12883_v25  ;;  %9343 = vmatpush3.bf16.msra.mxu0 %v20541_v60  ;;  %9375 = vmatpush3.bf16.msra.mxu1 %v20542_v3  ;;  %v20546_v53 = vld [vmem:[#allocation28_spill] sm:$0xff]  ;;  %v12927_v3 = vmul.f32 %v20367_v14, %v20506_v17  ;;  %v12943_v60 = vmul.f32 %v20369_v43, %v20503_v11 }
 0x31b   : > { %20536 = vst [vmem:[#allocation48_spill] sm:$0xff] %v12891_v31  ;;  %20537 = vst [vmem:[#allocation156_spill] sm:$0xff] %v12895_v56  ;;  %9345 = vmatprep.subr.bf16.mxu0 %v20545_v32  ;;  %9377 = vmatprep.subr.bf16.mxu1 %v20546_v53  ;;  %v12939_v53 = vmul.f32 %v20368_v42, %v20506_v17  ;;  %v12957_v32 = vmul.f32 %v20374_v57, %v20506_v17  ;;  %v20559_v31 = vld [vmem:[#allocation32_spill] sm:$0xff] }
 0x31c   : > { %20539 = vst [vmem:[#allocation56_spill] sm:$0xff] %v12903_v24  ;;  %20540 = vst [vmem:[#allocation157_spill] sm:$0xff] %v12907_v51  ;;  %7135 = vmatmul.mubr.f32.gmra.mrb[34].mxu0 %v20538_v47  ;;  %7171 = vmatmul.mubr.f32.gmra.mrb[50].mxu1 %v20538_v47  ;;  %v12949_v24 = vmul.f32 %v20369_v43, %v20506_v17  ;;  %v12953_v47 = vmul.f32 %v20374_v57, %v20503_v11  ;;  %v20554_v51 = vld [vmem:[#allocation29_spill] sm:$0xff] }
 0x31d   : > { %20543 = vst [vmem:[#allocation158_spill] sm:$0xff] %v12915_v33  ;;  %20544 = vst [vmem:[#allocation159_spill] sm:$0xff] %v12919_v63  ;;  %v20555_v33 = vld [vmem:[#allocation30_spill] sm:$0xff]  ;;  %v12965_v56 = vmul.f32 %v20375_v18, %v20503_v11  ;;  %v12969_v63 = vmul.f32 %v20375_v18, %v20506_v17  ;;  %v12979_v25 = vmul.f32 %v20458_v38, %v20503_v11 }
 0x31e   : > { %20547 = vst [vmem:[#allocation160_spill] sm:$0xff] %v12927_v3  ;;  %20548 = vst [vmem:[#allocation161_spill] sm:$0xff] %v12931_v22  ;;  %9347 = vmatpush3.bf16.msra.mxu0 %v20554_v51  ;;  %9379 = vmatpush3.bf16.msra.mxu1 %v20555_v33  ;;  %v20558_v3 = vld [vmem:[#allocation31_spill] sm:$0xff]  ;;  %v12993_v51 = vmul.f32 %v20461_v20, %v20506_v17  ;;  %v12997_v33 = vmul.f32 %v20464_v21, %v20503_v11 }
 0x31f   : > { %20549 = vst [vmem:[#allocation162_spill] sm:$0xff] %v12939_v53  ;;  %20550 = vst [vmem:[#allocation163_spill] sm:$0xff] %v12943_v60  ;;  %9349 = vmatprep.subr.bf16.mxu0 %v20558_v3  ;;  %9381 = vmatprep.subr.bf16.mxu1 %v20559_v31  ;;  %v12985_v53 = vmul.f32 %v20458_v38, %v20506_v17  ;;  %v12989_v31 = vmul.f32 %v20461_v20, %v20503_v11 }
 0x320   : > { %20551 = vst [vmem:[#allocation164_spill] sm:$0xff] %v12949_v24  ;;  %20552 = vst [vmem:[#allocation165_spill] sm:$0xff] %v12953_v47  ;;  %v13001_v3 = vmul.f32 %v20464_v21, %v20506_v17  ;;  %v13005_v22 = vmul.f32 %v20468_v59, %v20503_v11  ;;  %v20569_v47 = vld [vmem:[#allocation34_spill] sm:$0xff]  ;;  %v13019_v24 = vmul.f32 %v20471_v29, %v20503_v11 }
 0x321   : > { %20553 = vst [vmem:[#allocation166_spill] sm:$0xff] %v12957_v32  ;;  %20556 = vst [vmem:[#allocation167_spill] sm:$0xff] %v12965_v56  ;;  %v13009_v56 = vmul.f32 %v20468_v59, %v20506_v17  ;;  %v13029_v32 = vmul.f32 %v20471_v29, %v20506_v17  ;;  %v13033_v60 = vmul.f32 %v20472_v7, %v20503_v11 }
 0x322   : > { %20557 = vst [vmem:[#allocation168_spill] sm:$0xff] %v12969_v63  ;;  %20560 = vst [vmem:[#allocation169_spill] sm:$0xff] %v12979_v25  ;;  %v20568_v63 = vld [vmem:[#allocation33_spill] sm:$0xff]  ;;  %9383 = vmatpush3.bf16.msra.mxu1 %v20569_v47  ;;  %v13095_v25 = vmul.f32 %v20500_v52, %v20503_v11  ;;  %v20592_v47 = vld [vmem:[#allocation58_spill] sm:$0xff] }
 0x323   : > { %20561 = vst [vmem:[#allocation170_spill] sm:$0xff] %v12985_v53  ;;  %20562 = vst [vmem:[#allocation171_spill] sm:$0xff] %v12989_v31  ;;  %9351 = vmatpush3.bf16.msra.mxu0 %v20568_v63  ;;  %9385 = vmatprep.subr.bf16.mxu1 %v20572_v35  ;;  %v13037_v63 = vmul.f32 %v20472_v7, %v20506_v17  ;;  %v13041_v35 = vmul.f32 %v20475_v37, %v20503_v11 }
 0x324   : > { %20563 = vst [vmem:[#allocation172_spill] sm:$0xff] %v12993_v51  ;;  %20564 = vst [vmem:[#allocation173_spill] sm:$0xff] %v12997_v33  ;;  %9353 = vmatprep.subr.bf16.mxu0 %v20571_v19  ;;  %v13051_v19 = vmul.f32 %v20488_v10, %v20503_v11  ;;  %v20581_v33 = vld [vmem:[#allocation37_spill] sm:$0xff]  ;;  %v20585_v51 = vld [vmem:[#allocation40_spill] sm:$0xff]  ;;  %v13081_v31 = vmul.f32 %v20494_v13, %v20506_v17 }
 0x325   : > { %20565 = vst [vmem:[#allocation174_spill] sm:$0xff] %v13001_v3  ;;  %20566 = vst [vmem:[#allocation175_spill] sm:$0xff] %v13005_v22  ;;  %v13055_v22 = vmul.f32 %v20488_v10, %v20506_v17  ;;  %v20582_v3 = vld [vmem:[#allocation38_spill] sm:$0xff] }
 0x326   : > { %20567 = vst [vmem:[#allocation176_spill] sm:$0xff] %v13009_v56  ;;  %20570 = vst [vmem:[#allocation177_spill] sm:$0xff] %v13019_v24  ;;  %v13059_v56 = vmul.f32 %v20491_v44, %v20503_v11  ;;  %9387 = vmatpush3.bf16.msra.mxu1 %v20582_v3  ;;  %v13069_v24 = vmul.f32 %v20491_v44, %v20506_v17  ;;  %v13077_v3 = vmul.f32 %v20494_v13, %v20503_v11 }
 0x327   : > { %20573 = vst [vmem:[#allocation178_spill] sm:$0xff] %v13029_v32  ;;  %20574 = vst [vmem:[#allocation179_spill] sm:$0xff] %v13033_v60  ;;  %9355 = vmatpush3.bf16.msra.mxu0 %v20581_v33  ;;  %v20584_v32 = vld [vmem:[#allocation39_spill] sm:$0xff]  ;;  %9389 = vmatprep.subr.bf16.mxu1 %v20585_v51  ;;  %v13087_v33 = vmul.f32 %v20497_v26, %v20503_v11  ;;  %v13091_v51 = vmul.f32 %v20497_v26, %v20506_v17 }
 0x328   : > { %20575 = vst [vmem:[#allocation180_spill] sm:$0xff] %v13037_v63  ;;  %20576 = vst [vmem:[#allocation181_spill] sm:$0xff] %v13041_v35  ;;  %9357 = vmatprep.subr.bf16.mxu0 %v20584_v32  ;;  %v20596_v35 = vld [vmem:[#allocation41_spill] sm:$0xff]  ;;  %v13117_v32 = vmul.f32 %v11737_v23, %v20592_v47  ;;  %v13131_v11 = vmul.f32 %v11608_v41, %v20592_v47  ;;  %v20613_v60 = vld [vmem:[#allocation47_spill] sm:$0xff] }
 0x329   : > { %20577 = vst [vmem:[#allocation182_spill] sm:$0xff] %v13045_v55  ;;  %20578 = vst [vmem:[#allocation183_spill] sm:$0xff] %v13051_v19  ;;  %v13101_v19 = vmul.f32 %v20500_v52, %v20506_v17  ;;  %v20597_v55 = vld [vmem:[#allocation42_spill] sm:$0xff]  ;;  %v20614_v63 = vld [vmem:[#allocation49_spill] sm:$0xff] }
 0x32a   : > { %20579 = vst [vmem:[#allocation184_spill] sm:$0xff] %v13055_v22  ;;  %20580 = vst [vmem:[#allocation185_spill] sm:$0xff] %v13059_v56  ;;  %v13105_v22 = vmul.f32 %v20504_v58, %v20592_v47  ;;  %v20594_v56 = vld [vmem:[#allocation57_spill] sm:$0xff]  ;;  %9391 = vmatpush3.bf16.msra.mxu1 %v20597_v55  ;;  %v13149_v55 = vmul.f32 %v11635_v34, %v20592_v47 }
 0x32b   : > { %20583 = vst [vmem:[#allocation186_spill] sm:$0xff] %v13069_v24  ;;  %20586 = vst [vmem:[#allocation187_spill] sm:$0xff] %v13077_v3  ;;  %v13109_v24 = vmul.f32 %v20504_v58, %v20594_v56  ;;  %9359 = vmatpush3.bf16.msra.mxu0 %v20596_v35  ;;  %v13121_v17 = vmul.f32 %v11737_v23, %v20594_v56  ;;  %v20600_v3 = vld [vmem:[#allocation43_spill] sm:$0xff]  ;;  %v13145_v35 = vmul.f32 %v11662_v54, %v20594_v56 }
 0x32c   : > { %20587 = vst [vmem:[#allocation188_spill] sm:$0xff] %v13081_v31  ;;  %20588 = vst [vmem:[#allocation189_spill] sm:$0xff] %v13087_v33  ;;  %9361 = vmatprep.subr.bf16.mxu0 %v20600_v3  ;;  %v20601_v31 = vld [vmem:[#allocation44_spill] sm:$0xff]  ;;  %v13157_v33 = vmul.f32 %v11765_v30, %v20592_v47  ;;  %v13181_v3 = vmul.f32 %v11611_v6, %v20594_v56  ;;  %v13197_v53 = vmul.f32 %v11638_v48, %v20594_v56 }
 0x32d   : > { %20589 = vst [vmem:[#allocation190_spill] sm:$0xff] %v13091_v51  ;;  %20590 = vst [vmem:[#allocation191_spill] sm:$0xff] %v13095_v25  ;;  %9393 = vmatprep.subr.bf16.mxu1 %v20601_v31  ;;  %v13137_v51 = vmul.f32 %v11608_v41, %v20594_v56  ;;  %v13141_v31 = vmul.f32 %v11662_v54, %v20592_v47  ;;  %v13185_v25 = vmul.f32 %v11689_v2, %v20592_v47 }
 0x32e   : > { %20591 = vst [vmem:[#allocation192_spill] sm:$0xff] %v13101_v19  ;;  %20593 = vst [vmem:[#allocation58_spill] sm:$0xff] %v13105_v22  ;;  %v13153_v22 = vmul.f32 %v11635_v34, %v20594_v56  ;;  %v13171_v19 = vmul.f32 %v11611_v6, %v20592_v47 }
 0x32f   : > { %20595 = vst [vmem:[#allocation57_spill] sm:$0xff] %v13109_v24  ;;  %20598 = vst [vmem:[#allocation193_spill] sm:$0xff] %v13117_v32  ;;  %v13161_v32 = vmul.f32 %v11765_v30, %v20594_v56  ;;  %v20611_v24 = vld [vmem:[#allocation46_spill] sm:$0xff] }
 0x330   : > { %20599 = vst [vmem:[#allocation194_spill] sm:$0xff] %v13121_v17  ;;  %20602 = vst [vmem:[#allocation195_spill] sm:$0xff] %v13131_v11  ;;  %v20610_v17 = vld [vmem:[#allocation45_spill] sm:$0xff]  ;;  %9395 = vmatpush3.bf16.msra.mxu1 %v20611_v24  ;;  %v20624_v11 = vld [vmem:[#allocation51_spill] sm:$0xff]  ;;  %v13257_v24 = vmul.f32 %v20363_v12, %v20592_v47 }
 0x331   : > { %20603 = vst [vmem:[#allocation196_spill] sm:$0xff] %v13137_v51  ;;  %20604 = vst [vmem:[#allocation197_spill] sm:$0xff] %v13141_v31  ;;  %9363 = vmatpush3.bf16.msra.mxu0 %v20610_v17  ;;  %9397 = vmatprep.subr.bf16.mxu1 %v20614_v63  ;;  %v13189_v31 = vmul.f32 %v11689_v2, %v20594_v56  ;;  %v20627_v63 = vld [vmem:[#allocation53_spill] sm:$0xff]  ;;  %v13233_v51 = vmul.f32 %v11692_v4, %v20594_v56 }
 0x332   : > { %20605 = vst [vmem:[#allocation198_spill] sm:$0xff] %v13145_v35  ;;  %20606 = vst [vmem:[#allocation199_spill] sm:$0xff] %v13149_v55  ;;  %9365 = vmatprep.subr.bf16.mxu0 %v20613_v60  ;;  %v13193_v35 = vmul.f32 %v11638_v48, %v20592_v47  ;;  %v13211_v55 = vmul.f32 %v11614_v9, %v20592_v47  ;;  %v13247_v60 = vmul.f32 %v11771_v40, %v20592_v47 }
 0x333   : > { %20607 = vst [vmem:[#allocation200_spill] sm:$0xff] %v13153_v22  ;;  %20608 = vst [vmem:[#allocation201_spill] sm:$0xff] %v13157_v33  ;;  %v13203_v33 = vmul.f32 %v11768_v50, %v20592_v47  ;;  %v20623_v22 = vld [vmem:[#allocation50_spill] sm:$0xff] }
 0x334   : > { %20609 = vst [vmem:[#allocation202_spill] sm:$0xff] %v13161_v32  ;;  %20612 = vst [vmem:[#allocation203_spill] sm:$0xff] %v13171_v19  ;;  %v13207_v32 = vmul.f32 %v11768_v50, %v20594_v56  ;;  %9399 = vmatpush3.bf16.msra.mxu1 %v20624_v11  ;;  %v13221_v19 = vmul.f32 %v11614_v9, %v20594_v56  ;;  %v13229_v11 = vmul.f32 %v11692_v4, %v20592_v47 }
 0x335   : > { %20615 = vst [vmem:[#allocation204_spill] sm:$0xff] %v13181_v3  ;;  %20616 = vst [vmem:[#allocation205_spill] sm:$0xff] %v13185_v25  ;;  %9367 = vmatpush3.bf16.msra.mxu0 %v20623_v22  ;;  %v20626_v3 = vld [vmem:[#allocation52_spill] sm:$0xff]  ;;  %9401 = vmatprep.subr.bf16.mxu1 %v20627_v63  ;;  %v13239_v25 = vmul.f32 %v11641_v49, %v20592_v47  ;;  %v20641_v63 = vld [vmem:[#allocation86_spill] sm:$0xff] }
 0x336   : > { %20617 = vst [vmem:[#allocation206_spill] sm:$0xff] %v13189_v31  ;;  %20618 = vst [vmem:[#allocation207_spill] sm:$0xff] %v13193_v35  ;;  %9369 = vmatprep.subr.bf16.mxu0 %v20626_v3  ;;  %v13243_v31 = vmul.f32 %v11641_v49, %v20594_v56  ;;  %v20637_v35 = vld [vmem:[#allocation55_spill] sm:$0xff] }
 0x337   : > { %20619 = vst [vmem:[#allocation208_spill] sm:$0xff] %v13197_v53  ;;  %20620 = vst [vmem:[#allocation209_spill] sm:$0xff] %v13203_v33  ;;  %v13269_v33 = vmul.f32 %v20367_v14, %v20592_v47  ;;  %v13337_v53 = vmul.f32 %v20461_v20, %v20592_v47 }
 0x338   : > { %20621 = vst [vmem:[#allocation210_spill] sm:$0xff] %v13207_v32  ;;  %20622 = vst [vmem:[#allocation211_spill] sm:$0xff] %v13211_v55  ;;  %v13253_v32 = vmul.f32 %v11771_v40, %v20594_v56  ;;  %v13261_v55 = vmul.f32 %v20363_v12, %v20594_v56  ;;  %9403 = vmatpush3.bf16.msra.mxu1 %v20637_v35  ;;  %v13341_v35 = vmul.f32 %v20461_v20, %v20594_v56 }
 0x339   : > { %20625 = vst [vmem:[#allocation212_spill] sm:$0xff] %v13221_v19  ;;  %20628 = vst [vmem:[#allocation213_spill] sm:$0xff] %v13229_v11  ;;  %v20636_v19 = vld [vmem:[#allocation54_spill] sm:$0xff]  ;;  %v13273_v11 = vmul.f32 %v20367_v14, %v20594_v56 }
 0x33a   : > { %20629 = vst [vmem:[#allocation214_spill] sm:$0xff] %v13233_v51  ;;  %20630 = vst [vmem:[#allocation215_spill] sm:$0xff] %v13239_v25  ;;  %9371 = vmatpush3.bf16.msra.mxu0 %v20636_v19  ;;  %v20640_v51 = vpack.c.bf16 %v12347_v39, %v12343_v61  ;;  %v20642_v19 = vpack.c.bf16 %v12381_v0, %v20641_v63  ;;  %v13287_v25 = vmul.f32 %v20368_v42, %v20592_v47 }
 0x33b   : > { %20631 = vst [vmem:[#allocation216_spill] sm:$0xff] %v13243_v31  ;;  %20632 = vst [vmem:[#allocation217_spill] sm:$0xff] %v13247_v60  ;;  %v13293_v61 = vmul.f32 %v20368_v42, %v20594_v56  ;;  %v13297_v39 = vmul.f32 %v20369_v43, %v20592_v47  ;;  %v13301_v0 = vmul.f32 %v20369_v43, %v20594_v56 }
 0x33c   : > { %20633 = vst [vmem:[#allocation218_spill] sm:$0xff] %v13253_v32  ;;  %20634 = vst [vmem:[#allocation219_spill] sm:$0xff] %v13257_v24  ;;  %9405 = vmatprep.subr.bf16.mxu0 %v20640_v51  ;;  %9437 = vmatprep.subr.bf16.mxu1 %v20642_v19  ;;  %v13305_v51 = vmul.f32 %v20374_v57, %v20592_v47  ;;  %v13309_v63 = vmul.f32 %v20374_v57, %v20594_v56 }
 0x33d   : > { %20635 = vst [vmem:[#allocation220_spill] sm:$0xff] %v13261_v55  ;;  %20638 = vst [vmem:[#allocation221_spill] sm:$0xff] %v13269_v33  ;;  %v13313_v19 = vmul.f32 %v20375_v18, %v20592_v47  ;;  %v13317_v31 = vmul.f32 %v20375_v18, %v20594_v56  ;;  %v13325_v33 = vmul.f32 %v20458_v38, %v20592_v47 }
 0x33e   : > { %20639 = vst [vmem:[#allocation222_spill] sm:$0xff] %v13273_v11  ;;  %20643 = vst [vmem:[#allocation86_spill] sm:$0xff] %v13287_v25  ;;  %v13329_v11 = vmul.f32 %v20458_v38, %v20594_v56  ;;  %v13351_v24 = vmul.f32 %v20464_v21, %v20594_v56  ;;  %v13355_v55 = vmul.f32 %v20468_v59, %v20592_v47 }
 0x33f   : > { %20644 = vst [vmem:[#allocation223_spill] sm:$0xff] %v13293_v61  ;;  %20645 = vst [vmem:[#allocation224_spill] sm:$0xff] %v13297_v39  ;;  %v13365_v39 = vmul.f32 %v20471_v29, %v20592_v47  ;;  %v13401_v25 = vmul.f32 %v20488_v10, %v20594_v56  ;;  %v20675_v61 = vld [vmem:[#allocation4_spill] sm:$0xff] }
 0x340   : > { %20646 = vst [vmem:[#allocation225_spill] sm:$0xff] %v13301_v0  ;;  %20647 = vst [vmem:[#allocation226_spill] sm:$0xff] %v13305_v51  ;;  %v13347_v0 = vmul.f32 %v20464_v21, %v20592_v47  ;;  %v13375_v51 = vmul.f32 %v20472_v7, %v20592_v47 }
 0x341   : > { %20648 = vst [vmem:[#allocation227_spill] sm:$0xff] %v13309_v63  ;;  %20649 = vst [vmem:[#allocation228_spill] sm:$0xff] %v13313_v19  ;;  %v13379_v19 = vmul.f32 %v20472_v7, %v20594_v56  ;;  %v13409_v63 = vmul.f32 %v20491_v44, %v20594_v56 }
 0x342   : > { %20650 = vst [vmem:[#allocation229_spill] sm:$0xff] %v13317_v31  ;;  %20651 = vst [vmem:[#allocation230_spill] sm:$0xff] %v13325_v33  ;;  %v13361_v31 = vmul.f32 %v20468_v59, %v20594_v56  ;;  %v13369_v33 = vmul.f32 %v20471_v29, %v20594_v56 }
 0x343   : > { %20652 = vst [vmem:[#allocation231_spill] sm:$0xff] %v13329_v11  ;;  %20653 = vst [vmem:[#allocation232_spill] sm:$0xff] %v13337_v53  ;;  %v13383_v53 = vmul.f32 %v20475_v37, %v20592_v47  ;;  %v13391_v11 = vmul.f32 %v20475_v37, %v20594_v56 }
 0x344   : > { %20654 = vst [vmem:[#allocation233_spill] sm:$0xff] %v13341_v35  ;;  %20655 = vst [vmem:[#allocation234_spill] sm:$0xff] %v13347_v0  ;;  %v13395_v0 = vmul.f32 %v20488_v10, %v20592_v47  ;;  %v13405_v35 = vmul.f32 %v20491_v44, %v20592_v47 }
 0x345   : > { %20656 = vst [vmem:[#allocation235_spill] sm:$0xff] %v13351_v24  ;;  %20657 = vst [vmem:[#allocation236_spill] sm:$0xff] %v13355_v55  ;;  %v13419_v24 = vmul.f32 %v20494_v13, %v20594_v56  ;;  %v13431_v55 = vmul.f32 %v20497_v26, %v20594_v56 }
 0x346   : > { %20658 = vst [vmem:[#allocation237_spill] sm:$0xff] %v13361_v31  ;;  %20659 = vst [vmem:[#allocation238_spill] sm:$0xff] %v13365_v39  ;;  %v13415_v31 = vmul.f32 %v20494_v13, %v20592_v47  ;;  %v20677_v39 = vld [vmem:[#allocation10_spill] sm:$0xff] }
 0x347   : > { %20660 = vst [vmem:[#allocation239_spill] sm:$0xff] %v13369_v33  ;;  %20661 = vst [vmem:[#allocation240_spill] sm:$0xff] %v13375_v51  ;;  %v13423_v51 = vmul.f32 %v20497_v26, %v20592_v47  ;;  %v13441_v33 = vmul.f32 %v20500_v52, %v20594_v56  ;;  %v13463_v56 = vmul.f32 %v11608_v41, %v20675_v61 }
 0x348   : > { %20662 = vst [vmem:[#allocation241_spill] sm:$0xff] %v13379_v19  ;;  %20663 = vst [vmem:[#allocation242_spill] sm:$0xff] %v13383_v53  ;;  %v13435_v53 = vmul.f32 %v20500_v52, %v20592_v47  ;;  %v13445_v19 = vmul.f32 %v20504_v58, %v20675_v61  ;;  %v13455_v47 = vmul.f32 %v11737_v23, %v20675_v61 }
 0x349   : > { %20664 = vst [vmem:[#allocation243_spill] sm:$0xff] %v13391_v11  ;;  %20665 = vst [vmem:[#allocation244_spill] sm:$0xff] %v13395_v0  ;;  %v13449_v0 = vmul.f32 %v20504_v58, %v20677_v39  ;;  %v13459_v11 = vmul.f32 %v11737_v23, %v20677_v39 }
 0x34a   : > { %20666 = vst [vmem:[#allocation245_spill] sm:$0xff] %v13401_v25  ;;  %20667 = vst [vmem:[#allocation246_spill] sm:$0xff] %v13405_v35  ;;  %v13471_v25 = vmul.f32 %v11608_v41, %v20677_v39  ;;  %v13481_v35 = vmul.f32 %v11662_v54, %v20677_v39 }
 0x34b   : > { %20668 = vst [vmem:[#allocation247_spill] sm:$0xff] %v13409_v63  ;;  %20669 = vst [vmem:[#allocation248_spill] sm:$0xff] %v13415_v31  ;;  %v13485_v31 = vmul.f32 %v11635_v34, %v20675_v61  ;;  %v20741_v63 = vld [vmem:[#allocation62_spill] sm:$0xff] }
 0x34c   : > { %20670 = vst [vmem:[#allocation249_spill] sm:$0xff] %v13419_v24  ;;  %20671 = vst [vmem:[#allocation250_spill] sm:$0xff] %v13423_v51  ;;  %v13475_v51 = vmul.f32 %v11662_v54, %v20675_v61  ;;  %v13489_v24 = vmul.f32 %v11635_v34, %v20677_v39 }
 0x34d   : > { %20672 = vst [vmem:[#allocation251_spill] sm:$0xff] %v13431_v55  ;;  %20673 = vst [vmem:[#allocation252_spill] sm:$0xff] %v13435_v53  ;;  %v13499_v55 = vmul.f32 %v11765_v30, %v20677_v39  ;;  %v13511_v53 = vmul.f32 %v11611_v6, %v20677_v39 }
 0x34e   : > { %20674 = vst [vmem:[#allocation253_spill] sm:$0xff] %v13441_v33  ;;  %20676 = vst [vmem:[#allocation4_spill] sm:$0xff] %v13445_v19  ;;  %v13495_v33 = vmul.f32 %v11765_v30, %v20675_v61  ;;  %v13529_v19 = vmul.f32 %v11638_v48, %v20677_v39 }
 0x34f   : > { %20678 = vst [vmem:[#allocation10_spill] sm:$0xff] %v13449_v0  ;;  %20679 = vst [vmem:[#allocation254_spill] sm:$0xff] %v13455_v47  ;;  %v13503_v47 = vmul.f32 %v11611_v6, %v20675_v61  ;;  %v13521_v0 = vmul.f32 %v11689_v2, %v20677_v39 }
 0x350   : > { %20680 = vst [vmem:[#allocation255_spill] sm:$0xff] %v13459_v11  ;;  %20681 = vst [vmem:[#allocation256_spill] sm:$0xff] %v13463_v56  ;;  %v13515_v56 = vmul.f32 %v11689_v2, %v20675_v61  ;;  %v13525_v11 = vmul.f32 %v11638_v48, %v20675_v61 }
 0x351   : > { %20682 = vst [vmem:[#allocation257_spill] sm:$0xff] %v13471_v25  ;;  %20683 = vst [vmem:[#allocation258_spill] sm:$0xff] %v13475_v51  ;;  %v13539_v25 = vmul.f32 %v11768_v50, %v20677_v39  ;;  %v13551_v51 = vmul.f32 %v11614_v9, %v20677_v39 }
 0x352   : > { %20684 = vst [vmem:[#allocation259_spill] sm:$0xff] %v13481_v35  ;;  %20685 = vst [vmem:[#allocation260_spill] sm:$0xff] %v13485_v31  ;;  %v13535_v35 = vmul.f32 %v11768_v50, %v20675_v61  ;;  %v13569_v31 = vmul.f32 %v11641_v49, %v20677_v39 }
 0x353   : > { %20686 = vst [vmem:[#allocation261_spill] sm:$0xff] %v13489_v24  ;;  %20687 = vst [vmem:[#allocation262_spill] sm:$0xff] %v13495_v33  ;;  %v13543_v33 = vmul.f32 %v11614_v9, %v20675_v61  ;;  %v13561_v24 = vmul.f32 %v11692_v4, %v20677_v39 }
 0x354   : > { %20688 = vst [vmem:[#allocation263_spill] sm:$0xff] %v13499_v55  ;;  %20689 = vst [vmem:[#allocation264_spill] sm:$0xff] %v13503_v47  ;;  %v13555_v47 = vmul.f32 %v11692_v4, %v20675_v61  ;;  %v13565_v55 = vmul.f32 %v11641_v49, %v20675_v61 }
 0x355   : > { %20690 = vst [vmem:[#allocation265_spill] sm:$0xff] %v13511_v53  ;;  %20691 = vst [vmem:[#allocation266_spill] sm:$0xff] %v13515_v56  ;;  %v13579_v53 = vmul.f32 %v11771_v40, %v20677_v39  ;;  %v13591_v56 = vmul.f32 %v20363_v12, %v20677_v39 }
 0x356   : > { %20692 = vst [vmem:[#allocation267_spill] sm:$0xff] %v13521_v0  ;;  %20693 = vst [vmem:[#allocation268_spill] sm:$0xff] %v13525_v11  ;;  %v13575_v0 = vmul.f32 %v11771_v40, %v20675_v61  ;;  %v13609_v11 = vmul.f32 %v20368_v42, %v20677_v39 }
 0x357   : > { %20694 = vst [vmem:[#allocation269_spill] sm:$0xff] %v13529_v19  ;;  %20695 = vst [vmem:[#allocation270_spill] sm:$0xff] %v13535_v35  ;;  %v13583_v35 = vmul.f32 %v20363_v12, %v20675_v61  ;;  %v13601_v19 = vmul.f32 %v20367_v14, %v20677_v39 }
 0x358   : > { %20696 = vst [vmem:[#allocation271_spill] sm:$0xff] %v13539_v25  ;;  %20697 = vst [vmem:[#allocation272_spill] sm:$0xff] %v13543_v33  ;;  %v13595_v33 = vmul.f32 %v20367_v14, %v20675_v61  ;;  %v13605_v25 = vmul.f32 %v20368_v42, %v20675_v61 }
 0x359   : > { %20698 = vst [vmem:[#allocation273_spill] sm:$0xff] %v13551_v51  ;;  %20699 = vst [vmem:[#allocation274_spill] sm:$0xff] %v13555_v47  ;;  %v13619_v51 = vmul.f32 %v20369_v43, %v20677_v39  ;;  %v13631_v47 = vmul.f32 %v20374_v57, %v20677_v39 }
 0x35a   : > { %20700 = vst [vmem:[#allocation275_spill] sm:$0xff] %v13561_v24  ;;  %20701 = vst [vmem:[#allocation276_spill] sm:$0xff] %v13565_v55  ;;  %v13615_v24 = vmul.f32 %v20369_v43, %v20675_v61  ;;  %v13649_v55 = vmul.f32 %v20458_v38, %v20677_v39 }
 0x35b   : > { %20702 = vst [vmem:[#allocation277_spill] sm:$0xff] %v13569_v31  ;;  %20703 = vst [vmem:[#allocation278_spill] sm:$0xff] %v13575_v0  ;;  %v13623_v0 = vmul.f32 %v20374_v57, %v20675_v61  ;;  %v13641_v31 = vmul.f32 %v20375_v18, %v20677_v39 }
 0x35c   : > { %20704 = vst [vmem:[#allocation279_spill] sm:$0xff] %v13579_v53  ;;  %20705 = vst [vmem:[#allocation280_spill] sm:$0xff] %v13583_v35  ;;  %v13635_v35 = vmul.f32 %v20375_v18, %v20675_v61  ;;  %v13645_v53 = vmul.f32 %v20458_v38, %v20675_v61 }
 0x35d   : > { %20706 = vst [vmem:[#allocation281_spill] sm:$0xff] %v13591_v56  ;;  %20707 = vst [vmem:[#allocation282_spill] sm:$0xff] %v13595_v33  ;;  %v13659_v56 = vmul.f32 %v20461_v20, %v20677_v39  ;;  %v13671_v33 = vmul.f32 %v20464_v21, %v20677_v39 }
 0x35e   : > { %20708 = vst [vmem:[#allocation283_spill] sm:$0xff] %v13601_v19  ;;  %20709 = vst [vmem:[#allocation284_spill] sm:$0xff] %v13605_v25  ;;  %v13655_v19 = vmul.f32 %v20461_v20, %v20675_v61  ;;  %v13689_v25 = vmul.f32 %v20471_v29, %v20677_v39 }
 0x35f   : > { %20710 = vst [vmem:[#allocation285_spill] sm:$0xff] %v13609_v11  ;;  %20711 = vst [vmem:[#allocation286_spill] sm:$0xff] %v13615_v24  ;;  %v13663_v24 = vmul.f32 %v20464_v21, %v20675_v61  ;;  %v13681_v11 = vmul.f32 %v20468_v59, %v20677_v39 }
 0x360   : > { %20712 = vst [vmem:[#allocation287_spill] sm:$0xff] %v13619_v51  ;;  %20713 = vst [vmem:[#allocation288_spill] sm:$0xff] %v13623_v0  ;;  %v13675_v0 = vmul.f32 %v20468_v59, %v20675_v61  ;;  %v13685_v51 = vmul.f32 %v20471_v29, %v20675_v61 }
 0x361   : > { %20714 = vst [vmem:[#allocation289_spill] sm:$0xff] %v13631_v47  ;;  %20715 = vst [vmem:[#allocation290_spill] sm:$0xff] %v13635_v35  ;;  %v13699_v47 = vmul.f32 %v20472_v7, %v20677_v39  ;;  %v13711_v35 = vmul.f32 %v20475_v37, %v20677_v39 }
 0x362   : > { %20716 = vst [vmem:[#allocation291_spill] sm:$0xff] %v13641_v31  ;;  %20717 = vst [vmem:[#allocation292_spill] sm:$0xff] %v13645_v53  ;;  %v13695_v31 = vmul.f32 %v20472_v7, %v20675_v61  ;;  %v13729_v53 = vmul.f32 %v20491_v44, %v20677_v39 }
 0x363   : > { %20718 = vst [vmem:[#allocation293_spill] sm:$0xff] %v13649_v55  ;;  %20719 = vst [vmem:[#allocation294_spill] sm:$0xff] %v13655_v19  ;;  %v13703_v19 = vmul.f32 %v20475_v37, %v20675_v61  ;;  %v13721_v55 = vmul.f32 %v20488_v10, %v20677_v39 }
 0x364   : > { %20720 = vst [vmem:[#allocation295_spill] sm:$0xff] %v13659_v56  ;;  %20721 = vst [vmem:[#allocation296_spill] sm:$0xff] %v13663_v24  ;;  %v13715_v24 = vmul.f32 %v20488_v10, %v20675_v61  ;;  %v13725_v56 = vmul.f32 %v20491_v44, %v20675_v61 }
 0x365   : > { %20722 = vst [vmem:[#allocation297_spill] sm:$0xff] %v13671_v33  ;;  %20723 = vst [vmem:[#allocation298_spill] sm:$0xff] %v13675_v0  ;;  %v13739_v33 = vmul.f32 %v20494_v13, %v20677_v39  ;;  %v13751_v0 = vmul.f32 %v20497_v26, %v20677_v39 }
 0x366   : > { %20724 = vst [vmem:[#allocation299_spill] sm:$0xff] %v13681_v11  ;;  %20725 = vst [vmem:[#allocation300_spill] sm:$0xff] %v13685_v51  ;;  %v13735_v11 = vmul.f32 %v20494_v13, %v20675_v61  ;;  %v20743_v51 = vld [vmem:[#allocation61_spill] sm:$0xff] }
 0x367   : > { %20726 = vst [vmem:[#allocation301_spill] sm:$0xff] %v13689_v25  ;;  %20727 = vst [vmem:[#allocation302_spill] sm:$0xff] %v13695_v31  ;;  %v13743_v31 = vmul.f32 %v20497_v26, %v20675_v61  ;;  %v13761_v25 = vmul.f32 %v20500_v52, %v20677_v39  ;;  %v13783_v39 = vmul.f32 %v11608_v41, %v20741_v63 }
 0x368   : > { %20728 = vst [vmem:[#allocation303_spill] sm:$0xff] %v13699_v47  ;;  %20729 = vst [vmem:[#allocation304_spill] sm:$0xff] %v13703_v19  ;;  %v13755_v19 = vmul.f32 %v20500_v52, %v20675_v61  ;;  %v13765_v47 = vmul.f32 %v20504_v58, %v20741_v63  ;;  %v13775_v61 = vmul.f32 %v11737_v23, %v20741_v63 }
 0x369   : > { %20730 = vst [vmem:[#allocation305_spill] sm:$0xff] %v13711_v35  ;;  %20731 = vst [vmem:[#allocation306_spill] sm:$0xff] %v13715_v24  ;;  %v13769_v24 = vmul.f32 %v20504_v58, %v20743_v51  ;;  %v13779_v35 = vmul.f32 %v11737_v23, %v20743_v51 }
 0x36a   : > { %20732 = vst [vmem:[#allocation307_spill] sm:$0xff] %v13721_v55  ;;  %20733 = vst [vmem:[#allocation308_spill] sm:$0xff] %v13725_v56  ;;  %v13791_v55 = vmul.f32 %v11608_v41, %v20743_v51  ;;  %v13801_v56 = vmul.f32 %v11662_v54, %v20743_v51 }
 0x36b   : > { %20734 = vst [vmem:[#allocation309_spill] sm:$0xff] %v13729_v53  ;;  %20735 = vst [vmem:[#allocation310_spill] sm:$0xff] %v13735_v11  ;;  %v13805_v11 = vmul.f32 %v11635_v34, %v20741_v63  ;;  %v20807_v53 = vld [vmem:[#allocation15_spill] sm:$0xff] }
 0x36c   : > { %20736 = vst [vmem:[#allocation311_spill] sm:$0xff] %v13739_v33  ;;  %20737 = vst [vmem:[#allocation312_spill] sm:$0xff] %v13743_v31  ;;  %v13795_v31 = vmul.f32 %v11662_v54, %v20741_v63  ;;  %v13809_v33 = vmul.f32 %v11635_v34, %v20743_v51 }
 0x36d   : > { %20738 = vst [vmem:[#allocation313_spill] sm:$0xff] %v13751_v0  ;;  %20739 = vst [vmem:[#allocation314_spill] sm:$0xff] %v13755_v19  ;;  %v13819_v0 = vmul.f32 %v11765_v30, %v20743_v51  ;;  %v13849_v19 = vmul.f32 %v11638_v48, %v20743_v51 }
 0x36e   : > { %20740 = vst [vmem:[#allocation315_spill] sm:$0xff] %v13761_v25  ;;  %20742 = vst [vmem:[#allocation62_spill] sm:$0xff] %v13765_v47  ;;  %v13831_v47 = vmul.f32 %v11611_v6, %v20743_v51  ;;  %v13841_v25 = vmul.f32 %v11689_v2, %v20743_v51 }
 0x36f   : > { %20744 = vst [vmem:[#allocation61_spill] sm:$0xff] %v13769_v24  ;;  %20745 = vst [vmem:[#allocation316_spill] sm:$0xff] %v13775_v61  ;;  %v13815_v24 = vmul.f32 %v11765_v30, %v20741_v63  ;;  %v13823_v61 = vmul.f32 %v11611_v6, %v20741_v63 }
 0x370   : > { %20746 = vst [vmem:[#allocation317_spill] sm:$0xff] %v13779_v35  ;;  %20747 = vst [vmem:[#allocation318_spill] sm:$0xff] %v13783_v39  ;;  %v13835_v39 = vmul.f32 %v11689_v2, %v20741_v63  ;;  %v13845_v35 = vmul.f32 %v11638_v48, %v20741_v63 }
 0x371   : > { %20748 = vst [vmem:[#allocation319_spill] sm:$0xff] %v13791_v55  ;;  %20749 = vst [vmem:[#allocation320_spill] sm:$0xff] %v13795_v31  ;;  %v13859_v55 = vmul.f32 %v11768_v50, %v20743_v51  ;;  %v13871_v31 = vmul.f32 %v11614_v9, %v20743_v51 }
 0x372   : > { %20750 = vst [vmem:[#allocation321_spill] sm:$0xff] %v13801_v56  ;;  %20751 = vst [vmem:[#allocation322_spill] sm:$0xff] %v13805_v11  ;;  %v13855_v56 = vmul.f32 %v11768_v50, %v20741_v63  ;;  %v13889_v11 = vmul.f32 %v11641_v49, %v20743_v51 }
 0x373   : > { %20752 = vst [vmem:[#allocation323_spill] sm:$0xff] %v13809_v33  ;;  %20753 = vst [vmem:[#allocation324_spill] sm:$0xff] %v13815_v24  ;;  %v13863_v24 = vmul.f32 %v11614_v9, %v20741_v63  ;;  %v13881_v33 = vmul.f32 %v11692_v4, %v20743_v51 }
 0x374   : > { %20754 = vst [vmem:[#allocation325_spill] sm:$0xff] %v13819_v0  ;;  %20755 = vst [vmem:[#allocation326_spill] sm:$0xff] %v13823_v61  ;;  %v13875_v61 = vmul.f32 %v11692_v4, %v20741_v63  ;;  %v13885_v0 = vmul.f32 %v11641_v49, %v20741_v63 }
 0x375   : > { %20756 = vst [vmem:[#allocation327_spill] sm:$0xff] %v13831_v47  ;;  %20757 = vst [vmem:[#allocation328_spill] sm:$0xff] %v13835_v39  ;;  %v13899_v47 = vmul.f32 %v11771_v40, %v20743_v51  ;;  %v13911_v39 = vmul.f32 %v20363_v12, %v20743_v51 }
 0x376   : > { %20758 = vst [vmem:[#allocation329_spill] sm:$0xff] %v13841_v25  ;;  %20759 = vst [vmem:[#allocation330_spill] sm:$0xff] %v13845_v35  ;;  %v13895_v25 = vmul.f32 %v11771_v40, %v20741_v63  ;;  %v13929_v35 = vmul.f32 %v20368_v42, %v20743_v51 }
 0x377   : > { %20760 = vst [vmem:[#allocation331_spill] sm:$0xff] %v13849_v19  ;;  %20761 = vst [vmem:[#allocation332_spill] sm:$0xff] %v13855_v56  ;;  %v13903_v56 = vmul.f32 %v20363_v12, %v20741_v63  ;;  %v13921_v19 = vmul.f32 %v20367_v14, %v20743_v51 }
 0x378   : > { %20762 = vst [vmem:[#allocation333_spill] sm:$0xff] %v13859_v55  ;;  %20763 = vst [vmem:[#allocation334_spill] sm:$0xff] %v13863_v24  ;;  %v13915_v24 = vmul.f32 %v20367_v14, %v20741_v63  ;;  %v13925_v55 = vmul.f32 %v20368_v42, %v20741_v63 }
 0x379   : > { %20764 = vst [vmem:[#allocation335_spill] sm:$0xff] %v13871_v31  ;;  %20765 = vst [vmem:[#allocation336_spill] sm:$0xff] %v13875_v61  ;;  %v13939_v31 = vmul.f32 %v20369_v43, %v20743_v51  ;;  %v13951_v61 = vmul.f32 %v20374_v57, %v20743_v51 }
 0x37a   : > { %20766 = vst [vmem:[#allocation337_spill] sm:$0xff] %v13881_v33  ;;  %20767 = vst [vmem:[#allocation338_spill] sm:$0xff] %v13885_v0  ;;  %v13935_v33 = vmul.f32 %v20369_v43, %v20741_v63  ;;  %v13969_v0 = vmul.f32 %v20458_v38, %v20743_v51 }
 0x37b   : > { %20768 = vst [vmem:[#allocation339_spill] sm:$0xff] %v13889_v11  ;;  %20769 = vst [vmem:[#allocation340_spill] sm:$0xff] %v13895_v25  ;;  %v13943_v25 = vmul.f32 %v20374_v57, %v20741_v63  ;;  %v13961_v11 = vmul.f32 %v20375_v18, %v20743_v51 }
 0x37c   : > { %20770 = vst [vmem:[#allocation341_spill] sm:$0xff] %v13899_v47  ;;  %20771 = vst [vmem:[#allocation342_spill] sm:$0xff] %v13903_v56  ;;  %v13955_v56 = vmul.f32 %v20375_v18, %v20741_v63  ;;  %v13965_v47 = vmul.f32 %v20458_v38, %v20741_v63 }
 0x37d   : > { %20772 = vst [vmem:[#allocation343_spill] sm:$0xff] %v13911_v39  ;;  %20773 = vst [vmem:[#allocation344_spill] sm:$0xff] %v13915_v24  ;;  %v13979_v39 = vmul.f32 %v20461_v20, %v20743_v51  ;;  %v13991_v24 = vmul.f32 %v20464_v21, %v20743_v51 }
 0x37e   : > { %20774 = vst [vmem:[#allocation345_spill] sm:$0xff] %v13921_v19  ;;  %20775 = vst [vmem:[#allocation346_spill] sm:$0xff] %v13925_v55  ;;  %v13975_v19 = vmul.f32 %v20461_v20, %v20741_v63  ;;  %v14009_v55 = vmul.f32 %v20471_v29, %v20743_v51 }
 0x37f   : > { %20776 = vst [vmem:[#allocation347_spill] sm:$0xff] %v13929_v35  ;;  %20777 = vst [vmem:[#allocation348_spill] sm:$0xff] %v13935_v33  ;;  %v13983_v33 = vmul.f32 %v20464_v21, %v20741_v63  ;;  %v14001_v35 = vmul.f32 %v20468_v59, %v20743_v51 }
 0x380   : > { %20778 = vst [vmem:[#allocation349_spill] sm:$0xff] %v13939_v31  ;;  %20779 = vst [vmem:[#allocation350_spill] sm:$0xff] %v13943_v25  ;;  %v13995_v25 = vmul.f32 %v20468_v59, %v20741_v63  ;;  %v14005_v31 = vmul.f32 %v20471_v29, %v20741_v63 }
 0x381   : > { %20780 = vst [vmem:[#allocation351_spill] sm:$0xff] %v13951_v61  ;;  %20781 = vst [vmem:[#allocation352_spill] sm:$0xff] %v13955_v56  ;;  %v14019_v61 = vmul.f32 %v20472_v7, %v20743_v51  ;;  %v14031_v56 = vmul.f32 %v20475_v37, %v20743_v51 }
 0x382   : > { %20782 = vst [vmem:[#allocation353_spill] sm:$0xff] %v13961_v11  ;;  %20783 = vst [vmem:[#allocation354_spill] sm:$0xff] %v13965_v47  ;;  %v14015_v11 = vmul.f32 %v20472_v7, %v20741_v63  ;;  %v14049_v47 = vmul.f32 %v20491_v44, %v20743_v51 }
 0x383   : > { %20784 = vst [vmem:[#allocation355_spill] sm:$0xff] %v13969_v0  ;;  %20785 = vst [vmem:[#allocation356_spill] sm:$0xff] %v13975_v19  ;;  %v14023_v19 = vmul.f32 %v20475_v37, %v20741_v63  ;;  %v14041_v0 = vmul.f32 %v20488_v10, %v20743_v51 }
 0x384   : > { %20786 = vst [vmem:[#allocation357_spill] sm:$0xff] %v13979_v39  ;;  %20787 = vst [vmem:[#allocation358_spill] sm:$0xff] %v13983_v33  ;;  %v14035_v33 = vmul.f32 %v20488_v10, %v20741_v63  ;;  %v14045_v39 = vmul.f32 %v20491_v44, %v20741_v63 }
 0x385   : > { %20788 = vst [vmem:[#allocation359_spill] sm:$0xff] %v13991_v24  ;;  %20789 = vst [vmem:[#allocation360_spill] sm:$0xff] %v13995_v25  ;;  %v14059_v24 = vmul.f32 %v20494_v13, %v20743_v51  ;;  %v14071_v25 = vmul.f32 %v20497_v26, %v20743_v51 }
 0x386   : > { %20790 = vst [vmem:[#allocation361_spill] sm:$0xff] %v14001_v35  ;;  %20791 = vst [vmem:[#allocation362_spill] sm:$0xff] %v14005_v31  ;;  %v14055_v35 = vmul.f32 %v20494_v13, %v20741_v63  ;;  %v20809_v31 = vld [vmem:[#allocation74_spill] sm:$0xff] }
 0x387   : > { %20792 = vst [vmem:[#allocation363_spill] sm:$0xff] %v14009_v55  ;;  %20793 = vst [vmem:[#allocation364_spill] sm:$0xff] %v14015_v11  ;;  %v14063_v11 = vmul.f32 %v20497_v26, %v20741_v63  ;;  %v14081_v55 = vmul.f32 %v20500_v52, %v20743_v51  ;;  %v14103_v51 = vmul.f32 %v11608_v41, %v20807_v53 }
 0x388   : > { %20794 = vst [vmem:[#allocation365_spill] sm:$0xff] %v14019_v61  ;;  %20795 = vst [vmem:[#allocation366_spill] sm:$0xff] %v14023_v19  ;;  %v14075_v19 = vmul.f32 %v20500_v52, %v20741_v63  ;;  %v14085_v61 = vmul.f32 %v20504_v58, %v20807_v53  ;;  %v14095_v63 = vmul.f32 %v11737_v23, %v20807_v53 }
 0x389   : > { %20796 = vst [vmem:[#allocation367_spill] sm:$0xff] %v14031_v56  ;;  %20797 = vst [vmem:[#allocation368_spill] sm:$0xff] %v14035_v33  ;;  %v14089_v33 = vmul.f32 %v20504_v58, %v20809_v31  ;;  %v14099_v56 = vmul.f32 %v11737_v23, %v20809_v31 }
 0x38a   : > { %20798 = vst [vmem:[#allocation369_spill] sm:$0xff] %v14041_v0  ;;  %20799 = vst [vmem:[#allocation370_spill] sm:$0xff] %v14045_v39  ;;  %v14111_v0 = vmul.f32 %v11608_v41, %v20809_v31  ;;  %v14121_v39 = vmul.f32 %v11662_v54, %v20809_v31 }
 0x38b   : > { %20800 = vst [vmem:[#allocation371_spill] sm:$0xff] %v14049_v47  ;;  %20801 = vst [vmem:[#allocation372_spill] sm:$0xff] %v14055_v35  ;;  %v14125_v35 = vmul.f32 %v11635_v34, %v20807_v53  ;;  %v20873_v47 = vld [vmem:[#allocation66_spill] sm:$0xff] }
 0x38c   : > { %20802 = vst [vmem:[#allocation373_spill] sm:$0xff] %v14059_v24  ;;  %20803 = vst [vmem:[#allocation374_spill] sm:$0xff] %v14063_v11  ;;  %v14115_v11 = vmul.f32 %v11662_v54, %v20807_v53  ;;  %v14129_v24 = vmul.f32 %v11635_v34, %v20809_v31 }
 0x38d   : > { %20804 = vst [vmem:[#allocation375_spill] sm:$0xff] %v14071_v25  ;;  %20805 = vst [vmem:[#allocation376_spill] sm:$0xff] %v14075_v19  ;;  %v14139_v25 = vmul.f32 %v11765_v30, %v20809_v31  ;;  %v14151_v19 = vmul.f32 %v11611_v6, %v20809_v31 }
 0x38e   : > { %20806 = vst [vmem:[#allocation377_spill] sm:$0xff] %v14081_v55  ;;  %20808 = vst [vmem:[#allocation15_spill] sm:$0xff] %v14085_v61  ;;  %v14135_v55 = vmul.f32 %v11765_v30, %v20807_v53  ;;  %v14169_v61 = vmul.f32 %v11638_v48, %v20809_v31 }
 0x38f   : > { %20810 = vst [vmem:[#allocation74_spill] sm:$0xff] %v14089_v33  ;;  %20811 = vst [vmem:[#allocation378_spill] sm:$0xff] %v14095_v63  ;;  %v14143_v63 = vmul.f32 %v11611_v6, %v20807_v53  ;;  %v14161_v33 = vmul.f32 %v11689_v2, %v20809_v31 }
 0x390   : > { %20812 = vst [vmem:[#allocation379_spill] sm:$0xff] %v14099_v56  ;;  %20813 = vst [vmem:[#allocation380_spill] sm:$0xff] %v14103_v51  ;;  %v14155_v51 = vmul.f32 %v11689_v2, %v20807_v53  ;;  %v14165_v56 = vmul.f32 %v11638_v48, %v20807_v53 }
 0x391   : > { %20814 = vst [vmem:[#allocation381_spill] sm:$0xff] %v14111_v0  ;;  %20815 = vst [vmem:[#allocation382_spill] sm:$0xff] %v14115_v11  ;;  %v14179_v0 = vmul.f32 %v11768_v50, %v20809_v31  ;;  %v14191_v11 = vmul.f32 %v11614_v9, %v20809_v31 }
 0x392   : > { %20816 = vst [vmem:[#allocation383_spill] sm:$0xff] %v14121_v39  ;;  %20817 = vst [vmem:[#allocation384_spill] sm:$0xff] %v14125_v35  ;;  %v14175_v39 = vmul.f32 %v11768_v50, %v20807_v53  ;;  %v14209_v35 = vmul.f32 %v11641_v49, %v20809_v31 }
 0x393   : > { %20818 = vst [vmem:[#allocation385_spill] sm:$0xff] %v14129_v24  ;;  %20819 = vst [vmem:[#allocation386_spill] sm:$0xff] %v14135_v55  ;;  %v14183_v55 = vmul.f32 %v11614_v9, %v20807_v53  ;;  %v14201_v24 = vmul.f32 %v11692_v4, %v20809_v31 }
 0x394   : > { %20820 = vst [vmem:[#allocation387_spill] sm:$0xff] %v14139_v25  ;;  %20821 = vst [vmem:[#allocation388_spill] sm:$0xff] %v14143_v63  ;;  %v14195_v63 = vmul.f32 %v11692_v4, %v20807_v53  ;;  %v14205_v25 = vmul.f32 %v11641_v49, %v20807_v53 }
 0x395   : > { %20822 = vst [vmem:[#allocation389_spill] sm:$0xff] %v14151_v19  ;;  %20823 = vst [vmem:[#allocation390_spill] sm:$0xff] %v14155_v51  ;;  %v14219_v19 = vmul.f32 %v11771_v40, %v20809_v31  ;;  %v14231_v51 = vmul.f32 %v20363_v12, %v20809_v31 }
 0x396   : > { %20824 = vst [vmem:[#allocation391_spill] sm:$0xff] %v14161_v33  ;;  %20825 = vst [vmem:[#allocation392_spill] sm:$0xff] %v14165_v56  ;;  %v14215_v33 = vmul.f32 %v11771_v40, %v20807_v53  ;;  %v14249_v56 = vmul.f32 %v20368_v42, %v20809_v31 }
 0x397   : > { %20826 = vst [vmem:[#allocation393_spill] sm:$0xff] %v14169_v61  ;;  %20827 = vst [vmem:[#allocation394_spill] sm:$0xff] %v14175_v39  ;;  %v14223_v39 = vmul.f32 %v20363_v12, %v20807_v53  ;;  %v14241_v61 = vmul.f32 %v20367_v14, %v20809_v31 }
 0x398   : > { %20828 = vst [vmem:[#allocation395_spill] sm:$0xff] %v14179_v0  ;;  %20829 = vst [vmem:[#allocation396_spill] sm:$0xff] %v14183_v55  ;;  %v14235_v55 = vmul.f32 %v20367_v14, %v20807_v53  ;;  %v14245_v0 = vmul.f32 %v20368_v42, %v20807_v53 }
 0x399   : > { %20830 = vst [vmem:[#allocation397_spill] sm:$0xff] %v14191_v11  ;;  %20831 = vst [vmem:[#allocation398_spill] sm:$0xff] %v14195_v63  ;;  %v14259_v11 = vmul.f32 %v20369_v43, %v20809_v31  ;;  %v14271_v63 = vmul.f32 %v20374_v57, %v20809_v31 }
 0x39a   : > { %20832 = vst [vmem:[#allocation399_spill] sm:$0xff] %v14201_v24  ;;  %20833 = vst [vmem:[#allocation400_spill] sm:$0xff] %v14205_v25  ;;  %v14255_v24 = vmul.f32 %v20369_v43, %v20807_v53  ;;  %v14289_v25 = vmul.f32 %v20458_v38, %v20809_v31 }
 0x39b   : > { %20834 = vst [vmem:[#allocation401_spill] sm:$0xff] %v14209_v35  ;;  %20835 = vst [vmem:[#allocation402_spill] sm:$0xff] %v14215_v33  ;;  %v14263_v33 = vmul.f32 %v20374_v57, %v20807_v53  ;;  %v14281_v35 = vmul.f32 %v20375_v18, %v20809_v31 }
 0x39c   : > { %20836 = vst [vmem:[#allocation403_spill] sm:$0xff] %v14219_v19  ;;  %20837 = vst [vmem:[#allocation404_spill] sm:$0xff] %v14223_v39  ;;  %v14275_v39 = vmul.f32 %v20375_v18, %v20807_v53  ;;  %v14285_v19 = vmul.f32 %v20458_v38, %v20807_v53 }
 0x39d   : > { %20838 = vst [vmem:[#allocation405_spill] sm:$0xff] %v14231_v51  ;;  %20839 = vst [vmem:[#allocation406_spill] sm:$0xff] %v14235_v55  ;;  %v14299_v51 = vmul.f32 %v20461_v20, %v20809_v31  ;;  %v14311_v55 = vmul.f32 %v20464_v21, %v20809_v31 }
 0x39e   : > { %20840 = vst [vmem:[#allocation407_spill] sm:$0xff] %v14241_v61  ;;  %20841 = vst [vmem:[#allocation408_spill] sm:$0xff] %v14245_v0  ;;  %v14295_v61 = vmul.f32 %v20461_v20, %v20807_v53  ;;  %v14329_v0 = vmul.f32 %v20471_v29, %v20809_v31 }
 0x39f   : > { %20842 = vst [vmem:[#allocation409_spill] sm:$0xff] %v14249_v56  ;;  %20843 = vst [vmem:[#allocation410_spill] sm:$0xff] %v14255_v24  ;;  %v14303_v24 = vmul.f32 %v20464_v21, %v20807_v53  ;;  %v14321_v56 = vmul.f32 %v20468_v59, %v20809_v31 }
 0x3a0   : > { %20844 = vst [vmem:[#allocation411_spill] sm:$0xff] %v14259_v11  ;;  %20845 = vst [vmem:[#allocation412_spill] sm:$0xff] %v14263_v33  ;;  %v14315_v33 = vmul.f32 %v20468_v59, %v20807_v53  ;;  %v14325_v11 = vmul.f32 %v20471_v29, %v20807_v53 }
 0x3a1   : > { %20846 = vst [vmem:[#allocation413_spill] sm:$0xff] %v14271_v63  ;;  %20847 = vst [vmem:[#allocation414_spill] sm:$0xff] %v14275_v39  ;;  %v14339_v63 = vmul.f32 %v20472_v7, %v20809_v31  ;;  %v14351_v39 = vmul.f32 %v20475_v37, %v20809_v31 }
 0x3a2   : > { %20848 = vst [vmem:[#allocation415_spill] sm:$0xff] %v14281_v35  ;;  %20849 = vst [vmem:[#allocation416_spill] sm:$0xff] %v14285_v19  ;;  %v14335_v35 = vmul.f32 %v20472_v7, %v20807_v53  ;;  %v14369_v19 = vmul.f32 %v20491_v44, %v20809_v31 }
 0x3a3   : > { %20850 = vst [vmem:[#allocation417_spill] sm:$0xff] %v14289_v25  ;;  %20851 = vst [vmem:[#allocation418_spill] sm:$0xff] %v14295_v61  ;;  %v14343_v61 = vmul.f32 %v20475_v37, %v20807_v53  ;;  %v14361_v25 = vmul.f32 %v20488_v10, %v20809_v31 }
 0x3a4   : > { %20852 = vst [vmem:[#allocation419_spill] sm:$0xff] %v14299_v51  ;;  %20853 = vst [vmem:[#allocation420_spill] sm:$0xff] %v14303_v24  ;;  %v14355_v24 = vmul.f32 %v20488_v10, %v20807_v53  ;;  %v14365_v51 = vmul.f32 %v20491_v44, %v20807_v53 }
 0x3a5   : > { %20854 = vst [vmem:[#allocation421_spill] sm:$0xff] %v14311_v55  ;;  %20855 = vst [vmem:[#allocation422_spill] sm:$0xff] %v14315_v33  ;;  %v14379_v55 = vmul.f32 %v20494_v13, %v20809_v31  ;;  %v14391_v33 = vmul.f32 %v20497_v26, %v20809_v31 }
 0x3a6   : > { %20856 = vst [vmem:[#allocation423_spill] sm:$0xff] %v14321_v56  ;;  %20857 = vst [vmem:[#allocation424_spill] sm:$0xff] %v14325_v11  ;;  %v14375_v56 = vmul.f32 %v20494_v13, %v20807_v53  ;;  %v20875_v11 = vld [vmem:[#allocation65_spill] sm:$0xff] }
 0x3a7   : > { %20858 = vst [vmem:[#allocation425_spill] sm:$0xff] %v14329_v0  ;;  %20859 = vst [vmem:[#allocation426_spill] sm:$0xff] %v14335_v35  ;;  %v14383_v35 = vmul.f32 %v20497_v26, %v20807_v53  ;;  %v14401_v0 = vmul.f32 %v20500_v52, %v20809_v31  ;;  %v14423_v31 = vmul.f32 %v11608_v41, %v20873_v47 }
 0x3a8   : > { %20860 = vst [vmem:[#allocation427_spill] sm:$0xff] %v14339_v63  ;;  %20861 = vst [vmem:[#allocation428_spill] sm:$0xff] %v14343_v61  ;;  %v14395_v61 = vmul.f32 %v20500_v52, %v20807_v53  ;;  %v14405_v63 = vmul.f32 %v20504_v58, %v20873_v47  ;;  %v14415_v53 = vmul.f32 %v11737_v23, %v20873_v47 }
 0x3a9   : > { %20862 = vst [vmem:[#allocation429_spill] sm:$0xff] %v14351_v39  ;;  %20863 = vst [vmem:[#allocation430_spill] sm:$0xff] %v14355_v24  ;;  %v14409_v24 = vmul.f32 %v20504_v58, %v20875_v11  ;;  %v14419_v39 = vmul.f32 %v11737_v23, %v20875_v11 }
 0x3aa   : > { %20864 = vst [vmem:[#allocation431_spill] sm:$0xff] %v14361_v25  ;;  %20865 = vst [vmem:[#allocation432_spill] sm:$0xff] %v14365_v51  ;;  %v14431_v25 = vmul.f32 %v11608_v41, %v20875_v11  ;;  %v14441_v51 = vmul.f32 %v11662_v54, %v20875_v11 }
 0x3ab   : > { %20866 = vst [vmem:[#allocation433_spill] sm:$0xff] %v14369_v19  ;;  %20867 = vst [vmem:[#allocation434_spill] sm:$0xff] %v14375_v56  ;;  %v14445_v56 = vmul.f32 %v11635_v34, %v20873_v47  ;;  %v20939_v19 = vld [vmem:[#allocation83_spill] sm:$0xff] }
 0x3ac   : > { %20868 = vst [vmem:[#allocation435_spill] sm:$0xff] %v14379_v55  ;;  %20869 = vst [vmem:[#allocation436_spill] sm:$0xff] %v14383_v35  ;;  %v14435_v35 = vmul.f32 %v11662_v54, %v20873_v47  ;;  %v14449_v55 = vmul.f32 %v11635_v34, %v20875_v11 }
 0x3ad   : > { %20870 = vst [vmem:[#allocation437_spill] sm:$0xff] %v14391_v33  ;;  %20871 = vst [vmem:[#allocation438_spill] sm:$0xff] %v14395_v61  ;;  %v14459_v33 = vmul.f32 %v11765_v30, %v20875_v11  ;;  %v14489_v61 = vmul.f32 %v11638_v48, %v20875_v11 }
 0x3ae   : > { %20872 = vst [vmem:[#allocation439_spill] sm:$0xff] %v14401_v0  ;;  %20874 = vst [vmem:[#allocation66_spill] sm:$0xff] %v14405_v63  ;;  %v14471_v63 = vmul.f32 %v11611_v6, %v20875_v11  ;;  %v14481_v0 = vmul.f32 %v11689_v2, %v20875_v11 }
 0x3af   : > { %20876 = vst [vmem:[#allocation65_spill] sm:$0xff] %v14409_v24  ;;  %20877 = vst [vmem:[#allocation440_spill] sm:$0xff] %v14415_v53  ;;  %v14455_v24 = vmul.f32 %v11765_v30, %v20873_v47  ;;  %v14463_v53 = vmul.f32 %v11611_v6, %v20873_v47 }
 0x3b0   : > { %20878 = vst [vmem:[#allocation441_spill] sm:$0xff] %v14419_v39  ;;  %20879 = vst [vmem:[#allocation442_spill] sm:$0xff] %v14423_v31  ;;  %v14475_v31 = vmul.f32 %v11689_v2, %v20873_v47  ;;  %v14485_v39 = vmul.f32 %v11638_v48, %v20873_v47 }
 0x3b1   : > { %20880 = vst [vmem:[#allocation443_spill] sm:$0xff] %v14431_v25  ;;  %20881 = vst [vmem:[#allocation444_spill] sm:$0xff] %v14435_v35  ;;  %v14499_v25 = vmul.f32 %v11768_v50, %v20875_v11  ;;  %v14511_v35 = vmul.f32 %v11614_v9, %v20875_v11 }
 0x3b2   : > { %20882 = vst [vmem:[#allocation445_spill] sm:$0xff] %v14441_v51  ;;  %20883 = vst [vmem:[#allocation446_spill] sm:$0xff] %v14445_v56  ;;  %v14495_v51 = vmul.f32 %v11768_v50, %v20873_v47  ;;  %v14529_v56 = vmul.f32 %v11641_v49, %v20875_v11 }
 0x3b3   : > { %20884 = vst [vmem:[#allocation447_spill] sm:$0xff] %v14449_v55  ;;  %20885 = vst [vmem:[#allocation448_spill] sm:$0xff] %v14455_v24  ;;  %v14503_v24 = vmul.f32 %v11614_v9, %v20873_v47  ;;  %v14521_v55 = vmul.f32 %v11692_v4, %v20875_v11 }
 0x3b4   : > { %20886 = vst [vmem:[#allocation449_spill] sm:$0xff] %v14459_v33  ;;  %20887 = vst [vmem:[#allocation450_spill] sm:$0xff] %v14463_v53  ;;  %v14515_v53 = vmul.f32 %v11692_v4, %v20873_v47  ;;  %v14525_v33 = vmul.f32 %v11641_v49, %v20873_v47 }
 0x3b5   : > { %20888 = vst [vmem:[#allocation451_spill] sm:$0xff] %v14471_v63  ;;  %20889 = vst [vmem:[#allocation452_spill] sm:$0xff] %v14475_v31  ;;  %v14539_v63 = vmul.f32 %v11771_v40, %v20875_v11  ;;  %v14551_v31 = vmul.f32 %v20363_v12, %v20875_v11 }
 0x3b6   : > { %20890 = vst [vmem:[#allocation453_spill] sm:$0xff] %v14481_v0  ;;  %20891 = vst [vmem:[#allocation454_spill] sm:$0xff] %v14485_v39  ;;  %v14535_v0 = vmul.f32 %v11771_v40, %v20873_v47  ;;  %v14569_v39 = vmul.f32 %v20368_v42, %v20875_v11 }
 0x3b7   : > { %20892 = vst [vmem:[#allocation455_spill] sm:$0xff] %v14489_v61  ;;  %20893 = vst [vmem:[#allocation456_spill] sm:$0xff] %v14495_v51  ;;  %v14543_v51 = vmul.f32 %v20363_v12, %v20873_v47  ;;  %v14561_v61 = vmul.f32 %v20367_v14, %v20875_v11 }
 0x3b8   : > { %20894 = vst [vmem:[#allocation457_spill] sm:$0xff] %v14499_v25  ;;  %20895 = vst [vmem:[#allocation458_spill] sm:$0xff] %v14503_v24  ;;  %v14555_v24 = vmul.f32 %v20367_v14, %v20873_v47  ;;  %v14565_v25 = vmul.f32 %v20368_v42, %v20873_v47 }
 0x3b9   : > { %20896 = vst [vmem:[#allocation459_spill] sm:$0xff] %v14511_v35  ;;  %20897 = vst [vmem:[#allocation460_spill] sm:$0xff] %v14515_v53  ;;  %v14579_v35 = vmul.f32 %v20369_v43, %v20875_v11  ;;  %v14591_v53 = vmul.f32 %v20374_v57, %v20875_v11 }
 0x3ba   : > { %20898 = vst [vmem:[#allocation461_spill] sm:$0xff] %v14521_v55  ;;  %20899 = vst [vmem:[#allocation462_spill] sm:$0xff] %v14525_v33  ;;  %v14575_v55 = vmul.f32 %v20369_v43, %v20873_v47  ;;  %v14609_v33 = vmul.f32 %v20458_v38, %v20875_v11 }
 0x3bb   : > { %20900 = vst [vmem:[#allocation463_spill] sm:$0xff] %v14529_v56  ;;  %20901 = vst [vmem:[#allocation464_spill] sm:$0xff] %v14535_v0  ;;  %v14583_v0 = vmul.f32 %v20374_v57, %v20873_v47  ;;  %v14601_v56 = vmul.f32 %v20375_v18, %v20875_v11 }
 0x3bc   : > { %20902 = vst [vmem:[#allocation465_spill] sm:$0xff] %v14539_v63  ;;  %20903 = vst [vmem:[#allocation466_spill] sm:$0xff] %v14543_v51  ;;  %v14595_v51 = vmul.f32 %v20375_v18, %v20873_v47  ;;  %v14605_v63 = vmul.f32 %v20458_v38, %v20873_v47 }
 0x3bd   : > { %20904 = vst [vmem:[#allocation467_spill] sm:$0xff] %v14551_v31  ;;  %20905 = vst [vmem:[#allocation468_spill] sm:$0xff] %v14555_v24  ;;  %v14619_v31 = vmul.f32 %v20461_v20, %v20875_v11  ;;  %v14631_v24 = vmul.f32 %v20464_v21, %v20875_v11 }
 0x3be   : > { %20906 = vst [vmem:[#allocation469_spill] sm:$0xff] %v14561_v61  ;;  %20907 = vst [vmem:[#allocation470_spill] sm:$0xff] %v14565_v25  ;;  %v14615_v61 = vmul.f32 %v20461_v20, %v20873_v47  ;;  %v14649_v25 = vmul.f32 %v20471_v29, %v20875_v11 }
 0x3bf   : > { %20908 = vst [vmem:[#allocation471_spill] sm:$0xff] %v14569_v39  ;;  %20909 = vst [vmem:[#allocation472_spill] sm:$0xff] %v14575_v55  ;;  %v14623_v55 = vmul.f32 %v20464_v21, %v20873_v47  ;;  %v14641_v39 = vmul.f32 %v20468_v59, %v20875_v11 }
 0x3c0   : > { %20910 = vst [vmem:[#allocation473_spill] sm:$0xff] %v14579_v35  ;;  %20911 = vst [vmem:[#allocation474_spill] sm:$0xff] %v14583_v0  ;;  %v14635_v0 = vmul.f32 %v20468_v59, %v20873_v47  ;;  %v14645_v35 = vmul.f32 %v20471_v29, %v20873_v47 }
 0x3c1   : > { %20912 = vst [vmem:[#allocation475_spill] sm:$0xff] %v14591_v53  ;;  %20913 = vst [vmem:[#allocation476_spill] sm:$0xff] %v14595_v51  ;;  %v14659_v53 = vmul.f32 %v20472_v7, %v20875_v11  ;;  %v14671_v51 = vmul.f32 %v20475_v37, %v20875_v11 }
 0x3c2   : > { %20914 = vst [vmem:[#allocation477_spill] sm:$0xff] %v14601_v56  ;;  %20915 = vst [vmem:[#allocation478_spill] sm:$0xff] %v14605_v63  ;;  %v14655_v56 = vmul.f32 %v20472_v7, %v20873_v47  ;;  %v14689_v63 = vmul.f32 %v20491_v44, %v20875_v11 }
 0x3c3   : > { %20916 = vst [vmem:[#allocation479_spill] sm:$0xff] %v14609_v33  ;;  %20917 = vst [vmem:[#allocation480_spill] sm:$0xff] %v14615_v61  ;;  %v14663_v61 = vmul.f32 %v20475_v37, %v20873_v47  ;;  %v14681_v33 = vmul.f32 %v20488_v10, %v20875_v11 }
 0x3c4   : > { %20918 = vst [vmem:[#allocation481_spill] sm:$0xff] %v14619_v31  ;;  %20919 = vst [vmem:[#allocation482_spill] sm:$0xff] %v14623_v55  ;;  %v14675_v55 = vmul.f32 %v20488_v10, %v20873_v47  ;;  %v14685_v31 = vmul.f32 %v20491_v44, %v20873_v47 }
 0x3c5   : > { %20920 = vst [vmem:[#allocation483_spill] sm:$0xff] %v14631_v24  ;;  %20921 = vst [vmem:[#allocation484_spill] sm:$0xff] %v14635_v0  ;;  %v14699_v24 = vmul.f32 %v20494_v13, %v20875_v11  ;;  %v14711_v0 = vmul.f32 %v20497_v26, %v20875_v11 }
 0x3c6   : > { %20922 = vst [vmem:[#allocation485_spill] sm:$0xff] %v14641_v39  ;;  %20923 = vst [vmem:[#allocation486_spill] sm:$0xff] %v14645_v35  ;;  %v14695_v39 = vmul.f32 %v20494_v13, %v20873_v47  ;;  %v20941_v35 = vld [vmem:[#allocation85_spill] sm:$0xff] }
 0x3c7   : > { %20924 = vst [vmem:[#allocation487_spill] sm:$0xff] %v14649_v25  ;;  %20925 = vst [vmem:[#allocation488_spill] sm:$0xff] %v14655_v56  ;;  %v14703_v56 = vmul.f32 %v20497_v26, %v20873_v47  ;;  %v14721_v25 = vmul.f32 %v20500_v52, %v20875_v11  ;;  %v14743_v11 = vmul.f32 %v11608_v41, %v20939_v19 }
 0x3c8   : > { %20926 = vst [vmem:[#allocation489_spill] sm:$0xff] %v14659_v53  ;;  %20927 = vst [vmem:[#allocation490_spill] sm:$0xff] %v14663_v61  ;;  %v14715_v61 = vmul.f32 %v20500_v52, %v20873_v47  ;;  %v14725_v53 = vmul.f32 %v20504_v58, %v20939_v19  ;;  %v14735_v47 = vmul.f32 %v11737_v23, %v20939_v19 }
 0x3c9   : > { %20928 = vst [vmem:[#allocation491_spill] sm:$0xff] %v14671_v51  ;;  %20929 = vst [vmem:[#allocation492_spill] sm:$0xff] %v14675_v55  ;;  %v14729_v55 = vmul.f32 %v20504_v58, %v20941_v35  ;;  %v14739_v51 = vmul.f32 %v11737_v23, %v20941_v35 }
 0x3ca   : > { %20930 = vst [vmem:[#allocation493_spill] sm:$0xff] %v14681_v33  ;;  %20931 = vst [vmem:[#allocation494_spill] sm:$0xff] %v14685_v31  ;;  %v14751_v33 = vmul.f32 %v11608_v41, %v20941_v35  ;;  %v14761_v31 = vmul.f32 %v11662_v54, %v20941_v35 }
 0x3cb   : > { %20932 = vst [vmem:[#allocation495_spill] sm:$0xff] %v14689_v63  ;;  %20933 = vst [vmem:[#allocation496_spill] sm:$0xff] %v14695_v39  ;;  %v14765_v39 = vmul.f32 %v11635_v34, %v20939_v19  ;;  %v21005_v63 = vld [vmem:[#allocation69_spill] sm:$0xff] }
 0x3cc   : > { %20934 = vst [vmem:[#allocation497_spill] sm:$0xff] %v14699_v24  ;;  %20935 = vst [vmem:[#allocation498_spill] sm:$0xff] %v14703_v56  ;;  %v14755_v56 = vmul.f32 %v11662_v54, %v20939_v19  ;;  %v14769_v24 = vmul.f32 %v11635_v34, %v20941_v35 }
 0x3cd   : > { %20936 = vst [vmem:[#allocation499_spill] sm:$0xff] %v14711_v0  ;;  %20937 = vst [vmem:[#allocation500_spill] sm:$0xff] %v14715_v61  ;;  %v14779_v0 = vmul.f32 %v11765_v30, %v20941_v35  ;;  %v14791_v61 = vmul.f32 %v11611_v6, %v20941_v35 }
 0x3ce   : > { %20938 = vst [vmem:[#allocation501_spill] sm:$0xff] %v14721_v25  ;;  %20940 = vst [vmem:[#allocation83_spill] sm:$0xff] %v14725_v53  ;;  %v14775_v25 = vmul.f32 %v11765_v30, %v20939_v19  ;;  %v14809_v53 = vmul.f32 %v11638_v48, %v20941_v35 }
 0x3cf   : > { %20942 = vst [vmem:[#allocation85_spill] sm:$0xff] %v14729_v55  ;;  %20943 = vst [vmem:[#allocation502_spill] sm:$0xff] %v14735_v47  ;;  %v14783_v47 = vmul.f32 %v11611_v6, %v20939_v19  ;;  %v14801_v55 = vmul.f32 %v11689_v2, %v20941_v35 }
 0x3d0   : > { %20944 = vst [vmem:[#allocation503_spill] sm:$0xff] %v14739_v51  ;;  %20945 = vst [vmem:[#allocation504_spill] sm:$0xff] %v14743_v11  ;;  %v14795_v11 = vmul.f32 %v11689_v2, %v20939_v19  ;;  %v14805_v51 = vmul.f32 %v11638_v48, %v20939_v19 }
 0x3d1   : > { %20946 = vst [vmem:[#allocation505_spill] sm:$0xff] %v14751_v33  ;;  %20947 = vst [vmem:[#allocation506_spill] sm:$0xff] %v14755_v56  ;;  %v14819_v33 = vmul.f32 %v11768_v50, %v20941_v35  ;;  %v14831_v56 = vmul.f32 %v11614_v9, %v20941_v35 }
 0x3d2   : > { %20948 = vst [vmem:[#allocation507_spill] sm:$0xff] %v14761_v31  ;;  %20949 = vst [vmem:[#allocation508_spill] sm:$0xff] %v14765_v39  ;;  %v14815_v31 = vmul.f32 %v11768_v50, %v20939_v19  ;;  %v14849_v39 = vmul.f32 %v11641_v49, %v20941_v35 }
 0x3d3   : > { %20950 = vst [vmem:[#allocation509_spill] sm:$0xff] %v14769_v24  ;;  %20951 = vst [vmem:[#allocation510_spill] sm:$0xff] %v14775_v25  ;;  %v14823_v25 = vmul.f32 %v11614_v9, %v20939_v19  ;;  %v14841_v24 = vmul.f32 %v11692_v4, %v20941_v35 }
 0x3d4   : > { %20952 = vst [vmem:[#allocation511_spill] sm:$0xff] %v14779_v0  ;;  %20953 = vst [vmem:[#allocation512_spill] sm:$0xff] %v14783_v47  ;;  %v14835_v47 = vmul.f32 %v11692_v4, %v20939_v19  ;;  %v14845_v0 = vmul.f32 %v11641_v49, %v20939_v19 }
 0x3d5   : > { %20954 = vst [vmem:[#allocation513_spill] sm:$0xff] %v14791_v61  ;;  %20955 = vst [vmem:[#allocation514_spill] sm:$0xff] %v14795_v11  ;;  %v14859_v61 = vmul.f32 %v11771_v40, %v20941_v35  ;;  %v14871_v11 = vmul.f32 %v20363_v12, %v20941_v35 }
 0x3d6   : > { %20956 = vst [vmem:[#allocation515_spill] sm:$0xff] %v14801_v55  ;;  %20957 = vst [vmem:[#allocation516_spill] sm:$0xff] %v14805_v51  ;;  %v14855_v55 = vmul.f32 %v11771_v40, %v20939_v19  ;;  %v14889_v51 = vmul.f32 %v20368_v42, %v20941_v35 }
 0x3d7   : > { %20958 = vst [vmem:[#allocation517_spill] sm:$0xff] %v14809_v53  ;;  %20959 = vst [vmem:[#allocation518_spill] sm:$0xff] %v14815_v31  ;;  %v14863_v31 = vmul.f32 %v20363_v12, %v20939_v19  ;;  %v14881_v53 = vmul.f32 %v20367_v14, %v20941_v35 }
 0x3d8   : > { %20960 = vst [vmem:[#allocation519_spill] sm:$0xff] %v14819_v33  ;;  %20961 = vst [vmem:[#allocation520_spill] sm:$0xff] %v14823_v25  ;;  %v14875_v25 = vmul.f32 %v20367_v14, %v20939_v19  ;;  %v14885_v33 = vmul.f32 %v20368_v42, %v20939_v19 }
 0x3d9   : > { %20962 = vst [vmem:[#allocation521_spill] sm:$0xff] %v14831_v56  ;;  %20963 = vst [vmem:[#allocation522_spill] sm:$0xff] %v14835_v47  ;;  %v14899_v56 = vmul.f32 %v20369_v43, %v20941_v35  ;;  %v14911_v47 = vmul.f32 %v20374_v57, %v20941_v35 }
 0x3da   : > { %20964 = vst [vmem:[#allocation523_spill] sm:$0xff] %v14841_v24  ;;  %20965 = vst [vmem:[#allocation524_spill] sm:$0xff] %v14845_v0  ;;  %v14895_v24 = vmul.f32 %v20369_v43, %v20939_v19  ;;  %v14929_v0 = vmul.f32 %v20458_v38, %v20941_v35 }
 0x3db   : > { %20966 = vst [vmem:[#allocation525_spill] sm:$0xff] %v14849_v39  ;;  %20967 = vst [vmem:[#allocation526_spill] sm:$0xff] %v14855_v55  ;;  %v14903_v55 = vmul.f32 %v20374_v57, %v20939_v19  ;;  %v14921_v39 = vmul.f32 %v20375_v18, %v20941_v35 }
 0x3dc   : > { %20968 = vst [vmem:[#allocation527_spill] sm:$0xff] %v14859_v61  ;;  %20969 = vst [vmem:[#allocation528_spill] sm:$0xff] %v14863_v31  ;;  %v14915_v31 = vmul.f32 %v20375_v18, %v20939_v19  ;;  %v14925_v61 = vmul.f32 %v20458_v38, %v20939_v19 }
 0x3dd   : > { %20970 = vst [vmem:[#allocation529_spill] sm:$0xff] %v14871_v11  ;;  %20971 = vst [vmem:[#allocation530_spill] sm:$0xff] %v14875_v25  ;;  %v14939_v11 = vmul.f32 %v20461_v20, %v20941_v35  ;;  %v14951_v25 = vmul.f32 %v20464_v21, %v20941_v35 }
 0x3de   : > { %20972 = vst [vmem:[#allocation531_spill] sm:$0xff] %v14881_v53  ;;  %20973 = vst [vmem:[#allocation532_spill] sm:$0xff] %v14885_v33  ;;  %v14935_v53 = vmul.f32 %v20461_v20, %v20939_v19  ;;  %v14969_v33 = vmul.f32 %v20471_v29, %v20941_v35 }
 0x3df   : > { %20974 = vst [vmem:[#allocation533_spill] sm:$0xff] %v14889_v51  ;;  %20975 = vst [vmem:[#allocation534_spill] sm:$0xff] %v14895_v24  ;;  %v14943_v24 = vmul.f32 %v20464_v21, %v20939_v19  ;;  %v14961_v51 = vmul.f32 %v20468_v59, %v20941_v35 }
 0x3e0   : > { %20976 = vst [vmem:[#allocation535_spill] sm:$0xff] %v14899_v56  ;;  %20977 = vst [vmem:[#allocation536_spill] sm:$0xff] %v14903_v55  ;;  %v14955_v55 = vmul.f32 %v20468_v59, %v20939_v19  ;;  %v14965_v56 = vmul.f32 %v20471_v29, %v20939_v19 }
 0x3e1   : > { %20978 = vst [vmem:[#allocation537_spill] sm:$0xff] %v14911_v47  ;;  %20979 = vst [vmem:[#allocation538_spill] sm:$0xff] %v14915_v31  ;;  %v14979_v47 = vmul.f32 %v20472_v7, %v20941_v35  ;;  %v14991_v31 = vmul.f32 %v20475_v37, %v20941_v35 }
 0x3e2   : > { %20980 = vst [vmem:[#allocation539_spill] sm:$0xff] %v14921_v39  ;;  %20981 = vst [vmem:[#allocation540_spill] sm:$0xff] %v14925_v61  ;;  %v14975_v39 = vmul.f32 %v20472_v7, %v20939_v19  ;;  %v15009_v61 = vmul.f32 %v20491_v44, %v20941_v35 }
 0x3e3   : > { %20982 = vst [vmem:[#allocation541_spill] sm:$0xff] %v14929_v0  ;;  %20983 = vst [vmem:[#allocation542_spill] sm:$0xff] %v14935_v53  ;;  %v14983_v53 = vmul.f32 %v20475_v37, %v20939_v19  ;;  %v15001_v0 = vmul.f32 %v20488_v10, %v20941_v35 }
 0x3e4   : > { %20984 = vst [vmem:[#allocation543_spill] sm:$0xff] %v14939_v11  ;;  %20985 = vst [vmem:[#allocation544_spill] sm:$0xff] %v14943_v24  ;;  %v14995_v24 = vmul.f32 %v20488_v10, %v20939_v19  ;;  %v15005_v11 = vmul.f32 %v20491_v44, %v20939_v19 }
 0x3e5   : > { %20986 = vst [vmem:[#allocation545_spill] sm:$0xff] %v14951_v25  ;;  %20987 = vst [vmem:[#allocation546_spill] sm:$0xff] %v14955_v55  ;;  %v15019_v25 = vmul.f32 %v20494_v13, %v20941_v35  ;;  %v15031_v55 = vmul.f32 %v20497_v26, %v20941_v35 }
 0x3e6   : > { %20988 = vst [vmem:[#allocation547_spill] sm:$0xff] %v14961_v51  ;;  %20989 = vst [vmem:[#allocation548_spill] sm:$0xff] %v14965_v56  ;;  %v15015_v51 = vmul.f32 %v20494_v13, %v20939_v19  ;;  %v21007_v56 = vld [vmem:[#allocation68_spill] sm:$0xff] }
 0x3e7   : > { %20990 = vst [vmem:[#allocation549_spill] sm:$0xff] %v14969_v33  ;;  %20991 = vst [vmem:[#allocation550_spill] sm:$0xff] %v14975_v39  ;;  %v15023_v39 = vmul.f32 %v20497_v26, %v20939_v19  ;;  %v15041_v33 = vmul.f32 %v20500_v52, %v20941_v35  ;;  %v15063_v35 = vmul.f32 %v11608_v41, %v21005_v63 }
 0x3e8   : > { %20992 = vst [vmem:[#allocation551_spill] sm:$0xff] %v14979_v47  ;;  %20993 = vst [vmem:[#allocation552_spill] sm:$0xff] %v14983_v53  ;;  %v15035_v53 = vmul.f32 %v20500_v52, %v20939_v19  ;;  %v15045_v47 = vmul.f32 %v20504_v58, %v21005_v63  ;;  %v15055_v19 = vmul.f32 %v11737_v23, %v21005_v63 }
 0x3e9   : > { %20994 = vst [vmem:[#allocation553_spill] sm:$0xff] %v14991_v31  ;;  %20995 = vst [vmem:[#allocation554_spill] sm:$0xff] %v14995_v24  ;;  %v15049_v24 = vmul.f32 %v20504_v58, %v21007_v56  ;;  %v15059_v31 = vmul.f32 %v11737_v23, %v21007_v56 }
 0x3ea   : > { %20996 = vst [vmem:[#allocation555_spill] sm:$0xff] %v15001_v0  ;;  %20997 = vst [vmem:[#allocation556_spill] sm:$0xff] %v15005_v11  ;;  %v15071_v0 = vmul.f32 %v11608_v41, %v21007_v56  ;;  %v15081_v11 = vmul.f32 %v11662_v54, %v21007_v56 }
 0x3eb   : > { %20998 = vst [vmem:[#allocation557_spill] sm:$0xff] %v15009_v61  ;;  %20999 = vst [vmem:[#allocation558_spill] sm:$0xff] %v15015_v51  ;;  %v15085_v51 = vmul.f32 %v11635_v34, %v21005_v63  ;;  %v21071_v61 = vld [vmem:[#allocation95_spill] sm:$0xff] }
 0x3ec   : > { %21000 = vst [vmem:[#allocation559_spill] sm:$0xff] %v15019_v25  ;;  %21001 = vst [vmem:[#allocation560_spill] sm:$0xff] %v15023_v39  ;;  %v15075_v39 = vmul.f32 %v11662_v54, %v21005_v63  ;;  %v15089_v25 = vmul.f32 %v11635_v34, %v21007_v56 }
 0x3ed   : > { %21002 = vst [vmem:[#allocation561_spill] sm:$0xff] %v15031_v55  ;;  %21003 = vst [vmem:[#allocation562_spill] sm:$0xff] %v15035_v53  ;;  %v15099_v55 = vmul.f32 %v11765_v30, %v21007_v56  ;;  %v15129_v53 = vmul.f32 %v11638_v48, %v21007_v56 }
 0x3ee   : > { %21004 = vst [vmem:[#allocation563_spill] sm:$0xff] %v15041_v33  ;;  %21006 = vst [vmem:[#allocation69_spill] sm:$0xff] %v15045_v47  ;;  %v15111_v47 = vmul.f32 %v11611_v6, %v21007_v56  ;;  %v15121_v33 = vmul.f32 %v11689_v2, %v21007_v56 }
 0x3ef   : > { %21008 = vst [vmem:[#allocation68_spill] sm:$0xff] %v15049_v24  ;;  %21009 = vst [vmem:[#allocation564_spill] sm:$0xff] %v15055_v19  ;;  %v15095_v24 = vmul.f32 %v11765_v30, %v21005_v63  ;;  %v15103_v19 = vmul.f32 %v11611_v6, %v21005_v63 }
 0x3f0   : > { %21010 = vst [vmem:[#allocation565_spill] sm:$0xff] %v15059_v31  ;;  %21011 = vst [vmem:[#allocation566_spill] sm:$0xff] %v15063_v35  ;;  %v15115_v35 = vmul.f32 %v11689_v2, %v21005_v63  ;;  %v15125_v31 = vmul.f32 %v11638_v48, %v21005_v63 }
 0x3f1   : > { %21012 = vst [vmem:[#allocation567_spill] sm:$0xff] %v15071_v0  ;;  %21013 = vst [vmem:[#allocation568_spill] sm:$0xff] %v15075_v39  ;;  %v15139_v0 = vmul.f32 %v11768_v50, %v21007_v56  ;;  %v15151_v39 = vmul.f32 %v11614_v9, %v21007_v56 }
 0x3f2   : > { %21014 = vst [vmem:[#allocation569_spill] sm:$0xff] %v15081_v11  ;;  %21015 = vst [vmem:[#allocation570_spill] sm:$0xff] %v15085_v51  ;;  %v15135_v11 = vmul.f32 %v11768_v50, %v21005_v63  ;;  %v15169_v51 = vmul.f32 %v11641_v49, %v21007_v56 }
 0x3f3   : > { %21016 = vst [vmem:[#allocation571_spill] sm:$0xff] %v15089_v25  ;;  %21017 = vst [vmem:[#allocation572_spill] sm:$0xff] %v15095_v24  ;;  %v15143_v24 = vmul.f32 %v11614_v9, %v21005_v63  ;;  %v15161_v25 = vmul.f32 %v11692_v4, %v21007_v56 }
 0x3f4   : > { %21018 = vst [vmem:[#allocation573_spill] sm:$0xff] %v15099_v55  ;;  %21019 = vst [vmem:[#allocation574_spill] sm:$0xff] %v15103_v19  ;;  %v15155_v19 = vmul.f32 %v11692_v4, %v21005_v63  ;;  %v15165_v55 = vmul.f32 %v11641_v49, %v21005_v63 }
 0x3f5   : > { %21020 = vst [vmem:[#allocation575_spill] sm:$0xff] %v15111_v47  ;;  %21021 = vst [vmem:[#allocation576_spill] sm:$0xff] %v15115_v35  ;;  %v15179_v47 = vmul.f32 %v11771_v40, %v21007_v56  ;;  %v15191_v35 = vmul.f32 %v20363_v12, %v21007_v56 }
 0x3f6   : > { %21022 = vst [vmem:[#allocation577_spill] sm:$0xff] %v15121_v33  ;;  %21023 = vst [vmem:[#allocation578_spill] sm:$0xff] %v15125_v31  ;;  %v15175_v33 = vmul.f32 %v11771_v40, %v21005_v63  ;;  %v15209_v31 = vmul.f32 %v20368_v42, %v21007_v56 }
 0x3f7   : > { %21024 = vst [vmem:[#allocation579_spill] sm:$0xff] %v15129_v53  ;;  %21025 = vst [vmem:[#allocation580_spill] sm:$0xff] %v15135_v11  ;;  %v15183_v11 = vmul.f32 %v20363_v12, %v21005_v63  ;;  %v15201_v53 = vmul.f32 %v20367_v14, %v21007_v56 }
 0x3f8   : > { %21026 = vst [vmem:[#allocation581_spill] sm:$0xff] %v15139_v0  ;;  %21027 = vst [vmem:[#allocation582_spill] sm:$0xff] %v15143_v24  ;;  %v15195_v24 = vmul.f32 %v20367_v14, %v21005_v63  ;;  %v15205_v0 = vmul.f32 %v20368_v42, %v21005_v63 }
 0x3f9   : > { %21028 = vst [vmem:[#allocation583_spill] sm:$0xff] %v15151_v39  ;;  %21029 = vst [vmem:[#allocation584_spill] sm:$0xff] %v15155_v19  ;;  %v15219_v39 = vmul.f32 %v20369_v43, %v21007_v56  ;;  %v15231_v19 = vmul.f32 %v20374_v57, %v21007_v56 }
 0x3fa   : > { %21030 = vst [vmem:[#allocation585_spill] sm:$0xff] %v15161_v25  ;;  %21031 = vst [vmem:[#allocation586_spill] sm:$0xff] %v15165_v55  ;;  %v15215_v25 = vmul.f32 %v20369_v43, %v21005_v63  ;;  %v15249_v55 = vmul.f32 %v20458_v38, %v21007_v56 }
 0x3fb   : > { %21032 = vst [vmem:[#allocation587_spill] sm:$0xff] %v15169_v51  ;;  %21033 = vst [vmem:[#allocation588_spill] sm:$0xff] %v15175_v33  ;;  %v15223_v33 = vmul.f32 %v20374_v57, %v21005_v63  ;;  %v15241_v51 = vmul.f32 %v20375_v18, %v21007_v56 }
 0x3fc   : > { %21034 = vst [vmem:[#allocation589_spill] sm:$0xff] %v15179_v47  ;;  %21035 = vst [vmem:[#allocation590_spill] sm:$0xff] %v15183_v11  ;;  %v15235_v11 = vmul.f32 %v20375_v18, %v21005_v63  ;;  %v15245_v47 = vmul.f32 %v20458_v38, %v21005_v63 }
 0x3fd   : > { %21036 = vst [vmem:[#allocation591_spill] sm:$0xff] %v15191_v35  ;;  %21037 = vst [vmem:[#allocation592_spill] sm:$0xff] %v15195_v24  ;;  %v15259_v35 = vmul.f32 %v20461_v20, %v21007_v56  ;;  %v15271_v24 = vmul.f32 %v20464_v21, %v21007_v56 }
 0x3fe   : > { %21038 = vst [vmem:[#allocation593_spill] sm:$0xff] %v15201_v53  ;;  %21039 = vst [vmem:[#allocation594_spill] sm:$0xff] %v15205_v0  ;;  %v15255_v53 = vmul.f32 %v20461_v20, %v21005_v63  ;;  %v15289_v0 = vmul.f32 %v20471_v29, %v21007_v56 }
 0x3ff   : > { %21040 = vst [vmem:[#allocation595_spill] sm:$0xff] %v15209_v31  ;;  %21041 = vst [vmem:[#allocation596_spill] sm:$0xff] %v15215_v25  ;;  %v15263_v25 = vmul.f32 %v20464_v21, %v21005_v63  ;;  %v15281_v31 = vmul.f32 %v20468_v59, %v21007_v56 }
 0x400   : > { %21042 = vst [vmem:[#allocation597_spill] sm:$0xff] %v15219_v39  ;;  %21043 = vst [vmem:[#allocation598_spill] sm:$0xff] %v15223_v33  ;;  %v15275_v33 = vmul.f32 %v20468_v59, %v21005_v63  ;;  %v15285_v39 = vmul.f32 %v20471_v29, %v21005_v63 }
 0x401   : > { %21044 = vst [vmem:[#allocation599_spill] sm:$0xff] %v15231_v19  ;;  %21045 = vst [vmem:[#allocation600_spill] sm:$0xff] %v15235_v11  ;;  %v15299_v19 = vmul.f32 %v20472_v7, %v21007_v56  ;;  %v15311_v11 = vmul.f32 %v20475_v37, %v21007_v56 }
 0x402   : > { %21046 = vst [vmem:[#allocation601_spill] sm:$0xff] %v15241_v51  ;;  %21047 = vst [vmem:[#allocation602_spill] sm:$0xff] %v15245_v47  ;;  %v15295_v51 = vmul.f32 %v20472_v7, %v21005_v63  ;;  %v15329_v47 = vmul.f32 %v20491_v44, %v21007_v56 }
 0x403   : > { %21048 = vst [vmem:[#allocation603_spill] sm:$0xff] %v15249_v55  ;;  %21049 = vst [vmem:[#allocation604_spill] sm:$0xff] %v15255_v53  ;;  %v15303_v53 = vmul.f32 %v20475_v37, %v21005_v63  ;;  %v15321_v55 = vmul.f32 %v20488_v10, %v21007_v56 }
 0x404   : > { %21050 = vst [vmem:[#allocation605_spill] sm:$0xff] %v15259_v35  ;;  %21051 = vst [vmem:[#allocation606_spill] sm:$0xff] %v15263_v25  ;;  %v15315_v25 = vmul.f32 %v20488_v10, %v21005_v63  ;;  %v15325_v35 = vmul.f32 %v20491_v44, %v21005_v63 }
 0x405   : > { %21052 = vst [vmem:[#allocation607_spill] sm:$0xff] %v15271_v24  ;;  %21053 = vst [vmem:[#allocation608_spill] sm:$0xff] %v15275_v33  ;;  %v15339_v24 = vmul.f32 %v20494_v13, %v21007_v56  ;;  %v15351_v33 = vmul.f32 %v20497_v26, %v21007_v56 }
 0x406   : > { %21054 = vst [vmem:[#allocation609_spill] sm:$0xff] %v15281_v31  ;;  %21055 = vst [vmem:[#allocation610_spill] sm:$0xff] %v15285_v39  ;;  %v15335_v31 = vmul.f32 %v20494_v13, %v21005_v63  ;;  %v15369_v39 = vmul.f32 %v20504_v58, %v12473_v27 }
 0x407   : > { %21056 = vst [vmem:[#allocation611_spill] sm:$0xff] %v15289_v0  ;;  %21057 = vst [vmem:[#allocation612_spill] sm:$0xff] %v15295_v51  ;;  %v15343_v51 = vmul.f32 %v20497_v26, %v21005_v63  ;;  %v15361_v0 = vmul.f32 %v20500_v52, %v21007_v56  ;;  %v15383_v56 = vmul.f32 %v11608_v41, %v21071_v61 }
 0x408   : > { %21058 = vst [vmem:[#allocation613_spill] sm:$0xff] %v15299_v19  ;;  %21059 = vst [vmem:[#allocation614_spill] sm:$0xff] %v15303_v53  ;;  %v15355_v53 = vmul.f32 %v20500_v52, %v21005_v63  ;;  %v15365_v19 = vmul.f32 %v20504_v58, %v21071_v61  ;;  %v15375_v63 = vmul.f32 %v11737_v23, %v21071_v61 }
 0x409   : > { %21060 = vst [vmem:[#allocation615_spill] sm:$0xff] %v15311_v11  ;;  %21061 = vst [vmem:[#allocation616_spill] sm:$0xff] %v15315_v25  ;;  %v15379_v11 = vmul.f32 %v11737_v23, %v12473_v27  ;;  %v15391_v25 = vmul.f32 %v11608_v41, %v12473_v27 }
 0x40a   : > { %21062 = vst [vmem:[#allocation617_spill] sm:$0xff] %v15321_v55  ;;  %21063 = vst [vmem:[#allocation618_spill] sm:$0xff] %v15325_v35  ;;  %v15401_v55 = vmul.f32 %v11662_v54, %v12473_v27 }
 0x40b   : > { %21064 = vst [vmem:[#allocation619_spill] sm:$0xff] %v15329_v47  ;;  %21065 = vst [vmem:[#allocation620_spill] sm:$0xff] %v15335_v31  ;;  %v15405_v31 = vmul.f32 %v11635_v34, %v21071_v61 }
 0x40c   : > { %21066 = vst [vmem:[#allocation621_spill] sm:$0xff] %v15339_v24  ;;  %21067 = vst [vmem:[#allocation622_spill] sm:$0xff] %v15343_v51  ;;  %v15395_v51 = vmul.f32 %v11662_v54, %v21071_v61  ;;  %v15409_v24 = vmul.f32 %v11635_v34, %v12473_v27 }
 0x40d   : > { %21068 = vst [vmem:[#allocation623_spill] sm:$0xff] %v15351_v33  ;;  %21069 = vst [vmem:[#allocation624_spill] sm:$0xff] %v15355_v53  ;;  %v15419_v33 = vmul.f32 %v11765_v30, %v12473_v27  ;;  %v15431_v53 = vmul.f32 %v11611_v6, %v12473_v27 }
 0x40e   : > { %21070 = vst [vmem:[#allocation625_spill] sm:$0xff] %v15361_v0  ;;  %21072 = vst [vmem:[#allocation95_spill] sm:$0xff] %v15365_v19  ;;  %v15415_v0 = vmul.f32 %v11765_v30, %v21071_v61  ;;  %v15449_v19 = vmul.f32 %v11638_v48, %v12473_v27 }
 0x40f   : > { %21073 = vst [vmem:[#allocation626_spill] sm:$0xff] %v15369_v39  ;;  %21074 = vst [vmem:[#allocation627_spill] sm:$0xff] %v15375_v63  ;;  %v15423_v63 = vmul.f32 %v11611_v6, %v21071_v61  ;;  %v15441_v39 = vmul.f32 %v11689_v2, %v12473_v27 }
 0x410   : > { %21075 = vst [vmem:[#allocation628_spill] sm:$0xff] %v15379_v11  ;;  %21076 = vst [vmem:[#allocation629_spill] sm:$0xff] %v15383_v56  ;;  %v15435_v56 = vmul.f32 %v11689_v2, %v21071_v61  ;;  %v15445_v11 = vmul.f32 %v11638_v48, %v21071_v61 }
 0x411   : > { %21077 = vst [vmem:[#allocation630_spill] sm:$0xff] %v15391_v25  ;;  %21078 = vst [vmem:[#allocation631_spill] sm:$0xff] %v15395_v51  ;;  %v15459_v25 = vmul.f32 %v11768_v50, %v12473_v27  ;;  %v15471_v51 = vmul.f32 %v11614_v9, %v12473_v27 }
 0x412   : > { %21079 = vst [vmem:[#allocation632_spill] sm:$0xff] %v15401_v55  ;;  %21080 = vst [vmem:[#allocation633_spill] sm:$0xff] %v15405_v31  ;;  %v15455_v55 = vmul.f32 %v11768_v50, %v21071_v61  ;;  %v15489_v31 = vmul.f32 %v11641_v49, %v12473_v27 }
 0x413   : > { %21081 = vst [vmem:[#allocation634_spill] sm:$0xff] %v15409_v24  ;;  %21082 = vst [vmem:[#allocation635_spill] sm:$0xff] %v15415_v0  ;;  %v15463_v0 = vmul.f32 %v11614_v9, %v21071_v61  ;;  %v15481_v24 = vmul.f32 %v11692_v4, %v12473_v27 }
 0x414   : > { %21083 = vst [vmem:[#allocation636_spill] sm:$0xff] %v15419_v33  ;;  %21084 = vst [vmem:[#allocation637_spill] sm:$0xff] %v15423_v63  ;;  %v15475_v63 = vmul.f32 %v11692_v4, %v21071_v61  ;;  %v15485_v33 = vmul.f32 %v11641_v49, %v21071_v61 }
 0x415   : > { %21085 = vst [vmem:[#allocation638_spill] sm:$0xff] %v15431_v53  ;;  %21086 = vst [vmem:[#allocation639_spill] sm:$0xff] %v15435_v56  ;;  %v15499_v53 = vmul.f32 %v11771_v40, %v12473_v27  ;;  %v15511_v56 = vmul.f32 %v20363_v12, %v12473_v27 }
 0x416   : > { %21087 = vst [vmem:[#allocation640_spill] sm:$0xff] %v15441_v39  ;;  %21088 = vst [vmem:[#allocation641_spill] sm:$0xff] %v15445_v11  ;;  %v15495_v39 = vmul.f32 %v11771_v40, %v21071_v61  ;;  %v15529_v11 = vmul.f32 %v20368_v42, %v12473_v27 }
 0x417   : > { %21089 = vst [vmem:[#allocation642_spill] sm:$0xff] %v15449_v19  ;;  %21090 = vst [vmem:[#allocation643_spill] sm:$0xff] %v15455_v55  ;;  %v15503_v55 = vmul.f32 %v20363_v12, %v21071_v61  ;;  %v15521_v19 = vmul.f32 %v20367_v14, %v12473_v27 }
 0x418   : > { %21091 = vst [vmem:[#allocation644_spill] sm:$0xff] %v15459_v25  ;;  %21092 = vst [vmem:[#allocation645_spill] sm:$0xff] %v15463_v0  ;;  %v15515_v0 = vmul.f32 %v20367_v14, %v21071_v61  ;;  %v15525_v25 = vmul.f32 %v20368_v42, %v21071_v61 }
 0x419   : > { %21093 = vst [vmem:[#allocation646_spill] sm:$0xff] %v15471_v51  ;;  %21094 = vst [vmem:[#allocation647_spill] sm:$0xff] %v15475_v63  ;;  %v15539_v51 = vmul.f32 %v20369_v43, %v12473_v27  ;;  %v15551_v63 = vmul.f32 %v20374_v57, %v12473_v27 }
 0x41a   : > { %21095 = vst [vmem:[#allocation648_spill] sm:$0xff] %v15481_v24  ;;  %21096 = vst [vmem:[#allocation649_spill] sm:$0xff] %v15485_v33  ;;  %v15535_v24 = vmul.f32 %v20369_v43, %v21071_v61  ;;  %v15569_v33 = vmul.f32 %v20458_v38, %v12473_v27 }
 0x41b   : > { %21097 = vst [vmem:[#allocation650_spill] sm:$0xff] %v15489_v31  ;;  %21098 = vst [vmem:[#allocation651_spill] sm:$0xff] %v15495_v39  ;;  %v15543_v39 = vmul.f32 %v20374_v57, %v21071_v61  ;;  %v15561_v31 = vmul.f32 %v20375_v18, %v12473_v27 }
 0x41c   : > { %21099 = vst [vmem:[#allocation652_spill] sm:$0xff] %v15499_v53  ;;  %21100 = vst [vmem:[#allocation653_spill] sm:$0xff] %v15503_v55  ;;  %v15555_v55 = vmul.f32 %v20375_v18, %v21071_v61  ;;  %v15565_v53 = vmul.f32 %v20458_v38, %v21071_v61 }
 0x41d   : > { %21101 = vst [vmem:[#allocation654_spill] sm:$0xff] %v15511_v56  ;;  %21102 = vst [vmem:[#allocation655_spill] sm:$0xff] %v15515_v0  ;;  %v15579_v56 = vmul.f32 %v20461_v20, %v12473_v27  ;;  %v15591_v0 = vmul.f32 %v20464_v21, %v12473_v27 }
 0x41e   : > { %21103 = vst [vmem:[#allocation656_spill] sm:$0xff] %v15521_v19  ;;  %21104 = vst [vmem:[#allocation657_spill] sm:$0xff] %v15525_v25  ;;  %v15575_v19 = vmul.f32 %v20461_v20, %v21071_v61  ;;  %v15609_v25 = vmul.f32 %v20471_v29, %v12473_v27 }
 0x41f   : > { %21105 = vst [vmem:[#allocation658_spill] sm:$0xff] %v15529_v11  ;;  %21106 = vst [vmem:[#allocation659_spill] sm:$0xff] %v15535_v24  ;;  %v15583_v24 = vmul.f32 %v20464_v21, %v21071_v61  ;;  %v15601_v11 = vmul.f32 %v20468_v59, %v12473_v27 }
 0x420   : > { %21107 = vst [vmem:[#allocation660_spill] sm:$0xff] %v15539_v51  ;;  %21108 = vst [vmem:[#allocation661_spill] sm:$0xff] %v15543_v39  ;;  %v15595_v39 = vmul.f32 %v20468_v59, %v21071_v61  ;;  %v15605_v51 = vmul.f32 %v20471_v29, %v21071_v61 }
 0x421   : > { %21109 = vst [vmem:[#allocation662_spill] sm:$0xff] %v15551_v63  ;;  %21110 = vst [vmem:[#allocation663_spill] sm:$0xff] %v15555_v55  ;;  %v15619_v63 = vmul.f32 %v20472_v7, %v12473_v27  ;;  %v15631_v55 = vmul.f32 %v20475_v37, %v12473_v27 }
 0x422   : > { %21111 = vst [vmem:[#allocation664_spill] sm:$0xff] %v15561_v31  ;;  %21112 = vst [vmem:[#allocation665_spill] sm:$0xff] %v15565_v53  ;;  %v15615_v31 = vmul.f32 %v20472_v7, %v21071_v61  ;;  %v15649_v53 = vmul.f32 %v20491_v44, %v12473_v27 }
 0x423   : > { %21113 = vst [vmem:[#allocation666_spill] sm:$0xff] %v15569_v33  ;;  %21114 = vst [vmem:[#allocation667_spill] sm:$0xff] %v15575_v19  ;;  %v15623_v19 = vmul.f32 %v20475_v37, %v21071_v61  ;;  %v15641_v33 = vmul.f32 %v20488_v10, %v12473_v27 }
 0x424   : > { %21115 = vst [vmem:[#allocation668_spill] sm:$0xff] %v15579_v56  ;;  %21116 = vst [vmem:[#allocation669_spill] sm:$0xff] %v15583_v24  ;;  %v15635_v24 = vmul.f32 %v20488_v10, %v21071_v61  ;;  %v15645_v56 = vmul.f32 %v20491_v44, %v21071_v61 }
 0x425   : > { %21117 = vst [vmem:[#allocation670_spill] sm:$0xff] %v15591_v0  ;;  %21118 = vst [vmem:[#allocation671_spill] sm:$0xff] %v15595_v39  ;;  %v15659_v0 = vmul.f32 %v20494_v13, %v12473_v27  ;;  %v15671_v39 = vmul.f32 %v20497_v26, %v12473_v27 }
 0x426   : > { %21119 = vst [vmem:[#allocation672_spill] sm:$0xff] %v15601_v11  ;;  %21120 = vst [vmem:[#allocation673_spill] sm:$0xff] %v15605_v51  ;;  %v15655_v11 = vmul.f32 %v20494_v13, %v21071_v61  ;;  %v21136_v51 = vld [vmem:[#allocation70_spill] sm:$0xff] }
 0x427   : > { %21121 = vst [vmem:[#allocation674_spill] sm:$0xff] %v15609_v25  ;;  %21122 = vst [vmem:[#allocation675_spill] sm:$0xff] %v15615_v31  ;;  %v15663_v31 = vmul.f32 %v20497_v26, %v21071_v61  ;;  %v15679_v25 = vpop.f32.mrb[48].mxu1  ;;  %v15719_v35 = vmul.f32 %v11608_v41, %v21136_v51  ;;  %v15729_v3 = vmul.f32 %v11662_v54, %v21136_v51 }
 0x428   : > { %21123 = vst [vmem:[#allocation676_spill] sm:$0xff] %v15619_v63  ;;  %21124 = vst [vmem:[#allocation677_spill] sm:$0xff] %v15623_v19  ;;  %v15675_v19 = vmul.f32 %v20500_v52, %v21071_v61  ;;  %v15685_v63 = vmul.f32 %v20500_v52, %v12473_v27  ;;  %v15699_v47 = vpop.f32.mrb[49].mxu1  ;;  %v15705_v27 = vmul.f32 %v11737_v23, %v21136_v51 }
 0x429   : > { %21125 = vst [vmem:[#allocation678_spill] sm:$0xff] %v15631_v55  ;;  %21126 = vst [vmem:[#allocation679_spill] sm:$0xff] %v15635_v24  ;;  %v15677_v55 = vpop.f32.mrb[32].mxu0  ;;  %v15689_v24 = vmul.f32 %v20504_v58, %v21136_v51  ;;  %v15771_v1 = vmul.f32 %v11611_v6, %v21136_v51  ;;  %v15789_v46 = vmul.f32 %v11638_v48, %v21136_v51 }
 0x42a   : > { %21127 = vst [vmem:[#allocation680_spill] sm:$0xff] %v15641_v33  ;;  %21128 = vst [vmem:[#allocation681_spill] sm:$0xff] %v15645_v56  ;;  %v21138_v33 = vld [vmem:[#allocation19_spill] sm:$0xff]  ;;  %v1930_v61 = vmax.f32 %v15677_v55, %v15679_v25 }
 0x42b   : > { %21129 = vst [vmem:[#allocation682_spill] sm:$0xff] %v15649_v53  ;;  %21130 = vst [vmem:[#allocation683_spill] sm:$0xff] %v15655_v11  ;;  %v15693_v56 = vmul.f32 %v20504_v58, %v21138_v33  ;;  %v15697_v53 = vpop.f32.mrb[33].mxu0  ;;  %v15709_v11 = vmul.f32 %v11737_v23, %v21138_v33  ;;  %v15733_v60 = vmul.f32 %v11662_v54, %v21138_v33 }
 0x42c   : > { %21131 = vst [vmem:[#allocation684_spill] sm:$0xff] %v15659_v0  ;;  %21132 = vst [vmem:[#allocation685_spill] sm:$0xff] %v15663_v31  ;;  %v1931_v0 = vmax.f32 %v15697_v53, %v15699_v47  ;;  %v15735_v32 = vpop.f32.mrb[34].mxu0  ;;  %v15741_v31 = vmul.f32 %v11635_v34, %v21136_v51  ;;  %v15763_v17 = vmul.f32 %v11765_v30, %v21138_v33 }
 0x42d   : > { %21133 = vst [vmem:[#allocation686_spill] sm:$0xff] %v15671_v39  ;;  %21134 = vst [vmem:[#allocation687_spill] sm:$0xff] %v15675_v19  ;;  %v15725_v39 = vmul.f32 %v11608_v41, %v21138_v33 }
 0x42e   : > { %21135 = vst [vmem:[#allocation688_spill] sm:$0xff] %v15685_v63  ;;  %21137 = vst [vmem:[#allocation70_spill] sm:$0xff] %v15689_v24  ;;  %v15737_v24 = vpop.f32.mrb[50].mxu1  ;;  %v15753_v63 = vpop.f32.mrb[35].mxu0 }
 0x42f   : > { %21139 = vst [vmem:[#allocation19_spill] sm:$0xff] %v15693_v56  ;;  %21140 = vst [vmem:[#allocation689_spill] sm:$0xff] %v15705_v27  ;;  %v1932_v56 = vmax.f32 %v1930_v61, %v1931_v0  ;;  %v15745_v27 = vmul.f32 %v11635_v34, %v21138_v33  ;;  %v1935_v19 = vmax.f32 %v15735_v32, %v15737_v24  ;;  %v15755_v22 = vpop.f32.mrb[51].mxu1 }
 0x430   : > { %21141 = vst [vmem:[#allocation690_spill] sm:$0xff] %v15709_v11  ;;  %21142 = vst [vmem:[#allocation691_spill] sm:$0xff] %v15729_v3  ;;  %v15749_v11 = vmul.f32 %v11765_v30, %v21136_v51  ;;  %v1936_v28 = vmax.f32 %v15753_v63, %v15755_v22  ;;  %v15775_v0 = vmul.f32 %v11611_v6, %v21138_v33 }
 0x431   : > { %21143 = vst [vmem:[#allocation692_spill] sm:$0xff] %v15733_v60  ;;  %21144 = vst [vmem:[#allocation693_spill] sm:$0xff] %v15741_v31  ;;  %1933 = vmax.xlane.f32.xlu0 %v1932_v56  ;;  %v15781_v3 = vmul.f32 %v11689_v2, %v21136_v51  ;;  %v15785_v56 = vmul.f32 %v11689_v2, %v21138_v33  ;;  %v15799_v61 = vmul.f32 %v11768_v50, %v21136_v51 }
 0x432   : > { %21145 = vst [vmem:[#allocation694_spill] sm:$0xff] %v15745_v27  ;;  %21146 = vst [vmem:[#allocation695_spill] sm:$0xff] %v15749_v11  ;;  %v1937_v60 = vmax.f32 %v1935_v19, %v1936_v28  ;;  %v15795_v27 = vmul.f32 %v11638_v48, %v21138_v33  ;;  %v15809_v28 = vmul.f32 %v11614_v9, %v21136_v51 }
 0x433   : > { %21147 = vst [vmem:[#allocation696_spill] sm:$0xff] %v15763_v17  ;;  %21148 = vst [vmem:[#allocation697_spill] sm:$0xff] %v15771_v1  ;;  %v15805_v17 = vmul.f32 %v11768_v50, %v21138_v33  ;;  %v15813_v19 = vmul.f32 %v11614_v9, %v21138_v33  ;;  %v15819_v1 = vmul.f32 %v11692_v4, %v21136_v51 }
 0x434   : > { %21149 = vst [vmem:[#allocation698_spill] sm:$0xff] %v15775_v0  ;;  %21150 = vst [vmem:[#allocation699_spill] sm:$0xff] %v15781_v3  ;;  %v15823_v11 = vmul.f32 %v11692_v4, %v21138_v33  ;;  %v15827_v3 = vmul.f32 %v11641_v49, %v21136_v51  ;;  %v15835_v31 = vmul.f32 %v11641_v49, %v21138_v33 }
 0x435   : > { %21151 = vst [vmem:[#allocation700_spill] sm:$0xff] %v15785_v56  ;;  %21152 = vst [vmem:[#allocation701_spill] sm:$0xff] %v15789_v46  ;;  %1938 = vmax.xlane.f32.xlu0 %v1937_v60  ;;  %v15839_v46 = vmul.f32 %v11771_v40, %v21136_v51  ;;  %v15845_v0 = vmul.f32 %v11771_v40, %v21138_v33  ;;  %v15849_v56 = vmul.f32 %v20363_v12, %v21136_v51 }
 0x436   : > { %21153 = vst [vmem:[#allocation702_spill] sm:$0xff] %v15795_v27  ;;  %21154 = vst [vmem:[#allocation703_spill] sm:$0xff] %v15799_v61  ;;  %v15853_v60 = vmul.f32 %v20363_v12, %v21138_v33  ;;  %v15863_v27 = vmul.f32 %v20367_v14, %v21138_v33  ;;  %v15893_v61 = vmul.f32 %v20374_v57, %v21138_v33 }
 0x437   : > { %21155 = vst [vmem:[#allocation704_spill] sm:$0xff] %v15805_v17  ;;  %21156 = vst [vmem:[#allocation705_spill] sm:$0xff] %v15809_v28  ;;  %v15875_v28 = vmul.f32 %v20368_v42, %v21138_v33  ;;  %v15885_v17 = vmul.f32 %v20369_v43, %v21138_v33 }
 0x438   : > { %21157 = vst [vmem:[#allocation706_spill] sm:$0xff] %v15813_v19  ;;  %21158 = vst [vmem:[#allocation707_spill] sm:$0xff] %v15819_v1  ;;  %v15859_v19 = vmul.f32 %v20367_v14, %v21136_v51  ;;  %v15867_v1 = vmul.f32 %v20368_v42, %v21136_v51 }
 0x439   : > { %21159 = vst [vmem:[#allocation708_spill] sm:$0xff] %v15823_v11  ;;  %21160 = vst [vmem:[#allocation709_spill] sm:$0xff] %v15827_v3  ;;  %v15879_v3 = vmul.f32 %v20369_v43, %v21136_v51  ;;  %v15889_v11 = vmul.f32 %v20374_v57, %v21136_v51 }
 0x43a   : > { %21161 = vst [vmem:[#allocation710_spill] sm:$0xff] %v15835_v31  ;;  %21162 = vst [vmem:[#allocation711_spill] sm:$0xff] %v15839_v46  ;;  %v15903_v31 = vmul.f32 %v20375_v18, %v21138_v33  ;;  %v15933_v46 = vmul.f32 %v20464_v21, %v21138_v33 }
 0x43b   : > { %21163 = vst [vmem:[#allocation712_spill] sm:$0xff] %v15845_v0  ;;  %21164 = vst [vmem:[#allocation713_spill] sm:$0xff] %v15849_v56  ;;  %v15915_v56 = vmul.f32 %v20458_v38, %v21138_v33  ;;  %v15925_v0 = vmul.f32 %v20461_v20, %v21138_v33 }
 0x43c   : > { %21165 = vst [vmem:[#allocation714_spill] sm:$0xff] %v15853_v60  ;;  %21166 = vst [vmem:[#allocation715_spill] sm:$0xff] %v15859_v19  ;;  %v15899_v60 = vmul.f32 %v20375_v18, %v21136_v51  ;;  %v15907_v19 = vmul.f32 %v20458_v38, %v21136_v51 }
 0x43d   : > { %21167 = vst [vmem:[#allocation716_spill] sm:$0xff] %v15863_v27  ;;  %21168 = vst [vmem:[#allocation717_spill] sm:$0xff] %v15867_v1  ;;  %v15919_v1 = vmul.f32 %v20461_v20, %v21136_v51  ;;  %v15929_v27 = vmul.f32 %v20464_v21, %v21136_v51 }
 0x43e   : > { %21169 = vst [vmem:[#allocation718_spill] sm:$0xff] %v15875_v28  ;;  %21170 = vst [vmem:[#allocation719_spill] sm:$0xff] %v15879_v3  ;;  %v15943_v28 = vmul.f32 %v20468_v59, %v21138_v33  ;;  %v15973_v3 = vmul.f32 %v20475_v37, %v21138_v33 }
 0x43f   : > { %21171 = vst [vmem:[#allocation720_spill] sm:$0xff] %v15885_v17  ;;  %21172 = vst [vmem:[#allocation721_spill] sm:$0xff] %v15889_v11  ;;  %v15955_v11 = vmul.f32 %v20471_v29, %v21138_v33  ;;  %v15965_v17 = vmul.f32 %v20472_v7, %v21138_v33 }
 0x440   : > { %21173 = vst [vmem:[#allocation722_spill] sm:$0xff] %v15893_v61  ;;  %21174 = vst [vmem:[#allocation723_spill] sm:$0xff] %v15899_v60  ;;  %v15939_v61 = vmul.f32 %v20468_v59, %v21136_v51  ;;  %v15947_v60 = vmul.f32 %v20471_v29, %v21136_v51 }
 0x441   : > { %21175 = vst [vmem:[#allocation724_spill] sm:$0xff] %v15903_v31  ;;  %21176 = vst [vmem:[#allocation725_spill] sm:$0xff] %v15907_v19  ;;  %v15959_v19 = vmul.f32 %v20472_v7, %v21136_v51  ;;  %v15969_v31 = vmul.f32 %v20475_v37, %v21136_v51 }
 0x442   : > { %21177 = vst [vmem:[#allocation726_spill] sm:$0xff] %v15915_v56  ;;  %21178 = vst [vmem:[#allocation727_spill] sm:$0xff] %v15919_v1  ;;  %v15983_v56 = vmul.f32 %v20488_v10, %v21138_v33  ;;  %v16013_v1 = vmul.f32 %v20497_v26, %v21138_v33 }
 0x443   : > { %21179 = vst [vmem:[#allocation728_spill] sm:$0xff] %v15925_v0  ;;  %21180 = vst [vmem:[#allocation729_spill] sm:$0xff] %v15929_v27  ;;  %v15995_v27 = vmul.f32 %v20491_v44, %v21138_v33  ;;  %v16005_v0 = vmul.f32 %v20494_v13, %v21138_v33 }
 0x444   : > { %21181 = vst [vmem:[#allocation730_spill] sm:$0xff] %v15933_v46  ;;  %21182 = vst [vmem:[#allocation731_spill] sm:$0xff] %v15939_v61  ;;  %v15979_v46 = vmul.f32 %v20488_v10, %v21136_v51  ;;  %v15987_v61 = vmul.f32 %v20491_v44, %v21136_v51 }
 0x445   : > { %21183 = vst [vmem:[#allocation732_spill] sm:$0xff] %v15943_v28  ;;  %21184 = vst [vmem:[#allocation733_spill] sm:$0xff] %v15947_v60  ;;  %v15999_v60 = vmul.f32 %v20494_v13, %v21136_v51  ;;  %v16009_v28 = vmul.f32 %v20497_v26, %v21136_v51 }
 0x446   : > { %21185 = vst [vmem:[#allocation734_spill] sm:$0xff] %v15955_v11  ;;  %21186 = vst [vmem:[#allocation735_spill] sm:$0xff] %v15959_v19  ;;  %v16023_v11 = vmul.f32 %v20500_v52, %v21138_v33  ;;  %v16053_v19 = vmul.f32 %v11608_v41, %v12585_v8  ;;  %v16063_v33 = vmul.f32 %v11662_v54, %v12585_v8 }
 0x447   : > { %21187 = vst [vmem:[#allocation736_spill] sm:$0xff] %v15965_v17  ;;  %21188 = vst [vmem:[#allocation737_spill] sm:$0xff] %v15969_v31  ;;  %v16035_v31 = vmul.f32 %v20504_v58, %v12585_v8 }
 0x448   : > { %21189 = vst [vmem:[#allocation738_spill] sm:$0xff] %v15973_v3  ;;  %21190 = vst [vmem:[#allocation739_spill] sm:$0xff] %v15979_v46  ;;  %v16019_v3 = vmul.f32 %v20500_v52, %v21136_v51  ;;  %v16027_v46 = vmul.f32 %v20504_v58, %v12529_v16  ;;  %v16039_v51 = vmul.f32 %v11737_v23, %v12529_v16 }
 0x449   : > { %21191 = vst [vmem:[#allocation740_spill] sm:$0xff] %v15983_v56  ;;  %21192 = vst [vmem:[#allocation741_spill] sm:$0xff] %v15987_v61  ;;  %v16045_v61 = vmul.f32 %v11737_v23, %v12585_v8  ;;  %v16049_v56 = vmul.f32 %v11608_v41, %v12529_v16 }
 0x44a   : > { %21193 = vst [vmem:[#allocation742_spill] sm:$0xff] %v15995_v27  ;;  %21194 = vst [vmem:[#allocation743_spill] sm:$0xff] %v15999_v60  ;;  %v16093_v60 = vmul.f32 %v11611_v6, %v12585_v8  ;;  %v21266_v27 = vld [vmem:[#allocation71_spill] sm:$0xff] }
 0x44b   : > { %21195 = vst [vmem:[#allocation744_spill] sm:$0xff] %v16005_v0  ;;  %21196 = vst [vmem:[#allocation745_spill] sm:$0xff] %v16009_v28  ;;  %v16075_v28 = vmul.f32 %v11635_v34, %v12585_v8  ;;  %v16085_v0 = vmul.f32 %v11765_v30, %v12585_v8 }
 0x44c   : > { %21197 = vst [vmem:[#allocation746_spill] sm:$0xff] %v16013_v1  ;;  %21198 = vst [vmem:[#allocation747_spill] sm:$0xff] %v16019_v3  ;;  %v16059_v1 = vmul.f32 %v11662_v54, %v12529_v16  ;;  %v16067_v3 = vmul.f32 %v11635_v34, %v12529_v16 }
 0x44d   : > { %21199 = vst [vmem:[#allocation748_spill] sm:$0xff] %v16023_v11  ;;  %21200 = vst [vmem:[#allocation749_spill] sm:$0xff] %v16027_v46  ;;  %v16079_v46 = vmul.f32 %v11765_v30, %v12529_v16  ;;  %v16089_v11 = vmul.f32 %v11611_v6, %v12529_v16 }
 0x44e   : > { %21201 = vst [vmem:[#allocation750_spill] sm:$0xff] %v16035_v31  ;;  %21202 = vst [vmem:[#allocation751_spill] sm:$0xff] %v16039_v51  ;;  %v16103_v31 = vmul.f32 %v11689_v2, %v12585_v8  ;;  %v16133_v51 = vmul.f32 %v11614_v9, %v12585_v8 }
 0x44f   : > { %21203 = vst [vmem:[#allocation752_spill] sm:$0xff] %v16045_v61  ;;  %21204 = vst [vmem:[#allocation753_spill] sm:$0xff] %v16049_v56  ;;  %v16115_v56 = vmul.f32 %v11638_v48, %v12585_v8  ;;  %v16125_v61 = vmul.f32 %v11768_v50, %v12585_v8 }
 0x450   : > { %21205 = vst [vmem:[#allocation754_spill] sm:$0xff] %v16053_v19  ;;  %21206 = vst [vmem:[#allocation755_spill] sm:$0xff] %v16059_v1  ;;  %v16099_v19 = vmul.f32 %v11689_v2, %v12529_v16  ;;  %v16107_v1 = vmul.f32 %v11638_v48, %v12529_v16 }
 0x451   : > { %21207 = vst [vmem:[#allocation756_spill] sm:$0xff] %v16063_v33  ;;  %21208 = vst [vmem:[#allocation757_spill] sm:$0xff] %v16067_v3  ;;  %v16119_v3 = vmul.f32 %v11768_v50, %v12529_v16  ;;  %v16129_v33 = vmul.f32 %v11614_v9, %v12529_v16 }
 0x452   : > { %21209 = vst [vmem:[#allocation758_spill] sm:$0xff] %v16075_v28  ;;  %21210 = vst [vmem:[#allocation759_spill] sm:$0xff] %v16079_v46  ;;  %v16143_v28 = vmul.f32 %v11692_v4, %v12585_v8  ;;  %v16173_v46 = vmul.f32 %v20363_v12, %v12585_v8 }
 0x453   : > { %21211 = vst [vmem:[#allocation760_spill] sm:$0xff] %v16085_v0  ;;  %21212 = vst [vmem:[#allocation761_spill] sm:$0xff] %v16089_v11  ;;  %v16155_v11 = vmul.f32 %v11641_v49, %v12585_v8  ;;  %v16165_v0 = vmul.f32 %v11771_v40, %v12585_v8 }
 0x454   : > { %21213 = vst [vmem:[#allocation762_spill] sm:$0xff] %v16093_v60  ;;  %21214 = vst [vmem:[#allocation763_spill] sm:$0xff] %v16099_v19  ;;  %v16139_v60 = vmul.f32 %v11692_v4, %v12529_v16  ;;  %v16147_v19 = vmul.f32 %v11641_v49, %v12529_v16 }
 0x455   : > { %21215 = vst [vmem:[#allocation764_spill] sm:$0xff] %v16103_v31  ;;  %21216 = vst [vmem:[#allocation765_spill] sm:$0xff] %v16107_v1  ;;  %v16159_v1 = vmul.f32 %v11771_v40, %v12529_v16  ;;  %v16169_v31 = vmul.f32 %v20363_v12, %v12529_v16 }
 0x456   : > { %21217 = vst [vmem:[#allocation766_spill] sm:$0xff] %v16115_v56  ;;  %21218 = vst [vmem:[#allocation767_spill] sm:$0xff] %v16119_v3  ;;  %v16183_v56 = vmul.f32 %v20367_v14, %v12585_v8  ;;  %v16213_v3 = vmul.f32 %v20374_v57, %v12585_v8 }
 0x457   : > { %21219 = vst [vmem:[#allocation768_spill] sm:$0xff] %v16125_v61  ;;  %21220 = vst [vmem:[#allocation769_spill] sm:$0xff] %v16129_v33  ;;  %v16195_v33 = vmul.f32 %v20368_v42, %v12585_v8  ;;  %v16205_v61 = vmul.f32 %v20369_v43, %v12585_v8 }
 0x458   : > { %21221 = vst [vmem:[#allocation770_spill] sm:$0xff] %v16133_v51  ;;  %21222 = vst [vmem:[#allocation771_spill] sm:$0xff] %v16139_v60  ;;  %v16179_v51 = vmul.f32 %v20367_v14, %v12529_v16  ;;  %v16187_v60 = vmul.f32 %v20368_v42, %v12529_v16 }
 0x459   : > { %21223 = vst [vmem:[#allocation772_spill] sm:$0xff] %v16143_v28  ;;  %21224 = vst [vmem:[#allocation773_spill] sm:$0xff] %v16147_v19  ;;  %v16199_v19 = vmul.f32 %v20369_v43, %v12529_v16  ;;  %v16209_v28 = vmul.f32 %v20374_v57, %v12529_v16 }
 0x45a   : > { %21225 = vst [vmem:[#allocation774_spill] sm:$0xff] %v16155_v11  ;;  %21226 = vst [vmem:[#allocation775_spill] sm:$0xff] %v16159_v1  ;;  %v16223_v11 = vmul.f32 %v20375_v18, %v12585_v8  ;;  %v16253_v1 = vmul.f32 %v20464_v21, %v12585_v8 }
 0x45b   : > { %21227 = vst [vmem:[#allocation776_spill] sm:$0xff] %v16165_v0  ;;  %21228 = vst [vmem:[#allocation777_spill] sm:$0xff] %v16169_v31  ;;  %v16235_v31 = vmul.f32 %v20458_v38, %v12585_v8  ;;  %v16245_v0 = vmul.f32 %v20461_v20, %v12585_v8 }
 0x45c   : > { %21229 = vst [vmem:[#allocation778_spill] sm:$0xff] %v16173_v46  ;;  %21230 = vst [vmem:[#allocation779_spill] sm:$0xff] %v16179_v51  ;;  %v16219_v46 = vmul.f32 %v20375_v18, %v12529_v16  ;;  %v16227_v51 = vmul.f32 %v20458_v38, %v12529_v16 }
 0x45d   : > { %21231 = vst [vmem:[#allocation780_spill] sm:$0xff] %v16183_v56  ;;  %21232 = vst [vmem:[#allocation781_spill] sm:$0xff] %v16187_v60  ;;  %v16239_v60 = vmul.f32 %v20461_v20, %v12529_v16  ;;  %v16249_v56 = vmul.f32 %v20464_v21, %v12529_v16 }
 0x45e   : > { %21233 = vst [vmem:[#allocation782_spill] sm:$0xff] %v16195_v33  ;;  %21234 = vst [vmem:[#allocation783_spill] sm:$0xff] %v16199_v19  ;;  %v16263_v33 = vmul.f32 %v20468_v59, %v12585_v8  ;;  %v16293_v19 = vmul.f32 %v20475_v37, %v12585_v8 }
 0x45f   : > { %21235 = vst [vmem:[#allocation784_spill] sm:$0xff] %v16205_v61  ;;  %21236 = vst [vmem:[#allocation785_spill] sm:$0xff] %v16209_v28  ;;  %v16275_v28 = vmul.f32 %v20471_v29, %v12585_v8  ;;  %v16285_v61 = vmul.f32 %v20472_v7, %v12585_v8 }
 0x460   : > { %21237 = vst [vmem:[#allocation786_spill] sm:$0xff] %v16213_v3  ;;  %21238 = vst [vmem:[#allocation787_spill] sm:$0xff] %v16219_v46  ;;  %v16259_v3 = vmul.f32 %v20468_v59, %v12529_v16  ;;  %v16267_v46 = vmul.f32 %v20471_v29, %v12529_v16 }
 0x461   : > { %21239 = vst [vmem:[#allocation788_spill] sm:$0xff] %v16223_v11  ;;  %21240 = vst [vmem:[#allocation789_spill] sm:$0xff] %v16227_v51  ;;  %v16279_v51 = vmul.f32 %v20472_v7, %v12529_v16  ;;  %v16289_v11 = vmul.f32 %v20475_v37, %v12529_v16 }
 0x462   : > { %21241 = vst [vmem:[#allocation790_spill] sm:$0xff] %v16235_v31  ;;  %21242 = vst [vmem:[#allocation791_spill] sm:$0xff] %v16239_v60  ;;  %v16303_v31 = vmul.f32 %v20488_v10, %v12585_v8  ;;  %v16333_v60 = vmul.f32 %v20497_v26, %v12585_v8 }
 0x463   : > { %21243 = vst [vmem:[#allocation792_spill] sm:$0xff] %v16245_v0  ;;  %21244 = vst [vmem:[#allocation793_spill] sm:$0xff] %v16249_v56  ;;  %v16315_v56 = vmul.f32 %v20491_v44, %v12585_v8  ;;  %v16325_v0 = vmul.f32 %v20494_v13, %v12585_v8 }
 0x464   : > { %21245 = vst [vmem:[#allocation794_spill] sm:$0xff] %v16253_v1  ;;  %21246 = vst [vmem:[#allocation795_spill] sm:$0xff] %v16259_v3  ;;  %v16299_v1 = vmul.f32 %v20488_v10, %v12529_v16  ;;  %v16307_v3 = vmul.f32 %v20491_v44, %v12529_v16 }
 0x465   : > { %21247 = vst [vmem:[#allocation796_spill] sm:$0xff] %v16263_v33  ;;  %21248 = vst [vmem:[#allocation797_spill] sm:$0xff] %v16267_v46  ;;  %v16319_v46 = vmul.f32 %v20494_v13, %v12529_v16  ;;  %v16329_v33 = vmul.f32 %v20497_v26, %v12529_v16 }
 0x466   : > { %21249 = vst [vmem:[#allocation798_spill] sm:$0xff] %v16275_v28  ;;  %21250 = vst [vmem:[#allocation799_spill] sm:$0xff] %v16279_v51  ;;  %v16343_v28 = vmul.f32 %v20500_v52, %v12585_v8  ;;  %v16383_v8 = vmul.f32 %v11662_v54, %v21266_v27 }
 0x467   : > { %21251 = vst [vmem:[#allocation800_spill] sm:$0xff] %v16285_v61  ;;  %21252 = vst [vmem:[#allocation801_spill] sm:$0xff] %v16289_v11  ;;  %v16355_v11 = vmul.f32 %v20504_v58, %v21266_v27  ;;  %v16373_v61 = vmul.f32 %v11608_v41, %v21266_v27 }
 0x468   : > { %21253 = vst [vmem:[#allocation802_spill] sm:$0xff] %v16293_v19  ;;  %21254 = vst [vmem:[#allocation803_spill] sm:$0xff] %v16299_v1  ;;  %v16339_v19 = vmul.f32 %v20500_v52, %v12529_v16  ;;  %v21264_v1 = vld [vmem:[#allocation72_spill] sm:$0xff] }
 0x469   : > { %21255 = vst [vmem:[#allocation804_spill] sm:$0xff] %v16303_v31  ;;  %21256 = vst [vmem:[#allocation805_spill] sm:$0xff] %v16307_v3  ;;  %v16347_v31 = vmul.f32 %v20504_v58, %v21264_v1  ;;  %v16359_v16 = vmul.f32 %v11737_v23, %v21264_v1  ;;  %v16365_v3 = vmul.f32 %v11737_v23, %v21266_v27 }
 0x46a   : > { %21257 = vst [vmem:[#allocation806_spill] sm:$0xff] %v16315_v56  ;;  %21258 = vst [vmem:[#allocation807_spill] sm:$0xff] %v16319_v46  ;;  %v16369_v51 = vmul.f32 %v11608_v41, %v21264_v1  ;;  %v16413_v46 = vmul.f32 %v11611_v6, %v21266_v27 }
 0x46b   : > { %21259 = vst [vmem:[#allocation808_spill] sm:$0xff] %v16325_v0  ;;  %21260 = vst [vmem:[#allocation809_spill] sm:$0xff] %v16329_v33  ;;  %v16395_v33 = vmul.f32 %v11635_v34, %v21266_v27  ;;  %v16405_v0 = vmul.f32 %v11765_v30, %v21266_v27 }
 0x46c   : > { %21261 = vst [vmem:[#allocation810_spill] sm:$0xff] %v16333_v60  ;;  %21262 = vst [vmem:[#allocation811_spill] sm:$0xff] %v16339_v19  ;;  %v16379_v60 = vmul.f32 %v11662_v54, %v21264_v1  ;;  %v16387_v19 = vmul.f32 %v11635_v34, %v21264_v1 }
 0x46d   : > { %21263 = vst [vmem:[#allocation812_spill] sm:$0xff] %v16343_v28  ;;  %21265 = vst [vmem:[#allocation72_spill] sm:$0xff] %v16347_v31  ;;  %v16399_v31 = vmul.f32 %v11765_v30, %v21264_v1  ;;  %v16409_v28 = vmul.f32 %v11611_v6, %v21264_v1 }
 0x46e   : > { %21267 = vst [vmem:[#allocation71_spill] sm:$0xff] %v16355_v11  ;;  %21268 = vst [vmem:[#allocation813_spill] sm:$0xff] %v16359_v16  ;;  %v16423_v11 = vmul.f32 %v11689_v2, %v21266_v27  ;;  %v16453_v16 = vmul.f32 %v11614_v9, %v21266_v27 }
 0x46f   : > { %21269 = vst [vmem:[#allocation814_spill] sm:$0xff] %v16365_v3  ;;  %21270 = vst [vmem:[#allocation815_spill] sm:$0xff] %v16369_v51  ;;  %v16435_v51 = vmul.f32 %v11638_v48, %v21266_v27  ;;  %v16445_v3 = vmul.f32 %v11768_v50, %v21266_v27 }
 0x470   : > { %21271 = vst [vmem:[#allocation816_spill] sm:$0xff] %v16373_v61  ;;  %21272 = vst [vmem:[#allocation817_spill] sm:$0xff] %v16379_v60  ;;  %v16419_v61 = vmul.f32 %v11689_v2, %v21264_v1  ;;  %v16427_v60 = vmul.f32 %v11638_v48, %v21264_v1 }
 0x471   : > { %21273 = vst [vmem:[#allocation818_spill] sm:$0xff] %v16383_v8  ;;  %21274 = vst [vmem:[#allocation819_spill] sm:$0xff] %v16387_v19  ;;  %v16439_v19 = vmul.f32 %v11768_v50, %v21264_v1  ;;  %v16449_v8 = vmul.f32 %v11614_v9, %v21264_v1 }
 0x472   : > { %21275 = vst [vmem:[#allocation820_spill] sm:$0xff] %v16395_v33  ;;  %21276 = vst [vmem:[#allocation821_spill] sm:$0xff] %v16399_v31  ;;  %v16463_v33 = vmul.f32 %v11692_v4, %v21266_v27  ;;  %v16493_v31 = vmul.f32 %v20363_v12, %v21266_v27 }
 0x473   : > { %21277 = vst [vmem:[#allocation822_spill] sm:$0xff] %v16405_v0  ;;  %21278 = vst [vmem:[#allocation823_spill] sm:$0xff] %v16409_v28  ;;  %v16475_v28 = vmul.f32 %v11641_v49, %v21266_v27  ;;  %v16485_v0 = vmul.f32 %v11771_v40, %v21266_v27 }
 0x474   : > { %21279 = vst [vmem:[#allocation824_spill] sm:$0xff] %v16413_v46  ;;  %21280 = vst [vmem:[#allocation825_spill] sm:$0xff] %v16419_v61  ;;  %v16459_v46 = vmul.f32 %v11692_v4, %v21264_v1  ;;  %v16467_v61 = vmul.f32 %v11641_v49, %v21264_v1 }
 0x475   : > { %21281 = vst [vmem:[#allocation826_spill] sm:$0xff] %v16423_v11  ;;  %21282 = vst [vmem:[#allocation827_spill] sm:$0xff] %v16427_v60  ;;  %v16479_v60 = vmul.f32 %v11771_v40, %v21264_v1  ;;  %v16489_v11 = vmul.f32 %v20363_v12, %v21264_v1 }
 0x476   : > { %21283 = vst [vmem:[#allocation828_spill] sm:$0xff] %v16435_v51  ;;  %21284 = vst [vmem:[#allocation829_spill] sm:$0xff] %v16439_v19  ;;  %v16503_v51 = vmul.f32 %v20367_v14, %v21266_v27  ;;  %v16533_v19 = vmul.f32 %v20374_v57, %v21266_v27 }
 0x477   : > { %21285 = vst [vmem:[#allocation830_spill] sm:$0xff] %v16445_v3  ;;  %21286 = vst [vmem:[#allocation831_spill] sm:$0xff] %v16449_v8  ;;  %v16515_v8 = vmul.f32 %v20368_v42, %v21266_v27  ;;  %v16525_v3 = vmul.f32 %v20369_v43, %v21266_v27 }
 0x478   : > { %21287 = vst [vmem:[#allocation832_spill] sm:$0xff] %v16453_v16  ;;  %21288 = vst [vmem:[#allocation833_spill] sm:$0xff] %v16459_v46  ;;  %v16499_v16 = vmul.f32 %v20367_v14, %v21264_v1  ;;  %v16507_v46 = vmul.f32 %v20368_v42, %v21264_v1 }
 0x479   : > { %21289 = vst [vmem:[#allocation834_spill] sm:$0xff] %v16463_v33  ;;  %21290 = vst [vmem:[#allocation835_spill] sm:$0xff] %v16467_v61  ;;  %v16519_v61 = vmul.f32 %v20369_v43, %v21264_v1  ;;  %v16529_v33 = vmul.f32 %v20374_v57, %v21264_v1 }
 0x47a   : > { %21291 = vst [vmem:[#allocation836_spill] sm:$0xff] %v16475_v28  ;;  %21292 = vst [vmem:[#allocation837_spill] sm:$0xff] %v16479_v60  ;;  %v16543_v28 = vmul.f32 %v20375_v18, %v21266_v27  ;;  %v16573_v60 = vmul.f32 %v20464_v21, %v21266_v27 }
 0x47b   : > { %21293 = vst [vmem:[#allocation838_spill] sm:$0xff] %v16485_v0  ;;  %21294 = vst [vmem:[#allocation839_spill] sm:$0xff] %v16489_v11  ;;  %v16555_v11 = vmul.f32 %v20458_v38, %v21266_v27  ;;  %v16565_v0 = vmul.f32 %v20461_v20, %v21266_v27 }
 0x47c   : > { %21295 = vst [vmem:[#allocation840_spill] sm:$0xff] %v16493_v31  ;;  %21296 = vst [vmem:[#allocation841_spill] sm:$0xff] %v16499_v16  ;;  %v16539_v31 = vmul.f32 %v20375_v18, %v21264_v1  ;;  %v16547_v16 = vmul.f32 %v20458_v38, %v21264_v1 }
 0x47d   : > { %21297 = vst [vmem:[#allocation842_spill] sm:$0xff] %v16503_v51  ;;  %21298 = vst [vmem:[#allocation843_spill] sm:$0xff] %v16507_v46  ;;  %v16559_v46 = vmul.f32 %v20461_v20, %v21264_v1  ;;  %v16569_v51 = vmul.f32 %v20464_v21, %v21264_v1 }
 0x47e   : > { %21299 = vst [vmem:[#allocation844_spill] sm:$0xff] %v16515_v8  ;;  %21300 = vst [vmem:[#allocation845_spill] sm:$0xff] %v16519_v61  ;;  %v16583_v8 = vmul.f32 %v20468_v59, %v21266_v27  ;;  %v16613_v61 = vmul.f32 %v20475_v37, %v21266_v27 }
 0x47f   : > { %21301 = vst [vmem:[#allocation846_spill] sm:$0xff] %v16525_v3  ;;  %21302 = vst [vmem:[#allocation847_spill] sm:$0xff] %v16529_v33  ;;  %v16595_v33 = vmul.f32 %v20471_v29, %v21266_v27  ;;  %v16605_v3 = vmul.f32 %v20472_v7, %v21266_v27 }
 0x480   : > { %21303 = vst [vmem:[#allocation848_spill] sm:$0xff] %v16533_v19  ;;  %21304 = vst [vmem:[#allocation849_spill] sm:$0xff] %v16539_v31  ;;  %v16579_v19 = vmul.f32 %v20468_v59, %v21264_v1  ;;  %v16587_v31 = vmul.f32 %v20471_v29, %v21264_v1 }
 0x481   : > { %21305 = vst [vmem:[#allocation850_spill] sm:$0xff] %v16543_v28  ;;  %21306 = vst [vmem:[#allocation851_spill] sm:$0xff] %v16547_v16  ;;  %v16599_v16 = vmul.f32 %v20472_v7, %v21264_v1  ;;  %v16609_v28 = vmul.f32 %v20475_v37, %v21264_v1 }
 0x482   : > { %21307 = vst [vmem:[#allocation852_spill] sm:$0xff] %v16555_v11  ;;  %21308 = vst [vmem:[#allocation853_spill] sm:$0xff] %v16559_v46  ;;  %v16623_v11 = vmul.f32 %v20488_v10, %v21266_v27  ;;  %v16653_v46 = vmul.f32 %v20497_v26, %v21266_v27 }
 0x483   : > { %21309 = vst [vmem:[#allocation854_spill] sm:$0xff] %v16565_v0  ;;  %21310 = vst [vmem:[#allocation855_spill] sm:$0xff] %v16569_v51  ;;  %v16635_v51 = vmul.f32 %v20491_v44, %v21266_v27  ;;  %v16645_v0 = vmul.f32 %v20494_v13, %v21266_v27 }
 0x484   : > { %21311 = vst [vmem:[#allocation856_spill] sm:$0xff] %v16573_v60  ;;  %21312 = vst [vmem:[#allocation857_spill] sm:$0xff] %v16579_v19  ;;  %v16619_v60 = vmul.f32 %v20488_v10, %v21264_v1  ;;  %v16627_v19 = vmul.f32 %v20491_v44, %v21264_v1 }
 0x485   : > { %21313 = vst [vmem:[#allocation858_spill] sm:$0xff] %v16583_v8  ;;  %21314 = vst [vmem:[#allocation859_spill] sm:$0xff] %v16587_v31  ;;  %v16639_v31 = vmul.f32 %v20494_v13, %v21264_v1  ;;  %v16649_v8 = vmul.f32 %v20497_v26, %v21264_v1 }
 0x486   : > { %21315 = vst [vmem:[#allocation860_spill] sm:$0xff] %v16595_v33  ;;  %21316 = vst [vmem:[#allocation861_spill] sm:$0xff] %v16599_v16  ;;  %v16663_v33 = vmul.f32 %v20500_v52, %v21266_v27  ;;  %v16693_v16 = vmul.f32 %v11608_v41, %v12695_v62  ;;  %v16703_v27 = vmul.f32 %v11662_v54, %v12695_v62 }
 0x487   : > { %21317 = vst [vmem:[#allocation862_spill] sm:$0xff] %v16605_v3  ;;  %21318 = vst [vmem:[#allocation863_spill] sm:$0xff] %v16609_v28  ;;  %v16675_v28 = vmul.f32 %v20504_v58, %v12695_v62 }
 0x488   : > { %21319 = vst [vmem:[#allocation864_spill] sm:$0xff] %v16613_v61  ;;  %21320 = vst [vmem:[#allocation865_spill] sm:$0xff] %v16619_v60  ;;  %v16659_v61 = vmul.f32 %v20500_v52, %v21264_v1  ;;  %v16667_v60 = vmul.f32 %v20504_v58, %v12641_v5  ;;  %v16679_v1 = vmul.f32 %v11737_v23, %v12641_v5 }
 0x489   : > { %21321 = vst [vmem:[#allocation866_spill] sm:$0xff] %v16623_v11  ;;  %21322 = vst [vmem:[#allocation867_spill] sm:$0xff] %v16627_v19  ;;  %v16685_v19 = vmul.f32 %v11737_v23, %v12695_v62  ;;  %v16689_v11 = vmul.f32 %v11608_v41, %v12641_v5 }
 0x48a   : > { %21323 = vst [vmem:[#allocation868_spill] sm:$0xff] %v16635_v51  ;;  %21324 = vst [vmem:[#allocation869_spill] sm:$0xff] %v16639_v31  ;;  %v16733_v31 = vmul.f32 %v11611_v6, %v12695_v62  ;;  %v21396_v51 = vld [vmem:[#allocation75_spill] sm:$0xff] }
 0x48b   : > { %21325 = vst [vmem:[#allocation870_spill] sm:$0xff] %v16645_v0  ;;  %21326 = vst [vmem:[#allocation871_spill] sm:$0xff] %v16649_v8  ;;  %v16715_v8 = vmul.f32 %v11635_v34, %v12695_v62  ;;  %v16725_v0 = vmul.f32 %v11765_v30, %v12695_v62 }
 0x48c   : > { %21327 = vst [vmem:[#allocation872_spill] sm:$0xff] %v16653_v46  ;;  %21328 = vst [vmem:[#allocation873_spill] sm:$0xff] %v16659_v61  ;;  %v16699_v46 = vmul.f32 %v11662_v54, %v12641_v5  ;;  %v16707_v61 = vmul.f32 %v11635_v34, %v12641_v5 }
 0x48d   : > { %21329 = vst [vmem:[#allocation874_spill] sm:$0xff] %v16663_v33  ;;  %21330 = vst [vmem:[#allocation875_spill] sm:$0xff] %v16667_v60  ;;  %v16719_v60 = vmul.f32 %v11765_v30, %v12641_v5  ;;  %v16729_v33 = vmul.f32 %v11611_v6, %v12641_v5 }
 0x48e   : > { %21331 = vst [vmem:[#allocation876_spill] sm:$0xff] %v16675_v28  ;;  %21332 = vst [vmem:[#allocation877_spill] sm:$0xff] %v16679_v1  ;;  %v16743_v28 = vmul.f32 %v11689_v2, %v12695_v62  ;;  %v16773_v1 = vmul.f32 %v11614_v9, %v12695_v62 }
 0x48f   : > { %21333 = vst [vmem:[#allocation878_spill] sm:$0xff] %v16685_v19  ;;  %21334 = vst [vmem:[#allocation879_spill] sm:$0xff] %v16689_v11  ;;  %v16755_v11 = vmul.f32 %v11638_v48, %v12695_v62  ;;  %v16765_v19 = vmul.f32 %v11768_v50, %v12695_v62 }
 0x490   : > { %21335 = vst [vmem:[#allocation880_spill] sm:$0xff] %v16693_v16  ;;  %21336 = vst [vmem:[#allocation881_spill] sm:$0xff] %v16699_v46  ;;  %v16739_v16 = vmul.f32 %v11689_v2, %v12641_v5  ;;  %v16747_v46 = vmul.f32 %v11638_v48, %v12641_v5 }
 0x491   : > { %21337 = vst [vmem:[#allocation882_spill] sm:$0xff] %v16703_v27  ;;  %21338 = vst [vmem:[#allocation883_spill] sm:$0xff] %v16707_v61  ;;  %v16759_v61 = vmul.f32 %v11768_v50, %v12641_v5  ;;  %v16769_v27 = vmul.f32 %v11614_v9, %v12641_v5 }
 0x492   : > { %21339 = vst [vmem:[#allocation884_spill] sm:$0xff] %v16715_v8  ;;  %21340 = vst [vmem:[#allocation885_spill] sm:$0xff] %v16719_v60  ;;  %v16783_v8 = vmul.f32 %v11692_v4, %v12695_v62  ;;  %v16813_v60 = vmul.f32 %v20363_v12, %v12695_v62 }
 0x493   : > { %21341 = vst [vmem:[#allocation886_spill] sm:$0xff] %v16725_v0  ;;  %21342 = vst [vmem:[#allocation887_spill] sm:$0xff] %v16729_v33  ;;  %v16795_v33 = vmul.f32 %v11641_v49, %v12695_v62  ;;  %v16805_v0 = vmul.f32 %v11771_v40, %v12695_v62 }
 0x494   : > { %21343 = vst [vmem:[#allocation888_spill] sm:$0xff] %v16733_v31  ;;  %21344 = vst [vmem:[#allocation889_spill] sm:$0xff] %v16739_v16  ;;  %v16779_v31 = vmul.f32 %v11692_v4, %v12641_v5  ;;  %v16787_v16 = vmul.f32 %v11641_v49, %v12641_v5 }
 0x495   : > { %21345 = vst [vmem:[#allocation890_spill] sm:$0xff] %v16743_v28  ;;  %21346 = vst [vmem:[#allocation891_spill] sm:$0xff] %v16747_v46  ;;  %v16799_v46 = vmul.f32 %v11771_v40, %v12641_v5  ;;  %v16809_v28 = vmul.f32 %v20363_v12, %v12641_v5 }
 0x496   : > { %21347 = vst [vmem:[#allocation892_spill] sm:$0xff] %v16755_v11  ;;  %21348 = vst [vmem:[#allocation893_spill] sm:$0xff] %v16759_v61  ;;  %v16823_v11 = vmul.f32 %v20367_v14, %v12695_v62  ;;  %v16853_v61 = vmul.f32 %v20374_v57, %v12695_v62 }
 0x497   : > { %21349 = vst [vmem:[#allocation894_spill] sm:$0xff] %v16765_v19  ;;  %21350 = vst [vmem:[#allocation895_spill] sm:$0xff] %v16769_v27  ;;  %v16835_v27 = vmul.f32 %v20368_v42, %v12695_v62  ;;  %v16845_v19 = vmul.f32 %v20369_v43, %v12695_v62 }
 0x498   : > { %21351 = vst [vmem:[#allocation896_spill] sm:$0xff] %v16773_v1  ;;  %21352 = vst [vmem:[#allocation897_spill] sm:$0xff] %v16779_v31  ;;  %v16819_v1 = vmul.f32 %v20367_v14, %v12641_v5  ;;  %v16827_v31 = vmul.f32 %v20368_v42, %v12641_v5 }
 0x499   : > { %21353 = vst [vmem:[#allocation898_spill] sm:$0xff] %v16783_v8  ;;  %21354 = vst [vmem:[#allocation899_spill] sm:$0xff] %v16787_v16  ;;  %v16839_v16 = vmul.f32 %v20369_v43, %v12641_v5  ;;  %v16849_v8 = vmul.f32 %v20374_v57, %v12641_v5 }
 0x49a   : > { %21355 = vst [vmem:[#allocation900_spill] sm:$0xff] %v16795_v33  ;;  %21356 = vst [vmem:[#allocation901_spill] sm:$0xff] %v16799_v46  ;;  %v16863_v33 = vmul.f32 %v20375_v18, %v12695_v62  ;;  %v16893_v46 = vmul.f32 %v20464_v21, %v12695_v62 }
 0x49b   : > { %21357 = vst [vmem:[#allocation902_spill] sm:$0xff] %v16805_v0  ;;  %21358 = vst [vmem:[#allocation903_spill] sm:$0xff] %v16809_v28  ;;  %v16875_v28 = vmul.f32 %v20458_v38, %v12695_v62  ;;  %v16885_v0 = vmul.f32 %v20461_v20, %v12695_v62 }
 0x49c   : > { %21359 = vst [vmem:[#allocation904_spill] sm:$0xff] %v16813_v60  ;;  %21360 = vst [vmem:[#allocation905_spill] sm:$0xff] %v16819_v1  ;;  %v16859_v60 = vmul.f32 %v20375_v18, %v12641_v5  ;;  %v16867_v1 = vmul.f32 %v20458_v38, %v12641_v5 }
 0x49d   : > { %21361 = vst [vmem:[#allocation906_spill] sm:$0xff] %v16823_v11  ;;  %21362 = vst [vmem:[#allocation907_spill] sm:$0xff] %v16827_v31  ;;  %v16879_v31 = vmul.f32 %v20461_v20, %v12641_v5  ;;  %v16889_v11 = vmul.f32 %v20464_v21, %v12641_v5 }
 0x49e   : > { %21363 = vst [vmem:[#allocation908_spill] sm:$0xff] %v16835_v27  ;;  %21364 = vst [vmem:[#allocation909_spill] sm:$0xff] %v16839_v16  ;;  %v16903_v27 = vmul.f32 %v20468_v59, %v12695_v62  ;;  %v16933_v16 = vmul.f32 %v20475_v37, %v12695_v62 }
 0x49f   : > { %21365 = vst [vmem:[#allocation910_spill] sm:$0xff] %v16845_v19  ;;  %21366 = vst [vmem:[#allocation911_spill] sm:$0xff] %v16849_v8  ;;  %v16915_v8 = vmul.f32 %v20471_v29, %v12695_v62  ;;  %v16925_v19 = vmul.f32 %v20472_v7, %v12695_v62 }
 0x4a0   : > { %21367 = vst [vmem:[#allocation912_spill] sm:$0xff] %v16853_v61  ;;  %21368 = vst [vmem:[#allocation913_spill] sm:$0xff] %v16859_v60  ;;  %v16899_v61 = vmul.f32 %v20468_v59, %v12641_v5  ;;  %v16907_v60 = vmul.f32 %v20471_v29, %v12641_v5 }
 0x4a1   : > { %21369 = vst [vmem:[#allocation914_spill] sm:$0xff] %v16863_v33  ;;  %21370 = vst [vmem:[#allocation915_spill] sm:$0xff] %v16867_v1  ;;  %v16919_v1 = vmul.f32 %v20472_v7, %v12641_v5  ;;  %v16929_v33 = vmul.f32 %v20475_v37, %v12641_v5 }
 0x4a2   : > { %21371 = vst [vmem:[#allocation916_spill] sm:$0xff] %v16875_v28  ;;  %21372 = vst [vmem:[#allocation917_spill] sm:$0xff] %v16879_v31  ;;  %v16943_v28 = vmul.f32 %v20488_v10, %v12695_v62  ;;  %v16973_v31 = vmul.f32 %v20497_v26, %v12695_v62 }
 0x4a3   : > { %21373 = vst [vmem:[#allocation918_spill] sm:$0xff] %v16885_v0  ;;  %21374 = vst [vmem:[#allocation919_spill] sm:$0xff] %v16889_v11  ;;  %v16955_v11 = vmul.f32 %v20491_v44, %v12695_v62  ;;  %v16965_v0 = vmul.f32 %v20494_v13, %v12695_v62 }
 0x4a4   : > { %21375 = vst [vmem:[#allocation920_spill] sm:$0xff] %v16893_v46  ;;  %21376 = vst [vmem:[#allocation921_spill] sm:$0xff] %v16899_v61  ;;  %v16939_v46 = vmul.f32 %v20488_v10, %v12641_v5  ;;  %v16947_v61 = vmul.f32 %v20491_v44, %v12641_v5 }
 0x4a5   : > { %21377 = vst [vmem:[#allocation922_spill] sm:$0xff] %v16903_v27  ;;  %21378 = vst [vmem:[#allocation923_spill] sm:$0xff] %v16907_v60  ;;  %v16959_v60 = vmul.f32 %v20494_v13, %v12641_v5  ;;  %v16969_v27 = vmul.f32 %v20497_v26, %v12641_v5 }
 0x4a6   : > { %21379 = vst [vmem:[#allocation924_spill] sm:$0xff] %v16915_v8  ;;  %21380 = vst [vmem:[#allocation925_spill] sm:$0xff] %v16919_v1  ;;  %v16983_v8 = vmul.f32 %v20500_v52, %v12695_v62  ;;  %v17023_v62 = vmul.f32 %v11662_v54, %v21396_v51 }
 0x4a7   : > { %21381 = vst [vmem:[#allocation926_spill] sm:$0xff] %v16925_v19  ;;  %21382 = vst [vmem:[#allocation927_spill] sm:$0xff] %v16929_v33  ;;  %v16995_v33 = vmul.f32 %v20504_v58, %v21396_v51  ;;  %v17013_v19 = vmul.f32 %v11608_v41, %v21396_v51 }
 0x4a8   : > { %21383 = vst [vmem:[#allocation928_spill] sm:$0xff] %v16933_v16  ;;  %21384 = vst [vmem:[#allocation929_spill] sm:$0xff] %v16939_v46  ;;  %v16979_v16 = vmul.f32 %v20500_v52, %v12641_v5  ;;  %v21394_v46 = vld [vmem:[#allocation76_spill] sm:$0xff] }
 0x4a9   : > { %21385 = vst [vmem:[#allocation930_spill] sm:$0xff] %v16943_v28  ;;  %21386 = vst [vmem:[#allocation931_spill] sm:$0xff] %v16947_v61  ;;  %v16987_v28 = vmul.f32 %v20504_v58, %v21394_v46  ;;  %v16999_v5 = vmul.f32 %v11737_v23, %v21394_v46  ;;  %v17005_v61 = vmul.f32 %v11737_v23, %v21396_v51 }
 0x4aa   : > { %21387 = vst [vmem:[#allocation932_spill] sm:$0xff] %v16955_v11  ;;  %21388 = vst [vmem:[#allocation933_spill] sm:$0xff] %v16959_v60  ;;  %v17009_v1 = vmul.f32 %v11608_v41, %v21394_v46  ;;  %v17027_v23 = vmul.f32 %v11635_v34, %v21394_v46  ;;  %v17035_v58 = vmul.f32 %v11635_v34, %v21396_v51 }
 0x4ab   : > { %21389 = vst [vmem:[#allocation934_spill] sm:$0xff] %v16965_v0  ;;  %21390 = vst [vmem:[#allocation935_spill] sm:$0xff] %v16969_v27  ;;  %v17019_v27 = vmul.f32 %v11662_v54, %v21394_v46  ;;  %v17053_v41 = vmul.f32 %v11611_v6, %v21396_v51  ;;  %v17063_v54 = vmul.f32 %v11689_v2, %v21396_v51 }
 0x4ac   : > { %21391 = vst [vmem:[#allocation936_spill] sm:$0xff] %v16973_v31  ;;  %21392 = vst [vmem:[#allocation937_spill] sm:$0xff] %v16979_v16  ;;  %v17049_v16 = vmul.f32 %v11611_v6, %v21394_v46  ;;  %v17075_v34 = vmul.f32 %v11638_v48, %v21396_v51  ;;  %v17093_v6 = vmul.f32 %v11614_v9, %v21396_v51 }
 0x4ad   : > { %21393 = vst [vmem:[#allocation938_spill] sm:$0xff] %v16983_v8  ;;  %21395 = vst [vmem:[#allocation76_spill] sm:$0xff] %v16987_v28  ;;  %v17039_v28 = vmul.f32 %v11765_v30, %v21394_v46 }
 0x4ae   : > { %21397 = vst [vmem:[#allocation75_spill] sm:$0xff] %v16995_v33  ;;  %21398 = vst [vmem:[#allocation939_spill] sm:$0xff] %v16999_v5  ;;  %v17045_v33 = vmul.f32 %v11765_v30, %v21396_v51  ;;  %v17067_v30 = vmul.f32 %v11638_v48, %v21394_v46  ;;  %v17115_v48 = vmul.f32 %v11641_v49, %v21396_v51 }
 0x4af   : > { %21399 = vst [vmem:[#allocation940_spill] sm:$0xff] %v17005_v61  ;;  %21400 = vst [vmem:[#allocation941_spill] sm:$0xff] %v17009_v1  ;;  %v17059_v1 = vmul.f32 %v11689_v2, %v21394_v46  ;;  %v17103_v2 = vmul.f32 %v11692_v4, %v21396_v51 }
 0x4b0   : > { %21401 = vst [vmem:[#allocation942_spill] sm:$0xff] %v17013_v19  ;;  %21402 = vst [vmem:[#allocation943_spill] sm:$0xff] %v17019_v27  ;;  %v17089_v27 = vmul.f32 %v11614_v9, %v21394_v46  ;;  %v17133_v9 = vmul.f32 %v20363_v12, %v21396_v51 }
 0x4b1   : > { %21403 = vst [vmem:[#allocation944_spill] sm:$0xff] %v17023_v62  ;;  %21404 = vst [vmem:[#allocation945_spill] sm:$0xff] %v17027_v23  ;;  %v17079_v62 = vmul.f32 %v11768_v50, %v21394_v46  ;;  %v17085_v23 = vmul.f32 %v11768_v50, %v21396_v51  ;;  %v17107_v50 = vmul.f32 %v11641_v49, %v21394_v46 }
 0x4b2   : > { %21405 = vst [vmem:[#allocation946_spill] sm:$0xff] %v17035_v58  ;;  %21406 = vst [vmem:[#allocation947_spill] sm:$0xff] %v17039_v28  ;;  %v17155_v49 = vmul.f32 %v20368_v42, %v21396_v51 }
 0x4b3   : > { %21407 = vst [vmem:[#allocation948_spill] sm:$0xff] %v17045_v33  ;;  %21408 = vst [vmem:[#allocation949_spill] sm:$0xff] %v17049_v16  ;;  %v17099_v16 = vmul.f32 %v11692_v4, %v21394_v46  ;;  %v17143_v4 = vmul.f32 %v20367_v14, %v21396_v51 }
 0x4b4   : > { %21409 = vst [vmem:[#allocation950_spill] sm:$0xff] %v17053_v41  ;;  %21410 = vst [vmem:[#allocation951_spill] sm:$0xff] %v17059_v1  ;;  %v17129_v1 = vmul.f32 %v20363_v12, %v21394_v46  ;;  %v17173_v12 = vmul.f32 %v20374_v57, %v21396_v51 }
 0x4b5   : > { %21411 = vst [vmem:[#allocation952_spill] sm:$0xff] %v17063_v54  ;;  %21412 = vst [vmem:[#allocation953_spill] sm:$0xff] %v17067_v30  ;;  %v17119_v54 = vmul.f32 %v11771_v40, %v21394_v46  ;;  %v17125_v30 = vmul.f32 %v11771_v40, %v21396_v51  ;;  %v17147_v40 = vmul.f32 %v20368_v42, %v21394_v46 }
 0x4b6   : > { %21413 = vst [vmem:[#allocation954_spill] sm:$0xff] %v17075_v34  ;;  %21414 = vst [vmem:[#allocation955_spill] sm:$0xff] %v17079_v62  ;;  %v17195_v42 = vmul.f32 %v20458_v38, %v21396_v51 }
 0x4b7   : > { %21415 = vst [vmem:[#allocation956_spill] sm:$0xff] %v17085_v23  ;;  %21416 = vst [vmem:[#allocation957_spill] sm:$0xff] %v17089_v27  ;;  %v17139_v27 = vmul.f32 %v20367_v14, %v21394_v46  ;;  %v17183_v14 = vmul.f32 %v20375_v18, %v21396_v51 }
 0x4b8   : > { %21417 = vst [vmem:[#allocation958_spill] sm:$0xff] %v17093_v6  ;;  %21418 = vst [vmem:[#allocation959_spill] sm:$0xff] %v17099_v16  ;;  %v17169_v16 = vmul.f32 %v20374_v57, %v21394_v46  ;;  %v17213_v57 = vmul.f32 %v20464_v21, %v21396_v51 }
 0x4b9   : > { %21419 = vst [vmem:[#allocation960_spill] sm:$0xff] %v17103_v2  ;;  %21420 = vst [vmem:[#allocation961_spill] sm:$0xff] %v17107_v50  ;;  %v17159_v2 = vmul.f32 %v20369_v43, %v21394_v46  ;;  %v17165_v50 = vmul.f32 %v20369_v43, %v21396_v51  ;;  %v17187_v43 = vmul.f32 %v20458_v38, %v21394_v46 }
 0x4ba   : > { %21421 = vst [vmem:[#allocation962_spill] sm:$0xff] %v17115_v48  ;;  %21422 = vst [vmem:[#allocation963_spill] sm:$0xff] %v17119_v54  ;;  %v17235_v38 = vmul.f32 %v20471_v29, %v21396_v51 }
 0x4bb   : > { %21423 = vst [vmem:[#allocation964_spill] sm:$0xff] %v17125_v30  ;;  %21424 = vst [vmem:[#allocation965_spill] sm:$0xff] %v17129_v1  ;;  %v17179_v1 = vmul.f32 %v20375_v18, %v21394_v46  ;;  %v17223_v18 = vmul.f32 %v20468_v59, %v21396_v51 }
 0x4bc   : > { %21425 = vst [vmem:[#allocation966_spill] sm:$0xff] %v17133_v9  ;;  %21426 = vst [vmem:[#allocation967_spill] sm:$0xff] %v17139_v27  ;;  %v17209_v27 = vmul.f32 %v20464_v21, %v21394_v46  ;;  %v17253_v21 = vmul.f32 %v20475_v37, %v21396_v51 }
 0x4bd   : > { %21427 = vst [vmem:[#allocation968_spill] sm:$0xff] %v17143_v4  ;;  %21428 = vst [vmem:[#allocation969_spill] sm:$0xff] %v17147_v40  ;;  %v17199_v4 = vmul.f32 %v20461_v20, %v21394_v46  ;;  %v17205_v40 = vmul.f32 %v20461_v20, %v21396_v51  ;;  %v17227_v20 = vmul.f32 %v20471_v29, %v21394_v46 }
 0x4be   : > { %21429 = vst [vmem:[#allocation970_spill] sm:$0xff] %v17155_v49  ;;  %21430 = vst [vmem:[#allocation971_spill] sm:$0xff] %v17159_v2  ;;  %v17275_v29 = vmul.f32 %v20491_v44, %v21396_v51  ;;  %v21681_v2 = vld [vmem:[#allocation193_spill] sm:$0xff] }
 0x4bf   : > { %21431 = vst [vmem:[#allocation972_spill] sm:$0xff] %v17165_v50  ;;  %21432 = vst [vmem:[#allocation973_spill] sm:$0xff] %v17169_v16  ;;  %v17219_v16 = vmul.f32 %v20468_v59, %v21394_v46  ;;  %v17263_v59 = vmul.f32 %v20488_v10, %v21396_v51 }
 0x4c0   : > { %21433 = vst [vmem:[#allocation974_spill] sm:$0xff] %v17173_v12  ;;  %21434 = vst [vmem:[#allocation975_spill] sm:$0xff] %v17179_v1  ;;  %v17249_v1 = vmul.f32 %v20475_v37, %v21394_v46  ;;  %v17293_v37 = vmul.f32 %v20497_v26, %v21396_v51  ;;  %v21680_v12 = vld [vmem:[#allocation194_spill] sm:$0xff] }
 0x4c1   : > { %21435 = vst [vmem:[#allocation976_spill] sm:$0xff] %v17183_v14  ;;  %21436 = vst [vmem:[#allocation977_spill] sm:$0xff] %v17187_v43  ;;  %v17239_v14 = vmul.f32 %v20472_v7, %v21394_v46  ;;  %v17245_v43 = vmul.f32 %v20472_v7, %v21396_v51  ;;  %v17267_v7 = vmul.f32 %v20491_v44, %v21394_v46 }
 0x4c2   : > { %21437 = vst [vmem:[#allocation978_spill] sm:$0xff] %v17195_v42  ;;  %21438 = vst [vmem:[#allocation979_spill] sm:$0xff] %v17199_v4  ;;  %v21677_v4 = vld [vmem:[#allocation58_spill] sm:$0xff]  ;;  %v21679_v42 = vld [vmem:[#allocation55_spill] sm:$0xff]  ;;  %v21682_v50 = vpack.c.bf16 %v21680_v12, %v21681_v2 }
 0x4c3   : > { %21439 = vst [vmem:[#allocation980_spill] sm:$0xff] %v17205_v40  ;;  %21440 = vst [vmem:[#allocation981_spill] sm:$0xff] %v17209_v27  ;;  %v17259_v27 = vmul.f32 %v20488_v10, %v21394_v46  ;;  %v17303_v10 = vmul.f32 %v20500_v52, %v21396_v51 }
 0x4c4   : > { %21441 = vst [vmem:[#allocation982_spill] sm:$0xff] %v17213_v57  ;;  %21442 = vst [vmem:[#allocation983_spill] sm:$0xff] %v17219_v16  ;;  %v17289_v16 = vmul.f32 %v20497_v26, %v21394_v46  ;;  %v21676_v57 = vld [vmem:[#allocation57_spill] sm:$0xff] }
 0x4c5   : > { %21443 = vst [vmem:[#allocation984_spill] sm:$0xff] %v17223_v18  ;;  %21444 = vst [vmem:[#allocation985_spill] sm:$0xff] %v17227_v20  ;;  %v17279_v18 = vmul.f32 %v20494_v13, %v21394_v46  ;;  %v17285_v20 = vmul.f32 %v20494_v13, %v21396_v51  ;;  %v21678_v40 = vpack.c.bf16 %v21676_v57, %v21677_v4 }
 0x4c6   : > { %21445 = vst [vmem:[#allocation986_spill] sm:$0xff] %v17235_v38  ;;  %21446 = vst [vmem:[#allocation987_spill] sm:$0xff] %v17239_v14  ;;  %v21675_v38 = vld [vmem:[#allocation54_spill] sm:$0xff] }
 0x4c7   : > { %21447 = vst [vmem:[#allocation988_spill] sm:$0xff] %v17245_v43  ;;  %21448 = vst [vmem:[#allocation989_spill] sm:$0xff] %v17249_v1  ;;  %v17299_v1 = vmul.f32 %v20500_v52, %v21394_v46  ;;  %v21674_v43 = vld [vmem:[#allocation53_spill] sm:$0xff] }
 0x4c8   : > { %21449 = vst [vmem:[#allocation990_spill] sm:$0xff] %v17253_v21  ;;  %21450 = vst [vmem:[#allocation991_spill] sm:$0xff] %v17259_v27 }
 0x4c9   : > { %21451 = vst [vmem:[#allocation992_spill] sm:$0xff] %v17263_v59  ;;  %21452 = vst [vmem:[#allocation993_spill] sm:$0xff] %v17267_v7  ;;  %v1934_v59 = vpop.xlane.xlu0 %1933 }
 0x4ca   : > { %21453 = vst [vmem:[#allocation994_spill] sm:$0xff] %v17275_v29  ;;  %21454 = vst [vmem:[#allocation995_spill] sm:$0xff] %v17279_v18  ;;  %v1940_v44 = vsub.f32 %v15677_v55, %v1934_v59  ;;  %v1941_v7 = vsub.f32 %v15697_v53, %v1934_v59  ;;  %v1942_v46 = vsub.f32 %v15679_v25, %v1934_v59  ;;  %v21672_v18 = vld [vmem:[#allocation52_spill] sm:$0xff] }
 0x4cb   : > { %21455 = vst [vmem:[#allocation996_spill] sm:$0xff] %v17285_v20  ;;  %21456 = vst [vmem:[#allocation997_spill] sm:$0xff] %v17289_v16  ;;  %v1943_v29 = vsub.f32 %v15699_v47, %v1934_v59  ;;  %v21673_v20 = vld [vmem:[#allocation51_spill] sm:$0xff] }
 0x4cc   : > { %21457 = vst [vmem:[#allocation998_spill] sm:$0xff] %v17293_v37  ;;  %21458 = vst [vmem:[#allocation999_spill] sm:$0xff] %v17299_v1  ;;  %v1948_v52 = vmul.f32 1.442695, %v1940_v44  ;;  %v1950_v51 = vmul.f32 1.442695, %v1941_v7 }
 0x4cd   : > { %21459 = vst [vmem:[#allocation1000_spill] sm:$0xff] %v17303_v10  ;;  %v1952_v21 = vmul.f32 1.442695, %v1942_v46  ;;  %v1954_v14 = vmul.f32 1.442695, %v1943_v29  ;;  %v1939_v13 = vpop.xlane.xlu0 %1938  ;;  %v21460_v7 = vld [vmem:[#allocation88_spill] sm:$0xff] }
 0x4ce   : > { %10890 = vpow2.f32 %v1948_v52  ;;  %v1944_v27 = vsub.f32 %v15735_v32, %v1939_v13  ;;  %v1945_v16 = vsub.f32 %v15753_v63, %v1939_v13  ;;  %v1946_v26 = vsub.f32 %v15737_v24, %v1939_v13  ;;  %v21670_v10 = vld [vmem:[#allocation49_spill] sm:$0xff]  ;;  %v21671_v37 = vld [vmem:[#allocation50_spill] sm:$0xff] }
 0x4cf   : > { %10892 = vpow2.f32 %v1950_v51  ;;  %v1947_v55 = vsub.f32 %v15755_v22, %v1939_v13  ;;  %v21461_v22 = vld [vmem:[#allocation87_spill] sm:$0xff]  ;;  %v21466_v13 = vld [vmem:[#allocation90_spill] sm:$0xff]  ;;  %v21469_v51 = vld [vmem:[#allocation96_spill] sm:$0xff] }
 0x4d0   : > { %10894 = vpow2.f32 %v1952_v21  ;;  %v1956_v53 = vmul.f32 1.442695, %v1944_v27  ;;  %v1958_v25 = vmul.f32 1.442695, %v1945_v16  ;;  %v1960_v1 = vmul.f32 1.442695, %v1946_v26 }
 0x4d1   : > { %10896 = vpow2.f32 %v1954_v14  ;;  %v1962_v47 = vmul.f32 1.442695, %v1947_v55  ;;  %v21462_v21 = vpack.c.bf16 %v21460_v7, %v21461_v22  ;;  %v21463_v27 = vld [vmem:[#allocation92_spill] sm:$0xff]  ;;  %v21464_v14 = vld [vmem:[#allocation91_spill] sm:$0xff]  ;;  %v21467_v26 = vld [vmem:[#allocation89_spill] sm:$0xff] }
 0x4d2   : > { %10898 = vpow2.f32 %v1956_v53  ;;  %v21465_v44 = vpack.c.bf16 %v21463_v27, %v21464_v14  ;;  %v21468_v46 = vpack.c.bf16 %v21466_v13, %v21467_v26  ;;  %v21470_v55 = vld [vmem:[#allocation94_spill] sm:$0xff]  ;;  %v21474_v7 = vld [vmem:[#allocation101_spill] sm:$0xff]  ;;  %v21475_v22 = vld [vmem:[#allocation100_spill] sm:$0xff] }
 0x4d3   : > { %10900 = vpow2.f32 %v1958_v25  ;;  %v21471_v53 = vpack.c.bf16 %v21469_v51, %v21470_v55  ;;  %v21472_v25 = vld [vmem:[#allocation97_spill] sm:$0xff]  ;;  %v21477_v27 = vld [vmem:[#allocation99_spill] sm:$0xff]  ;;  %v21478_v14 = vld [vmem:[#allocation98_spill] sm:$0xff] }
 0x4d4   : > { %10902 = vpow2.f32 %v1960_v1  ;;  %v21480_v13 = vld [vmem:[#allocation104_spill] sm:$0xff]  ;;  %v21481_v26 = vld [vmem:[#allocation102_spill] sm:$0xff]  ;;  %v21484_v55 = vld [vmem:[#allocation105_spill] sm:$0xff] }
 0x4d5   : > { %10904 = vpow2.f32 %v1962_v47  ;;  %v21473_v47 = vpack.c.bf16 %v12435_v15, %v21472_v25  ;;  %v21483_v51 = vld [vmem:[#allocation106_spill] sm:$0xff]  ;;  %v21487_v25 = vld [vmem:[#allocation109_spill] sm:$0xff] }
 0x4d6   : > { %v21486_v15 = vld [vmem:[#allocation110_spill] sm:$0xff] }
 0x4d8   : > { %v10891_v59 = vpop.eup %10890 }
 0x4d9   : > { %v10893_v29 = vpop.eup %10892 }
 0x4da   : > { %v10895_v32 = vpop.eup %10894  ;;  %2028 = vmatprep.mubr.f32.mxu0 %v10893_v29 }
 0x4db   : > { %v10897_v63 = vpop.eup %10896  ;;  %2029 = vmatmul.mubr.f32.vlgmr.msra.gmra.mrb[36].mxu0 %v10891_v59 }
 0x4dc   : > { %v10899_v24 = vpop.eup %10898  ;;  %2103 = vmatprep.mubr.f32.mxu1 %v10897_v63  ;;  %9407 = vmatpush3.bf16.msra.mxu0 %v21462_v21  ;;  %v21476_v21 = vpack.c.bf16 %v21474_v7, %v21475_v22  ;;  %v21489_v7 = vld [vmem:[#allocation108_spill] sm:$0xff]  ;;  %v21490_v22 = vld [vmem:[#allocation107_spill] sm:$0xff] }
 0x4dd   : > { %v10901_v16 = vpop.eup %10900  ;;  %2104 = vmatmul.mubr.f32.vlgmr.msra.gmra.mrb[52].mxu1 %v10895_v32  ;;  %9409 = vmatprep.subr.bf16.mxu0 %v21465_v44  ;;  %v21479_v44 = vpack.c.bf16 %v21477_v27, %v21478_v14  ;;  %v21492_v27 = vld [vmem:[#allocation113_spill] sm:$0xff]  ;;  %v21493_v14 = vld [vmem:[#allocation111_spill] sm:$0xff] }
 0x4de   : > { %v10903_v1 = vpop.eup %10902  ;;  %9439 = vmatpush3.bf16.msra.mxu1 %v21468_v46  ;;  %2033 = vmatprep.mubr.f32.mxu0 %v10901_v16  ;;  %v21482_v46 = vpack.c.bf16 %v21480_v13, %v21481_v26  ;;  %v21496_v13 = vld [vmem:[#allocation114_spill] sm:$0xff] }
 0x4df   : > { %v10905_v52 = vpop.eup %10904  ;;  %9441 = vmatprep.subr.bf16.mxu1 %v21471_v53  ;;  %2034 = vmatmul.mubr.f32.gmra.mrb[38].mxu0 %v10899_v24  ;;  %v21485_v53 = vpack.c.bf16 %v21483_v51, %v21484_v55  ;;  %v21501_v55 = vld [vmem:[#allocation117_spill] sm:$0xff] }
 0x4e0   : > { %2108 = vmatprep.mubr.f32.mxu1 %v10905_v52  ;;  %9411 = vmatpush3.bf16.msra.mxu0 %v21473_v47  ;;  %v21488_v47 = vpack.c.bf16 %v21486_v15, %v21487_v25  ;;  %v21504_v25 = vld [vmem:[#allocation121_spill] sm:$0xff] }
 0x4e1   : > { %2109 = vmatmul.mubr.f32.gmra.mrb[54].mxu1 %v10903_v1  ;;  %9413 = vmatprep.subr.bf16.mxu0 %v21476_v21  ;;  %v21491_v21 = vpack.c.bf16 %v21489_v7, %v21490_v22  ;;  %v21507_v22 = vld [vmem:[#allocation124_spill] sm:$0xff] }
 0x4e2   : > { %9443 = vmatpush3.bf16.msra.mxu1 %v21479_v44  ;;  %2178 = vmatprep.mubr.f32.mxu0 %v10893_v29  ;;  %v21494_v29 = vpack.c.bf16 %v21492_v27, %v21493_v14  ;;  %v21495_v44 = vld [vmem:[#allocation115_spill] sm:$0xff] }
 0x4e3   : > { %9445 = vmatprep.subr.bf16.mxu1 %v21482_v46  ;;  %2253 = vmatprep.mubr.f32.mxu1 %v10897_v63  ;;  %v21497_v26 = vpack.c.bf16 %v21495_v44, %v21496_v13  ;;  %v21498_v63 = vld [vmem:[#allocation119_spill] sm:$0xff]  ;;  %v21499_v46 = vld [vmem:[#allocation118_spill] sm:$0xff] }
 0x4e4   : > { %9415 = vmatpush3.bf16.msra.mxu0 %v21485_v53  ;;  %v21500_v51 = vpack.c.bf16 %v21498_v63, %v21499_v46  ;;  %v21502_v53 = vld [vmem:[#allocation116_spill] sm:$0xff]  ;;  %v21510_v14 = vld [vmem:[#allocation127_spill] sm:$0xff]  ;;  %v21513_v13 = vld [vmem:[#allocation126_spill] sm:$0xff] }
 0x4e5   : > { %9417 = vmatprep.subr.bf16.mxu0 %v21488_v47  ;;  %v21503_v15 = vpack.c.bf16 %v21501_v55, %v21502_v53  ;;  %v21505_v47 = vld [vmem:[#allocation120_spill] sm:$0xff]  ;;  %v21519_v53 = vld [vmem:[#allocation130_spill] sm:$0xff] }
 0x4e6   : > { %9447 = vmatpush3.bf16.msra.mxu1 %v21491_v21  ;;  %v21506_v7 = vpack.c.bf16 %v21504_v25, %v21505_v47  ;;  %v21508_v21 = vld [vmem:[#allocation123_spill] sm:$0xff]  ;;  %v21516_v46 = vld [vmem:[#allocation128_spill] sm:$0xff]  ;;  %v21522_v47 = vpack.c.bf16 %v12663_v36, %v12659_v45  ;;  %v21538_v45 = vld [vmem:[#allocation17_spill] sm:$0xff] }
 0x4e7   : > { %9449 = vmatprep.subr.bf16.mxu1 %v21494_v29  ;;  %v21509_v27 = vpack.c.bf16 %v21507_v22, %v21508_v21  ;;  %v21511_v29 = vld [vmem:[#allocation11_spill] sm:$0xff]  ;;  %v21524_v22 = vld [vmem:[#allocation16_spill] sm:$0xff] }
 0x4e8   : > { %9419 = vmatpush3.bf16.msra.mxu0 %v21497_v26  ;;  %v21512_v44 = vpack.c.bf16 %v21510_v14, %v21511_v29  ;;  %v21514_v26 = vld [vmem:[#allocation125_spill] sm:$0xff]  ;;  %v21527_v14 = vld [vmem:[#allocation12_spill] sm:$0xff] }
 0x4e9   : > { %9421 = vmatprep.subr.bf16.mxu0 %v21500_v51  ;;  %v21515_v63 = vpack.c.bf16 %v21513_v13, %v21514_v26  ;;  %v21517_v51 = vld [vmem:[#allocation20_spill] sm:$0xff]  ;;  %v21530_v13 = vld [vmem:[#allocation7_spill] sm:$0xff] }
 0x4ea   : > { %9451 = vmatpush3.bf16.msra.mxu1 %v21503_v15  ;;  %v21518_v55 = vpack.c.bf16 %v21516_v46, %v21517_v51  ;;  %v21520_v15 = vld [vmem:[#allocation6_spill] sm:$0xff] }
 0x4eb   : > { %9453 = vmatprep.subr.bf16.mxu1 %v21506_v7  ;;  %v21521_v25 = vpack.c.bf16 %v21519_v53, %v21520_v15  ;;  %v21523_v7 = vld [vmem:[#allocation131_spill] sm:$0xff]  ;;  %v21533_v46 = vld [vmem:[#allocation78_spill] sm:$0xff]  ;;  %v21536_v53 = vld [vmem:[#allocation77_spill] sm:$0xff] }
 0x4ec   : > { %9423 = vmatpush3.bf16.msra.mxu0 %v21509_v27  ;;  %v21525_v21 = vpack.c.bf16 %v21523_v7, %v21524_v22  ;;  %v21526_v27 = vld [vmem:[#allocation21_spill] sm:$0xff] }
 0x4ed   : > { %9425 = vmatprep.subr.bf16.mxu0 %v21512_v44  ;;  %v21528_v29 = vpack.c.bf16 %v21526_v27, %v21527_v14  ;;  %v21529_v44 = vld [vmem:[#allocation132_spill] sm:$0xff]  ;;  %v21539_v15 = vld [vmem:[#allocation81_spill] sm:$0xff] }
 0x4ee   : > { %9455 = vmatpush3.bf16.msra.mxu1 %v21515_v63  ;;  %v21531_v26 = vpack.c.bf16 %v21529_v44, %v21530_v13  ;;  %v21532_v63 = vld [vmem:[#allocation82_spill] sm:$0xff]  ;;  %v21542_v7 = vld [vmem:[#allocation13_spill] sm:$0xff]  ;;  %v21545_v27 = vld [vmem:[#allocation60_spill] sm:$0xff] }
 0x4ef   : > { %9457 = vmatprep.subr.bf16.mxu1 %v21518_v55  ;;  %v21534_v51 = vpack.c.bf16 %v21532_v63, %v21533_v46  ;;  %v21535_v55 = vld [vmem:[#allocation79_spill] sm:$0xff]  ;;  %v21548_v44 = vld [vmem:[#allocation8_spill] sm:$0xff] }
 0x4f0   : > { %9427 = vmatpush3.bf16.msra.mxu0 %v21521_v25  ;;  %v21537_v36 = vpack.c.bf16 %v21535_v55, %v21536_v53  ;;  %v21540_v25 = vpack.c.bf16 %v21538_v45, %v21539_v15  ;;  %v21551_v63 = vld [vmem:[#allocation64_spill] sm:$0xff]  ;;  %v21555_v53 = vld [vmem:[#allocation135_spill] sm:$0xff] }
 0x4f1   : > { %9429 = vmatprep.subr.bf16.mxu0 %v21522_v47  ;;  %v21541_v47 = vld [vmem:[#allocation22_spill] sm:$0xff]  ;;  %v21554_v55 = vld [vmem:[#allocation136_spill] sm:$0xff]  ;;  %v21558_v15 = vld [vmem:[#allocation139_spill] sm:$0xff] }
 0x4f2   : > { %9459 = vmatpush3.bf16.msra.mxu1 %v21525_v21  ;;  %v21543_v22 = vpack.c.bf16 %v21541_v47, %v21542_v7  ;;  %v21544_v21 = vld [vmem:[#allocation9_spill] sm:$0xff]  ;;  %v21557_v45 = vld [vmem:[#allocation140_spill] sm:$0xff]  ;;  %v21560_v47 = vld [vmem:[#allocation138_spill] sm:$0xff] }
 0x4f3   : > { %9461 = vmatprep.subr.bf16.mxu1 %v21528_v29  ;;  %v21546_v14 = vpack.c.bf16 %v21544_v21, %v21545_v27  ;;  %v21547_v29 = vld [vmem:[#allocation18_spill] sm:$0xff]  ;;  %v21561_v7 = vld [vmem:[#allocation137_spill] sm:$0xff]  ;;  %v21569_v21 = vld [vmem:[#allocation148_spill] sm:$0xff] }
 0x4f4   : > { %9431 = vmatpush3.bf16.msra.mxu0 %v21531_v26  ;;  %v21549_v13 = vpack.c.bf16 %v21547_v29, %v21548_v44  ;;  %v21550_v26 = vld [vmem:[#allocation134_spill] sm:$0xff]  ;;  %v21570_v27 = vld [vmem:[#allocation147_spill] sm:$0xff]  ;;  %v21573_v44 = vld [vmem:[#allocation145_spill] sm:$0xff] }
 0x4f5   : > { %9433 = vmatprep.subr.bf16.mxu0 %v21534_v51  ;;  %v21552_v46 = vpack.c.bf16 %v21550_v26, %v21551_v63  ;;  %v21553_v51 = vld [vmem:[#allocation59_spill] sm:$0xff]  ;;  %v21572_v29 = vld [vmem:[#allocation146_spill] sm:$0xff]  ;;  %v21576_v63 = vld [vmem:[#allocation149_spill] sm:$0xff] }
 0x4f6   : > { %9463 = vmatpush3.bf16.msra.mxu1 %v21537_v36  ;;  %v21556_v36 = vpack.c.bf16 %v21554_v55, %v21555_v53  ;;  %v21575_v26 = vld [vmem:[#allocation150_spill] sm:$0xff]  ;;  %v21578_v55 = vld [vmem:[#allocation152_spill] sm:$0xff]  ;;  %v21579_v53 = vld [vmem:[#allocation151_spill] sm:$0xff] }
 0x4f7   : > { %9465 = vmatprep.subr.bf16.mxu1 %v21540_v25  ;;  %v21559_v25 = vpack.c.bf16 %v21557_v45, %v21558_v15  ;;  %v21581_v45 = vld [vmem:[#allocation48_spill] sm:$0xff]  ;;  %v21582_v15 = vld [vmem:[#allocation155_spill] sm:$0xff] }
 0x4f8   : > { %9435 = vmatpush3.bf16.msra.mxu0 %v21543_v22 }
 0x4f9   : > { %9469 = vmatprep.subr.bf16.mxu0 %v21546_v14  ;;  %v21571_v14 = vpack.c.bf16 %v21569_v21, %v21570_v27  ;;  %v21593_v21 = vld [vmem:[#allocation162_spill] sm:$0xff]  ;;  %v21594_v27 = vld [vmem:[#allocation161_spill] sm:$0xff] }
 0x4fa   : > { %9467 = vmatpush3.bf16.msra.mxu1 %v21549_v13  ;;  %v21574_v13 = vpack.c.bf16 %v21572_v29, %v21573_v44  ;;  %v21596_v29 = vld [vmem:[#allocation160_spill] sm:$0xff]  ;;  %v21597_v44 = vld [vmem:[#allocation159_spill] sm:$0xff] }
 0x4fb   : > { %9501 = vmatprep.subr.bf16.mxu1 %v21552_v46  ;;  %2179 = vmatmul.mubr.f32.vlgmr.msra.gmra.mrb[40].mxu0 %v10891_v59  ;;  %v21562_v59 = vpack.c.bf16 %v21560_v47, %v21561_v7  ;;  %v21577_v46 = vpack.c.bf16 %v21575_v26, %v21576_v63  ;;  %v21584_v47 = vld [vmem:[#allocation154_spill] sm:$0xff]  ;;  %v21585_v7 = vld [vmem:[#allocation153_spill] sm:$0xff]  ;;  %v21599_v26 = vld [vmem:[#allocation164_spill] sm:$0xff] }
 0x4fc   : > { %2183 = vmatprep.mubr.f32.mxu0 %v10901_v16  ;;  %v21564_v16 = vld [vmem:[#allocation141_spill] sm:$0xff]  ;;  %v21600_v63 = vld [vmem:[#allocation163_spill] sm:$0xff] }
 0x4fd   : > { %2254 = vmatmul.mubr.f32.vlgmr.msra.gmra.mrb[56].mxu1 %v10895_v32  ;;  %v21563_v32 = vld [vmem:[#allocation142_spill] sm:$0xff] }
 0x4fe   : > { %2258 = vmatprep.mubr.f32.mxu1 %v10905_v52  ;;  %v21566_v52 = vld [vmem:[#allocation144_spill] sm:$0xff] }
 0x4ff   : > { %2184 = vmatmul.mubr.f32.gmra.mrb[42].mxu0 %v10899_v24  ;;  %v21565_v24 = vpack.c.bf16 %v21563_v32, %v21564_v16  ;;  %v21587_v32 = vld [vmem:[#allocation56_spill] sm:$0xff] }
 0x500   : > { %7356 = vmatprep.mubr.f32.mxu0 %v21553_v51  ;;  %v21588_v16 = vld [vmem:[#allocation156_spill] sm:$0xff] }
 0x501   : > { %2259 = vmatmul.mubr.f32.gmra.mrb[58].mxu1 %v10903_v1  ;;  %9471 = vmatpush3.bf16.xpose.msra.mxu0 %v21556_v36  ;;  %v21567_v1 = vld [vmem:[#allocation143_spill] sm:$0xff]  ;;  %v21580_v36 = vpack.c.bf16 %v21578_v55, %v21579_v53  ;;  %v21602_v55 = vld [vmem:[#allocation166_spill] sm:$0xff]  ;;  %v21603_v53 = vld [vmem:[#allocation165_spill] sm:$0xff] }
 0x502   : > { %7392 = vmatprep.mubr.f32.mxu1 %v21553_v51  ;;  %9473 = vmatprep.subr.bf16.mxu0 %v21559_v25  ;;  %v21568_v22 = vpack.c.bf16 %v21566_v52, %v21567_v1  ;;  %v21583_v25 = vpack.c.bf16 %v21581_v45, %v21582_v15  ;;  %v21590_v52 = vld [vmem:[#allocation158_spill] sm:$0xff]  ;;  %v21591_v1 = vld [vmem:[#allocation157_spill] sm:$0xff] }
 0x503   : > { %9503 = vmatpush3.bf16.xpose.msra.mxu1 %v21562_v59  ;;  %v21586_v59 = vpack.c.bf16 %v21584_v47, %v21585_v7  ;;  %v21605_v45 = vld [vmem:[#allocation170_spill] sm:$0xff]  ;;  %v21606_v15 = vld [vmem:[#allocation169_spill] sm:$0xff]  ;;  %v21608_v47 = vld [vmem:[#allocation168_spill] sm:$0xff] }
 0x504   : > { %9505 = vmatprep.subr.bf16.mxu1 %v21565_v24  ;;  %v21589_v24 = vpack.c.bf16 %v21587_v32, %v21588_v16  ;;  %v21609_v7 = vld [vmem:[#allocation167_spill] sm:$0xff]  ;;  %v21611_v32 = vld [vmem:[#allocation172_spill] sm:$0xff] }
 0x505   : > { %v21612_v16 = vld [vmem:[#allocation171_spill] sm:$0xff] }
 0x509   : > { %9475 = vmatpush3.bf16.xpose.msra.mxu0 %v21568_v22  ;;  %v21592_v22 = vpack.c.bf16 %v21590_v52, %v21591_v1  ;;  %v21614_v52 = vld [vmem:[#allocation174_spill] sm:$0xff]  ;;  %v21615_v1 = vld [vmem:[#allocation173_spill] sm:$0xff] }
 0x50a   : > { %9477 = vmatprep.subr.bf16.mxu0 %v21571_v14  ;;  %v21595_v14 = vpack.c.bf16 %v21593_v21, %v21594_v27  ;;  %v21617_v21 = vld [vmem:[#allocation178_spill] sm:$0xff]  ;;  %v21618_v27 = vld [vmem:[#allocation177_spill] sm:$0xff] }
 0x50b   : > { %9507 = vmatpush3.bf16.xpose.msra.mxu1 %v21574_v13  ;;  %v21598_v13 = vpack.c.bf16 %v21596_v29, %v21597_v44  ;;  %v21620_v29 = vld [vmem:[#allocation176_spill] sm:$0xff]  ;;  %v21621_v44 = vld [vmem:[#allocation175_spill] sm:$0xff] }
 0x50c   : > { %9509 = vmatprep.subr.bf16.mxu1 %v21577_v46  ;;  %v21601_v46 = vpack.c.bf16 %v21599_v26, %v21600_v63  ;;  %v21623_v26 = vld [vmem:[#allocation180_spill] sm:$0xff]  ;;  %v21624_v63 = vld [vmem:[#allocation179_spill] sm:$0xff] }
 0x511   : > { %9479 = vmatpush3.bf16.xpose.msra.mxu0 %v21580_v36  ;;  %v21604_v36 = vpack.c.bf16 %v21602_v55, %v21603_v53  ;;  %v21626_v55 = vld [vmem:[#allocation182_spill] sm:$0xff]  ;;  %v21627_v53 = vld [vmem:[#allocation181_spill] sm:$0xff] }
 0x512   : > { %9481 = vmatprep.subr.bf16.mxu0 %v21583_v25  ;;  %v21607_v25 = vpack.c.bf16 %v21605_v45, %v21606_v15  ;;  %v21629_v45 = vld [vmem:[#allocation186_spill] sm:$0xff]  ;;  %v21630_v15 = vld [vmem:[#allocation185_spill] sm:$0xff] }
 0x513   : > { %9511 = vmatpush3.bf16.xpose.msra.mxu1 %v21586_v59  ;;  %v21610_v59 = vpack.c.bf16 %v21608_v47, %v21609_v7  ;;  %v21632_v47 = vld [vmem:[#allocation184_spill] sm:$0xff]  ;;  %v21633_v7 = vld [vmem:[#allocation183_spill] sm:$0xff] }
 0x514   : > { %9513 = vmatprep.subr.bf16.mxu1 %v21589_v24  ;;  %v21613_v24 = vpack.c.bf16 %v21611_v32, %v21612_v16  ;;  %v21635_v32 = vld [vmem:[#allocation188_spill] sm:$0xff]  ;;  %v21636_v16 = vld [vmem:[#allocation187_spill] sm:$0xff] }
 0x519   : > { %9483 = vmatpush3.bf16.xpose.msra.mxu0 %v21592_v22  ;;  %v21616_v22 = vpack.c.bf16 %v21614_v52, %v21615_v1  ;;  %v21638_v52 = vld [vmem:[#allocation190_spill] sm:$0xff]  ;;  %v21639_v1 = vld [vmem:[#allocation189_spill] sm:$0xff] }
 0x51a   : > { %9485 = vmatprep.subr.bf16.mxu0 %v21595_v14  ;;  %v21619_v14 = vpack.c.bf16 %v21617_v21, %v21618_v27  ;;  %v21641_v21 = vld [vmem:[#allocation23_spill] sm:$0xff]  ;;  %v21642_v27 = vld [vmem:[#allocation192_spill] sm:$0xff] }
 0x51b   : > { %9515 = vmatpush3.bf16.xpose.msra.mxu1 %v21598_v13  ;;  %v21622_v13 = vpack.c.bf16 %v21620_v29, %v21621_v44  ;;  %v21645_v44 = vld [vmem:[#allocation24_spill] sm:$0xff] }
 0x51c   : > { %9517 = vmatprep.subr.bf16.mxu1 %v21601_v46  ;;  %v21625_v46 = vpack.c.bf16 %v21623_v26, %v21624_v63  ;;  %v21647_v26 = vld [vmem:[#allocation25_spill] sm:$0xff]  ;;  %v21648_v63 = vld [vmem:[#allocation27_spill] sm:$0xff] }
 0x521   : > { %9487 = vmatpush3.bf16.xpose.msra.mxu0 %v21604_v36  ;;  %v21628_v36 = vpack.c.bf16 %v21626_v55, %v21627_v53  ;;  %v21650_v55 = vld [vmem:[#allocation28_spill] sm:$0xff]  ;;  %v21651_v53 = vld [vmem:[#allocation29_spill] sm:$0xff] }
 0x522   : > { %9489 = vmatprep.subr.bf16.mxu0 %v21607_v25  ;;  %v21631_v25 = vpack.c.bf16 %v21629_v45, %v21630_v15  ;;  %v21653_v45 = vld [vmem:[#allocation30_spill] sm:$0xff]  ;;  %v21654_v15 = vld [vmem:[#allocation32_spill] sm:$0xff] }
 0x523   : > { %9519 = vmatpush3.bf16.xpose.msra.mxu1 %v21610_v59  ;;  %v21634_v59 = vpack.c.bf16 %v21632_v47, %v21633_v7  ;;  %v21657_v47 = vld [vmem:[#allocation34_spill] sm:$0xff]  ;;  %v21658_v7 = vld [vmem:[#allocation36_spill] sm:$0xff] }
 0x524   : > { %9521 = vmatprep.subr.bf16.mxu1 %v21613_v24  ;;  %v21637_v24 = vpack.c.bf16 %v21635_v32, %v21636_v16  ;;  %v21660_v32 = vld [vmem:[#allocation39_spill] sm:$0xff]  ;;  %v21661_v16 = vld [vmem:[#allocation38_spill] sm:$0xff] }
 0x529   : > { %9491 = vmatpush3.bf16.xpose.msra.mxu0 %v21616_v22  ;;  %v21640_v22 = vpack.c.bf16 %v21638_v52, %v21639_v1  ;;  %v21663_v52 = vld [vmem:[#allocation41_spill] sm:$0xff]  ;;  %v21664_v1 = vld [vmem:[#allocation43_spill] sm:$0xff] }
 0x52a   : > { %9493 = vmatprep.subr.bf16.mxu0 %v21619_v14  ;;  %v21643_v14 = vld [vmem:[#allocation191_spill] sm:$0xff] }
 0x52b   : > { %9523 = vmatpush3.bf16.xpose.msra.mxu1 %v21622_v13  ;;  %v21644_v29 = vpack.c.bf16 %v21642_v27, %v21643_v14  ;;  %v21646_v13 = vld [vmem:[#allocation63_spill] sm:$0xff]  ;;  %v21666_v27 = vld [vmem:[#allocation44_spill] sm:$0xff]  ;;  %v21667_v14 = vld [vmem:[#allocation45_spill] sm:$0xff] }
 0x52c   : > { %9525 = vmatprep.subr.bf16.mxu1 %v21625_v46  ;;  %v21649_v46 = vld [vmem:[#allocation26_spill] sm:$0xff] }
 0x531   : > { %9495 = vmatpush3.bf16.xpose.msra.mxu0 %v21628_v36  ;;  %v21652_v36 = vld [vmem:[#allocation31_spill] sm:$0xff] }
 0x532   : > { %9497 = vmatprep.subr.bf16.mxu0 %v21631_v25  ;;  %v21656_v25 = vld [vmem:[#allocation35_spill] sm:$0xff] }
 0x533   : > { %9527 = vmatpush3.bf16.xpose.msra.mxu1 %v21634_v59  ;;  %v21659_v59 = vld [vmem:[#allocation37_spill] sm:$0xff] }
 0x534   : > { %9529 = vmatprep.subr.bf16.mxu1 %v21637_v24  ;;  %v21662_v24 = vld [vmem:[#allocation40_spill] sm:$0xff] }
 0x539   : > { %9499 = vmatpush3.bf16.xpose.msra.mxu0 %v21640_v22  ;;  %v21665_v22 = vld [vmem:[#allocation42_spill] sm:$0xff] }
 0x53a   : > { %9533 = vmatprep.subr.bf16.mxu0 %v21641_v21 }
 0x53b   : > { %9531 = vmatpush3.bf16.xpose.msra.mxu1 %v21644_v29  ;;  %v21668_v29 = vld [vmem:[#allocation47_spill] sm:$0xff] }
 0x53c   : > { %9565 = vmatprep.subr.bf16.mxu1 %v21645_v44 }
 0x540   : > { %7357 = vmatmul.mubr.f32.vlgmr.msra.gmra.mrb[44].mxu0 %v21553_v51 }
 0x541   : > { %7358 = vmatprep.mubr.f32.mxu0 %v21646_v13  ;;  %9535 = vmatpush3.bf16.msra.mxu0 %v21647_v26 }
 0x542   : > { %7393 = vmatmul.mubr.f32.vlgmr.msra.gmra.mrb[60].mxu1 %v21553_v51  ;;  %9537 = vmatprep.subr.bf16.mxu0 %v21648_v63  ;;  %v21655_v51 = vld [vmem:[#allocation33_spill] sm:$0xff] }
 0x543   : > { %7394 = vmatprep.mubr.f32.mxu1 %v21646_v13  ;;  %9567 = vmatpush3.bf16.msra.mxu1 %v21649_v46 }
 0x544   : > { %7359 = vmatmul.mubr.f32.gmra.mrb[46].mxu0 %v21646_v13  ;;  %9569 = vmatprep.subr.bf16.mxu1 %v21650_v55 }
 0x545   : > { %9539 = vmatpush3.bf16.msra.mxu0 %v21651_v53 }
 0x546   : > { %7395 = vmatmul.mubr.f32.gmra.mrb[62].mxu1 %v21646_v13  ;;  %9541 = vmatprep.subr.bf16.mxu0 %v21652_v36  ;;  %v21669_v13 = vld [vmem:[#allocation46_spill] sm:$0xff] }
 0x547   : > { %9571 = vmatpush3.bf16.msra.mxu1 %v21653_v45 }
 0x548   : > { %9573 = vmatprep.subr.bf16.mxu1 %v21654_v15 }
 0x549   : > { %9543 = vmatpush3.bf16.msra.mxu0 %v21655_v51 }
 0x54a   : > { %9545 = vmatprep.subr.bf16.mxu0 %v21656_v25 }
 0x54b   : > { %9575 = vmatpush3.bf16.msra.mxu1 %v21657_v47 }
 0x54c   : > { %9577 = vmatprep.subr.bf16.mxu1 %v21658_v7 }
 0x54d   : > { %9547 = vmatpush3.bf16.msra.mxu0 %v21659_v59 }
 0x54e   : > { %9549 = vmatprep.subr.bf16.mxu0 %v21660_v32 }
 0x54f   : > { %9579 = vmatpush3.bf16.msra.mxu1 %v21661_v16 }
 0x550   : > { %9581 = vmatprep.subr.bf16.mxu1 %v21662_v24 }
 0x551   : > { %9551 = vmatpush3.bf16.msra.mxu0 %v21663_v52 }
 0x552   : > { %9553 = vmatprep.subr.bf16.mxu0 %v21664_v1 }
 0x553   : > { %9583 = vmatpush3.bf16.msra.mxu1 %v21665_v22 }
 0x554   : > { %9585 = vmatprep.subr.bf16.mxu1 %v21666_v27 }
 0x555   : > { %9555 = vmatpush3.bf16.msra.mxu0 %v21667_v14 }
 0x556   : > { %9557 = vmatprep.subr.bf16.mxu0 %v21668_v29 }
 0x557   : > { %9587 = vmatpush3.bf16.msra.mxu1 %v21669_v13 }
 0x558   : > { %9589 = vmatprep.subr.bf16.mxu1 %v21670_v10 }
 0x559   : > { %9559 = vmatpush3.bf16.msra.mxu0 %v21671_v37 }
 0x55a   : > { %9561 = vmatprep.subr.bf16.mxu0 %v21672_v18 }
 0x55b   : > { %9591 = vmatpush3.bf16.msra.mxu1 %v21673_v20 }
 0x55c   : > { %9593 = vmatprep.subr.bf16.mxu1 %v21674_v43 }
 0x55d   : > { %9563 = vmatpush3.bf16.msra.mxu0 %v21675_v38 }
 0x55e   : > { %9597 = vmatprep.subr.bf16.mxu0 %v21678_v40 }
 0x55f   : > { %9595 = vmatpush3.bf16.msra.mxu1 %v21679_v42 }
 0x560   : > { %9629 = vmatprep.subr.bf16.mxu1 %v21682_v50 }
 0x5ae   : > { %v7204_v49 = vpop.f32.mrb[36].mxu0 }
 0x5af   : > { %v7205_v9 = vpop.f32.mrb[37].mxu0 }
 0x5b0   : > { %v7242_v54 = vpop.f32.mrb[52].mxu1  ;;  %v7206_v30 = vadd.f32 %v7205_v9, %v7204_v49 }
 0x5b1   : > { %v7243_v48 = vpop.f32.mrb[53].mxu1 }
 0x5b2   : > { %v7244_v6 = vadd.f32 %v7243_v48, %v7242_v54  ;;  %v7207_v62 = vpop.f32.mrb[38].mxu0 }
 0x5b3   : > { %v7208_v23 = vpop.f32.mrb[39].mxu0 }
 0x5b4   : > { %v17551_v34 = vadd.f32 %v7244_v6, %v7206_v30  ;;  %v7245_v41 = vpop.f32.mrb[54].mxu1  ;;  %v7209_v28 = vadd.f32 %v7208_v23, %v7207_v62 }
 0x5b5   : > { %v7246_v4 = vpop.f32.mrb[55].mxu1 }
 0x5b6   : > { %v7247_v40 = vadd.f32 %v7246_v4, %v7245_v41 }
 0x5b8   : > { %v2111_v57 = vadd.f32 %v7247_v40, %v7209_v28 }
 0x5ba   : > { %v2265_v33 = vmax.f32 %v2111_v57, 1e-30 }
 0x5bc   : > { %10906 = vrcp.f32 %v2265_v33 }
 0x5c6   : > { %v10907_v23 = vpop.eup %10906 }
 0x5ce   : > { %v7280_v58 = vpop.f32.mrb[40].mxu0 }
 0x5cf   : > { %v7281_v2 = vpop.f32.mrb[41].mxu0 }
 0x5d0   : > { %v7318_v50 = vpop.f32.mrb[56].mxu1  ;;  %v7282_v12 = vadd.f32 %v7281_v2, %v7280_v58 }
 0x5d1   : > { %v7319_v19 = vpop.f32.mrb[57].mxu1 }
 0x5d2   : > { %v7320_v5 = vadd.f32 %v7319_v19, %v7318_v50  ;;  %v7283_v9 = vpop.f32.mrb[42].mxu0 }
 0x5d3   : > { %v7284_v49 = vpop.f32.mrb[43].mxu0 }
 0x5d4   : > { %v17553_v54 = vadd.f32 %v7320_v5, %v7282_v12  ;;  %v7321_v48 = vpop.f32.mrb[58].mxu1  ;;  %v7285_v30 = vadd.f32 %v7284_v49, %v7283_v9 }
 0x5d5   : > { %v7322_v6 = vpop.f32.mrb[59].mxu1 }
 0x5d6   : > { %v7323_v61 = vadd.f32 %v7322_v6, %v7321_v48 }
 0x5d8   : > { %v2261_v62 = vadd.f32 %v7323_v61, %v7285_v30 }
 0x5da   : > { %v17555_v41 = vmul.f32 %v10907_v23, %v2261_v62 }
 0x5dc   : > { %21683 = vst [vmem:[#allocation88_spill] sm:$0xff] %v17555_v41 }
 0x613   : > { %v2475_v28 = vpop.f32.mrb[44].mxu0 }
 0x614   : > { %v2477_v4 = vpop.f32.mrb[45].mxu0 }
 0x615   : > { %v2552_v33 = vpop.f32.mrb[60].mxu1 }
 0x616   : > { %v2563_v40 = vmax.f32 %v2475_v28, %v2552_v33  ;;  %v2554_v57 = vpop.f32.mrb[61].mxu1 }
 0x617   : > { %v2564_v58 = vmax.f32 %v2477_v4, %v2554_v57  ;;  %v2481_v2 = vpop.f32.mrb[46].mxu0 }
 0x618   : > { %v2483_v19 = vpop.f32.mrb[47].mxu0 }
 0x619   : > { %v2558_v50 = vpop.f32.mrb[62].mxu1  ;;  %v2565_v8 = vmax.f32 %v2563_v40, %v2564_v58 }
 0x61a   : > { %v2568_v5 = vmax.f32 %v2481_v2, %v2558_v50  ;;  %v2560_v12 = vpop.f32.mrb[63].mxu1 }
 0x61b   : > { %v2569_v31 = vmax.f32 %v2483_v19, %v2560_v12  ;;  %2566 = vmax.xlane.f32.xlu1 %v2565_v8 }
 0x61d   : > { %v2570_v9 = vmax.f32 %v2568_v5, %v2569_v31 }
 0x61f   : > { %2571 = vmax.xlane.f32.xlu1 %v2570_v9 }
 0x6a8   : > { %v2567_v61 = vpop.xlane.xlu1 %2566 }
 0x6a9   : > { %v2573_v49 = vsub.f32 %v2475_v28, %v2567_v61  ;;  %v2574_v48 = vsub.f32 %v2477_v4, %v2567_v61  ;;  %v2575_v30 = vsub.f32 %v2552_v33, %v2567_v61  ;;  %v2576_v6 = vsub.f32 %v2554_v57, %v2567_v61 }
 0x6ab   : > { %v2581_v62 = vmul.f32 1.442695, %v2573_v49  ;;  %v2583_v23 = vmul.f32 1.442695, %v2574_v48  ;;  %v2585_v41 = vmul.f32 1.442695, %v2575_v30 }
 0x6ac   : > { %v2587_v60 = vmul.f32 1.442695, %v2576_v6  ;;  %v2572_v0 = vpop.xlane.xlu1 %2571  ;;  %v21690_v49 = vld [vmem:[#allocation198_spill] sm:$0xff]  ;;  %v21691_v48 = vld [vmem:[#allocation197_spill] sm:$0xff] }
 0x6ad   : > { %10908 = vpow2.f32 %v2581_v62  ;;  %v2577_v11 = vsub.f32 %v2481_v2, %v2572_v0  ;;  %v2578_v3 = vsub.f32 %v2483_v19, %v2572_v0  ;;  %v2579_v40 = vsub.f32 %v2558_v50, %v2572_v0  ;;  %v21688_v50 = vld [vmem:[#allocation199_spill] sm:$0xff]  ;;  %v21693_v62 = vld [vmem:[#allocation202_spill] sm:$0xff] }
 0x6ae   : > { %10910 = vpow2.f32 %v2583_v23  ;;  %v2580_v58 = vsub.f32 %v2560_v12, %v2572_v0  ;;  %v2264_v19 = vmax.f32 %v17551_v34, 1e-30  ;;  %v21684_v0 = vld [vmem:[#allocation196_spill] sm:$0xff]  ;;  %v21692_v30 = vpack.c.bf16 %v21690_v49, %v21691_v48  ;;  %v21694_v34 = vld [vmem:[#allocation201_spill] sm:$0xff]  ;;  %v21709_v49 = vld [vmem:[#allocation211_spill] sm:$0xff] }
 0x6af   : > { %10912 = vpow2.f32 %v2585_v41  ;;  %v2589_v8 = vmul.f32 1.442695, %v2577_v11  ;;  %v2591_v31 = vmul.f32 1.442695, %v2578_v3  ;;  %v2593_v5 = vmul.f32 1.442695, %v2579_v40 }
 0x6b0   : > { %10914 = vpow2.f32 %v2587_v60  ;;  %v2595_v28 = vmul.f32 1.442695, %v2580_v58  ;;  %v21685_v11 = vld [vmem:[#allocation195_spill] sm:$0xff]  ;;  %v21687_v41 = vld [vmem:[#allocation200_spill] sm:$0xff]  ;;  %v21695_v23 = vpack.c.bf16 %v21693_v62, %v21694_v34 }
 0x6b1   : > { %10916 = vpow2.f32 %v2589_v8  ;;  %v21686_v3 = vpack.c.bf16 %v21684_v0, %v21685_v11  ;;  %v21689_v12 = vpack.c.bf16 %v21687_v41, %v21688_v50  ;;  %v21696_v40 = vld [vmem:[#allocation204_spill] sm:$0xff]  ;;  %v21697_v58 = vld [vmem:[#allocation203_spill] sm:$0xff]  ;;  %v21702_v0 = vld [vmem:[#allocation206_spill] sm:$0xff] }
 0x6b2   : > { %10918 = vpow2.f32 %v2591_v31  ;;  %v21698_v8 = vpack.c.bf16 %v21696_v40, %v21697_v58  ;;  %v21699_v31 = vld [vmem:[#allocation208_spill] sm:$0xff]  ;;  %v21703_v11 = vld [vmem:[#allocation205_spill] sm:$0xff]  ;;  %v21705_v41 = vld [vmem:[#allocation210_spill] sm:$0xff] }
 0x6b3   : > { %10920 = vpow2.f32 %v2593_v5  ;;  %v21700_v5 = vld [vmem:[#allocation207_spill] sm:$0xff]  ;;  %v21706_v50 = vld [vmem:[#allocation209_spill] sm:$0xff] }
 0x6b4   : > { %10922 = vpow2.f32 %v2595_v28  ;;  %v21701_v28 = vpack.c.bf16 %v21699_v31, %v21700_v5  ;;  %v21712_v62 = vld [vmem:[#allocation215_spill] sm:$0xff]  ;;  %v21715_v40 = vld [vmem:[#allocation213_spill] sm:$0xff]  ;;  %v21720_v5 = vld [vmem:[#allocation220_spill] sm:$0xff] }
 0x6b5   : > { %10924 = vrcp.f32 %v2264_v19  ;;  %v21708_v19 = vld [vmem:[#allocation212_spill] sm:$0xff]  ;;  %v21718_v31 = vld [vmem:[#allocation217_spill] sm:$0xff] }
 0x6b6   : > { %v21710_v48 = vpack.c.bf16 %v21708_v19, %v21709_v49  ;;  %v21729_v49 = vld [vmem:[#allocation225_spill] sm:$0xff] }
 0x6b7   : > { %v10909_v4 = vpop.eup %10908 }
 0x6b8   : > { %v10911_v33 = vpop.eup %10910 }
 0x6b9   : > { %v10913_v57 = vpop.eup %10912  ;;  %2661 = vmatprep.mubr.f32.mxu0 %v10911_v33 }
 0x6ba   : > { %v10915_v9 = vpop.eup %10914  ;;  %2662 = vmatmul.mubr.f32.vlgmr.msra.gmra.mrb[48].mxu0 %v10909_v4 }
 0x6bb   : > { %v10917_v2 = vpop.eup %10916  ;;  %2736 = vmatprep.mubr.f32.mxu1 %v10915_v9  ;;  %9599 = vmatpush3.bf16.msra.mxu0 %v21686_v3  ;;  %v21704_v3 = vpack.c.bf16 %v21702_v0, %v21703_v11  ;;  %v21724_v11 = vld [vmem:[#allocation86_spill] sm:$0xff] }
 0x6bc   : > { %v10919_v60 = vpop.eup %10918  ;;  %2737 = vmatmul.mubr.f32.vlgmr.msra.gmra.mrb[64].mxu1 %v10913_v57  ;;  %9601 = vmatprep.subr.bf16.mxu0 %v21689_v12  ;;  %v21707_v12 = vpack.c.bf16 %v21705_v41, %v21706_v50  ;;  %v21726_v50 = vld [vmem:[#allocation222_spill] sm:$0xff] }
 0x6bd   : > { %v10921_v61 = vpop.eup %10920  ;;  %9631 = vmatpush3.bf16.msra.mxu1 %v21692_v30  ;;  %2666 = vmatprep.mubr.f32.mxu0 %v10919_v60  ;;  %v21711_v30 = vld [vmem:[#allocation216_spill] sm:$0xff] }
 0x6be   : > { %v10923_v6 = vpop.eup %10922  ;;  %9633 = vmatprep.subr.bf16.mxu1 %v21695_v23  ;;  %2667 = vmatmul.mubr.f32.gmra.mrb[50].mxu0 %v10917_v2  ;;  %v21713_v34 = vpack.c.bf16 %v21711_v30, %v21712_v62  ;;  %v21714_v23 = vld [vmem:[#allocation214_spill] sm:$0xff] }
 0x6bf   : > { %2741 = vmatprep.mubr.f32.mxu1 %v10923_v6  ;;  %9603 = vmatpush3.bf16.msra.mxu0 %v21698_v8  ;;  %v21716_v58 = vpack.c.bf16 %v21714_v23, %v21715_v40  ;;  %v21717_v8 = vld [vmem:[#allocation218_spill] sm:$0xff]  ;;  %v10925_v41 = vpop.eup %10924 }
 0x6c0   : > { %2742 = vmatmul.mubr.f32.gmra.mrb[66].mxu1 %v10921_v61  ;;  %9605 = vmatprep.subr.bf16.mxu0 %v21701_v28  ;;  %v21721_v28 = vld [vmem:[#allocation219_spill] sm:$0xff]  ;;  %v17607_v62 = vmul.f32 %v10925_v41, %v17553_v54  ;;  %v21734_v23 = vld [vmem:[#allocation226_spill] sm:$0xff] }
 0x6c1   : > { %9635 = vmatpush3.bf16.msra.mxu1 %v21704_v3  ;;  %2811 = vmatprep.mubr.f32.mxu0 %v10911_v33  ;;  %v21719_v33 = vpack.c.bf16 %v21717_v8, %v21718_v31  ;;  %v21722_v0 = vpack.c.bf16 %v21720_v5, %v21721_v28  ;;  %v21737_v8 = vld [vmem:[#allocation230_spill] sm:$0xff]  ;;  %v21740_v5 = vld [vmem:[#allocation228_spill] sm:$0xff]  ;;  %v21748_v41 = vld [vmem:[#allocation239_spill] sm:$0xff] }
 0x6c2   : > { %9637 = vmatprep.subr.bf16.mxu1 %v21707_v12  ;;  %2886 = vmatprep.mubr.f32.mxu1 %v10915_v9  ;;  %v21723_v9 = vld [vmem:[#allocation223_spill] sm:$0xff]  ;;  %v21727_v12 = vld [vmem:[#allocation221_spill] sm:$0xff]  ;;  %21732 = vst [vmem:[#allocation87_spill] sm:$0xff] %v17607_v62 }
 0x6c3   : > { %9607 = vmatpush3.bf16.msra.mxu0 %v21710_v48  ;;  %v21725_v3 = vpack.c.bf16 %v21723_v9, %v21724_v11  ;;  %v21728_v19 = vpack.c.bf16 %v21726_v50, %v21727_v12  ;;  %v21730_v48 = vld [vmem:[#allocation224_spill] sm:$0xff]  ;;  %v21746_v50 = vld [vmem:[#allocation234_spill] sm:$0xff] }
 0x6c4   : > { %9609 = vmatprep.subr.bf16.mxu0 %v21713_v34  ;;  %v21731_v30 = vpack.c.bf16 %v21729_v49, %v21730_v48  ;;  %v21733_v34 = vld [vmem:[#allocation227_spill] sm:$0xff]  ;;  %v21743_v9 = vld [vmem:[#allocation232_spill] sm:$0xff]  ;;  %v21749_v12 = vld [vmem:[#allocation238_spill] sm:$0xff] }
 0x6c5   : > { %9639 = vmatpush3.bf16.msra.mxu1 %v21716_v58  ;;  %v21735_v40 = vpack.c.bf16 %v21733_v34, %v21734_v23  ;;  %v21736_v58 = vld [vmem:[#allocation231_spill] sm:$0xff]  ;;  %v21751_v49 = vld [vmem:[#allocation237_spill] sm:$0xff]  ;;  %v21752_v48 = vld [vmem:[#allocation236_spill] sm:$0xff] }
 0x6c6   : > { %9641 = vmatprep.subr.bf16.mxu1 %v21719_v33  ;;  %v21738_v31 = vpack.c.bf16 %v21736_v58, %v21737_v8  ;;  %v21739_v33 = vld [vmem:[#allocation229_spill] sm:$0xff]  ;;  %v21755_v23 = vld [vmem:[#allocation240_spill] sm:$0xff]  ;;  %v21757_v58 = vld [vmem:[#allocation243_spill] sm:$0xff] }
 0x6c7   : > { %9611 = vmatpush3.bf16.msra.mxu0 %v21722_v0  ;;  %v21741_v28 = vpack.c.bf16 %v21739_v33, %v21740_v5  ;;  %v21742_v0 = vld [vmem:[#allocation233_spill] sm:$0xff]  ;;  %v21758_v8 = vld [vmem:[#allocation242_spill] sm:$0xff]  ;;  %v21760_v33 = vld [vmem:[#allocation247_spill] sm:$0xff] }
 0x6c8   : > { %9613 = vmatprep.subr.bf16.mxu0 %v21725_v3  ;;  %v21744_v11 = vpack.c.bf16 %v21742_v0, %v21743_v9  ;;  %v21745_v3 = vld [vmem:[#allocation235_spill] sm:$0xff]  ;;  %v21754_v34 = vld [vmem:[#allocation241_spill] sm:$0xff]  ;;  %v21761_v5 = vld [vmem:[#allocation246_spill] sm:$0xff] }
 0x6c9   : > { %9643 = vmatpush3.bf16.msra.mxu1 %v21728_v19  ;;  %v21747_v54 = vpack.c.bf16 %v21745_v3, %v21746_v50  ;;  %v21750_v19 = vpack.c.bf16 %v21748_v41, %v21749_v12  ;;  %v21763_v0 = vld [vmem:[#allocation245_spill] sm:$0xff]  ;;  %v21764_v9 = vld [vmem:[#allocation244_spill] sm:$0xff]  ;;  %v21769_v41 = vld [vmem:[#allocation251_spill] sm:$0xff] }
 0x6ca   : > { %9645 = vmatprep.subr.bf16.mxu1 %v21731_v30  ;;  %v21753_v30 = vpack.c.bf16 %v21751_v49, %v21752_v48  ;;  %v21766_v3 = vld [vmem:[#allocation249_spill] sm:$0xff]  ;;  %v21767_v50 = vld [vmem:[#allocation248_spill] sm:$0xff]  ;;  %v21770_v12 = vld [vmem:[#allocation250_spill] sm:$0xff] }
 0x6cb   : > { %9615 = vmatpush3.bf16.msra.mxu0 %v21735_v40  ;;  %v21756_v40 = vpack.c.bf16 %v21754_v34, %v21755_v23  ;;  %v21772_v49 = vld [vmem:[#allocation10_spill] sm:$0xff]  ;;  %v21773_v48 = vld [vmem:[#allocation4_spill] sm:$0xff]  ;;  %v21775_v34 = vld [vmem:[#allocation253_spill] sm:$0xff] }
 0x6cc   : > { %9617 = vmatprep.subr.bf16.mxu0 %v21738_v31  ;;  %v21759_v31 = vpack.c.bf16 %v21757_v58, %v21758_v8  ;;  %v21776_v23 = vld [vmem:[#allocation252_spill] sm:$0xff]  ;;  %v21778_v58 = vld [vmem:[#allocation255_spill] sm:$0xff]  ;;  %v21779_v8 = vld [vmem:[#allocation254_spill] sm:$0xff] }
 0x6cd   : > { %9647 = vmatpush3.bf16.msra.mxu1 %v21741_v28  ;;  %v21762_v28 = vpack.c.bf16 %v21760_v33, %v21761_v5  ;;  %v21781_v33 = vld [vmem:[#allocation67_spill] sm:$0xff]  ;;  %v21782_v5 = vld [vmem:[#allocation257_spill] sm:$0xff] }
 0x6ce   : > { %9649 = vmatprep.subr.bf16.mxu1 %v21744_v11  ;;  %v21765_v11 = vpack.c.bf16 %v21763_v0, %v21764_v9  ;;  %v21785_v9 = vld [vmem:[#allocation261_spill] sm:$0xff] }
 0x6cf   : > { %9619 = vmatpush3.bf16.msra.mxu0 %v21747_v54  ;;  %v21768_v54 = vpack.c.bf16 %v21766_v3, %v21767_v50  ;;  %v21788_v50 = vld [vmem:[#allocation259_spill] sm:$0xff] }
 0x6d0   : > { %9621 = vmatprep.subr.bf16.mxu0 %v21750_v19  ;;  %v21771_v19 = vpack.c.bf16 %v21769_v41, %v21770_v12  ;;  %v21797_v12 = vld [vmem:[#allocation269_spill] sm:$0xff] }
 0x6d1   : > { %9651 = vmatpush3.bf16.msra.mxu1 %v21753_v30  ;;  %v21774_v30 = vpack.c.bf16 %v21772_v49, %v21773_v48  ;;  %v21800_v48 = vld [vmem:[#allocation267_spill] sm:$0xff] }
 0x6d2   : > { %9653 = vmatprep.subr.bf16.mxu1 %v21756_v40  ;;  %v21777_v40 = vpack.c.bf16 %v21775_v34, %v21776_v23  ;;  %v21803_v23 = vld [vmem:[#allocation271_spill] sm:$0xff] }
 0x6d3   : > { %9623 = vmatpush3.bf16.msra.mxu0 %v21759_v31  ;;  %v21780_v31 = vpack.c.bf16 %v21778_v58, %v21779_v8  ;;  %v21806_v8 = vld [vmem:[#allocation273_spill] sm:$0xff] }
 0x6d4   : > { %9625 = vmatprep.subr.bf16.mxu0 %v21762_v28  ;;  %v21783_v28 = vld [vmem:[#allocation256_spill] sm:$0xff] }
 0x6d5   : > { %9655 = vmatpush3.bf16.msra.mxu1 %v21765_v11  ;;  %v21784_v0 = vpack.c.bf16 %v21782_v5, %v21783_v28  ;;  %v21786_v11 = vld [vmem:[#allocation260_spill] sm:$0xff]  ;;  %v21809_v28 = vld [vmem:[#allocation277_spill] sm:$0xff] }
 0x6d6   : > { %9657 = vmatprep.subr.bf16.mxu1 %v21768_v54  ;;  %v21787_v3 = vpack.c.bf16 %v21785_v9, %v21786_v11  ;;  %v21789_v54 = vld [vmem:[#allocation258_spill] sm:$0xff]  ;;  %v21812_v11 = vld [vmem:[#allocation275_spill] sm:$0xff] }
 0x6d7   : > { %9627 = vmatpush3.bf16.msra.mxu0 %v21771_v19  ;;  %v21798_v19 = vld [vmem:[#allocation268_spill] sm:$0xff] }
 0x6d8   : > { %9661 = vmatprep.subr.bf16.mxu0 %v21774_v30  ;;  %v21799_v49 = vpack.c.bf16 %v21797_v12, %v21798_v19  ;;  %v21801_v30 = vld [vmem:[#allocation266_spill] sm:$0xff]  ;;  %v21824_v19 = vld [vmem:[#allocation283_spill] sm:$0xff] }
 0x6d9   : > { %9659 = vmatpush3.bf16.msra.mxu1 %v21777_v40  ;;  %v21802_v34 = vpack.c.bf16 %v21800_v48, %v21801_v30  ;;  %v21804_v40 = vld [vmem:[#allocation270_spill] sm:$0xff]  ;;  %v21827_v30 = vld [vmem:[#allocation287_spill] sm:$0xff] }
 0x6da   : > { %9693 = vmatprep.subr.bf16.mxu1 %v21780_v31  ;;  %2812 = vmatmul.mubr.f32.vlgmr.msra.gmra.mrb[52].mxu0 %v10909_v4  ;;  %v21790_v4 = vpack.c.bf16 %v21788_v50, %v21789_v54  ;;  %v21805_v58 = vpack.c.bf16 %v21803_v23, %v21804_v40  ;;  %v21807_v31 = vld [vmem:[#allocation272_spill] sm:$0xff]  ;;  %v21815_v54 = vld [vmem:[#allocation279_spill] sm:$0xff]  ;;  %v21830_v40 = vld [vmem:[#allocation289_spill] sm:$0xff] }
 0x6db   : > { %2816 = vmatprep.mubr.f32.mxu0 %v10919_v60  ;;  %v21792_v60 = vld [vmem:[#allocation262_spill] sm:$0xff]  ;;  %v21808_v5 = vpack.c.bf16 %v21806_v8, %v21807_v31  ;;  %v21833_v31 = vld [vmem:[#allocation293_spill] sm:$0xff] }
 0x6dc   : > { %2887 = vmatmul.mubr.f32.vlgmr.msra.gmra.mrb[68].mxu1 %v10913_v57  ;;  %v21791_v57 = vld [vmem:[#allocation263_spill] sm:$0xff] }
 0x6dd   : > { %2891 = vmatprep.mubr.f32.mxu1 %v10923_v6  ;;  %v21794_v6 = vld [vmem:[#allocation265_spill] sm:$0xff] }
 0x6de   : > { %2817 = vmatmul.mubr.f32.gmra.mrb[54].mxu0 %v10917_v2  ;;  %v21793_v2 = vpack.c.bf16 %v21791_v57, %v21792_v60  ;;  %v21818_v60 = vld [vmem:[#allocation281_spill] sm:$0xff] }
 0x6df   : > { %7580 = vmatprep.mubr.f32.mxu0 %v21781_v33 }
 0x6e0   : > { %2892 = vmatmul.mubr.f32.gmra.mrb[70].mxu1 %v10921_v61  ;;  %9663 = vmatpush3.bf16.xpose.msra.mxu0 %v21784_v0  ;;  %v21795_v61 = vld [vmem:[#allocation264_spill] sm:$0xff] }
 0x6e1   : > { %7616 = vmatprep.mubr.f32.mxu1 %v21781_v33  ;;  %9665 = vmatprep.subr.bf16.mxu0 %v21787_v3  ;;  %v21796_v41 = vpack.c.bf16 %v21794_v6, %v21795_v61  ;;  %v21810_v0 = vld [vmem:[#allocation276_spill] sm:$0xff]  ;;  %v21813_v3 = vld [vmem:[#allocation274_spill] sm:$0xff]  ;;  %v21821_v61 = vld [vmem:[#allocation285_spill] sm:$0xff] }
 0x6e2   : > { %9695 = vmatpush3.bf16.xpose.msra.mxu1 %v21790_v4  ;;  %v21811_v9 = vpack.c.bf16 %v21809_v28, %v21810_v0  ;;  %v21814_v50 = vpack.c.bf16 %v21812_v11, %v21813_v3  ;;  %v21816_v4 = vld [vmem:[#allocation278_spill] sm:$0xff]  ;;  %v21836_v0 = vld [vmem:[#allocation291_spill] sm:$0xff] }
 0x6e3   : > { %9697 = vmatprep.subr.bf16.mxu1 %v21793_v2  ;;  %v21817_v57 = vpack.c.bf16 %v21815_v54, %v21816_v4  ;;  %v21819_v2 = vld [vmem:[#allocation280_spill] sm:$0xff]  ;;  %v21839_v3 = vld [vmem:[#allocation295_spill] sm:$0xff]  ;;  %v21842_v4 = vld [vmem:[#allocation297_spill] sm:$0xff] }
 0x6e4   : > { %v21820_v6 = vpack.c.bf16 %v21818_v60, %v21819_v2  ;;  %v21845_v2 = vld [vmem:[#allocation301_spill] sm:$0xff] }
 0x6e8   : > { %9667 = vmatpush3.bf16.xpose.msra.mxu0 %v21796_v41  ;;  %v21822_v41 = vld [vmem:[#allocation284_spill] sm:$0xff] }
 0x6e9   : > { %9669 = vmatprep.subr.bf16.mxu0 %v21799_v49  ;;  %v21823_v12 = vpack.c.bf16 %v21821_v61, %v21822_v41  ;;  %v21825_v49 = vld [vmem:[#allocation282_spill] sm:$0xff]  ;;  %v21848_v41 = vld [vmem:[#allocation299_spill] sm:$0xff] }
 0x6ea   : > { %9699 = vmatpush3.bf16.xpose.msra.mxu1 %v21802_v34  ;;  %v21826_v48 = vpack.c.bf16 %v21824_v19, %v21825_v49  ;;  %v21828_v34 = vld [vmem:[#allocation286_spill] sm:$0xff]  ;;  %v21851_v49 = vld [vmem:[#allocation303_spill] sm:$0xff] }
 0x6eb   : > { %9701 = vmatprep.subr.bf16.mxu1 %v21805_v58  ;;  %v21829_v23 = vpack.c.bf16 %v21827_v30, %v21828_v34  ;;  %v21831_v58 = vld [vmem:[#allocation288_spill] sm:$0xff]  ;;  %v21854_v34 = vld [vmem:[#allocation305_spill] sm:$0xff] }
 0x6ec   : > { %v21832_v8 = vpack.c.bf16 %v21830_v40, %v21831_v58  ;;  %v21857_v58 = vld [vmem:[#allocation309_spill] sm:$0xff] }
 0x6f0   : > { %9671 = vmatpush3.bf16.xpose.msra.mxu0 %v21808_v5  ;;  %v21834_v5 = vld [vmem:[#allocation292_spill] sm:$0xff] }
 0x6f1   : > { %9673 = vmatprep.subr.bf16.mxu0 %v21811_v9  ;;  %v21835_v28 = vpack.c.bf16 %v21833_v31, %v21834_v5  ;;  %v21837_v9 = vld [vmem:[#allocation290_spill] sm:$0xff]  ;;  %v21860_v5 = vld [vmem:[#allocation307_spill] sm:$0xff] }
 0x6f2   : > { %9703 = vmatpush3.bf16.xpose.msra.mxu1 %v21814_v50  ;;  %v21838_v11 = vpack.c.bf16 %v21836_v0, %v21837_v9  ;;  %v21840_v50 = vld [vmem:[#allocation294_spill] sm:$0xff]  ;;  %v21863_v9 = vld [vmem:[#allocation311_spill] sm:$0xff] }
 0x6f3   : > { %9705 = vmatprep.subr.bf16.mxu1 %v21817_v57  ;;  %v21841_v54 = vpack.c.bf16 %v21839_v3, %v21840_v50  ;;  %v21843_v57 = vld [vmem:[#allocation296_spill] sm:$0xff]  ;;  %v21866_v50 = vld [vmem:[#allocation313_spill] sm:$0xff] }
 0x6f4   : > { %v21844_v60 = vpack.c.bf16 %v21842_v4, %v21843_v57  ;;  %v21869_v57 = vld [vmem:[#allocation315_spill] sm:$0xff] }
 0x6f8   : > { %9675 = vmatpush3.bf16.xpose.msra.mxu0 %v21820_v6  ;;  %v21846_v6 = vld [vmem:[#allocation300_spill] sm:$0xff] }
 0x6f9   : > { %9677 = vmatprep.subr.bf16.mxu0 %v21823_v12  ;;  %v21847_v61 = vpack.c.bf16 %v21845_v2, %v21846_v6  ;;  %v21849_v12 = vld [vmem:[#allocation298_spill] sm:$0xff] }
 0x6fa   : > { %9707 = vmatpush3.bf16.xpose.msra.mxu1 %v21826_v48  ;;  %v21850_v19 = vpack.c.bf16 %v21848_v41, %v21849_v12  ;;  %v21852_v48 = vld [vmem:[#allocation302_spill] sm:$0xff]  ;;  %v21876_v12 = vld [vmem:[#allocation317_spill] sm:$0xff] }
 0x6fb   : > { %9709 = vmatprep.subr.bf16.mxu1 %v21829_v23  ;;  %v21853_v30 = vpack.c.bf16 %v21851_v49, %v21852_v48  ;;  %v21855_v23 = vld [vmem:[#allocation304_spill] sm:$0xff]  ;;  %v21872_v6 = vld [vmem:[#allocation14_spill] sm:$0xff] }
 0x6fc   : > { %v21856_v40 = vpack.c.bf16 %v21854_v34, %v21855_v23 }
 0x700   : > { %9679 = vmatpush3.bf16.xpose.msra.mxu0 %v21832_v8  ;;  %v21858_v8 = vld [vmem:[#allocation308_spill] sm:$0xff] }
 0x701   : > { %9681 = vmatprep.subr.bf16.mxu0 %v21835_v28  ;;  %v21859_v31 = vpack.c.bf16 %v21857_v58, %v21858_v8  ;;  %v21861_v28 = vld [vmem:[#allocation306_spill] sm:$0xff] }
 0x702   : > { %9711 = vmatpush3.bf16.xpose.msra.mxu1 %v21838_v11  ;;  %v21862_v0 = vpack.c.bf16 %v21860_v5, %v21861_v28  ;;  %v21864_v11 = vld [vmem:[#allocation310_spill] sm:$0xff] }
 0x703   : > { %9713 = vmatprep.subr.bf16.mxu1 %v21841_v54  ;;  %v21865_v3 = vpack.c.bf16 %v21863_v9, %v21864_v11  ;;  %v21867_v54 = vld [vmem:[#allocation312_spill] sm:$0xff] }
 0x704   : > { %v21868_v4 = vpack.c.bf16 %v21866_v50, %v21867_v54 }
 0x708   : > { %9683 = vmatpush3.bf16.xpose.msra.mxu0 %v21844_v60  ;;  %v21870_v60 = vld [vmem:[#allocation314_spill] sm:$0xff] }
 0x709   : > { %9685 = vmatprep.subr.bf16.mxu0 %v21847_v61  ;;  %v21871_v2 = vpack.c.bf16 %v21869_v57, %v21870_v60  ;;  %v21874_v61 = vld [vmem:[#allocation62_spill] sm:$0xff] }
 0x70a   : > { %9715 = vmatpush3.bf16.xpose.msra.mxu1 %v21850_v19  ;;  %v21877_v19 = vld [vmem:[#allocation316_spill] sm:$0xff] }
 0x70b   : > { %9717 = vmatprep.subr.bf16.mxu1 %v21853_v30  ;;  %v21878_v49 = vpack.c.bf16 %v21876_v12, %v21877_v19 }
 0x710   : > { %9687 = vmatpush3.bf16.xpose.msra.mxu0 %v21856_v40 }
 0x711   : > { %9689 = vmatprep.subr.bf16.mxu0 %v21859_v31 }
 0x712   : > { %9719 = vmatpush3.bf16.xpose.msra.mxu1 %v21862_v0 }
 0x713   : > { %9721 = vmatprep.subr.bf16.mxu1 %v21865_v3 }
 0x718   : > { %9691 = vmatpush3.bf16.xpose.msra.mxu0 %v21868_v4 }
 0x719   : > { %9725 = vmatprep.subr.bf16.mxu0 %v21641_v21 }
 0x71a   : > { %9723 = vmatpush3.bf16.xpose.msra.mxu1 %v21871_v2 }
 0x71b   : > { %9757 = vmatprep.subr.bf16.mxu1 %v21645_v44 }
 0x71f   : > { %7581 = vmatmul.mubr.f32.vlgmr.msra.gmra.mrb[56].mxu0 %v21781_v33 }
 0x720   : > { %7582 = vmatprep.mubr.f32.mxu0 %v21872_v6  ;;  %9727 = vmatpush3.bf16.msra.mxu0 %v21647_v26 }
 0x721   : > { %7617 = vmatmul.mubr.f32.vlgmr.msra.gmra.mrb[72].mxu1 %v21781_v33  ;;  %9729 = vmatprep.subr.bf16.mxu0 %v21648_v63  ;;  %v21873_v33 = vld [vmem:[#allocation61_spill] sm:$0xff] }
 0x722   : > { %7618 = vmatprep.mubr.f32.mxu1 %v21872_v6  ;;  %9759 = vmatpush3.bf16.msra.mxu1 %v21649_v46  ;;  %v21875_v41 = vpack.c.bf16 %v21873_v33, %v21874_v61 }
 0x723   : > { %7583 = vmatmul.mubr.f32.gmra.mrb[58].mxu0 %v21872_v6  ;;  %9761 = vmatprep.subr.bf16.mxu1 %v21650_v55 }
 0x724   : > { %9731 = vmatpush3.bf16.msra.mxu0 %v21651_v53 }
 0x725   : > { %7619 = vmatmul.mubr.f32.gmra.mrb[74].mxu1 %v21872_v6  ;;  %9733 = vmatprep.subr.bf16.mxu0 %v21652_v36 }
 0x726   : > { %9763 = vmatpush3.bf16.msra.mxu1 %v21653_v45 }
 0x727   : > { %9765 = vmatprep.subr.bf16.mxu1 %v21654_v15 }
 0x728   : > { %9735 = vmatpush3.bf16.msra.mxu0 %v21655_v51 }
 0x729   : > { %9737 = vmatprep.subr.bf16.mxu0 %v21656_v25 }
 0x72a   : > { %9767 = vmatpush3.bf16.msra.mxu1 %v21657_v47 }
 0x72b   : > { %9769 = vmatprep.subr.bf16.mxu1 %v21658_v7 }
 0x72c   : > { %9739 = vmatpush3.bf16.msra.mxu0 %v21659_v59 }
 0x72d   : > { %9741 = vmatprep.subr.bf16.mxu0 %v21660_v32 }
 0x72e   : > { %9771 = vmatpush3.bf16.msra.mxu1 %v21661_v16 }
 0x72f   : > { %9773 = vmatprep.subr.bf16.mxu1 %v21662_v24 }
 0x730   : > { %9743 = vmatpush3.bf16.msra.mxu0 %v21663_v52 }
 0x731   : > { %9745 = vmatprep.subr.bf16.mxu0 %v21664_v1 }
 0x732   : > { %9775 = vmatpush3.bf16.msra.mxu1 %v21665_v22 }
 0x733   : > { %9777 = vmatprep.subr.bf16.mxu1 %v21666_v27 }
 0x734   : > { %9747 = vmatpush3.bf16.msra.mxu0 %v21667_v14 }
 0x735   : > { %9749 = vmatprep.subr.bf16.mxu0 %v21668_v29 }
 0x736   : > { %9779 = vmatpush3.bf16.msra.mxu1 %v21669_v13 }
 0x737   : > { %9781 = vmatprep.subr.bf16.mxu1 %v21670_v10 }
 0x738   : > { %9751 = vmatpush3.bf16.msra.mxu0 %v21671_v37 }
 0x739   : > { %9753 = vmatprep.subr.bf16.mxu0 %v21672_v18 }
 0x73a   : > { %9783 = vmatpush3.bf16.msra.mxu1 %v21673_v20 }
 0x73b   : > { %9785 = vmatprep.subr.bf16.mxu1 %v21674_v43 }
 0x73c   : > { %9755 = vmatpush3.bf16.msra.mxu0 %v21675_v38 }
 0x73d   : > { %9789 = vmatprep.subr.bf16.mxu0 %v21875_v41 }
 0x73e   : > { %9787 = vmatpush3.bf16.msra.mxu1 %v21679_v42 }
 0x73f   : > { %9821 = vmatprep.subr.bf16.mxu1 %v21878_v49 }
 0x78d   : > { %v7428_v48 = vpop.f32.mrb[48].mxu0 }
 0x78e   : > { %v7429_v30 = vpop.f32.mrb[49].mxu0 }
 0x78f   : > { %v7466_v34 = vpop.f32.mrb[64].mxu1  ;;  %v7430_v23 = vadd.f32 %v7429_v30, %v7428_v48 }
 0x790   : > { %v7467_v40 = vpop.f32.mrb[65].mxu1 }
 0x791   : > { %v7468_v58 = vadd.f32 %v7467_v40, %v7466_v34  ;;  %v7431_v8 = vpop.f32.mrb[50].mxu0 }
 0x792   : > { %v7432_v31 = vpop.f32.mrb[51].mxu0 }
 0x793   : > { %v17793_v5 = vadd.f32 %v7468_v58, %v7430_v23  ;;  %v7469_v28 = vpop.f32.mrb[66].mxu1  ;;  %v7433_v0 = vadd.f32 %v7432_v31, %v7431_v8 }
 0x794   : > { %v7470_v9 = vpop.f32.mrb[67].mxu1 }
 0x795   : > { %v7471_v11 = vadd.f32 %v7470_v9, %v7469_v28 }
 0x797   : > { %v17795_v3 = vadd.f32 %v7471_v11, %v7433_v0 }
 0x7ad   : > { %v7504_v50 = vpop.f32.mrb[52].mxu0 }
 0x7ae   : > { %v7505_v54 = vpop.f32.mrb[53].mxu0 }
 0x7af   : > { %v7542_v4 = vpop.f32.mrb[68].mxu1  ;;  %v7506_v57 = vadd.f32 %v7505_v54, %v7504_v50 }
 0x7b0   : > { %v7543_v60 = vpop.f32.mrb[69].mxu1 }
 0x7b1   : > { %v7544_v2 = vadd.f32 %v7543_v60, %v7542_v4  ;;  %v7507_v6 = vpop.f32.mrb[54].mxu0 }
 0x7b2   : > { %v7508_v33 = vpop.f32.mrb[55].mxu0 }
 0x7b3   : > { %v17797_v61 = vadd.f32 %v7544_v2, %v7506_v57  ;;  %v7545_v41 = vpop.f32.mrb[70].mxu1  ;;  %v7509_v12 = vadd.f32 %v7508_v33, %v7507_v6 }
 0x7b4   : > { %v7546_v19 = vpop.f32.mrb[71].mxu1 }
 0x7b5   : > { %v7547_v49 = vadd.f32 %v7546_v19, %v7545_v41 }
 0x7b7   : > { %v17799_v48 = vadd.f32 %v7547_v49, %v7509_v12 }
 0x7f2   : > { %v3109_v30 = vpop.f32.mrb[56].mxu0 }
 0x7f3   : > { %v3111_v34 = vpop.f32.mrb[57].mxu0 }
 0x7f4   : > { %v3186_v23 = vpop.f32.mrb[72].mxu1 }
 0x7f5   : > { %v3197_v40 = vmax.f32 %v3109_v30, %v3186_v23  ;;  %v3188_v58 = vpop.f32.mrb[73].mxu1 }
 0x7f6   : > { %v3198_v8 = vmax.f32 %v3111_v34, %v3188_v58  ;;  %v3115_v31 = vpop.f32.mrb[58].mxu0 }
 0x7f7   : > { %v3117_v28 = vpop.f32.mrb[59].mxu0 }
 0x7f8   : > { %v3192_v0 = vpop.f32.mrb[74].mxu1  ;;  %v3199_v9 = vmax.f32 %v3197_v40, %v3198_v8 }
 0x7f9   : > { %v3202_v11 = vmax.f32 %v3115_v31, %v3192_v0  ;;  %v3194_v50 = vpop.f32.mrb[75].mxu1 }
 0x7fa   : > { %v3203_v54 = vmax.f32 %v3117_v28, %v3194_v50  ;;  %3200 = vmax.xlane.f32.xlu0 %v3199_v9 }
 0x7fc   : > { %v3204_v4 = vmax.f32 %v3202_v11, %v3203_v54 }
 0x7fe   : > { %3205 = vmax.xlane.f32.xlu1 %v3204_v4 }
 0x887   : > { %v3201_v57 = vpop.xlane.xlu0 %3200 }
 0x888   : > { %v3207_v60 = vsub.f32 %v3109_v30, %v3201_v57  ;;  %v3208_v2 = vsub.f32 %v3111_v34, %v3201_v57  ;;  %v3209_v6 = vsub.f32 %v3186_v23, %v3201_v57  ;;  %v3210_v33 = vsub.f32 %v3188_v58, %v3201_v57  ;;  %v21882_v57 = vld [vmem:[#allocation323_spill] sm:$0xff] }
 0x889   : > { %v2897_v23 = vmax.f32 %v17793_v5, 1e-30 }
 0x88a   : > { %v3215_v41 = vmul.f32 1.442695, %v3207_v60  ;;  %v3217_v12 = vmul.f32 1.442695, %v3208_v2  ;;  %v3219_v19 = vmul.f32 1.442695, %v3209_v6 }
 0x88b   : > { %v3221_v49 = vmul.f32 1.442695, %v3210_v33  ;;  %v3206_v62 = vpop.xlane.xlu1 %3205  ;;  %v21883_v60 = vld [vmem:[#allocation322_spill] sm:$0xff]  ;;  %v21885_v6 = vld [vmem:[#allocation321_spill] sm:$0xff]  ;;  %v21886_v33 = vld [vmem:[#allocation320_spill] sm:$0xff] }
 0x88c   : > { %10926 = vpow2.f32 %v3215_v41  ;;  %v3211_v56 = vsub.f32 %v3115_v31, %v3206_v62  ;;  %v3212_v17 = vsub.f32 %v3117_v28, %v3206_v62  ;;  %v3213_v40 = vsub.f32 %v3192_v0, %v3206_v62 }
 0x88d   : > { %10928 = vpow2.f32 %v3217_v12  ;;  %v3214_v8 = vsub.f32 %v3194_v50, %v3206_v62  ;;  %v21880_v62 = vld [vmem:[#allocation318_spill] sm:$0xff]  ;;  %v21884_v2 = vpack.c.bf16 %v21882_v57, %v21883_v60  ;;  %v21887_v41 = vpack.c.bf16 %v21885_v6, %v21886_v33  ;;  %v21901_v57 = vld [vmem:[#allocation332_spill] sm:$0xff]  ;;  %v21906_v33 = vld [vmem:[#allocation339_spill] sm:$0xff] }
 0x88e   : > { %10930 = vpow2.f32 %v3219_v19  ;;  %v3223_v9 = vmul.f32 1.442695, %v3211_v56  ;;  %v3225_v11 = vmul.f32 1.442695, %v3212_v17  ;;  %v3227_v54 = vmul.f32 1.442695, %v3213_v40 }
 0x88f   : > { %10932 = vpow2.f32 %v3221_v49  ;;  %v3229_v30 = vmul.f32 1.442695, %v3214_v8  ;;  %v2898_v56 = vmax.f32 %v17795_v3, 1e-30  ;;  %v21879_v17 = vld [vmem:[#allocation319_spill] sm:$0xff]  ;;  %v21888_v19 = vld [vmem:[#allocation325_spill] sm:$0xff] }
 0x890   : > { %10934 = vpow2.f32 %v3223_v9  ;;  %v21881_v0 = vpack.c.bf16 %v21879_v17, %v21880_v62  ;;  %v21889_v3 = vld [vmem:[#allocation324_spill] sm:$0xff]  ;;  %v21891_v40 = vld [vmem:[#allocation327_spill] sm:$0xff]  ;;  %v21892_v8 = vld [vmem:[#allocation326_spill] sm:$0xff] }
 0x891   : > { %10936 = vpow2.f32 %v3225_v11  ;;  %v21890_v49 = vpack.c.bf16 %v21888_v19, %v21889_v3  ;;  %v21893_v9 = vpack.c.bf16 %v21891_v40, %v21892_v8  ;;  %v21894_v11 = vld [vmem:[#allocation331_spill] sm:$0xff]  ;;  %v21898_v17 = vld [vmem:[#allocation328_spill] sm:$0xff] }
 0x892   : > { %10938 = vpow2.f32 %v3227_v54  ;;  %v21895_v54 = vld [vmem:[#allocation330_spill] sm:$0xff]  ;;  %v21910_v40 = vld [vmem:[#allocation336_spill] sm:$0xff] }
 0x893   : > { %10940 = vpow2.f32 %v3229_v30  ;;  %v21896_v30 = vpack.c.bf16 %v21894_v11, %v21895_v54 }
 0x894   : > { %10942 = vrcp.f32 %v2897_v23  ;;  %v21897_v23 = vld [vmem:[#allocation329_spill] sm:$0xff] }
 0x895   : > { %10944 = vrcp.f32 %v2898_v56  ;;  %v21899_v62 = vpack.c.bf16 %v21897_v23, %v21898_v17  ;;  %v21903_v56 = vld [vmem:[#allocation335_spill] sm:$0xff] }
 0x896   : > { %v10927_v34 = vpop.eup %10926  ;;  %v21919_v17 = vld [vmem:[#allocation347_spill] sm:$0xff] }
 0x897   : > { %v10929_v58 = vpop.eup %10928 }
 0x898   : > { %v10931_v4 = vpop.eup %10930  ;;  %3295 = vmatprep.mubr.f32.mxu0 %v10929_v58 }
 0x899   : > { %v10933_v31 = vpop.eup %10932  ;;  %3296 = vmatmul.mubr.f32.vlgmr.msra.gmra.mrb[60].mxu0 %v10927_v34 }
 0x89a   : > { %v10935_v28 = vpop.eup %10934  ;;  %3370 = vmatprep.mubr.f32.mxu1 %v10933_v31  ;;  %9791 = vmatpush3.bf16.msra.mxu0 %v21881_v0  ;;  %v21900_v0 = vld [vmem:[#allocation333_spill] sm:$0xff] }
 0x89b   : > { %v10937_v50 = vpop.eup %10936  ;;  %3371 = vmatmul.mubr.f32.vlgmr.msra.gmra.mrb[76].mxu1 %v10931_v4  ;;  %9793 = vmatprep.subr.bf16.mxu0 %v21884_v2  ;;  %v21902_v60 = vpack.c.bf16 %v21900_v0, %v21901_v57  ;;  %v21904_v2 = vld [vmem:[#allocation334_spill] sm:$0xff] }
 0x89c   : > { %v10939_v5 = vpop.eup %10938  ;;  %9823 = vmatpush3.bf16.msra.mxu1 %v21887_v41  ;;  %3300 = vmatprep.mubr.f32.mxu0 %v10937_v50  ;;  %v21905_v6 = vpack.c.bf16 %v21903_v56, %v21904_v2  ;;  %v21907_v41 = vld [vmem:[#allocation338_spill] sm:$0xff]  ;;  %v21923_v56 = vld [vmem:[#allocation344_spill] sm:$0xff] }
 0x89d   : > { %v10941_v12 = vpop.eup %10940  ;;  %9825 = vmatprep.subr.bf16.mxu1 %v21890_v49  ;;  %3301 = vmatmul.mubr.f32.gmra.mrb[62].mxu0 %v10935_v28  ;;  %v21908_v19 = vpack.c.bf16 %v21906_v33, %v21907_v41  ;;  %v21909_v49 = vld [vmem:[#allocation337_spill] sm:$0xff]  ;;  %v21926_v33 = vld [vmem:[#allocation348_spill] sm:$0xff] }
 0x89e   : > { %3375 = vmatprep.mubr.f32.mxu1 %v10941_v12  ;;  %9795 = vmatpush3.bf16.msra.mxu0 %v21893_v9  ;;  %v10943_v3 = vpop.eup %10942  ;;  %v21911_v8 = vpack.c.bf16 %v21909_v49, %v21910_v40  ;;  %v21912_v9 = vld [vmem:[#allocation341_spill] sm:$0xff]  ;;  %v21932_v40 = vld [vmem:[#allocation355_spill] sm:$0xff] }
 0x89f   : > { %3376 = vmatmul.mubr.f32.gmra.mrb[78].mxu1 %v10939_v5  ;;  %9797 = vmatprep.subr.bf16.mxu0 %v21896_v30  ;;  %v17840_v54 = vmul.f32 %v10943_v3, %v17797_v61  ;;  %v21917_v30 = vld [vmem:[#allocation342_spill] sm:$0xff]  ;;  %v10945_v57 = vpop.eup %10944 }
 0x8a0   : > { %9827 = vmatpush3.bf16.msra.mxu1 %v21899_v62  ;;  %3445 = vmatprep.mubr.f32.mxu0 %v10929_v58  ;;  %v21913_v58 = vld [vmem:[#allocation340_spill] sm:$0xff]  ;;  %v21920_v62 = vld [vmem:[#allocation346_spill] sm:$0xff]  ;;  %v17855_v61 = vmul.f32 %v10945_v57, %v17799_v48  ;;  %v21944_v57 = vld [vmem:[#allocation363_spill] sm:$0xff] }
 0x8a1   : > { %9829 = vmatprep.subr.bf16.mxu1 %v21902_v60  ;;  %3520 = vmatprep.mubr.f32.mxu1 %v10933_v31  ;;  %v21914_v11 = vpack.c.bf16 %v21912_v9, %v21913_v58  ;;  %21915 = vst [vmem:[#allocation92_spill] sm:$0xff] %v17840_v54  ;;  %v21916_v31 = vld [vmem:[#allocation343_spill] sm:$0xff]  ;;  %v21921_v0 = vpack.c.bf16 %v21919_v17, %v21920_v62  ;;  %v21922_v60 = vld [vmem:[#allocation345_spill] sm:$0xff]  ;;  %v21930_v3 = vld [vmem:[#allocation350_spill] sm:$0xff] }
 0x8a2   : > { %9799 = vmatpush3.bf16.msra.mxu0 %v21905_v6  ;;  %v21918_v23 = vpack.c.bf16 %v21916_v31, %v21917_v30  ;;  %v21924_v2 = vpack.c.bf16 %v21922_v60, %v21923_v56  ;;  %v21925_v6 = vld [vmem:[#allocation349_spill] sm:$0xff]  ;;  %21928 = vst [vmem:[#allocation91_spill] sm:$0xff] %v17855_v61  ;;  %v21941_v62 = vld [vmem:[#allocation359_spill] sm:$0xff]  ;;  %v21945_v60 = vld [vmem:[#allocation362_spill] sm:$0xff] }
 0x8a3   : > { %9801 = vmatprep.subr.bf16.mxu0 %v21908_v19  ;;  %v21927_v41 = vpack.c.bf16 %v21925_v6, %v21926_v33  ;;  %v21929_v19 = vld [vmem:[#allocation351_spill] sm:$0xff]  ;;  %v21935_v58 = vld [vmem:[#allocation353_spill] sm:$0xff]  ;;  %v21946_v56 = vpack.c.bf16 %v21944_v57, %v21945_v60  ;;  %v21948_v6 = vld [vmem:[#allocation360_spill] sm:$0xff] }
 0x8a4   : > { %9831 = vmatpush3.bf16.msra.mxu1 %v21911_v8  ;;  %v21931_v49 = vpack.c.bf16 %v21929_v19, %v21930_v3  ;;  %v21933_v8 = vld [vmem:[#allocation354_spill] sm:$0xff]  ;;  %v21938_v30 = vld [vmem:[#allocation357_spill] sm:$0xff]  ;;  %v21951_v19 = vld [vmem:[#allocation364_spill] sm:$0xff] }
 0x8a5   : > { %9833 = vmatprep.subr.bf16.mxu1 %v21914_v11  ;;  %v21934_v9 = vpack.c.bf16 %v21932_v40, %v21933_v8  ;;  %v21936_v11 = vld [vmem:[#allocation352_spill] sm:$0xff]  ;;  %v21954_v40 = vld [vmem:[#allocation366_spill] sm:$0xff] }
 0x8a6   : > { %9803 = vmatpush3.bf16.msra.mxu0 %v21918_v23  ;;  %v21937_v31 = vpack.c.bf16 %v21935_v58, %v21936_v11  ;;  %v21939_v23 = vld [vmem:[#allocation356_spill] sm:$0xff]  ;;  %v21957_v58 = vld [vmem:[#allocation370_spill] sm:$0xff] }
 0x8a7   : > { %9805 = vmatprep.subr.bf16.mxu0 %v21921_v0  ;;  %v21940_v17 = vpack.c.bf16 %v21938_v30, %v21939_v23  ;;  %v21942_v0 = vld [vmem:[#allocation358_spill] sm:$0xff]  ;;  %v21960_v30 = vld [vmem:[#allocation368_spill] sm:$0xff] }
 0x8a8   : > { %9835 = vmatpush3.bf16.msra.mxu1 %v21924_v2  ;;  %v21943_v48 = vpack.c.bf16 %v21941_v62, %v21942_v0  ;;  %v21947_v2 = vld [vmem:[#allocation361_spill] sm:$0xff]  ;;  %v21963_v62 = vld [vmem:[#allocation372_spill] sm:$0xff]  ;;  %v21966_v57 = vld [vmem:[#allocation374_spill] sm:$0xff] }
 0x8a9   : > { %9837 = vmatprep.subr.bf16.mxu1 %v21927_v41  ;;  %v21949_v33 = vpack.c.bf16 %v21947_v2, %v21948_v6  ;;  %v21950_v41 = vld [vmem:[#allocation365_spill] sm:$0xff]  ;;  %v21969_v2 = vld [vmem:[#allocation15_spill] sm:$0xff] }
 0x8aa   : > { %9807 = vmatpush3.bf16.msra.mxu0 %v21931_v49  ;;  %v21952_v3 = vpack.c.bf16 %v21950_v41, %v21951_v19  ;;  %v21953_v49 = vld [vmem:[#allocation367_spill] sm:$0xff]  ;;  %v21972_v41 = vld [vmem:[#allocation376_spill] sm:$0xff] }
 0x8ab   : > { %9809 = vmatprep.subr.bf16.mxu0 %v21934_v9  ;;  %v21955_v8 = vpack.c.bf16 %v21953_v49, %v21954_v40  ;;  %v21956_v9 = vld [vmem:[#allocation371_spill] sm:$0xff]  ;;  %v21975_v49 = vld [vmem:[#allocation378_spill] sm:$0xff] }
 0x8ac   : > { %9839 = vmatpush3.bf16.msra.mxu1 %v21937_v31  ;;  %v21958_v11 = vpack.c.bf16 %v21956_v9, %v21957_v58  ;;  %v21959_v31 = vld [vmem:[#allocation369_spill] sm:$0xff]  ;;  %v21979_v58 = vld [vmem:[#allocation380_spill] sm:$0xff] }
 0x8ad   : > { %9841 = vmatprep.subr.bf16.mxu1 %v21940_v17  ;;  %v21961_v23 = vpack.c.bf16 %v21959_v31, %v21960_v30  ;;  %v21962_v17 = vld [vmem:[#allocation373_spill] sm:$0xff]  ;;  %v21982_v30 = vld [vmem:[#allocation384_spill] sm:$0xff] }
 0x8ae   : > { %9811 = vmatpush3.bf16.msra.mxu0 %v21943_v48  ;;  %v21964_v0 = vpack.c.bf16 %v21962_v17, %v21963_v62  ;;  %v21965_v48 = vld [vmem:[#allocation375_spill] sm:$0xff]  ;;  %v21978_v9 = vld [vmem:[#allocation381_spill] sm:$0xff]  ;;  %v21985_v62 = vld [vmem:[#allocation382_spill] sm:$0xff] }
 0x8af   : > { %9813 = vmatprep.subr.bf16.mxu0 %v21946_v56  ;;  %v21967_v60 = vpack.c.bf16 %v21965_v48, %v21966_v57  ;;  %v21968_v56 = vld [vmem:[#allocation74_spill] sm:$0xff]  ;;  %v21981_v31 = vld [vmem:[#allocation385_spill] sm:$0xff]  ;;  %v21984_v17 = vld [vmem:[#allocation383_spill] sm:$0xff] }
 0x8b0   : > { %9843 = vmatpush3.bf16.msra.mxu1 %v21949_v33  ;;  %v21970_v6 = vpack.c.bf16 %v21968_v56, %v21969_v2  ;;  %v21971_v33 = vld [vmem:[#allocation377_spill] sm:$0xff]  ;;  %v21994_v57 = vld [vmem:[#allocation392_spill] sm:$0xff]  ;;  %v21996_v56 = vld [vmem:[#allocation391_spill] sm:$0xff] }
 0x8b1   : > { %9845 = vmatprep.subr.bf16.mxu1 %v21952_v3  ;;  %v21973_v19 = vpack.c.bf16 %v21971_v33, %v21972_v41  ;;  %v21974_v3 = vld [vmem:[#allocation379_spill] sm:$0xff]  ;;  %v21993_v48 = vld [vmem:[#allocation393_spill] sm:$0xff]  ;;  %v21997_v2 = vld [vmem:[#allocation390_spill] sm:$0xff] }
 0x8b2   : > { %9815 = vmatpush3.bf16.msra.mxu0 %v21955_v8  ;;  %v21976_v40 = vpack.c.bf16 %v21974_v3, %v21975_v49  ;;  %v21977_v8 = vld [vmem:[#allocation5_spill] sm:$0xff]  ;;  %v21999_v33 = vld [vmem:[#allocation395_spill] sm:$0xff]  ;;  %v22000_v41 = vld [vmem:[#allocation394_spill] sm:$0xff] }
 0x8b3   : > { %9817 = vmatprep.subr.bf16.mxu0 %v21958_v11  ;;  %v21980_v11 = vpack.c.bf16 %v21978_v9, %v21979_v58  ;;  %v22002_v3 = vld [vmem:[#allocation397_spill] sm:$0xff]  ;;  %v22003_v49 = vld [vmem:[#allocation396_spill] sm:$0xff] }
 0x8b4   : > { %9847 = vmatpush3.bf16.msra.mxu1 %v21961_v23  ;;  %v21983_v23 = vpack.c.bf16 %v21981_v31, %v21982_v30  ;;  %v22005_v9 = vld [vmem:[#allocation401_spill] sm:$0xff]  ;;  %v22006_v58 = vld [vmem:[#allocation400_spill] sm:$0xff]  ;;  %v22008_v31 = vld [vmem:[#allocation399_spill] sm:$0xff] }
 0x8b5   : > { %9849 = vmatprep.subr.bf16.mxu1 %v21964_v0  ;;  %v22009_v30 = vld [vmem:[#allocation398_spill] sm:$0xff] }
 0x8b6   : > { %9819 = vmatpush3.bf16.msra.mxu0 %v21967_v60  ;;  %v21995_v60 = vpack.c.bf16 %v21993_v48, %v21994_v57  ;;  %v22020_v48 = vld [vmem:[#allocation407_spill] sm:$0xff]  ;;  %v22021_v57 = vld [vmem:[#allocation406_spill] sm:$0xff] }
 0x8b7   : > { %9853 = vmatprep.subr.bf16.mxu0 %v21970_v6  ;;  %v21998_v6 = vpack.c.bf16 %v21996_v56, %v21997_v2  ;;  %v22023_v56 = vld [vmem:[#allocation411_spill] sm:$0xff]  ;;  %v22024_v2 = vld [vmem:[#allocation410_spill] sm:$0xff] }
 0x8b8   : > { %9851 = vmatpush3.bf16.msra.mxu1 %v21973_v19  ;;  %v22001_v19 = vpack.c.bf16 %v21999_v33, %v22000_v41  ;;  %v22026_v33 = vld [vmem:[#allocation413_spill] sm:$0xff]  ;;  %v22027_v41 = vld [vmem:[#allocation412_spill] sm:$0xff] }
 0x8b9   : > { %9885 = vmatprep.subr.bf16.mxu1 %v21976_v40  ;;  %3446 = vmatmul.mubr.f32.vlgmr.msra.gmra.mrb[64].mxu0 %v10927_v34  ;;  %v21986_v34 = vpack.c.bf16 %v21984_v17, %v21985_v62  ;;  %v22004_v40 = vpack.c.bf16 %v22002_v3, %v22003_v49  ;;  %v22011_v17 = vld [vmem:[#allocation403_spill] sm:$0xff]  ;;  %v22012_v62 = vld [vmem:[#allocation402_spill] sm:$0xff]  ;;  %v22029_v3 = vld [vmem:[#allocation417_spill] sm:$0xff] }
 0x8ba   : > { %3450 = vmatprep.mubr.f32.mxu0 %v10937_v50  ;;  %v21988_v50 = vld [vmem:[#allocation386_spill] sm:$0xff]  ;;  %v22030_v49 = vld [vmem:[#allocation416_spill] sm:$0xff] }
 0x8bb   : > { %3521 = vmatmul.mubr.f32.vlgmr.msra.gmra.mrb[80].mxu1 %v10931_v4  ;;  %v21987_v4 = vld [vmem:[#allocation387_spill] sm:$0xff] }
 0x8bc   : > { %3525 = vmatprep.mubr.f32.mxu1 %v10941_v12  ;;  %v21990_v12 = vld [vmem:[#allocation389_spill] sm:$0xff] }
 0x8bd   : > { %3451 = vmatmul.mubr.f32.gmra.mrb[66].mxu0 %v10935_v28  ;;  %v21989_v28 = vpack.c.bf16 %v21987_v4, %v21988_v50  ;;  %v22014_v4 = vld [vmem:[#allocation405_spill] sm:$0xff]  ;;  %v22015_v50 = vld [vmem:[#allocation404_spill] sm:$0xff] }
 0x8be   : > { %7804 = vmatprep.mubr.f32.mxu0 %v21977_v8 }
 0x8bf   : > { %3526 = vmatmul.mubr.f32.gmra.mrb[82].mxu1 %v10939_v5  ;;  %9855 = vmatpush3.bf16.xpose.msra.mxu0 %v21980_v11  ;;  %v21991_v5 = vld [vmem:[#allocation388_spill] sm:$0xff]  ;;  %v22007_v11 = vpack.c.bf16 %v22005_v9, %v22006_v58  ;;  %v22032_v9 = vld [vmem:[#allocation415_spill] sm:$0xff]  ;;  %v22033_v58 = vld [vmem:[#allocation414_spill] sm:$0xff] }
 0x8c0   : > { %7840 = vmatprep.mubr.f32.mxu1 %v21977_v8  ;;  %9857 = vmatprep.subr.bf16.mxu0 %v21983_v23  ;;  %v21992_v0 = vpack.c.bf16 %v21990_v12, %v21991_v5  ;;  %v22010_v23 = vpack.c.bf16 %v22008_v31, %v22009_v30  ;;  %v22017_v12 = vld [vmem:[#allocation409_spill] sm:$0xff]  ;;  %v22018_v5 = vld [vmem:[#allocation408_spill] sm:$0xff]  ;;  %v22035_v31 = vld [vmem:[#allocation419_spill] sm:$0xff] }
 0x8c1   : > { %9887 = vmatpush3.bf16.xpose.msra.mxu1 %v21986_v34  ;;  %v22013_v34 = vpack.c.bf16 %v22011_v17, %v22012_v62  ;;  %v22036_v30 = vld [vmem:[#allocation418_spill] sm:$0xff]  ;;  %v22038_v17 = vld [vmem:[#allocation421_spill] sm:$0xff]  ;;  %v22039_v62 = vld [vmem:[#allocation420_spill] sm:$0xff] }
 0x8c2   : > { %9889 = vmatprep.subr.bf16.mxu1 %v21989_v28  ;;  %v22016_v28 = vpack.c.bf16 %v22014_v4, %v22015_v50  ;;  %v22041_v4 = vld [vmem:[#allocation425_spill] sm:$0xff]  ;;  %v22042_v50 = vld [vmem:[#allocation424_spill] sm:$0xff] }
 0x8c7   : > { %9859 = vmatpush3.bf16.xpose.msra.mxu0 %v21992_v0  ;;  %v22019_v0 = vpack.c.bf16 %v22017_v12, %v22018_v5  ;;  %v22044_v12 = vld [vmem:[#allocation423_spill] sm:$0xff]  ;;  %v22045_v5 = vld [vmem:[#allocation422_spill] sm:$0xff] }
 0x8c8   : > { %9861 = vmatprep.subr.bf16.mxu0 %v21995_v60  ;;  %v22022_v60 = vpack.c.bf16 %v22020_v48, %v22021_v57  ;;  %v22047_v48 = vld [vmem:[#allocation427_spill] sm:$0xff]  ;;  %v22048_v57 = vld [vmem:[#allocation426_spill] sm:$0xff] }
 0x8c9   : > { %9891 = vmatpush3.bf16.xpose.msra.mxu1 %v21998_v6  ;;  %v22025_v6 = vpack.c.bf16 %v22023_v56, %v22024_v2  ;;  %v22050_v56 = vld [vmem:[#allocation429_spill] sm:$0xff]  ;;  %v22051_v2 = vld [vmem:[#allocation428_spill] sm:$0xff] }
 0x8ca   : > { %9893 = vmatprep.subr.bf16.mxu1 %v22001_v19  ;;  %v22028_v19 = vpack.c.bf16 %v22026_v33, %v22027_v41  ;;  %v22053_v33 = vld [vmem:[#allocation433_spill] sm:$0xff]  ;;  %v22054_v41 = vld [vmem:[#allocation432_spill] sm:$0xff] }
 0x8cf   : > { %9863 = vmatpush3.bf16.xpose.msra.mxu0 %v22004_v40  ;;  %v22031_v40 = vpack.c.bf16 %v22029_v3, %v22030_v49  ;;  %v22056_v3 = vld [vmem:[#allocation431_spill] sm:$0xff]  ;;  %v22057_v49 = vld [vmem:[#allocation430_spill] sm:$0xff] }
 0x8d0   : > { %9865 = vmatprep.subr.bf16.mxu0 %v22007_v11  ;;  %v22034_v11 = vpack.c.bf16 %v22032_v9, %v22033_v58  ;;  %v22059_v9 = vld [vmem:[#allocation435_spill] sm:$0xff]  ;;  %v22060_v58 = vld [vmem:[#allocation434_spill] sm:$0xff] }
 0x8d1   : > { %9895 = vmatpush3.bf16.xpose.msra.mxu1 %v22010_v23  ;;  %v22037_v23 = vpack.c.bf16 %v22035_v31, %v22036_v30  ;;  %v22062_v31 = vld [vmem:[#allocation437_spill] sm:$0xff]  ;;  %v22063_v30 = vld [vmem:[#allocation436_spill] sm:$0xff] }
 0x8d2   : > { %9897 = vmatprep.subr.bf16.mxu1 %v22013_v34  ;;  %v22040_v34 = vpack.c.bf16 %v22038_v17, %v22039_v62  ;;  %v22065_v17 = vld [vmem:[#allocation439_spill] sm:$0xff]  ;;  %v22066_v62 = vld [vmem:[#allocation438_spill] sm:$0xff] }
 0x8d7   : > { %9867 = vmatpush3.bf16.xpose.msra.mxu0 %v22016_v28  ;;  %v22043_v28 = vpack.c.bf16 %v22041_v4, %v22042_v50  ;;  %v22068_v4 = vld [vmem:[#allocation73_spill] sm:$0xff]  ;;  %v22070_v50 = vld [vmem:[#allocation66_spill] sm:$0xff] }
 0x8d8   : > { %9869 = vmatprep.subr.bf16.mxu0 %v22019_v0  ;;  %v22046_v0 = vpack.c.bf16 %v22044_v12, %v22045_v5  ;;  %v22072_v12 = vld [vmem:[#allocation441_spill] sm:$0xff]  ;;  %v22073_v5 = vld [vmem:[#allocation440_spill] sm:$0xff] }
 0x8d9   : > { %9899 = vmatpush3.bf16.xpose.msra.mxu1 %v22022_v60  ;;  %v22049_v60 = vpack.c.bf16 %v22047_v48, %v22048_v57 }
 0x8da   : > { %9901 = vmatprep.subr.bf16.mxu1 %v22025_v6  ;;  %v22052_v6 = vpack.c.bf16 %v22050_v56, %v22051_v2 }
 0x8df   : > { %9871 = vmatpush3.bf16.xpose.msra.mxu0 %v22028_v19  ;;  %v22055_v19 = vpack.c.bf16 %v22053_v33, %v22054_v41 }
 0x8e0   : > { %9873 = vmatprep.subr.bf16.mxu0 %v22031_v40  ;;  %v22058_v40 = vpack.c.bf16 %v22056_v3, %v22057_v49 }
 0x8e1   : > { %9903 = vmatpush3.bf16.xpose.msra.mxu1 %v22034_v11  ;;  %v22061_v11 = vpack.c.bf16 %v22059_v9, %v22060_v58 }
 0x8e2   : > { %9905 = vmatprep.subr.bf16.mxu1 %v22037_v23  ;;  %v22064_v23 = vpack.c.bf16 %v22062_v31, %v22063_v30 }
 0x8e7   : > { %9875 = vmatpush3.bf16.xpose.msra.mxu0 %v22040_v34  ;;  %v22067_v34 = vpack.c.bf16 %v22065_v17, %v22066_v62 }
 0x8e8   : > { %9877 = vmatprep.subr.bf16.mxu0 %v22043_v28 }
 0x8e9   : > { %9907 = vmatpush3.bf16.xpose.msra.mxu1 %v22046_v0  ;;  %v22074_v0 = vpack.c.bf16 %v22072_v12, %v22073_v5 }
 0x8ea   : > { %9909 = vmatprep.subr.bf16.mxu1 %v22049_v60 }
 0x8ef   : > { %9879 = vmatpush3.bf16.xpose.msra.mxu0 %v22052_v6 }
 0x8f0   : > { %9881 = vmatprep.subr.bf16.mxu0 %v22055_v19 }
 0x8f1   : > { %9911 = vmatpush3.bf16.xpose.msra.mxu1 %v22058_v40 }
 0x8f2   : > { %9913 = vmatprep.subr.bf16.mxu1 %v22061_v11 }
 0x8f7   : > { %9883 = vmatpush3.bf16.xpose.msra.mxu0 %v22064_v23 }
 0x8f8   : > { %9917 = vmatprep.subr.bf16.mxu0 %v21641_v21 }
 0x8f9   : > { %9915 = vmatpush3.bf16.xpose.msra.mxu1 %v22067_v34 }
 0x8fa   : > { %9949 = vmatprep.subr.bf16.mxu1 %v21645_v44 }
 0x8fe   : > { %7805 = vmatmul.mubr.f32.vlgmr.msra.gmra.mrb[68].mxu0 %v21977_v8 }
 0x8ff   : > { %7806 = vmatprep.mubr.f32.mxu0 %v22068_v4  ;;  %9919 = vmatpush3.bf16.msra.mxu0 %v21647_v26 }
 0x900   : > { %7841 = vmatmul.mubr.f32.vlgmr.msra.gmra.mrb[84].mxu1 %v21977_v8  ;;  %9921 = vmatprep.subr.bf16.mxu0 %v21648_v63  ;;  %v22069_v8 = vld [vmem:[#allocation65_spill] sm:$0xff] }
 0x901   : > { %7842 = vmatprep.mubr.f32.mxu1 %v22068_v4  ;;  %9951 = vmatpush3.bf16.msra.mxu1 %v21649_v46  ;;  %v22071_v28 = vpack.c.bf16 %v22069_v8, %v22070_v50 }
 0x902   : > { %7807 = vmatmul.mubr.f32.gmra.mrb[70].mxu0 %v22068_v4  ;;  %9953 = vmatprep.subr.bf16.mxu1 %v21650_v55 }
 0x903   : > { %9923 = vmatpush3.bf16.msra.mxu0 %v21651_v53 }
 0x904   : > { %7843 = vmatmul.mubr.f32.gmra.mrb[86].mxu1 %v22068_v4  ;;  %9925 = vmatprep.subr.bf16.mxu0 %v21652_v36 }
 0x905   : > { %9955 = vmatpush3.bf16.msra.mxu1 %v21653_v45 }
 0x906   : > { %9957 = vmatprep.subr.bf16.mxu1 %v21654_v15 }
 0x907   : > { %9927 = vmatpush3.bf16.msra.mxu0 %v21655_v51 }
 0x908   : > { %9929 = vmatprep.subr.bf16.mxu0 %v21656_v25 }
 0x909   : > { %9959 = vmatpush3.bf16.msra.mxu1 %v21657_v47 }
 0x90a   : > { %9961 = vmatprep.subr.bf16.mxu1 %v21658_v7 }
 0x90b   : > { %9931 = vmatpush3.bf16.msra.mxu0 %v21659_v59 }
 0x90c   : > { %9933 = vmatprep.subr.bf16.mxu0 %v21660_v32 }
 0x90d   : > { %9963 = vmatpush3.bf16.msra.mxu1 %v21661_v16 }
 0x90e   : > { %9965 = vmatprep.subr.bf16.mxu1 %v21662_v24 }
 0x90f   : > { %9935 = vmatpush3.bf16.msra.mxu0 %v21663_v52 }
 0x910   : > { %9937 = vmatprep.subr.bf16.mxu0 %v21664_v1 }
 0x911   : > { %9967 = vmatpush3.bf16.msra.mxu1 %v21665_v22 }
 0x912   : > { %9969 = vmatprep.subr.bf16.mxu1 %v21666_v27 }
 0x913   : > { %9939 = vmatpush3.bf16.msra.mxu0 %v21667_v14 }
 0x914   : > { %9941 = vmatprep.subr.bf16.mxu0 %v21668_v29 }
 0x915   : > { %9971 = vmatpush3.bf16.msra.mxu1 %v21669_v13 }
 0x916   : > { %9973 = vmatprep.subr.bf16.mxu1 %v21670_v10 }
 0x917   : > { %9943 = vmatpush3.bf16.msra.mxu0 %v21671_v37 }
 0x918   : > { %9945 = vmatprep.subr.bf16.mxu0 %v21672_v18 }
 0x919   : > { %9975 = vmatpush3.bf16.msra.mxu1 %v21673_v20 }
 0x91a   : > { %9977 = vmatprep.subr.bf16.mxu1 %v21674_v43 }
 0x91b   : > { %9947 = vmatpush3.bf16.msra.mxu0 %v21675_v38 }
 0x91c   : > { %9981 = vmatprep.subr.bf16.mxu0 %v22071_v28 }
 0x91d   : > { %9979 = vmatpush3.bf16.msra.mxu1 %v21679_v42 }
 0x91e   : > { %10013 = vmatprep.subr.bf16.mxu1 %v22074_v0 }
 0x96c   : > { %v7652_v48 = vpop.f32.mrb[60].mxu0 }
 0x96d   : > { %v7653_v57 = vpop.f32.mrb[61].mxu0 }
 0x96e   : > { %v7690_v60 = vpop.f32.mrb[76].mxu1  ;;  %v7654_v56 = vadd.f32 %v7653_v57, %v7652_v48 }
 0x96f   : > { %v7691_v2 = vpop.f32.mrb[77].mxu1 }
 0x970   : > { %v7692_v6 = vadd.f32 %v7691_v2, %v7690_v60  ;;  %v7655_v33 = vpop.f32.mrb[62].mxu0 }
 0x971   : > { %v7656_v41 = vpop.f32.mrb[63].mxu0 }
 0x972   : > { %v18041_v19 = vadd.f32 %v7692_v6, %v7654_v56  ;;  %v7693_v3 = vpop.f32.mrb[78].mxu1  ;;  %v7657_v49 = vadd.f32 %v7656_v41, %v7655_v33 }
 0x973   : > { %v7694_v40 = vpop.f32.mrb[79].mxu1 }
 0x974   : > { %v7695_v9 = vadd.f32 %v7694_v40, %v7693_v3 }
 0x976   : > { %v18043_v58 = vadd.f32 %v7695_v9, %v7657_v49 }
 0x98c   : > { %v7728_v11 = vpop.f32.mrb[64].mxu0 }
 0x98d   : > { %v7729_v31 = vpop.f32.mrb[65].mxu0 }
 0x98e   : > { %v7766_v30 = vpop.f32.mrb[80].mxu1  ;;  %v7730_v23 = vadd.f32 %v7729_v31, %v7728_v11 }
 0x98f   : > { %v7767_v17 = vpop.f32.mrb[81].mxu1 }
 0x990   : > { %v7768_v62 = vadd.f32 %v7767_v17, %v7766_v30  ;;  %v7731_v34 = vpop.f32.mrb[66].mxu0 }
 0x991   : > { %v7732_v4 = vpop.f32.mrb[67].mxu0 }
 0x992   : > { %v18045_v8 = vadd.f32 %v7768_v62, %v7730_v23  ;;  %v7769_v50 = vpop.f32.mrb[82].mxu1  ;;  %v7733_v28 = vadd.f32 %v7732_v4, %v7731_v34 }
 0x993   : > { %v7770_v12 = vpop.f32.mrb[83].mxu1 }
 0x994   : > { %v7771_v5 = vadd.f32 %v7770_v12, %v7769_v50 }
 0x996   : > { %v18047_v0 = vadd.f32 %v7771_v5, %v7733_v28 }
 0x9d1   : > { %v3743_v48 = vpop.f32.mrb[68].mxu0 }
 0x9d2   : > { %v3745_v57 = vpop.f32.mrb[69].mxu0 }
 0x9d3   : > { %v3820_v60 = vpop.f32.mrb[84].mxu1 }
 0x9d4   : > { %v3831_v56 = vmax.f32 %v3743_v48, %v3820_v60  ;;  %v3822_v2 = vpop.f32.mrb[85].mxu1 }
 0x9d5   : > { %v3832_v6 = vmax.f32 %v3745_v57, %v3822_v2  ;;  %v3749_v33 = vpop.f32.mrb[70].mxu0 }
 0x9d6   : > { %v3751_v41 = vpop.f32.mrb[71].mxu0 }
 0x9d7   : > { %v3826_v3 = vpop.f32.mrb[86].mxu1  ;;  %v3833_v49 = vmax.f32 %v3831_v56, %v3832_v6 }
 0x9d8   : > { %v3836_v40 = vmax.f32 %v3749_v33, %v3826_v3  ;;  %v3828_v9 = vpop.f32.mrb[87].mxu1 }
 0x9d9   : > { %v3837_v11 = vmax.f32 %v3751_v41, %v3828_v9  ;;  %3834 = vmax.xlane.f32.xlu0 %v3833_v49 }
 0x9db   : > { %v3838_v31 = vmax.f32 %v3836_v40, %v3837_v11 }
 0x9dd   : > { %3839 = vmax.xlane.f32.xlu1 %v3838_v31 }
 0xa66   : > { %v3835_v30 = vpop.xlane.xlu0 %3834 }
 0xa67   : > { %v3841_v23 = vsub.f32 %v3743_v48, %v3835_v30  ;;  %v3842_v17 = vsub.f32 %v3745_v57, %v3835_v30  ;;  %v3843_v62 = vsub.f32 %v3820_v60, %v3835_v30  ;;  %v3844_v34 = vsub.f32 %v3822_v2, %v3835_v30 }
 0xa68   : > { %v3531_v57 = vmax.f32 %v18041_v19, 1e-30  ;;  %v3532_v2 = vmax.f32 %v18043_v58, 1e-30  ;;  %v22078_v19 = vld [vmem:[#allocation447_spill] sm:$0xff]  ;;  %v22081_v58 = vld [vmem:[#allocation445_spill] sm:$0xff] }
 0xa69   : > { %v3849_v4 = vmul.f32 1.442695, %v3841_v23  ;;  %v3851_v50 = vmul.f32 1.442695, %v3842_v17  ;;  %v3853_v28 = vmul.f32 1.442695, %v3843_v62 }
 0xa6a   : > { %v3855_v12 = vmul.f32 1.442695, %v3844_v34  ;;  %v3840_v5 = vpop.xlane.xlu1 %3839  ;;  %v22079_v23 = vld [vmem:[#allocation446_spill] sm:$0xff]  ;;  %v22082_v34 = vld [vmem:[#allocation444_spill] sm:$0xff] }
 0xa6b   : > { %10946 = vpow2.f32 %v3849_v4  ;;  %v3845_v61 = vsub.f32 %v3749_v33, %v3840_v5  ;;  %v3846_v54 = vsub.f32 %v3751_v41, %v3840_v5  ;;  %v3847_v56 = vsub.f32 %v3826_v3, %v3840_v5 }
 0xa6c   : > { %10948 = vpow2.f32 %v3851_v50  ;;  %v3848_v6 = vsub.f32 %v3828_v9, %v3840_v5  ;;  %v22076_v9 = vld [vmem:[#allocation442_spill] sm:$0xff]  ;;  %v22080_v17 = vpack.c.bf16 %v22078_v19, %v22079_v23  ;;  %v22083_v4 = vpack.c.bf16 %v22081_v58, %v22082_v34  ;;  %v22097_v19 = vld [vmem:[#allocation456_spill] sm:$0xff]  ;;  %v22100_v58 = vld [vmem:[#allocation459_spill] sm:$0xff] }
 0xa6d   : > { %10950 = vpow2.f32 %v3853_v28  ;;  %v3857_v49 = vmul.f32 1.442695, %v3845_v61  ;;  %v3859_v40 = vmul.f32 1.442695, %v3846_v54  ;;  %v3861_v11 = vmul.f32 1.442695, %v3847_v56 }
 0xa6e   : > { %10952 = vpow2.f32 %v3855_v12  ;;  %v3863_v48 = vmul.f32 1.442695, %v3848_v6  ;;  %v22075_v54 = vld [vmem:[#allocation443_spill] sm:$0xff]  ;;  %v22084_v28 = vld [vmem:[#allocation449_spill] sm:$0xff]  ;;  %v22085_v12 = vld [vmem:[#allocation448_spill] sm:$0xff] }
 0xa6f   : > { %10954 = vpow2.f32 %v3857_v49  ;;  %v22077_v31 = vpack.c.bf16 %v22075_v54, %v22076_v9  ;;  %v22086_v5 = vpack.c.bf16 %v22084_v28, %v22085_v12  ;;  %v22087_v56 = vld [vmem:[#allocation451_spill] sm:$0xff]  ;;  %v22088_v6 = vld [vmem:[#allocation450_spill] sm:$0xff]  ;;  %v22094_v54 = vld [vmem:[#allocation452_spill] sm:$0xff] }
 0xa70   : > { %10956 = vpow2.f32 %v3859_v40  ;;  %v22089_v49 = vpack.c.bf16 %v22087_v56, %v22088_v6  ;;  %v22090_v40 = vld [vmem:[#allocation455_spill] sm:$0xff]  ;;  %v22101_v34 = vld [vmem:[#allocation458_spill] sm:$0xff]  ;;  %v22106_v6 = vld [vmem:[#allocation461_spill] sm:$0xff] }
 0xa71   : > { %10958 = vpow2.f32 %v3861_v11  ;;  %v22091_v11 = vld [vmem:[#allocation454_spill] sm:$0xff]  ;;  %v22103_v28 = vld [vmem:[#allocation463_spill] sm:$0xff] }
 0xa72   : > { %10960 = vpow2.f32 %v3863_v48  ;;  %v22092_v48 = vpack.c.bf16 %v22090_v40, %v22091_v11  ;;  %v22104_v12 = vld [vmem:[#allocation462_spill] sm:$0xff]  ;;  %v22109_v40 = vld [vmem:[#allocation465_spill] sm:$0xff]  ;;  %v22110_v11 = vld [vmem:[#allocation464_spill] sm:$0xff] }
 0xa73   : > { %10962 = vrcp.f32 %v3531_v57 }
 0xa74   : > { %10964 = vrcp.f32 %v3532_v2  ;;  %v22093_v2 = vld [vmem:[#allocation453_spill] sm:$0xff] }
 0xa75   : > { %v10947_v60 = vpop.eup %10946  ;;  %v22095_v9 = vpack.c.bf16 %v22093_v2, %v22094_v54  ;;  %v22116_v54 = vld [vmem:[#allocation471_spill] sm:$0xff] }
 0xa76   : > { %v10949_v33 = vpop.eup %10948 }
 0xa77   : > { %v10951_v41 = vpop.eup %10950  ;;  %3929 = vmatprep.mubr.f32.mxu0 %v10949_v33 }
 0xa78   : > { %v10953_v3 = vpop.eup %10952  ;;  %3930 = vmatmul.mubr.f32.vlgmr.msra.gmra.mrb[72].mxu0 %v10947_v60 }
 0xa79   : > { %v10955_v61 = vpop.eup %10954  ;;  %4004 = vmatprep.mubr.f32.mxu1 %v10953_v3  ;;  %9983 = vmatpush3.bf16.msra.mxu0 %v22077_v31  ;;  %v22096_v31 = vld [vmem:[#allocation457_spill] sm:$0xff] }
 0xa7a   : > { %v10957_v30 = vpop.eup %10956  ;;  %4005 = vmatmul.mubr.f32.vlgmr.msra.gmra.mrb[88].mxu1 %v10951_v41  ;;  %9985 = vmatprep.subr.bf16.mxu0 %v22080_v17  ;;  %v22098_v23 = vpack.c.bf16 %v22096_v31, %v22097_v19  ;;  %v22119_v19 = vld [vmem:[#allocation469_spill] sm:$0xff] }
 0xa7b   : > { %v10959_v62 = vpop.eup %10958  ;;  %10015 = vmatpush3.bf16.msra.mxu1 %v22083_v4  ;;  %3934 = vmatprep.mubr.f32.mxu0 %v10957_v30  ;;  %v22102_v4 = vpack.c.bf16 %v22100_v58, %v22101_v34  ;;  %v22122_v34 = vld [vmem:[#allocation473_spill] sm:$0xff] }
 0xa7c   : > { %v10961_v50 = vpop.eup %10960  ;;  %10017 = vmatprep.subr.bf16.mxu1 %v22086_v5  ;;  %3935 = vmatmul.mubr.f32.gmra.mrb[74].mxu0 %v10955_v61  ;;  %v22105_v5 = vpack.c.bf16 %v22103_v28, %v22104_v12  ;;  %v22125_v12 = vld [vmem:[#allocation475_spill] sm:$0xff] }
 0xa7d   : > { %4009 = vmatprep.mubr.f32.mxu1 %v10961_v50  ;;  %9987 = vmatpush3.bf16.msra.mxu0 %v22089_v49  ;;  %v10963_v57 = vpop.eup %10962  ;;  %v22107_v49 = vld [vmem:[#allocation460_spill] sm:$0xff] }
 0xa7e   : > { %4010 = vmatmul.mubr.f32.gmra.mrb[90].mxu1 %v10959_v62  ;;  %9989 = vmatprep.subr.bf16.mxu0 %v22092_v48  ;;  %v18076_v17 = vmul.f32 %v10963_v57, %v18045_v8  ;;  %v10965_v56 = vpop.eup %10964  ;;  %v22111_v48 = vpack.c.bf16 %v22109_v40, %v22110_v11  ;;  %v22114_v57 = vld [vmem:[#allocation466_spill] sm:$0xff]  ;;  %v22132_v40 = vld [vmem:[#allocation476_spill] sm:$0xff] }
 0xa7f   : > { %10019 = vmatpush3.bf16.msra.mxu1 %v22095_v9  ;;  %4079 = vmatprep.mubr.f32.mxu0 %v10949_v33  ;;  %v22108_v33 = vpack.c.bf16 %v22106_v6, %v22107_v49  ;;  %v18091_v8 = vmul.f32 %v10965_v56, %v18047_v0  ;;  %v22117_v9 = vld [vmem:[#allocation470_spill] sm:$0xff]  ;;  %v22128_v56 = vld [vmem:[#allocation479_spill] sm:$0xff] }
 0xa80   : > { %10021 = vmatprep.subr.bf16.mxu1 %v22098_v23  ;;  %4154 = vmatprep.mubr.f32.mxu1 %v10953_v3  ;;  %22099 = vst [vmem:[#allocation90_spill] sm:$0xff] %v18076_v17  ;;  %v22113_v3 = vld [vmem:[#allocation467_spill] sm:$0xff]  ;;  %v22118_v31 = vpack.c.bf16 %v22116_v54, %v22117_v9  ;;  %v22120_v23 = vld [vmem:[#allocation468_spill] sm:$0xff]  ;;  %v22129_v6 = vld [vmem:[#allocation478_spill] sm:$0xff] }
 0xa81   : > { %9991 = vmatpush3.bf16.msra.mxu0 %v22102_v4  ;;  %22112 = vst [vmem:[#allocation89_spill] sm:$0xff] %v18091_v8  ;;  %v22115_v2 = vpack.c.bf16 %v22113_v3, %v22114_v57  ;;  %v22121_v58 = vpack.c.bf16 %v22119_v19, %v22120_v23  ;;  %v22123_v4 = vld [vmem:[#allocation472_spill] sm:$0xff]  ;;  %v22130_v49 = vpack.c.bf16 %v22128_v56, %v22129_v6  ;;  %v22138_v54 = vld [vmem:[#allocation482_spill] sm:$0xff] }
 0xa82   : > { %9993 = vmatprep.subr.bf16.mxu0 %v22105_v5  ;;  %v22124_v28 = vpack.c.bf16 %v22122_v34, %v22123_v4  ;;  %v22126_v5 = vld [vmem:[#allocation474_spill] sm:$0xff]  ;;  %v22135_v3 = vld [vmem:[#allocation480_spill] sm:$0xff] }
 0xa83   : > { %10023 = vmatpush3.bf16.msra.mxu1 %v22108_v33  ;;  %v22127_v0 = vpack.c.bf16 %v22125_v12, %v22126_v5  ;;  %v22131_v33 = vld [vmem:[#allocation477_spill] sm:$0xff]  ;;  %v22141_v19 = vld [vmem:[#allocation486_spill] sm:$0xff]  ;;  %v22144_v34 = vld [vmem:[#allocation484_spill] sm:$0xff] }
 0xa84   : > { %10025 = vmatprep.subr.bf16.mxu1 %v22111_v48  ;;  %v22133_v11 = vpack.c.bf16 %v22131_v33, %v22132_v40  ;;  %v22134_v48 = vld [vmem:[#allocation481_spill] sm:$0xff]  ;;  %v22147_v12 = vld [vmem:[#allocation488_spill] sm:$0xff]  ;;  %v22150_v56 = vld [vmem:[#allocation490_spill] sm:$0xff] }
 0xa85   : > { %9995 = vmatpush3.bf16.msra.mxu0 %v22115_v2  ;;  %v22136_v57 = vpack.c.bf16 %v22134_v48, %v22135_v3  ;;  %v22137_v2 = vld [vmem:[#allocation483_spill] sm:$0xff]  ;;  %v22153_v33 = vld [vmem:[#allocation494_spill] sm:$0xff]  ;;  %v22156_v48 = vld [vmem:[#allocation492_spill] sm:$0xff] }
 0xa86   : > { %9997 = vmatprep.subr.bf16.mxu0 %v22118_v31  ;;  %v22139_v9 = vpack.c.bf16 %v22137_v2, %v22138_v54  ;;  %v22140_v31 = vld [vmem:[#allocation487_spill] sm:$0xff]  ;;  %v22159_v2 = vld [vmem:[#allocation496_spill] sm:$0xff] }
 0xa87   : > { %10027 = vmatpush3.bf16.msra.mxu1 %v22121_v58  ;;  %v22142_v23 = vpack.c.bf16 %v22140_v31, %v22141_v19  ;;  %v22143_v58 = vld [vmem:[#allocation485_spill] sm:$0xff]  ;;  %v22162_v31 = vld [vmem:[#allocation498_spill] sm:$0xff] }
 0xa88   : > { %10029 = vmatprep.subr.bf16.mxu1 %v22124_v28  ;;  %v22145_v4 = vpack.c.bf16 %v22143_v58, %v22144_v34  ;;  %v22146_v28 = vld [vmem:[#allocation489_spill] sm:$0xff]  ;;  %v22165_v58 = vld [vmem:[#allocation83_spill] sm:$0xff] }
 0xa89   : > { %9999 = vmatpush3.bf16.msra.mxu0 %v22127_v0  ;;  %v22148_v5 = vpack.c.bf16 %v22146_v28, %v22147_v12  ;;  %v22149_v0 = vld [vmem:[#allocation491_spill] sm:$0xff]  ;;  %v22168_v28 = vld [vmem:[#allocation500_spill] sm:$0xff] }
 0xa8a   : > { %10001 = vmatprep.subr.bf16.mxu0 %v22130_v49  ;;  %v22151_v6 = vpack.c.bf16 %v22149_v0, %v22150_v56  ;;  %v22152_v49 = vld [vmem:[#allocation495_spill] sm:$0xff]  ;;  %v22171_v0 = vld [vmem:[#allocation502_spill] sm:$0xff] }
 0xa8b   : > { %10031 = vmatpush3.bf16.msra.mxu1 %v22133_v11  ;;  %v22154_v40 = vpack.c.bf16 %v22152_v49, %v22153_v33  ;;  %v22155_v11 = vld [vmem:[#allocation493_spill] sm:$0xff]  ;;  %v22175_v33 = vld [vmem:[#allocation504_spill] sm:$0xff] }
 0xa8c   : > { %10033 = vmatprep.subr.bf16.mxu1 %v22136_v57  ;;  %v22157_v3 = vpack.c.bf16 %v22155_v11, %v22156_v48  ;;  %v22158_v57 = vld [vmem:[#allocation497_spill] sm:$0xff]  ;;  %v22178_v48 = vld [vmem:[#allocation508_spill] sm:$0xff] }
 0xa8d   : > { %10003 = vmatpush3.bf16.msra.mxu0 %v22139_v9  ;;  %v22160_v54 = vpack.c.bf16 %v22158_v57, %v22159_v2  ;;  %v22161_v9 = vld [vmem:[#allocation499_spill] sm:$0xff]  ;;  %v22174_v49 = vld [vmem:[#allocation505_spill] sm:$0xff]  ;;  %v22181_v2 = vld [vmem:[#allocation506_spill] sm:$0xff] }
 0xa8e   : > { %10005 = vmatprep.subr.bf16.mxu0 %v22142_v23  ;;  %v22163_v19 = vpack.c.bf16 %v22161_v9, %v22162_v31  ;;  %v22164_v23 = vld [vmem:[#allocation85_spill] sm:$0xff]  ;;  %v22180_v57 = vld [vmem:[#allocation507_spill] sm:$0xff]  ;;  %v22190_v31 = vld [vmem:[#allocation516_spill] sm:$0xff] }
 0xa8f   : > { %10035 = vmatpush3.bf16.msra.mxu1 %v22145_v4  ;;  %v22166_v34 = vpack.c.bf16 %v22164_v23, %v22165_v58  ;;  %v22167_v4 = vld [vmem:[#allocation501_spill] sm:$0xff]  ;;  %v22192_v23 = vld [vmem:[#allocation515_spill] sm:$0xff]  ;;  %v22193_v58 = vld [vmem:[#allocation514_spill] sm:$0xff] }
 0xa90   : > { %10037 = vmatprep.subr.bf16.mxu1 %v22148_v5  ;;  %v22169_v12 = vpack.c.bf16 %v22167_v4, %v22168_v28  ;;  %v22170_v5 = vld [vmem:[#allocation503_spill] sm:$0xff]  ;;  %v22177_v11 = vld [vmem:[#allocation509_spill] sm:$0xff]  ;;  %v22196_v28 = vld [vmem:[#allocation518_spill] sm:$0xff] }
 0xa91   : > { %10007 = vmatpush3.bf16.msra.mxu0 %v22151_v6  ;;  %v22172_v56 = vpack.c.bf16 %v22170_v5, %v22171_v0  ;;  %v22173_v6 = vld [vmem:[#allocation80_spill] sm:$0xff]  ;;  %v22189_v9 = vld [vmem:[#allocation517_spill] sm:$0xff]  ;;  %v22195_v4 = vld [vmem:[#allocation519_spill] sm:$0xff] }
 0xa92   : > { %10009 = vmatprep.subr.bf16.mxu0 %v22154_v40  ;;  %v22176_v40 = vpack.c.bf16 %v22174_v49, %v22175_v33  ;;  %v22198_v5 = vld [vmem:[#allocation521_spill] sm:$0xff]  ;;  %v22199_v0 = vld [vmem:[#allocation520_spill] sm:$0xff] }
 0xa93   : > { %10039 = vmatpush3.bf16.msra.mxu1 %v22157_v3  ;;  %v22179_v3 = vpack.c.bf16 %v22177_v11, %v22178_v48  ;;  %v22201_v49 = vld [vmem:[#allocation525_spill] sm:$0xff]  ;;  %v22202_v33 = vld [vmem:[#allocation524_spill] sm:$0xff]  ;;  %v22204_v11 = vld [vmem:[#allocation523_spill] sm:$0xff] }
 0xa94   : > { %10041 = vmatprep.subr.bf16.mxu1 %v22160_v54  ;;  %v22205_v48 = vld [vmem:[#allocation522_spill] sm:$0xff] }
 0xa95   : > { %10011 = vmatpush3.bf16.msra.mxu0 %v22163_v19  ;;  %v22191_v19 = vpack.c.bf16 %v22189_v9, %v22190_v31  ;;  %v22216_v9 = vld [vmem:[#allocation531_spill] sm:$0xff]  ;;  %v22217_v31 = vld [vmem:[#allocation530_spill] sm:$0xff] }
 0xa96   : > { %10045 = vmatprep.subr.bf16.mxu0 %v22166_v34  ;;  %v22194_v34 = vpack.c.bf16 %v22192_v23, %v22193_v58  ;;  %v22219_v23 = vld [vmem:[#allocation535_spill] sm:$0xff]  ;;  %v22220_v58 = vld [vmem:[#allocation534_spill] sm:$0xff] }
 0xa97   : > { %10043 = vmatpush3.bf16.msra.mxu1 %v22169_v12  ;;  %v22197_v12 = vpack.c.bf16 %v22195_v4, %v22196_v28  ;;  %v22222_v4 = vld [vmem:[#allocation537_spill] sm:$0xff]  ;;  %v22223_v28 = vld [vmem:[#allocation536_spill] sm:$0xff] }
 0xa98   : > { %10077 = vmatprep.subr.bf16.mxu1 %v22172_v56  ;;  %4080 = vmatmul.mubr.f32.vlgmr.msra.gmra.mrb[76].mxu0 %v10947_v60  ;;  %v22182_v60 = vpack.c.bf16 %v22180_v57, %v22181_v2  ;;  %v22200_v56 = vpack.c.bf16 %v22198_v5, %v22199_v0  ;;  %v22207_v57 = vld [vmem:[#allocation527_spill] sm:$0xff]  ;;  %v22208_v2 = vld [vmem:[#allocation526_spill] sm:$0xff]  ;;  %v22225_v5 = vld [vmem:[#allocation541_spill] sm:$0xff] }
 0xa99   : > { %4084 = vmatprep.mubr.f32.mxu0 %v10957_v30  ;;  %v22184_v30 = vld [vmem:[#allocation510_spill] sm:$0xff]  ;;  %v22226_v0 = vld [vmem:[#allocation540_spill] sm:$0xff] }
 0xa9a   : > { %4155 = vmatmul.mubr.f32.vlgmr.msra.gmra.mrb[92].mxu1 %v10951_v41  ;;  %v22183_v41 = vld [vmem:[#allocation511_spill] sm:$0xff] }
 0xa9b   : > { %4159 = vmatprep.mubr.f32.mxu1 %v10961_v50  ;;  %v22186_v50 = vld [vmem:[#allocation513_spill] sm:$0xff] }
 0xa9c   : > { %4085 = vmatmul.mubr.f32.gmra.mrb[78].mxu0 %v10955_v61  ;;  %v22185_v61 = vpack.c.bf16 %v22183_v41, %v22184_v30  ;;  %v22210_v41 = vld [vmem:[#allocation529_spill] sm:$0xff]  ;;  %v22211_v30 = vld [vmem:[#allocation528_spill] sm:$0xff] }
 0xa9d   : > { %8028 = vmatprep.mubr.f32.mxu0 %v22173_v6 }
 0xa9e   : > { %4160 = vmatmul.mubr.f32.gmra.mrb[94].mxu1 %v10959_v62  ;;  %10047 = vmatpush3.bf16.xpose.msra.mxu0 %v22176_v40  ;;  %v22187_v62 = vld [vmem:[#allocation512_spill] sm:$0xff]  ;;  %v22203_v40 = vpack.c.bf16 %v22201_v49, %v22202_v33  ;;  %v22228_v49 = vld [vmem:[#allocation539_spill] sm:$0xff]  ;;  %v22229_v33 = vld [vmem:[#allocation538_spill] sm:$0xff] }
 0xa9f   : > { %8064 = vmatprep.mubr.f32.mxu1 %v22173_v6  ;;  %10049 = vmatprep.subr.bf16.mxu0 %v22179_v3  ;;  %v22188_v54 = vpack.c.bf16 %v22186_v50, %v22187_v62  ;;  %v22206_v3 = vpack.c.bf16 %v22204_v11, %v22205_v48  ;;  %v22213_v50 = vld [vmem:[#allocation533_spill] sm:$0xff]  ;;  %v22214_v62 = vld [vmem:[#allocation532_spill] sm:$0xff]  ;;  %v22231_v11 = vld [vmem:[#allocation543_spill] sm:$0xff] }
 0xaa0   : > { %10079 = vmatpush3.bf16.xpose.msra.mxu1 %v22182_v60  ;;  %v22209_v60 = vpack.c.bf16 %v22207_v57, %v22208_v2  ;;  %v22232_v48 = vld [vmem:[#allocation542_spill] sm:$0xff]  ;;  %v22234_v57 = vld [vmem:[#allocation545_spill] sm:$0xff]  ;;  %v22235_v2 = vld [vmem:[#allocation544_spill] sm:$0xff] }
 0xaa1   : > { %10081 = vmatprep.subr.bf16.mxu1 %v22185_v61  ;;  %v22212_v61 = vpack.c.bf16 %v22210_v41, %v22211_v30  ;;  %v22237_v41 = vld [vmem:[#allocation549_spill] sm:$0xff]  ;;  %v22238_v30 = vld [vmem:[#allocation548_spill] sm:$0xff] }
 0xaa6   : > { %10051 = vmatpush3.bf16.xpose.msra.mxu0 %v22188_v54  ;;  %v22215_v54 = vpack.c.bf16 %v22213_v50, %v22214_v62  ;;  %v22240_v50 = vld [vmem:[#allocation547_spill] sm:$0xff]  ;;  %v22241_v62 = vld [vmem:[#allocation546_spill] sm:$0xff] }
 0xaa7   : > { %10053 = vmatprep.subr.bf16.mxu0 %v22191_v19  ;;  %v22218_v19 = vpack.c.bf16 %v22216_v9, %v22217_v31  ;;  %v22243_v9 = vld [vmem:[#allocation551_spill] sm:$0xff]  ;;  %v22244_v31 = vld [vmem:[#allocation550_spill] sm:$0xff] }
 0xaa8   : > { %10083 = vmatpush3.bf16.xpose.msra.mxu1 %v22194_v34  ;;  %v22221_v34 = vpack.c.bf16 %v22219_v23, %v22220_v58  ;;  %v22246_v23 = vld [vmem:[#allocation553_spill] sm:$0xff]  ;;  %v22247_v58 = vld [vmem:[#allocation552_spill] sm:$0xff] }
 0xaa9   : > { %10085 = vmatprep.subr.bf16.mxu1 %v22197_v12  ;;  %v22224_v12 = vpack.c.bf16 %v22222_v4, %v22223_v28  ;;  %v22249_v4 = vld [vmem:[#allocation557_spill] sm:$0xff]  ;;  %v22250_v28 = vld [vmem:[#allocation556_spill] sm:$0xff] }
 0xaae   : > { %10055 = vmatpush3.bf16.xpose.msra.mxu0 %v22200_v56  ;;  %v22227_v56 = vpack.c.bf16 %v22225_v5, %v22226_v0  ;;  %v22252_v5 = vld [vmem:[#allocation555_spill] sm:$0xff]  ;;  %v22253_v0 = vld [vmem:[#allocation554_spill] sm:$0xff] }
 0xaaf   : > { %10057 = vmatprep.subr.bf16.mxu0 %v22203_v40  ;;  %v22230_v40 = vpack.c.bf16 %v22228_v49, %v22229_v33  ;;  %v22255_v49 = vld [vmem:[#allocation559_spill] sm:$0xff]  ;;  %v22256_v33 = vld [vmem:[#allocation558_spill] sm:$0xff] }
 0xab0   : > { %10087 = vmatpush3.bf16.xpose.msra.mxu1 %v22206_v3  ;;  %v22233_v3 = vpack.c.bf16 %v22231_v11, %v22232_v48  ;;  %v22258_v11 = vld [vmem:[#allocation561_spill] sm:$0xff]  ;;  %v22259_v48 = vld [vmem:[#allocation560_spill] sm:$0xff] }
 0xab1   : > { %10089 = vmatprep.subr.bf16.mxu1 %v22209_v60  ;;  %v22236_v60 = vpack.c.bf16 %v22234_v57, %v22235_v2  ;;  %v22261_v57 = vld [vmem:[#allocation563_spill] sm:$0xff]  ;;  %v22262_v2 = vld [vmem:[#allocation562_spill] sm:$0xff] }
 0xab6   : > { %10059 = vmatpush3.bf16.xpose.msra.mxu0 %v22212_v61  ;;  %v22239_v61 = vpack.c.bf16 %v22237_v41, %v22238_v30  ;;  %v22264_v41 = vld [vmem:[#allocation84_spill] sm:$0xff]  ;;  %v22266_v30 = vld [vmem:[#allocation69_spill] sm:$0xff] }
 0xab7   : > { %10061 = vmatprep.subr.bf16.mxu0 %v22215_v54  ;;  %v22242_v54 = vpack.c.bf16 %v22240_v50, %v22241_v62  ;;  %v22268_v50 = vld [vmem:[#allocation565_spill] sm:$0xff]  ;;  %v22269_v62 = vld [vmem:[#allocation564_spill] sm:$0xff] }
 0xab8   : > { %10091 = vmatpush3.bf16.xpose.msra.mxu1 %v22218_v19  ;;  %v22245_v19 = vpack.c.bf16 %v22243_v9, %v22244_v31 }
 0xab9   : > { %10093 = vmatprep.subr.bf16.mxu1 %v22221_v34  ;;  %v22248_v34 = vpack.c.bf16 %v22246_v23, %v22247_v58 }
 0xabe   : > { %10063 = vmatpush3.bf16.xpose.msra.mxu0 %v22224_v12  ;;  %v22251_v12 = vpack.c.bf16 %v22249_v4, %v22250_v28 }
 0xabf   : > { %10065 = vmatprep.subr.bf16.mxu0 %v22227_v56  ;;  %v22254_v56 = vpack.c.bf16 %v22252_v5, %v22253_v0 }
 0xac0   : > { %10095 = vmatpush3.bf16.xpose.msra.mxu1 %v22230_v40  ;;  %v22257_v40 = vpack.c.bf16 %v22255_v49, %v22256_v33 }
 0xac1   : > { %10097 = vmatprep.subr.bf16.mxu1 %v22233_v3  ;;  %v22260_v3 = vpack.c.bf16 %v22258_v11, %v22259_v48 }
 0xac6   : > { %10067 = vmatpush3.bf16.xpose.msra.mxu0 %v22236_v60  ;;  %v22263_v60 = vpack.c.bf16 %v22261_v57, %v22262_v2 }
 0xac7   : > { %10069 = vmatprep.subr.bf16.mxu0 %v22239_v61 }
 0xac8   : > { %10099 = vmatpush3.bf16.xpose.msra.mxu1 %v22242_v54  ;;  %v22270_v54 = vpack.c.bf16 %v22268_v50, %v22269_v62 }
 0xac9   : > { %10101 = vmatprep.subr.bf16.mxu1 %v22245_v19 }
 0xace   : > { %10071 = vmatpush3.bf16.xpose.msra.mxu0 %v22248_v34 }
 0xacf   : > { %10073 = vmatprep.subr.bf16.mxu0 %v22251_v12 }
 0xad0   : > { %10103 = vmatpush3.bf16.xpose.msra.mxu1 %v22254_v56 }
 0xad1   : > { %10105 = vmatprep.subr.bf16.mxu1 %v22257_v40 }
 0xad6   : > { %10075 = vmatpush3.bf16.xpose.msra.mxu0 %v22260_v3 }
 0xad7   : > { %10109 = vmatprep.subr.bf16.mxu0 %v21641_v21 }
 0xad8   : > { %10107 = vmatpush3.bf16.xpose.msra.mxu1 %v22263_v60 }
 0xad9   : > { %10141 = vmatprep.subr.bf16.mxu1 %v21645_v44 }
 0xadd   : > { %8029 = vmatmul.mubr.f32.vlgmr.msra.gmra.mrb[80].mxu0 %v22173_v6 }
 0xade   : > { %8030 = vmatprep.mubr.f32.mxu0 %v22264_v41  ;;  %10111 = vmatpush3.bf16.msra.mxu0 %v21647_v26 }
 0xadf   : > { %8065 = vmatmul.mubr.f32.vlgmr.msra.gmra.mrb[96].mxu1 %v22173_v6  ;;  %10113 = vmatprep.subr.bf16.mxu0 %v21648_v63  ;;  %v22265_v6 = vld [vmem:[#allocation68_spill] sm:$0xff] }
 0xae0   : > { %8066 = vmatprep.mubr.f32.mxu1 %v22264_v41  ;;  %10143 = vmatpush3.bf16.msra.mxu1 %v21649_v46  ;;  %v22267_v61 = vpack.c.bf16 %v22265_v6, %v22266_v30 }
 0xae1   : > { %8031 = vmatmul.mubr.f32.gmra.mrb[82].mxu0 %v22264_v41  ;;  %10145 = vmatprep.subr.bf16.mxu1 %v21650_v55 }
 0xae2   : > { %10115 = vmatpush3.bf16.msra.mxu0 %v21651_v53 }
 0xae3   : > { %8067 = vmatmul.mubr.f32.gmra.mrb[98].mxu1 %v22264_v41  ;;  %10117 = vmatprep.subr.bf16.mxu0 %v21652_v36 }
 0xae4   : > { %10147 = vmatpush3.bf16.msra.mxu1 %v21653_v45 }
 0xae5   : > { %10149 = vmatprep.subr.bf16.mxu1 %v21654_v15 }
 0xae6   : > { %10119 = vmatpush3.bf16.msra.mxu0 %v21655_v51 }
 0xae7   : > { %10121 = vmatprep.subr.bf16.mxu0 %v21656_v25 }
 0xae8   : > { %10151 = vmatpush3.bf16.msra.mxu1 %v21657_v47 }
 0xae9   : > { %10153 = vmatprep.subr.bf16.mxu1 %v21658_v7 }
 0xaea   : > { %10123 = vmatpush3.bf16.msra.mxu0 %v21659_v59 }
 0xaeb   : > { %10125 = vmatprep.subr.bf16.mxu0 %v21660_v32 }
 0xaec   : > { %10155 = vmatpush3.bf16.msra.mxu1 %v21661_v16 }
 0xaed   : > { %10157 = vmatprep.subr.bf16.mxu1 %v21662_v24 }
 0xaee   : > { %10127 = vmatpush3.bf16.msra.mxu0 %v21663_v52 }
 0xaef   : > { %10129 = vmatprep.subr.bf16.mxu0 %v21664_v1 }
 0xaf0   : > { %10159 = vmatpush3.bf16.msra.mxu1 %v21665_v22 }
 0xaf1   : > { %10161 = vmatprep.subr.bf16.mxu1 %v21666_v27 }
 0xaf2   : > { %10131 = vmatpush3.bf16.msra.mxu0 %v21667_v14 }
 0xaf3   : > { %10133 = vmatprep.subr.bf16.mxu0 %v21668_v29 }
 0xaf4   : > { %10163 = vmatpush3.bf16.msra.mxu1 %v21669_v13 }
 0xaf5   : > { %10165 = vmatprep.subr.bf16.mxu1 %v21670_v10 }
 0xaf6   : > { %10135 = vmatpush3.bf16.msra.mxu0 %v21671_v37 }
 0xaf7   : > { %10137 = vmatprep.subr.bf16.mxu0 %v21672_v18 }
 0xaf8   : > { %10167 = vmatpush3.bf16.msra.mxu1 %v21673_v20 }
 0xaf9   : > { %10169 = vmatprep.subr.bf16.mxu1 %v21674_v43 }
 0xafa   : > { %10139 = vmatpush3.bf16.msra.mxu0 %v21675_v38 }
 0xafb   : > { %10173 = vmatprep.subr.bf16.mxu0 %v22267_v61 }
 0xafc   : > { %10171 = vmatpush3.bf16.msra.mxu1 %v21679_v42 }
 0xafd   : > { %10205 = vmatprep.subr.bf16.mxu1 %v22270_v54 }
 0xb4b   : > { %v7876_v9 = vpop.f32.mrb[72].mxu0 }
 0xb4c   : > { %v7877_v31 = vpop.f32.mrb[73].mxu0 }
 0xb4d   : > { %v7914_v19 = vpop.f32.mrb[88].mxu1  ;;  %v7878_v23 = vadd.f32 %v7877_v31, %v7876_v9 }
 0xb4e   : > { %v7915_v58 = vpop.f32.mrb[89].mxu1 }
 0xb4f   : > { %v7916_v34 = vadd.f32 %v7915_v58, %v7914_v19  ;;  %v7879_v4 = vpop.f32.mrb[74].mxu0 }
 0xb50   : > { %v7880_v28 = vpop.f32.mrb[75].mxu0 }
 0xb51   : > { %v4007_v12 = vadd.f32 %v7916_v34, %v7878_v23  ;;  %v7917_v5 = vpop.f32.mrb[90].mxu1  ;;  %v7881_v0 = vadd.f32 %v7880_v28, %v7879_v4 }
 0xb52   : > { %v7918_v56 = vpop.f32.mrb[91].mxu1 }
 0xb53   : > { %v7919_v49 = vadd.f32 %v7918_v56, %v7917_v5 }
 0xb55   : > { %v4012_v33 = vadd.f32 %v7919_v49, %v7881_v0 }
 0xb6b   : > { %v7952_v40 = vpop.f32.mrb[76].mxu0 }
 0xb6c   : > { %v7953_v11 = vpop.f32.mrb[77].mxu0 }
 0xb6d   : > { %v7990_v48 = vpop.f32.mrb[92].mxu1  ;;  %v7954_v3 = vadd.f32 %v7953_v11, %v7952_v40 }
 0xb6e   : > { %v7991_v57 = vpop.f32.mrb[93].mxu1 }
 0xb6f   : > { %v7992_v2 = vadd.f32 %v7991_v57, %v7990_v48  ;;  %v7955_v60 = vpop.f32.mrb[78].mxu0  ;;  %v4165_v48 = vmax.f32 %v4007_v12, 1e-30 }
 0xb70   : > { %v7956_v41 = vpop.f32.mrb[79].mxu0 }
 0xb71   : > { %v18289_v6 = vadd.f32 %v7992_v2, %v7954_v3  ;;  %v7993_v30 = vpop.f32.mrb[94].mxu1  ;;  %v7957_v61 = vadd.f32 %v7956_v41, %v7955_v60  ;;  %10966 = vrcp.f32 %v4165_v48 }
 0xb72   : > { %v7994_v50 = vpop.f32.mrb[95].mxu1 }
 0xb73   : > { %v7995_v62 = vadd.f32 %v7994_v50, %v7993_v30 }
 0xb75   : > { %v18291_v54 = vadd.f32 %v7995_v62, %v7957_v61 }
 0xbb0   : > { %v4377_v9 = vpop.f32.mrb[80].mxu0 }
 0xbb1   : > { %v4379_v31 = vpop.f32.mrb[81].mxu0 }
 0xbb2   : > { %v4454_v19 = vpop.f32.mrb[96].mxu1 }
 0xbb3   : > { %v4465_v23 = vmax.f32 %v4377_v9, %v4454_v19  ;;  %v4456_v58 = vpop.f32.mrb[97].mxu1 }
 0xbb4   : > { %v4466_v34 = vmax.f32 %v4379_v31, %v4456_v58  ;;  %v4383_v4 = vpop.f32.mrb[82].mxu0 }
 0xbb5   : > { %v4385_v28 = vpop.f32.mrb[83].mxu0 }
 0xbb6   : > { %v4460_v5 = vpop.f32.mrb[98].mxu1  ;;  %v4467_v0 = vmax.f32 %v4465_v23, %v4466_v34 }
 0xbb7   : > { %v4470_v56 = vmax.f32 %v4383_v4, %v4460_v5  ;;  %v4462_v49 = vpop.f32.mrb[99].mxu1 }
 0xbb8   : > { %v4471_v40 = vmax.f32 %v4385_v28, %v4462_v49  ;;  %4468 = vmax.xlane.f32.xlu0 %v4467_v0 }
 0xbba   : > { %v4472_v11 = vmax.f32 %v4470_v56, %v4471_v40 }
 0xbbc   : > { %4473 = vmax.xlane.f32.xlu1 %v4472_v11 }
 0xc45   : > { %v4469_v3 = vpop.xlane.xlu0 %4468 }
 0xc46   : > { %v4475_v57 = vsub.f32 %v4377_v9, %v4469_v3  ;;  %v4476_v2 = vsub.f32 %v4379_v31, %v4469_v3  ;;  %v4477_v60 = vsub.f32 %v4454_v19, %v4469_v3  ;;  %v4478_v41 = vsub.f32 %v4456_v58, %v4469_v3  ;;  %v10967_v19 = vpop.eup %10966  ;;  %v22274_v3 = vld [vmem:[#allocation571_spill] sm:$0xff] }
 0xc47   : > { %v4166_v31 = vmax.f32 %v4012_v33, 1e-30  ;;  %v22275_v33 = vld [vmem:[#allocation570_spill] sm:$0xff] }
 0xc48   : > { %v4483_v30 = vmul.f32 1.442695, %v4475_v57  ;;  %v4485_v61 = vmul.f32 1.442695, %v4476_v2  ;;  %v4487_v50 = vmul.f32 1.442695, %v4477_v60  ;;  %v22276_v57 = vpack.c.bf16 %v22274_v3, %v22275_v33 }
 0xc49   : > { %v4489_v62 = vmul.f32 1.442695, %v4478_v41  ;;  %v4474_v8 = vpop.xlane.xlu1 %4473  ;;  %v22277_v60 = vld [vmem:[#allocation569_spill] sm:$0xff]  ;;  %v22278_v41 = vld [vmem:[#allocation568_spill] sm:$0xff] }
 0xc4a   : > { %10968 = vpow2.f32 %v4483_v30  ;;  %v4479_v23 = vsub.f32 %v4383_v4, %v4474_v8  ;;  %v4480_v34 = vsub.f32 %v4385_v28, %v4474_v8  ;;  %v4481_v17 = vsub.f32 %v4460_v5, %v4474_v8  ;;  %v22271_v5 = vld [vmem:[#allocation567_spill] sm:$0xff]  ;;  %v22293_v33 = vld [vmem:[#allocation581_spill] sm:$0xff] }
 0xc4b   : > { %10970 = vpow2.f32 %v4485_v61  ;;  %v4482_v0 = vsub.f32 %v4462_v49, %v4474_v8  ;;  %v22272_v49 = vld [vmem:[#allocation566_spill] sm:$0xff]  ;;  %v22279_v30 = vpack.c.bf16 %v22277_v60, %v22278_v41  ;;  %v22297_v60 = vld [vmem:[#allocation583_spill] sm:$0xff] }
 0xc4c   : > { %10972 = vpow2.f32 %v4487_v50  ;;  %v4491_v56 = vmul.f32 1.442695, %v4479_v23  ;;  %v4493_v12 = vmul.f32 1.442695, %v4480_v34  ;;  %v4495_v40 = vmul.f32 1.442695, %v4481_v17 }
 0xc4d   : > { %10974 = vpow2.f32 %v4489_v62  ;;  %v4497_v9 = vmul.f32 1.442695, %v4482_v0  ;;  %v22273_v17 = vpack.c.bf16 %v22271_v5, %v22272_v49  ;;  %v22280_v50 = vld [vmem:[#allocation573_spill] sm:$0xff]  ;;  %v22281_v62 = vld [vmem:[#allocation572_spill] sm:$0xff]  ;;  %v18306_v34 = vmul.f32 %v10967_v19, %v18289_v6  ;;  %v22284_v0 = vld [vmem:[#allocation575_spill] sm:$0xff] }
 0xc4e   : > { %10976 = vpow2.f32 %v4491_v56  ;;  %v22282_v23 = vpack.c.bf16 %v22280_v50, %v22281_v62  ;;  %v22285_v56 = vld [vmem:[#allocation574_spill] sm:$0xff]  ;;  %v22290_v49 = vld [vmem:[#allocation577_spill] sm:$0xff]  ;;  %v22300_v50 = vld [vmem:[#allocation587_spill] sm:$0xff] }
 0xc4f   : > { %10978 = vpow2.f32 %v4493_v12  ;;  %22283 = vst [vmem:[#allocation96_spill] sm:$0xff] %v18306_v34  ;;  %v22286_v12 = vpack.c.bf16 %v22284_v0, %v22285_v56  ;;  %v22298_v41 = vld [vmem:[#allocation582_spill] sm:$0xff]  ;;  %v22303_v0 = vld [vmem:[#allocation585_spill] sm:$0xff]  ;;  %v22304_v56 = vld [vmem:[#allocation584_spill] sm:$0xff] }
 0xc50   : > { %10980 = vpow2.f32 %v4495_v40  ;;  %v22287_v40 = vld [vmem:[#allocation579_spill] sm:$0xff]  ;;  %v22301_v62 = vld [vmem:[#allocation586_spill] sm:$0xff] }
 0xc51   : > { %10982 = vpow2.f32 %v4497_v9  ;;  %v22288_v9 = vld [vmem:[#allocation578_spill] sm:$0xff] }
 0xc52   : > { %10984 = vrcp.f32 %v4166_v31  ;;  %v22289_v31 = vpack.c.bf16 %v22287_v40, %v22288_v9  ;;  %v22307_v40 = vld [vmem:[#allocation588_spill] sm:$0xff] }
 0xc54   : > { %v10969_v58 = vpop.eup %10968 }
 0xc55   : > { %v10971_v11 = vpop.eup %10970 }
 0xc56   : > { %v10973_v4 = vpop.eup %10972  ;;  %4563 = vmatprep.mubr.f32.mxu0 %v10971_v11 }
 0xc57   : > { %v10975_v28 = vpop.eup %10974  ;;  %4564 = vmatmul.mubr.f32.vlgmr.msra.gmra.mrb[84].mxu0 %v10969_v58 }
 0xc58   : > { %v10977_v8 = vpop.eup %10976  ;;  %4638 = vmatprep.mubr.f32.mxu1 %v10975_v28  ;;  %10175 = vmatpush3.bf16.msra.mxu0 %v22273_v17  ;;  %v22291_v17 = vld [vmem:[#allocation576_spill] sm:$0xff] }
 0xc59   : > { %v10979_v48 = vpop.eup %10978  ;;  %4639 = vmatmul.mubr.f32.vlgmr.msra.gmra.mrb[100].mxu1 %v10973_v4  ;;  %10177 = vmatprep.subr.bf16.mxu0 %v22276_v57  ;;  %v22292_v3 = vpack.c.bf16 %v22290_v49, %v22291_v17  ;;  %v22294_v57 = vld [vmem:[#allocation580_spill] sm:$0xff]  ;;  %v22313_v49 = vld [vmem:[#allocation594_spill] sm:$0xff] }
 0xc5a   : > { %v10981_v2 = vpop.eup %10980  ;;  %10207 = vmatpush3.bf16.msra.mxu1 %v22279_v30  ;;  %4568 = vmatprep.mubr.f32.mxu0 %v10979_v48  ;;  %v22295_v6 = vpack.c.bf16 %v22293_v33, %v22294_v57  ;;  %v22299_v30 = vpack.c.bf16 %v22297_v60, %v22298_v41  ;;  %v22316_v33 = vld [vmem:[#allocation592_spill] sm:$0xff] }
 0xc5b   : > { %v10983_v61 = vpop.eup %10982  ;;  %10209 = vmatprep.subr.bf16.mxu1 %v22282_v23  ;;  %4569 = vmatmul.mubr.f32.gmra.mrb[86].mxu0 %v10977_v8  ;;  %v22302_v23 = vpack.c.bf16 %v22300_v50, %v22301_v62  ;;  %v22319_v60 = vld [vmem:[#allocation596_spill] sm:$0xff]  ;;  %v22322_v50 = vld [vmem:[#allocation598_spill] sm:$0xff] }
 0xc5c   : > { %4643 = vmatprep.mubr.f32.mxu1 %v10983_v61  ;;  %10179 = vmatpush3.bf16.msra.mxu0 %v22286_v12  ;;  %v10985_v5 = vpop.eup %10984  ;;  %v22305_v12 = vpack.c.bf16 %v22303_v0, %v22304_v56  ;;  %v22325_v0 = vld [vmem:[#allocation602_spill] sm:$0xff] }
 0xc5d   : > { %4644 = vmatmul.mubr.f32.gmra.mrb[102].mxu1 %v10981_v2  ;;  %10181 = vmatprep.subr.bf16.mxu0 %v22289_v31  ;;  %v18321_v19 = vmul.f32 %v10985_v5, %v18291_v54  ;;  %v22310_v31 = vld [vmem:[#allocation590_spill] sm:$0xff]  ;;  %v22312_v5 = vld [vmem:[#allocation595_spill] sm:$0xff] }
 0xc5e   : > { %10211 = vmatpush3.bf16.msra.mxu1 %v22292_v3  ;;  %4713 = vmatprep.mubr.f32.mxu0 %v10971_v11  ;;  %v22306_v11 = vld [vmem:[#allocation589_spill] sm:$0xff]  ;;  %v22314_v17 = vpack.c.bf16 %v22312_v5, %v22313_v49  ;;  %v22334_v5 = vld [vmem:[#allocation606_spill] sm:$0xff] }
 0xc5f   : > { %10213 = vmatprep.subr.bf16.mxu1 %v22295_v6  ;;  %4788 = vmatprep.mubr.f32.mxu1 %v10975_v28  ;;  %22296 = vst [vmem:[#allocation94_spill] sm:$0xff] %v18321_v19  ;;  %v22308_v9 = vpack.c.bf16 %v22306_v11, %v22307_v40  ;;  %v22309_v28 = vld [vmem:[#allocation591_spill] sm:$0xff]  ;;  %v22315_v3 = vld [vmem:[#allocation593_spill] sm:$0xff]  ;;  %v22328_v11 = vld [vmem:[#allocation600_spill] sm:$0xff] }
 0xc60   : > { %10183 = vmatpush3.bf16.msra.mxu0 %v22299_v30  ;;  %v22311_v54 = vpack.c.bf16 %v22309_v28, %v22310_v31  ;;  %v22317_v57 = vpack.c.bf16 %v22315_v3, %v22316_v33  ;;  %v22318_v6 = vld [vmem:[#allocation597_spill] sm:$0xff]  ;;  %v22321_v30 = vld [vmem:[#allocation599_spill] sm:$0xff]  ;;  %v22331_v28 = vld [vmem:[#allocation604_spill] sm:$0xff] }
 0xc61   : > { %10185 = vmatprep.subr.bf16.mxu0 %v22302_v23  ;;  %v22320_v41 = vpack.c.bf16 %v22318_v6, %v22319_v60  ;;  %v22323_v62 = vpack.c.bf16 %v22321_v30, %v22322_v50  ;;  %v22324_v23 = vld [vmem:[#allocation603_spill] sm:$0xff]  ;;  %v22337_v3 = vld [vmem:[#allocation610_spill] sm:$0xff]  ;;  %v22340_v6 = vld [vmem:[#allocation608_spill] sm:$0xff] }
 0xc62   : > { %10215 = vmatpush3.bf16.msra.mxu1 %v22305_v12  ;;  %v22326_v56 = vpack.c.bf16 %v22324_v23, %v22325_v0  ;;  %v22327_v12 = vld [vmem:[#allocation601_spill] sm:$0xff]  ;;  %v22343_v30 = vld [vmem:[#allocation612_spill] sm:$0xff]  ;;  %v22346_v23 = vld [vmem:[#allocation614_spill] sm:$0xff] }
 0xc63   : > { %10217 = vmatprep.subr.bf16.mxu1 %v22308_v9  ;;  %v22329_v40 = vpack.c.bf16 %v22327_v12, %v22328_v11  ;;  %v22330_v9 = vld [vmem:[#allocation605_spill] sm:$0xff]  ;;  %v22349_v12 = vld [vmem:[#allocation618_spill] sm:$0xff] }
 0xc64   : > { %10187 = vmatpush3.bf16.msra.mxu0 %v22311_v54  ;;  %v22332_v31 = vpack.c.bf16 %v22330_v9, %v22331_v28  ;;  %v22333_v54 = vld [vmem:[#allocation607_spill] sm:$0xff]  ;;  %v22352_v9 = vld [vmem:[#allocation616_spill] sm:$0xff] }
 0xc65   : > { %10189 = vmatprep.subr.bf16.mxu0 %v22314_v17  ;;  %v22335_v49 = vpack.c.bf16 %v22333_v54, %v22334_v5  ;;  %v22336_v17 = vld [vmem:[#allocation611_spill] sm:$0xff]  ;;  %v22355_v54 = vld [vmem:[#allocation620_spill] sm:$0xff] }
 0xc66   : > { %10219 = vmatpush3.bf16.msra.mxu1 %v22317_v57  ;;  %v22338_v33 = vpack.c.bf16 %v22336_v17, %v22337_v3  ;;  %v22339_v57 = vld [vmem:[#allocation609_spill] sm:$0xff]  ;;  %v22358_v17 = vld [vmem:[#allocation622_spill] sm:$0xff] }
 0xc67   : > { %10221 = vmatprep.subr.bf16.mxu1 %v22320_v41  ;;  %v22341_v60 = vpack.c.bf16 %v22339_v57, %v22340_v6  ;;  %v22342_v41 = vld [vmem:[#allocation613_spill] sm:$0xff]  ;;  %v22361_v57 = vld [vmem:[#allocation95_spill] sm:$0xff] }
 0xc68   : > { %10191 = vmatpush3.bf16.msra.mxu0 %v22323_v62  ;;  %v22344_v50 = vpack.c.bf16 %v22342_v41, %v22343_v30  ;;  %v22345_v62 = vld [vmem:[#allocation615_spill] sm:$0xff]  ;;  %v22364_v41 = vld [vmem:[#allocation624_spill] sm:$0xff] }
 0xc69   : > { %10193 = vmatprep.subr.bf16.mxu0 %v22326_v56  ;;  %v22347_v0 = vpack.c.bf16 %v22345_v62, %v22346_v23  ;;  %v22348_v56 = vld [vmem:[#allocation619_spill] sm:$0xff] }
 0xc6a   : > { %10223 = vmatpush3.bf16.msra.mxu1 %v22329_v40  ;;  %v22350_v11 = vpack.c.bf16 %v22348_v56, %v22349_v12  ;;  %v22351_v40 = vld [vmem:[#allocation617_spill] sm:$0xff]  ;;  %v22367_v62 = vld [vmem:[#allocation627_spill] sm:$0xff]  ;;  %v22370_v56 = vld [vmem:[#allocation630_spill] sm:$0xff] }
 0xc6b   : > { %10225 = vmatprep.subr.bf16.mxu1 %v22332_v31  ;;  %v22353_v28 = vpack.c.bf16 %v22351_v40, %v22352_v9  ;;  %v22354_v31 = vld [vmem:[#allocation621_spill] sm:$0xff]  ;;  %v22373_v40 = vld [vmem:[#allocation634_spill] sm:$0xff] }
 0xc6c   : > { %10195 = vmatpush3.bf16.msra.mxu0 %v22335_v49  ;;  %v22356_v5 = vpack.c.bf16 %v22354_v31, %v22355_v54  ;;  %v22357_v49 = vld [vmem:[#allocation623_spill] sm:$0xff]  ;;  %v22371_v12 = vld [vmem:[#allocation629_spill] sm:$0xff]  ;;  %v22376_v31 = vld [vmem:[#allocation632_spill] sm:$0xff] }
 0xc6d   : > { %10197 = vmatprep.subr.bf16.mxu0 %v22338_v33  ;;  %v22359_v3 = vpack.c.bf16 %v22357_v49, %v22358_v17  ;;  %v22360_v33 = vld [vmem:[#allocation626_spill] sm:$0xff]  ;;  %v22374_v9 = vld [vmem:[#allocation633_spill] sm:$0xff]  ;;  %v22377_v54 = vld [vmem:[#allocation631_spill] sm:$0xff] }
 0xc6e   : > { %10227 = vmatpush3.bf16.msra.mxu1 %v22341_v60  ;;  %v22362_v6 = vpack.c.bf16 %v22360_v33, %v22361_v57  ;;  %v22363_v60 = vld [vmem:[#allocation625_spill] sm:$0xff]  ;;  %v22385_v49 = vld [vmem:[#allocation642_spill] sm:$0xff]  ;;  %v22388_v33 = vld [vmem:[#allocation640_spill] sm:$0xff] }
 0xc6f   : > { %10229 = vmatprep.subr.bf16.mxu1 %v22344_v50  ;;  %v22365_v30 = vpack.c.bf16 %v22363_v60, %v22364_v41  ;;  %v22366_v50 = vld [vmem:[#allocation628_spill] sm:$0xff]  ;;  %v22386_v17 = vld [vmem:[#allocation641_spill] sm:$0xff]  ;;  %v22389_v57 = vld [vmem:[#allocation639_spill] sm:$0xff] }
 0xc70   : > { %10199 = vmatpush3.bf16.msra.mxu0 %v22347_v0  ;;  %v22368_v23 = vpack.c.bf16 %v22366_v50, %v22367_v62  ;;  %v22369_v0 = vld [vmem:[#allocation93_spill] sm:$0xff]  ;;  %v22391_v60 = vld [vmem:[#allocation644_spill] sm:$0xff]  ;;  %v22392_v41 = vld [vmem:[#allocation643_spill] sm:$0xff] }
 0xc71   : > { %10201 = vmatprep.subr.bf16.mxu0 %v22350_v11  ;;  %v22372_v11 = vpack.c.bf16 %v22370_v56, %v22371_v12  ;;  %v22394_v50 = vld [vmem:[#allocation646_spill] sm:$0xff]  ;;  %v22395_v62 = vld [vmem:[#allocation645_spill] sm:$0xff] }
 0xc72   : > { %10231 = vmatpush3.bf16.msra.mxu1 %v22353_v28  ;;  %v22375_v28 = vpack.c.bf16 %v22373_v40, %v22374_v9  ;;  %v22397_v56 = vld [vmem:[#allocation650_spill] sm:$0xff]  ;;  %v22398_v12 = vld [vmem:[#allocation649_spill] sm:$0xff]  ;;  %v22400_v40 = vld [vmem:[#allocation648_spill] sm:$0xff] }
 0xc73   : > { %10233 = vmatprep.subr.bf16.mxu1 %v22356_v5  ;;  %v22401_v9 = vld [vmem:[#allocation647_spill] sm:$0xff] }
 0xc74   : > { %10203 = vmatpush3.bf16.msra.mxu0 %v22359_v3  ;;  %v22387_v3 = vpack.c.bf16 %v22385_v49, %v22386_v17  ;;  %v22412_v49 = vld [vmem:[#allocation656_spill] sm:$0xff]  ;;  %v22413_v17 = vld [vmem:[#allocation655_spill] sm:$0xff] }
 0xc75   : > { %10237 = vmatprep.subr.bf16.mxu0 %v22362_v6  ;;  %v22390_v6 = vpack.c.bf16 %v22388_v33, %v22389_v57  ;;  %v22415_v33 = vld [vmem:[#allocation660_spill] sm:$0xff]  ;;  %v22416_v57 = vld [vmem:[#allocation659_spill] sm:$0xff] }
 0xc76   : > { %10235 = vmatpush3.bf16.msra.mxu1 %v22365_v30  ;;  %v22393_v30 = vpack.c.bf16 %v22391_v60, %v22392_v41  ;;  %v22418_v60 = vld [vmem:[#allocation662_spill] sm:$0xff]  ;;  %v22419_v41 = vld [vmem:[#allocation661_spill] sm:$0xff] }
 0xc77   : > { %10269 = vmatprep.subr.bf16.mxu1 %v22368_v23  ;;  %4714 = vmatmul.mubr.f32.vlgmr.msra.gmra.mrb[88].mxu0 %v10969_v58  ;;  %v22378_v58 = vpack.c.bf16 %v22376_v31, %v22377_v54  ;;  %v22396_v23 = vpack.c.bf16 %v22394_v50, %v22395_v62  ;;  %v22403_v31 = vld [vmem:[#allocation652_spill] sm:$0xff]  ;;  %v22404_v54 = vld [vmem:[#allocation651_spill] sm:$0xff]  ;;  %v22421_v50 = vld [vmem:[#allocation666_spill] sm:$0xff] }
 0xc78   : > { %4718 = vmatprep.mubr.f32.mxu0 %v10979_v48  ;;  %v22380_v48 = vld [vmem:[#allocation635_spill] sm:$0xff]  ;;  %v22422_v62 = vld [vmem:[#allocation665_spill] sm:$0xff] }
 0xc79   : > { %4789 = vmatmul.mubr.f32.vlgmr.msra.gmra.mrb[104].mxu1 %v10973_v4  ;;  %v22379_v4 = vld [vmem:[#allocation636_spill] sm:$0xff] }
 0xc7a   : > { %4793 = vmatprep.mubr.f32.mxu1 %v10983_v61  ;;  %v22382_v61 = vld [vmem:[#allocation638_spill] sm:$0xff] }
 0xc7b   : > { %4719 = vmatmul.mubr.f32.gmra.mrb[90].mxu0 %v10977_v8  ;;  %v22381_v8 = vpack.c.bf16 %v22379_v4, %v22380_v48  ;;  %v22406_v4 = vld [vmem:[#allocation654_spill] sm:$0xff]  ;;  %v22407_v48 = vld [vmem:[#allocation653_spill] sm:$0xff] }
 0xc7c   : > { %8252 = vmatprep.mubr.f32.mxu0 %v22369_v0 }
 0xc7d   : > { %4794 = vmatmul.mubr.f32.gmra.mrb[106].mxu1 %v10981_v2  ;;  %10239 = vmatpush3.bf16.xpose.msra.mxu0 %v22372_v11  ;;  %v22383_v2 = vld [vmem:[#allocation637_spill] sm:$0xff]  ;;  %v22399_v11 = vpack.c.bf16 %v22397_v56, %v22398_v12  ;;  %v22424_v56 = vld [vmem:[#allocation664_spill] sm:$0xff]  ;;  %v22425_v12 = vld [vmem:[#allocation663_spill] sm:$0xff] }
 0xc7e   : > { %8288 = vmatprep.mubr.f32.mxu1 %v22369_v0  ;;  %10241 = vmatprep.subr.bf16.mxu0 %v22375_v28  ;;  %v22384_v5 = vpack.c.bf16 %v22382_v61, %v22383_v2  ;;  %v22402_v28 = vpack.c.bf16 %v22400_v40, %v22401_v9  ;;  %v22409_v61 = vld [vmem:[#allocation658_spill] sm:$0xff]  ;;  %v22410_v2 = vld [vmem:[#allocation657_spill] sm:$0xff]  ;;  %v22427_v40 = vld [vmem:[#allocation668_spill] sm:$0xff] }
 0xc7f   : > { %10271 = vmatpush3.bf16.xpose.msra.mxu1 %v22378_v58  ;;  %v22405_v58 = vpack.c.bf16 %v22403_v31, %v22404_v54  ;;  %v22428_v9 = vld [vmem:[#allocation667_spill] sm:$0xff]  ;;  %v22430_v31 = vld [vmem:[#allocation670_spill] sm:$0xff]  ;;  %v22431_v54 = vld [vmem:[#allocation669_spill] sm:$0xff] }
 0xc80   : > { %10273 = vmatprep.subr.bf16.mxu1 %v22381_v8  ;;  %v22408_v8 = vpack.c.bf16 %v22406_v4, %v22407_v48  ;;  %v22433_v4 = vld [vmem:[#allocation674_spill] sm:$0xff]  ;;  %v22434_v48 = vld [vmem:[#allocation673_spill] sm:$0xff] }
 0xc85   : > { %10243 = vmatpush3.bf16.xpose.msra.mxu0 %v22384_v5  ;;  %v22411_v5 = vpack.c.bf16 %v22409_v61, %v22410_v2  ;;  %v22436_v61 = vld [vmem:[#allocation672_spill] sm:$0xff]  ;;  %v22437_v2 = vld [vmem:[#allocation671_spill] sm:$0xff] }
 0xc86   : > { %10245 = vmatprep.subr.bf16.mxu0 %v22387_v3  ;;  %v22414_v3 = vpack.c.bf16 %v22412_v49, %v22413_v17  ;;  %v22439_v49 = vld [vmem:[#allocation676_spill] sm:$0xff]  ;;  %v22440_v17 = vld [vmem:[#allocation675_spill] sm:$0xff] }
 0xc87   : > { %10275 = vmatpush3.bf16.xpose.msra.mxu1 %v22390_v6  ;;  %v22417_v6 = vpack.c.bf16 %v22415_v33, %v22416_v57  ;;  %v22442_v33 = vld [vmem:[#allocation678_spill] sm:$0xff]  ;;  %v22443_v57 = vld [vmem:[#allocation677_spill] sm:$0xff] }
 0xc88   : > { %10277 = vmatprep.subr.bf16.mxu1 %v22393_v30  ;;  %v22420_v30 = vpack.c.bf16 %v22418_v60, %v22419_v41  ;;  %v22445_v60 = vld [vmem:[#allocation682_spill] sm:$0xff]  ;;  %v22446_v41 = vld [vmem:[#allocation681_spill] sm:$0xff] }
 0xc8d   : > { %10247 = vmatpush3.bf16.xpose.msra.mxu0 %v22396_v23  ;;  %v22423_v23 = vpack.c.bf16 %v22421_v50, %v22422_v62  ;;  %v22448_v50 = vld [vmem:[#allocation680_spill] sm:$0xff]  ;;  %v22449_v62 = vld [vmem:[#allocation679_spill] sm:$0xff] }
 0xc8e   : > { %10249 = vmatprep.subr.bf16.mxu0 %v22399_v11  ;;  %v22426_v11 = vpack.c.bf16 %v22424_v56, %v22425_v12  ;;  %v22451_v56 = vld [vmem:[#allocation684_spill] sm:$0xff]  ;;  %v22452_v12 = vld [vmem:[#allocation683_spill] sm:$0xff] }
 0xc8f   : > { %10279 = vmatpush3.bf16.xpose.msra.mxu1 %v22402_v28  ;;  %v22429_v28 = vpack.c.bf16 %v22427_v40, %v22428_v9  ;;  %v22454_v40 = vld [vmem:[#allocation686_spill] sm:$0xff]  ;;  %v22455_v9 = vld [vmem:[#allocation685_spill] sm:$0xff] }
 0xc90   : > { %10281 = vmatprep.subr.bf16.mxu1 %v22405_v58  ;;  %v22432_v58 = vpack.c.bf16 %v22430_v31, %v22431_v54  ;;  %v22457_v31 = vld [vmem:[#allocation688_spill] sm:$0xff]  ;;  %v22458_v54 = vld [vmem:[#allocation687_spill] sm:$0xff] }
 0xc95   : > { %10251 = vmatpush3.bf16.xpose.msra.mxu0 %v22408_v8  ;;  %v22435_v8 = vpack.c.bf16 %v22433_v4, %v22434_v48  ;;  %v22460_v4 = vld [vmem:[#allocation103_spill] sm:$0xff]  ;;  %v22462_v48 = vld [vmem:[#allocation70_spill] sm:$0xff] }
 0xc96   : > { %10253 = vmatprep.subr.bf16.mxu0 %v22411_v5  ;;  %v22438_v5 = vpack.c.bf16 %v22436_v61, %v22437_v2  ;;  %v22464_v61 = vld [vmem:[#allocation690_spill] sm:$0xff]  ;;  %v22465_v2 = vld [vmem:[#allocation689_spill] sm:$0xff] }
 0xc97   : > { %10283 = vmatpush3.bf16.xpose.msra.mxu1 %v22414_v3  ;;  %v22441_v3 = vpack.c.bf16 %v22439_v49, %v22440_v17 }
 0xc98   : > { %10285 = vmatprep.subr.bf16.mxu1 %v22417_v6  ;;  %v22444_v6 = vpack.c.bf16 %v22442_v33, %v22443_v57 }
 0xc9d   : > { %10255 = vmatpush3.bf16.xpose.msra.mxu0 %v22420_v30  ;;  %v22447_v30 = vpack.c.bf16 %v22445_v60, %v22446_v41 }
 0xc9e   : > { %10257 = vmatprep.subr.bf16.mxu0 %v22423_v23  ;;  %v22450_v23 = vpack.c.bf16 %v22448_v50, %v22449_v62 }
 0xc9f   : > { %10287 = vmatpush3.bf16.xpose.msra.mxu1 %v22426_v11  ;;  %v22453_v11 = vpack.c.bf16 %v22451_v56, %v22452_v12 }
 0xca0   : > { %10289 = vmatprep.subr.bf16.mxu1 %v22429_v28  ;;  %v22456_v28 = vpack.c.bf16 %v22454_v40, %v22455_v9 }
 0xca5   : > { %10259 = vmatpush3.bf16.xpose.msra.mxu0 %v22432_v58  ;;  %v22459_v58 = vpack.c.bf16 %v22457_v31, %v22458_v54 }
 0xca6   : > { %10261 = vmatprep.subr.bf16.mxu0 %v22435_v8 }
 0xca7   : > { %10291 = vmatpush3.bf16.xpose.msra.mxu1 %v22438_v5  ;;  %v22466_v5 = vpack.c.bf16 %v22464_v61, %v22465_v2 }
 0xca8   : > { %10293 = vmatprep.subr.bf16.mxu1 %v22441_v3 }
 0xcad   : > { %10263 = vmatpush3.bf16.xpose.msra.mxu0 %v22444_v6 }
 0xcae   : > { %10265 = vmatprep.subr.bf16.mxu0 %v22447_v30 }
 0xcaf   : > { %10295 = vmatpush3.bf16.xpose.msra.mxu1 %v22450_v23 }
 0xcb0   : > { %10297 = vmatprep.subr.bf16.mxu1 %v22453_v11 }
 0xcb5   : > { %10267 = vmatpush3.bf16.xpose.msra.mxu0 %v22456_v28 }
 0xcb6   : > { %10301 = vmatprep.subr.bf16.mxu0 %v21641_v21 }
 0xcb7   : > { %10299 = vmatpush3.bf16.xpose.msra.mxu1 %v22459_v58 }
 0xcb8   : > { %10333 = vmatprep.subr.bf16.mxu1 %v21645_v44 }
 0xcbc   : > { %8253 = vmatmul.mubr.f32.vlgmr.msra.gmra.mrb[92].mxu0 %v22369_v0 }
 0xcbd   : > { %8254 = vmatprep.mubr.f32.mxu0 %v22460_v4  ;;  %10303 = vmatpush3.bf16.msra.mxu0 %v21647_v26 }
 0xcbe   : > { %8289 = vmatmul.mubr.f32.vlgmr.msra.gmra.mrb[108].mxu1 %v22369_v0  ;;  %10305 = vmatprep.subr.bf16.mxu0 %v21648_v63  ;;  %v22461_v0 = vld [vmem:[#allocation19_spill] sm:$0xff] }
 0xcbf   : > { %8290 = vmatprep.mubr.f32.mxu1 %v22460_v4  ;;  %10335 = vmatpush3.bf16.msra.mxu1 %v21649_v46  ;;  %v22463_v8 = vpack.c.bf16 %v22461_v0, %v22462_v48 }
 0xcc0   : > { %8255 = vmatmul.mubr.f32.gmra.mrb[94].mxu0 %v22460_v4  ;;  %10337 = vmatprep.subr.bf16.mxu1 %v21650_v55 }
 0xcc1   : > { %10307 = vmatpush3.bf16.msra.mxu0 %v21651_v53 }
 0xcc2   : > { %8291 = vmatmul.mubr.f32.gmra.mrb[110].mxu1 %v22460_v4  ;;  %10309 = vmatprep.subr.bf16.mxu0 %v21652_v36 }
 0xcc3   : > { %10339 = vmatpush3.bf16.msra.mxu1 %v21653_v45 }
 0xcc4   : > { %10341 = vmatprep.subr.bf16.mxu1 %v21654_v15 }
 0xcc5   : > { %10311 = vmatpush3.bf16.msra.mxu0 %v21655_v51 }
 0xcc6   : > { %10313 = vmatprep.subr.bf16.mxu0 %v21656_v25 }
 0xcc7   : > { %10343 = vmatpush3.bf16.msra.mxu1 %v21657_v47 }
 0xcc8   : > { %10345 = vmatprep.subr.bf16.mxu1 %v21658_v7 }
 0xcc9   : > { %10315 = vmatpush3.bf16.msra.mxu0 %v21659_v59 }
 0xcca   : > { %10317 = vmatprep.subr.bf16.mxu0 %v21660_v32 }
 0xccb   : > { %10347 = vmatpush3.bf16.msra.mxu1 %v21661_v16 }
 0xccc   : > { %10349 = vmatprep.subr.bf16.mxu1 %v21662_v24 }
 0xccd   : > { %10319 = vmatpush3.bf16.msra.mxu0 %v21663_v52 }
 0xcce   : > { %10321 = vmatprep.subr.bf16.mxu0 %v21664_v1 }
 0xccf   : > { %10351 = vmatpush3.bf16.msra.mxu1 %v21665_v22 }
 0xcd0   : > { %10353 = vmatprep.subr.bf16.mxu1 %v21666_v27 }
 0xcd1   : > { %10323 = vmatpush3.bf16.msra.mxu0 %v21667_v14 }
 0xcd2   : > { %10325 = vmatprep.subr.bf16.mxu0 %v21668_v29 }
 0xcd3   : > { %10355 = vmatpush3.bf16.msra.mxu1 %v21669_v13 }
 0xcd4   : > { %10357 = vmatprep.subr.bf16.mxu1 %v21670_v10 }
 0xcd5   : > { %10327 = vmatpush3.bf16.msra.mxu0 %v21671_v37 }
 0xcd6   : > { %10329 = vmatprep.subr.bf16.mxu0 %v21672_v18 }
 0xcd7   : > { %10359 = vmatpush3.bf16.msra.mxu1 %v21673_v20 }
 0xcd8   : > { %10361 = vmatprep.subr.bf16.mxu1 %v21674_v43 }
 0xcd9   : > { %10331 = vmatpush3.bf16.msra.mxu0 %v21675_v38 }
 0xcda   : > { %10365 = vmatprep.subr.bf16.mxu0 %v22463_v8 }
 0xcdb   : > { %10363 = vmatpush3.bf16.msra.mxu1 %v21679_v42 }
 0xcdc   : > { %10397 = vmatprep.subr.bf16.mxu1 %v22466_v5 }
 0xd2a   : > { %v8100_v49 = vpop.f32.mrb[84].mxu0 }
 0xd2b   : > { %v8101_v17 = vpop.f32.mrb[85].mxu0 }
 0xd2c   : > { %v8138_v3 = vpop.f32.mrb[100].mxu1  ;;  %v8102_v33 = vadd.f32 %v8101_v17, %v8100_v49 }
 0xd2d   : > { %v8139_v57 = vpop.f32.mrb[101].mxu1 }
 0xd2e   : > { %v8140_v6 = vadd.f32 %v8139_v57, %v8138_v3  ;;  %v8103_v60 = vpop.f32.mrb[86].mxu0 }
 0xd2f   : > { %v8104_v41 = vpop.f32.mrb[87].mxu0 }
 0xd30   : > { %v4641_v30 = vadd.f32 %v8140_v6, %v8102_v33  ;;  %v8141_v50 = vpop.f32.mrb[102].mxu1  ;;  %v8105_v62 = vadd.f32 %v8104_v41, %v8103_v60 }
 0xd31   : > { %v8142_v23 = vpop.f32.mrb[103].mxu1 }
 0xd32   : > { %v8143_v56 = vadd.f32 %v8142_v23, %v8141_v50 }
 0xd34   : > { %v4646_v12 = vadd.f32 %v8143_v56, %v8105_v62 }
 0xd4a   : > { %v8176_v11 = vpop.f32.mrb[88].mxu0 }
 0xd4b   : > { %v8177_v40 = vpop.f32.mrb[89].mxu0 }
 0xd4c   : > { %v8214_v9 = vpop.f32.mrb[104].mxu1  ;;  %v8178_v28 = vadd.f32 %v8177_v40, %v8176_v11 }
 0xd4d   : > { %v8215_v31 = vpop.f32.mrb[105].mxu1 }
 0xd4e   : > { %v8216_v54 = vadd.f32 %v8215_v31, %v8214_v9  ;;  %v8179_v58 = vpop.f32.mrb[90].mxu0  ;;  %v4799_v9 = vmax.f32 %v4641_v30, 1e-30 }
 0xd4f   : > { %v8180_v4 = vpop.f32.mrb[91].mxu0 }
 0xd50   : > { %v4791_v0 = vadd.f32 %v8216_v54, %v8178_v28  ;;  %v8217_v48 = vpop.f32.mrb[106].mxu1  ;;  %v8181_v8 = vadd.f32 %v8180_v4, %v8179_v58  ;;  %v4800_v28 = vmax.f32 %v4646_v12, 1e-30  ;;  %10986 = vrcp.f32 %v4799_v9 }
 0xd51   : > { %v8218_v61 = vpop.f32.mrb[107].mxu1 }
 0xd52   : > { %v8219_v2 = vadd.f32 %v8218_v61, %v8217_v48  ;;  %10988 = vrcp.f32 %v4800_v28  ;;  %v22469_v28 = vld [vmem:[#allocation693_spill] sm:$0xff] }
 0xd54   : > { %v18531_v5 = vadd.f32 %v8219_v2, %v8181_v8 }
 0xd8f   : > { %v5011_v49 = vpop.f32.mrb[92].mxu0 }
 0xd90   : > { %v5013_v17 = vpop.f32.mrb[93].mxu0 }
 0xd91   : > { %v5088_v3 = vpop.f32.mrb[108].mxu1 }
 0xd92   : > { %v5099_v33 = vmax.f32 %v5011_v49, %v5088_v3  ;;  %v5090_v57 = vpop.f32.mrb[109].mxu1 }
 0xd93   : > { %v5100_v6 = vmax.f32 %v5013_v17, %v5090_v57  ;;  %v5017_v60 = vpop.f32.mrb[94].mxu0 }
 0xd94   : > { %v5019_v41 = vpop.f32.mrb[95].mxu0 }
 0xd95   : > { %v5094_v50 = vpop.f32.mrb[110].mxu1  ;;  %v5101_v62 = vmax.f32 %v5099_v33, %v5100_v6 }
 0xd96   : > { %v5104_v23 = vmax.f32 %v5017_v60, %v5094_v50  ;;  %v5096_v56 = vpop.f32.mrb[111].mxu1 }
 0xd97   : > { %v5105_v11 = vmax.f32 %v5019_v41, %v5096_v56  ;;  %5102 = vmax.xlane.f32.xlu0 %v5101_v62 }
 0xd99   : > { %v5106_v40 = vmax.f32 %v5104_v23, %v5105_v11 }
 0xd9b   : > { %5107 = vmax.xlane.f32.xlu1 %v5106_v40 }
 0xe24   : > { %v5103_v31 = vpop.xlane.xlu0 %5102 }
 0xe25   : > { %v5109_v54 = vsub.f32 %v5011_v49, %v5103_v31  ;;  %v5110_v58 = vsub.f32 %v5013_v17, %v5103_v31  ;;  %v5111_v4 = vsub.f32 %v5088_v3, %v5103_v31  ;;  %v5112_v48 = vsub.f32 %v5090_v57, %v5103_v31  ;;  %v10987_v3 = vpop.eup %10986 }
 0xe26   : > { %v10989_v57 = vpop.eup %10988 }
 0xe27   : > { %v5117_v8 = vmul.f32 1.442695, %v5109_v54  ;;  %v5119_v61 = vmul.f32 1.442695, %v5110_v58  ;;  %v5121_v2 = vmul.f32 1.442695, %v5111_v4 }
 0xe28   : > { %v5123_v19 = vmul.f32 1.442695, %v5112_v48  ;;  %v5108_v33 = vpop.xlane.xlu1 %5107  ;;  %v22471_v58 = vld [vmem:[#allocation692_spill] sm:$0xff]  ;;  %v22472_v4 = vld [vmem:[#allocation691_spill] sm:$0xff] }
 0xe29   : > { %10990 = vpow2.f32 %v5117_v8  ;;  %v5113_v6 = vsub.f32 %v5017_v60, %v5108_v33  ;;  %v5114_v34 = vsub.f32 %v5019_v41, %v5108_v33  ;;  %v5115_v62 = vsub.f32 %v5094_v50, %v5108_v33  ;;  %v22474_v8 = vld [vmem:[#allocation696_spill] sm:$0xff] }
 0xe2a   : > { %10992 = vpow2.f32 %v5119_v61  ;;  %v5116_v23 = vsub.f32 %v5096_v56, %v5108_v33  ;;  %v18533_v41 = vmul.f32 %v10987_v3, %v4791_v0  ;;  %v22468_v56 = vld [vmem:[#allocation694_spill] sm:$0xff]  ;;  %v22473_v48 = vpack.c.bf16 %v22471_v58, %v22472_v4  ;;  %v22475_v61 = vld [vmem:[#allocation695_spill] sm:$0xff]  ;;  %v22478_v33 = vld [vmem:[#allocation697_spill] sm:$0xff] }
 0xe2b   : > { %10994 = vpow2.f32 %v5121_v2  ;;  %v5125_v30 = vmul.f32 1.442695, %v5113_v6  ;;  %v5127_v12 = vmul.f32 1.442695, %v5114_v34  ;;  %v5129_v49 = vmul.f32 1.442695, %v5115_v62 }
 0xe2c   : > { %10996 = vpow2.f32 %v5123_v19  ;;  %v5131_v17 = vmul.f32 1.442695, %v5116_v23  ;;  %v22467_v34 = vpack.c.bf16 %v15725_v39, %v15719_v35  ;;  %v22470_v31 = vpack.c.bf16 %v22468_v56, %v22469_v28  ;;  %v22477_v35 = vld [vmem:[#allocation698_spill] sm:$0xff]  ;;  %v22481_v23 = vld [vmem:[#allocation701_spill] sm:$0xff]  ;;  %v22486_v3 = vld [vmem:[#allocation704_spill] sm:$0xff] }
 0xe2d   : > { %10998 = vpow2.f32 %v5125_v30  ;;  %v22476_v2 = vpack.c.bf16 %v22474_v8, %v22475_v61  ;;  %v18548_v39 = vmul.f32 %v10989_v57, %v18531_v5  ;;  %v22479_v6 = vpack.c.bf16 %v22477_v35, %v22478_v33  ;;  %v22480_v62 = vld [vmem:[#allocation702_spill] sm:$0xff]  ;;  %v22490_v57 = vld [vmem:[#allocation705_spill] sm:$0xff]  ;;  %v22496_v8 = vld [vmem:[#allocation707_spill] sm:$0xff] }
 0xe2e   : > { %11000 = vpow2.f32 %v5127_v12  ;;  %v22482_v30 = vpack.c.bf16 %v22480_v62, %v22481_v23  ;;  %v22483_v12 = vld [vmem:[#allocation700_spill] sm:$0xff]  ;;  %v22489_v5 = vld [vmem:[#allocation706_spill] sm:$0xff]  ;;  %v22493_v58 = vld [vmem:[#allocation709_spill] sm:$0xff] }
 0xe2f   : > { %11002 = vpow2.f32 %v5129_v49  ;;  %v22484_v49 = vld [vmem:[#allocation699_spill] sm:$0xff]  ;;  %v22491_v28 = vpack.c.bf16 %v22489_v5, %v22490_v57  ;;  %v22501_v33 = vld [vmem:[#allocation714_spill] sm:$0xff]  ;;  %v22505_v23 = vld [vmem:[#allocation717_spill] sm:$0xff] }
 0xe30   : > { %11004 = vpow2.f32 %v5131_v17  ;;  %v22485_v17 = vpack.c.bf16 %v22483_v12, %v22484_v49  ;;  %v22499_v35 = vld [vmem:[#allocation711_spill] sm:$0xff]  ;;  %v22507_v12 = vld [vmem:[#allocation716_spill] sm:$0xff]  ;;  %v22513_v5 = vld [vmem:[#allocation722_spill] sm:$0xff] }
 0xe31   : > { %v22508_v49 = vld [vmem:[#allocation715_spill] sm:$0xff]  ;;  %v22514_v57 = vld [vmem:[#allocation721_spill] sm:$0xff] }
 0xe33   : > { %v10991_v11 = vpop.eup %10990 }
 0xe34   : > { %v10993_v40 = vpop.eup %10992 }
 0xe35   : > { %v10995_v9 = vpop.eup %10994  ;;  %5197 = vmatprep.mubr.f32.mxu0 %v10993_v40 }
 0xe36   : > { %v10997_v60 = vpop.eup %10996  ;;  %5198 = vmatmul.mubr.f32.vlgmr.msra.gmra.mrb[96].mxu0 %v10991_v11 }
 0xe37   : > { %v10999_v50 = vpop.eup %10998  ;;  %5272 = vmatprep.mubr.f32.mxu1 %v10997_v60  ;;  %10367 = vmatpush3.bf16.msra.mxu0 %v22467_v34  ;;  %v22487_v34 = vld [vmem:[#allocation703_spill] sm:$0xff] }
 0xe38   : > { %v11001_v19 = vpop.eup %11000  ;;  %5273 = vmatmul.mubr.f32.vlgmr.msra.gmra.mrb[112].mxu1 %v10995_v9  ;;  %10369 = vmatprep.subr.bf16.mxu0 %v22470_v31  ;;  %v22488_v56 = vpack.c.bf16 %v22486_v3, %v22487_v34  ;;  %v22492_v31 = vld [vmem:[#allocation710_spill] sm:$0xff]  ;;  %v22510_v3 = vld [vmem:[#allocation720_spill] sm:$0xff]  ;;  %v22511_v34 = vld [vmem:[#allocation719_spill] sm:$0xff] }
 0xe39   : > { %v11003_v54 = vpop.eup %11002  ;;  %10399 = vmatpush3.bf16.msra.mxu1 %v22473_v48  ;;  %5202 = vmatprep.mubr.f32.mxu0 %v11001_v19  ;;  %v22494_v4 = vpack.c.bf16 %v22492_v31, %v22493_v58  ;;  %v22495_v48 = vld [vmem:[#allocation708_spill] sm:$0xff]  ;;  %v22516_v31 = vld [vmem:[#allocation726_spill] sm:$0xff]  ;;  %v22517_v58 = vld [vmem:[#allocation725_spill] sm:$0xff] }
 0xe3a   : > { %v11005_v0 = vpop.eup %11004  ;;  %10401 = vmatprep.subr.bf16.mxu1 %v22476_v2  ;;  %5203 = vmatmul.mubr.f32.gmra.mrb[98].mxu0 %v10999_v50  ;;  %v22497_v61 = vpack.c.bf16 %v22495_v48, %v22496_v8  ;;  %v22498_v2 = vld [vmem:[#allocation712_spill] sm:$0xff]  ;;  %v22520_v8 = vld [vmem:[#allocation723_spill] sm:$0xff] }
 0xe3b   : > { %5277 = vmatprep.mubr.f32.mxu1 %v11005_v0  ;;  %10371 = vmatpush3.bf16.msra.mxu0 %v22479_v6  ;;  %v22502_v6 = vld [vmem:[#allocation713_spill] sm:$0xff]  ;;  %v22519_v48 = vld [vmem:[#allocation724_spill] sm:$0xff] }
 0xe3c   : > { %5278 = vmatmul.mubr.f32.gmra.mrb[114].mxu1 %v11003_v54  ;;  %10373 = vmatprep.subr.bf16.mxu0 %v22482_v30  ;;  %v22503_v62 = vpack.c.bf16 %v22501_v33, %v22502_v6  ;;  %v22525_v33 = vld [vmem:[#allocation730_spill] sm:$0xff]  ;;  %v22526_v6 = vld [vmem:[#allocation729_spill] sm:$0xff] }
 0xe3d   : > { %10403 = vmatpush3.bf16.msra.mxu1 %v22485_v17  ;;  %5347 = vmatprep.mubr.f32.mxu0 %v10993_v40  ;;  %v22500_v40 = vpack.c.bf16 %v22498_v2, %v22499_v35  ;;  %v22509_v17 = vpack.c.bf16 %v22507_v12, %v22508_v49  ;;  %v22522_v2 = vld [vmem:[#allocation728_spill] sm:$0xff]  ;;  %v22523_v35 = vld [vmem:[#allocation727_spill] sm:$0xff] }
 0xe3e   : > { %10405 = vmatprep.subr.bf16.mxu1 %v22488_v56  ;;  %5422 = vmatprep.mubr.f32.mxu1 %v10997_v60  ;;  %v22504_v60 = vld [vmem:[#allocation718_spill] sm:$0xff]  ;;  %v22512_v56 = vpack.c.bf16 %v22510_v3, %v22511_v34  ;;  %v22531_v12 = vld [vmem:[#allocation732_spill] sm:$0xff]  ;;  %v22532_v49 = vld [vmem:[#allocation731_spill] sm:$0xff] }
 0xe3f   : > { %10375 = vmatpush3.bf16.msra.mxu0 %v22491_v28  ;;  %v22506_v30 = vpack.c.bf16 %v22504_v60, %v22505_v23  ;;  %v22515_v28 = vpack.c.bf16 %v22513_v5, %v22514_v57  ;;  %v22528_v60 = vld [vmem:[#allocation734_spill] sm:$0xff]  ;;  %v22529_v23 = vld [vmem:[#allocation733_spill] sm:$0xff]  ;;  %v22534_v3 = vld [vmem:[#allocation736_spill] sm:$0xff] }
 0xe40   : > { %10377 = vmatprep.subr.bf16.mxu0 %v22494_v4  ;;  %v22518_v4 = vpack.c.bf16 %v22516_v31, %v22517_v58  ;;  %v22535_v34 = vld [vmem:[#allocation735_spill] sm:$0xff]  ;;  %v22537_v5 = vld [vmem:[#allocation738_spill] sm:$0xff]  ;;  %v22538_v57 = vld [vmem:[#allocation737_spill] sm:$0xff] }
 0xe41   : > { %10407 = vmatpush3.bf16.msra.mxu1 %v22497_v61  ;;  %v22521_v61 = vpack.c.bf16 %v22519_v48, %v22520_v8  ;;  %v22540_v31 = vld [vmem:[#allocation742_spill] sm:$0xff]  ;;  %v22541_v58 = vld [vmem:[#allocation741_spill] sm:$0xff]  ;;  %v22543_v48 = vld [vmem:[#allocation740_spill] sm:$0xff] }
 0xe42   : > { %10409 = vmatprep.subr.bf16.mxu1 %v22500_v40  ;;  %v22524_v40 = vpack.c.bf16 %v22522_v2, %v22523_v35  ;;  %v22544_v8 = vld [vmem:[#allocation739_spill] sm:$0xff]  ;;  %v22546_v2 = vld [vmem:[#allocation744_spill] sm:$0xff] }
 0xe43   : > { %10379 = vmatpush3.bf16.msra.mxu0 %v22503_v62  ;;  %v22527_v62 = vpack.c.bf16 %v22525_v33, %v22526_v6  ;;  %v22547_v35 = vld [vmem:[#allocation743_spill] sm:$0xff]  ;;  %v22549_v33 = vld [vmem:[#allocation746_spill] sm:$0xff]  ;;  %v22550_v6 = vld [vmem:[#allocation745_spill] sm:$0xff] }
 0xe44   : > { %10381 = vmatprep.subr.bf16.mxu0 %v22506_v30  ;;  %v22530_v30 = vpack.c.bf16 %v22528_v60, %v22529_v23  ;;  %v22552_v60 = vld [vmem:[#allocation750_spill] sm:$0xff]  ;;  %v22553_v23 = vld [vmem:[#allocation749_spill] sm:$0xff] }
 0xe45   : > { %10411 = vmatpush3.bf16.msra.mxu1 %v22509_v17  ;;  %v22533_v17 = vpack.c.bf16 %v22531_v12, %v22532_v49  ;;  %v22555_v12 = vld [vmem:[#allocation748_spill] sm:$0xff]  ;;  %v22556_v49 = vld [vmem:[#allocation747_spill] sm:$0xff] }
 0xe46   : > { %10413 = vmatprep.subr.bf16.mxu1 %v22512_v56  ;;  %v22536_v56 = vpack.c.bf16 %v22534_v3, %v22535_v34  ;;  %v22558_v3 = vld [vmem:[#allocation752_spill] sm:$0xff]  ;;  %v22559_v34 = vld [vmem:[#allocation751_spill] sm:$0xff] }
 0xe47   : > { %10383 = vmatpush3.bf16.msra.mxu0 %v22515_v28  ;;  %v22539_v28 = vpack.c.bf16 %v22537_v5, %v22538_v57  ;;  %v22561_v5 = vld [vmem:[#allocation112_spill] sm:$0xff]  ;;  %v22562_v57 = vld [vmem:[#allocation754_spill] sm:$0xff] }
 0xe48   : > { %10385 = vmatprep.subr.bf16.mxu0 %v22518_v4  ;;  %v22542_v4 = vpack.c.bf16 %v22540_v31, %v22541_v58  ;;  %v22565_v58 = vld [vmem:[#allocation758_spill] sm:$0xff] }
 0xe49   : > { %10415 = vmatpush3.bf16.msra.mxu1 %v22521_v61  ;;  %v22545_v61 = vpack.c.bf16 %v22543_v48, %v22544_v8  ;;  %v22568_v8 = vld [vmem:[#allocation756_spill] sm:$0xff] }
 0xe4a   : > { %10417 = vmatprep.subr.bf16.mxu1 %v22524_v40  ;;  %v22548_v40 = vpack.c.bf16 %v22546_v2, %v22547_v35  ;;  %v22577_v35 = vld [vmem:[#allocation766_spill] sm:$0xff] }
 0xe4b   : > { %10387 = vmatpush3.bf16.msra.mxu0 %v22527_v62  ;;  %v22551_v62 = vpack.c.bf16 %v22549_v33, %v22550_v6  ;;  %v22580_v6 = vld [vmem:[#allocation764_spill] sm:$0xff] }
 0xe4c   : > { %10389 = vmatprep.subr.bf16.mxu0 %v22530_v30  ;;  %v22554_v30 = vpack.c.bf16 %v22552_v60, %v22553_v23  ;;  %v22583_v23 = vld [vmem:[#allocation768_spill] sm:$0xff] }
 0xe4d   : > { %10419 = vmatpush3.bf16.msra.mxu1 %v22533_v17  ;;  %v22557_v17 = vpack.c.bf16 %v22555_v12, %v22556_v49  ;;  %v22586_v49 = vld [vmem:[#allocation770_spill] sm:$0xff] }
 0xe4e   : > { %10421 = vmatprep.subr.bf16.mxu1 %v22536_v56  ;;  %v22560_v56 = vpack.c.bf16 %v22558_v3, %v22559_v34  ;;  %v22589_v34 = vld [vmem:[#allocation774_spill] sm:$0xff] }
 0xe4f   : > { %10391 = vmatpush3.bf16.msra.mxu0 %v22539_v28  ;;  %v22563_v28 = vld [vmem:[#allocation753_spill] sm:$0xff] }
 0xe50   : > { %10393 = vmatprep.subr.bf16.mxu0 %v22542_v4  ;;  %v22564_v31 = vpack.c.bf16 %v22562_v57, %v22563_v28  ;;  %v22566_v4 = vld [vmem:[#allocation757_spill] sm:$0xff]  ;;  %v22592_v28 = vld [vmem:[#allocation772_spill] sm:$0xff] }
 0xe51   : > { %10423 = vmatpush3.bf16.msra.mxu1 %v22545_v61  ;;  %v22567_v48 = vpack.c.bf16 %v22565_v58, %v22566_v4  ;;  %v22569_v61 = vld [vmem:[#allocation755_spill] sm:$0xff]  ;;  %v22595_v4 = vld [vmem:[#allocation776_spill] sm:$0xff] }
 0xe52   : > { %10425 = vmatprep.subr.bf16.mxu1 %v22548_v40  ;;  %v22578_v40 = vld [vmem:[#allocation765_spill] sm:$0xff] }
 0xe53   : > { %10395 = vmatpush3.bf16.msra.mxu0 %v22551_v62  ;;  %v22579_v33 = vpack.c.bf16 %v22577_v35, %v22578_v40  ;;  %v22581_v62 = vld [vmem:[#allocation763_spill] sm:$0xff]  ;;  %v22607_v40 = vld [vmem:[#allocation784_spill] sm:$0xff] }
 0xe54   : > { %10429 = vmatprep.subr.bf16.mxu0 %v22554_v30  ;;  %v22582_v60 = vpack.c.bf16 %v22580_v6, %v22581_v62  ;;  %v22584_v30 = vld [vmem:[#allocation767_spill] sm:$0xff]  ;;  %v22610_v62 = vld [vmem:[#allocation786_spill] sm:$0xff] }
 0xe55   : > { %10427 = vmatpush3.bf16.msra.mxu1 %v22557_v17  ;;  %v22585_v12 = vpack.c.bf16 %v22583_v23, %v22584_v30  ;;  %v22587_v17 = vld [vmem:[#allocation769_spill] sm:$0xff]  ;;  %v22613_v30 = vld [vmem:[#allocation790_spill] sm:$0xff] }
 0xe56   : > { %10461 = vmatprep.subr.bf16.mxu1 %v22560_v56  ;;  %5348 = vmatmul.mubr.f32.vlgmr.msra.gmra.mrb[100].mxu0 %v10991_v11  ;;  %v22570_v11 = vpack.c.bf16 %v22568_v8, %v22569_v61  ;;  %v22588_v3 = vpack.c.bf16 %v22586_v49, %v22587_v17  ;;  %v22590_v56 = vld [vmem:[#allocation773_spill] sm:$0xff]  ;;  %v22598_v61 = vld [vmem:[#allocation778_spill] sm:$0xff]  ;;  %v22616_v17 = vld [vmem:[#allocation788_spill] sm:$0xff] }
 0xe57   : > { %5352 = vmatprep.mubr.f32.mxu0 %v11001_v19  ;;  %v22572_v19 = vld [vmem:[#allocation759_spill] sm:$0xff]  ;;  %v22591_v57 = vpack.c.bf16 %v22589_v34, %v22590_v56  ;;  %v22619_v56 = vld [vmem:[#allocation792_spill] sm:$0xff] }
 0xe58   : > { %5423 = vmatmul.mubr.f32.vlgmr.msra.gmra.mrb[116].mxu1 %v10995_v9  ;;  %v22571_v9 = vld [vmem:[#allocation760_spill] sm:$0xff] }
 0xe59   : > { %5427 = vmatprep.mubr.f32.mxu1 %v11005_v0  ;;  %v22574_v0 = vld [vmem:[#allocation762_spill] sm:$0xff] }
 0xe5a   : > { %5353 = vmatmul.mubr.f32.gmra.mrb[102].mxu0 %v10999_v50  ;;  %v22573_v50 = vpack.c.bf16 %v22571_v9, %v22572_v19  ;;  %v22601_v19 = vld [vmem:[#allocation782_spill] sm:$0xff] }
 0xe5b   : > { %8476 = vmatprep.mubr.f32.mxu0 %v22561_v5 }
 0xe5c   : > { %5428 = vmatmul.mubr.f32.gmra.mrb[118].mxu1 %v11003_v54  ;;  %10431 = vmatpush3.bf16.xpose.msra.mxu0 %v22564_v31  ;;  %v22575_v54 = vld [vmem:[#allocation761_spill] sm:$0xff]  ;;  %v22593_v31 = vld [vmem:[#allocation771_spill] sm:$0xff] }
 0xe5d   : > { %8512 = vmatprep.mubr.f32.mxu1 %v22561_v5  ;;  %10433 = vmatprep.subr.bf16.mxu0 %v22567_v48  ;;  %v22576_v2 = vpack.c.bf16 %v22574_v0, %v22575_v54  ;;  %v22594_v58 = vpack.c.bf16 %v22592_v28, %v22593_v31  ;;  %v22596_v48 = vld [vmem:[#allocation775_spill] sm:$0xff]  ;;  %v22604_v54 = vld [vmem:[#allocation780_spill] sm:$0xff]  ;;  %v22622_v31 = vld [vmem:[#allocation794_spill] sm:$0xff] }
 0xe5e   : > { %10463 = vmatpush3.bf16.xpose.msra.mxu1 %v22570_v11  ;;  %v22597_v8 = vpack.c.bf16 %v22595_v4, %v22596_v48  ;;  %v22599_v11 = vld [vmem:[#allocation777_spill] sm:$0xff]  ;;  %v22625_v48 = vld [vmem:[#allocation798_spill] sm:$0xff] }
 0xe5f   : > { %10465 = vmatprep.subr.bf16.mxu1 %v22573_v50  ;;  %v22600_v9 = vpack.c.bf16 %v22598_v61, %v22599_v11  ;;  %v22602_v50 = vld [vmem:[#allocation781_spill] sm:$0xff]  ;;  %v22628_v11 = vld [vmem:[#allocation796_spill] sm:$0xff] }
 0xe60   : > { %v22603_v0 = vpack.c.bf16 %v22601_v19, %v22602_v50  ;;  %v22631_v50 = vld [vmem:[#allocation800_spill] sm:$0xff] }
 0xe64   : > { %10435 = vmatpush3.bf16.xpose.msra.mxu0 %v22576_v2  ;;  %v22605_v2 = vld [vmem:[#allocation779_spill] sm:$0xff] }
 0xe65   : > { %10437 = vmatprep.subr.bf16.mxu0 %v22579_v33  ;;  %v22606_v35 = vpack.c.bf16 %v22604_v54, %v22605_v2  ;;  %v22608_v33 = vld [vmem:[#allocation783_spill] sm:$0xff]  ;;  %v22634_v2 = vld [vmem:[#allocation802_spill] sm:$0xff] }
 0xe66   : > { %10467 = vmatpush3.bf16.xpose.msra.mxu1 %v22582_v60  ;;  %v22609_v6 = vpack.c.bf16 %v22607_v40, %v22608_v33  ;;  %v22611_v60 = vld [vmem:[#allocation785_spill] sm:$0xff]  ;;  %v22637_v33 = vld [vmem:[#allocation806_spill] sm:$0xff] }
 0xe67   : > { %10469 = vmatprep.subr.bf16.mxu1 %v22585_v12  ;;  %v22612_v23 = vpack.c.bf16 %v22610_v62, %v22611_v60  ;;  %v22614_v12 = vld [vmem:[#allocation789_spill] sm:$0xff]  ;;  %v22640_v60 = vld [vmem:[#allocation804_spill] sm:$0xff] }
 0xe68   : > { %v22615_v49 = vpack.c.bf16 %v22613_v30, %v22614_v12  ;;  %v22643_v12 = vld [vmem:[#allocation808_spill] sm:$0xff] }
 0xe6c   : > { %10439 = vmatpush3.bf16.xpose.msra.mxu0 %v22588_v3  ;;  %v22617_v3 = vld [vmem:[#allocation787_spill] sm:$0xff] }
 0xe6d   : > { %10441 = vmatprep.subr.bf16.mxu0 %v22591_v57  ;;  %v22618_v34 = vpack.c.bf16 %v22616_v17, %v22617_v3  ;;  %v22620_v57 = vld [vmem:[#allocation791_spill] sm:$0xff]  ;;  %v22646_v3 = vld [vmem:[#allocation810_spill] sm:$0xff] }
 0xe6e   : > { %10471 = vmatpush3.bf16.xpose.msra.mxu1 %v22594_v58  ;;  %v22621_v28 = vpack.c.bf16 %v22619_v56, %v22620_v57  ;;  %v22623_v58 = vld [vmem:[#allocation793_spill] sm:$0xff]  ;;  %v22649_v57 = vld [vmem:[#allocation812_spill] sm:$0xff] }
 0xe6f   : > { %10473 = vmatprep.subr.bf16.mxu1 %v22597_v8  ;;  %v22624_v4 = vpack.c.bf16 %v22622_v31, %v22623_v58  ;;  %v22626_v8 = vld [vmem:[#allocation797_spill] sm:$0xff]  ;;  %v22652_v58 = vld [vmem:[#allocation122_spill] sm:$0xff] }
 0xe70   : > { %v22627_v61 = vpack.c.bf16 %v22625_v48, %v22626_v8  ;;  %v22656_v8 = vld [vmem:[#allocation814_spill] sm:$0xff] }
 0xe74   : > { %10443 = vmatpush3.bf16.xpose.msra.mxu0 %v22600_v9  ;;  %v22629_v9 = vld [vmem:[#allocation795_spill] sm:$0xff] }
 0xe75   : > { %10445 = vmatprep.subr.bf16.mxu0 %v22603_v0  ;;  %v22630_v19 = vpack.c.bf16 %v22628_v11, %v22629_v9  ;;  %v22632_v0 = vld [vmem:[#allocation799_spill] sm:$0xff] }
 0xe76   : > { %10475 = vmatpush3.bf16.xpose.msra.mxu1 %v22606_v35  ;;  %v22633_v54 = vpack.c.bf16 %v22631_v50, %v22632_v0  ;;  %v22635_v35 = vld [vmem:[#allocation801_spill] sm:$0xff] }
 0xe77   : > { %10477 = vmatprep.subr.bf16.mxu1 %v22609_v6  ;;  %v22636_v40 = vpack.c.bf16 %v22634_v2, %v22635_v35  ;;  %v22638_v6 = vld [vmem:[#allocation805_spill] sm:$0xff] }
 0xe78   : > { %v22639_v62 = vpack.c.bf16 %v22637_v33, %v22638_v6 }
 0xe7c   : > { %10447 = vmatpush3.bf16.xpose.msra.mxu0 %v22612_v23  ;;  %v22641_v23 = vld [vmem:[#allocation803_spill] sm:$0xff] }
 0xe7d   : > { %10449 = vmatprep.subr.bf16.mxu0 %v22615_v49  ;;  %v22642_v30 = vpack.c.bf16 %v22640_v60, %v22641_v23  ;;  %v22644_v49 = vld [vmem:[#allocation807_spill] sm:$0xff] }
 0xe7e   : > { %10479 = vmatpush3.bf16.xpose.msra.mxu1 %v22618_v34  ;;  %v22645_v17 = vpack.c.bf16 %v22643_v12, %v22644_v49  ;;  %v22647_v34 = vld [vmem:[#allocation809_spill] sm:$0xff] }
 0xe7f   : > { %10481 = vmatprep.subr.bf16.mxu1 %v22621_v28  ;;  %v22648_v56 = vpack.c.bf16 %v22646_v3, %v22647_v34  ;;  %v22650_v28 = vld [vmem:[#allocation811_spill] sm:$0xff] }
 0xe80   : > { %v22651_v31 = vpack.c.bf16 %v22649_v57, %v22650_v28 }
 0xe84   : > { %10451 = vmatpush3.bf16.xpose.msra.mxu0 %v22624_v4  ;;  %v22654_v4 = vld [vmem:[#allocation72_spill] sm:$0xff] }
 0xe85   : > { %10453 = vmatprep.subr.bf16.mxu0 %v22627_v61  ;;  %v22657_v61 = vld [vmem:[#allocation813_spill] sm:$0xff] }
 0xe86   : > { %10483 = vmatpush3.bf16.xpose.msra.mxu1 %v22630_v19  ;;  %v22658_v11 = vpack.c.bf16 %v22656_v8, %v22657_v61 }
 0xe87   : > { %10485 = vmatprep.subr.bf16.mxu1 %v22633_v54 }
 0xe8c   : > { %10455 = vmatpush3.bf16.xpose.msra.mxu0 %v22636_v40 }
 0xe8d   : > { %10457 = vmatprep.subr.bf16.mxu0 %v22639_v62 }
 0xe8e   : > { %10487 = vmatpush3.bf16.xpose.msra.mxu1 %v22642_v30 }
 0xe8f   : > { %10489 = vmatprep.subr.bf16.mxu1 %v22645_v17 }
 0xe94   : > { %10459 = vmatpush3.bf16.xpose.msra.mxu0 %v22648_v56 }
 0xe95   : > { %10493 = vmatprep.subr.bf16.mxu0 %v21641_v21 }
 0xe96   : > { %10491 = vmatpush3.bf16.xpose.msra.mxu1 %v22651_v31 }
 0xe97   : > { %10525 = vmatprep.subr.bf16.mxu1 %v21645_v44 }
 0xe9b   : > { %8477 = vmatmul.mubr.f32.vlgmr.msra.gmra.mrb[104].mxu0 %v22561_v5 }
 0xe9c   : > { %8478 = vmatprep.mubr.f32.mxu0 %v22652_v58  ;;  %10495 = vmatpush3.bf16.msra.mxu0 %v21647_v26 }
 0xe9d   : > { %8513 = vmatmul.mubr.f32.vlgmr.msra.gmra.mrb[120].mxu1 %v22561_v5  ;;  %10497 = vmatprep.subr.bf16.mxu0 %v21648_v63  ;;  %v22653_v5 = vld [vmem:[#allocation71_spill] sm:$0xff] }
 0xe9e   : > { %8514 = vmatprep.mubr.f32.mxu1 %v22652_v58  ;;  %10527 = vmatpush3.bf16.msra.mxu1 %v21649_v46  ;;  %v22655_v48 = vpack.c.bf16 %v22653_v5, %v22654_v4 }
 0xe9f   : > { %8479 = vmatmul.mubr.f32.gmra.mrb[106].mxu0 %v22652_v58  ;;  %10529 = vmatprep.subr.bf16.mxu1 %v21650_v55 }
 0xea0   : > { %10499 = vmatpush3.bf16.msra.mxu0 %v21651_v53 }
 0xea1   : > { %8515 = vmatmul.mubr.f32.gmra.mrb[122].mxu1 %v22652_v58  ;;  %10501 = vmatprep.subr.bf16.mxu0 %v21652_v36 }
 0xea2   : > { %10531 = vmatpush3.bf16.msra.mxu1 %v21653_v45 }
 0xea3   : > { %10533 = vmatprep.subr.bf16.mxu1 %v21654_v15 }
 0xea4   : > { %10503 = vmatpush3.bf16.msra.mxu0 %v21655_v51 }
 0xea5   : > { %10505 = vmatprep.subr.bf16.mxu0 %v21656_v25 }
 0xea6   : > { %10535 = vmatpush3.bf16.msra.mxu1 %v21657_v47 }
 0xea7   : > { %10537 = vmatprep.subr.bf16.mxu1 %v21658_v7 }
 0xea8   : > { %10507 = vmatpush3.bf16.msra.mxu0 %v21659_v59 }
 0xea9   : > { %10509 = vmatprep.subr.bf16.mxu0 %v21660_v32 }
 0xeaa   : > { %10539 = vmatpush3.bf16.msra.mxu1 %v21661_v16 }
 0xeab   : > { %10541 = vmatprep.subr.bf16.mxu1 %v21662_v24 }
 0xeac   : > { %10511 = vmatpush3.bf16.msra.mxu0 %v21663_v52 }
 0xead   : > { %10513 = vmatprep.subr.bf16.mxu0 %v21664_v1 }
 0xeae   : > { %10543 = vmatpush3.bf16.msra.mxu1 %v21665_v22 }
 0xeaf   : > { %10545 = vmatprep.subr.bf16.mxu1 %v21666_v27 }
 0xeb0   : > { %10515 = vmatpush3.bf16.msra.mxu0 %v21667_v14 }
 0xeb1   : > { %10517 = vmatprep.subr.bf16.mxu0 %v21668_v29 }
 0xeb2   : > { %10547 = vmatpush3.bf16.msra.mxu1 %v21669_v13 }
 0xeb3   : > { %10549 = vmatprep.subr.bf16.mxu1 %v21670_v10 }
 0xeb4   : > { %10519 = vmatpush3.bf16.msra.mxu0 %v21671_v37 }
 0xeb5   : > { %10521 = vmatprep.subr.bf16.mxu0 %v21672_v18 }
 0xeb6   : > { %10551 = vmatpush3.bf16.msra.mxu1 %v21673_v20 }
 0xeb7   : > { %10553 = vmatprep.subr.bf16.mxu1 %v21674_v43 }
 0xeb8   : > { %10523 = vmatpush3.bf16.msra.mxu0 %v21675_v38 }
 0xeb9   : > { %10557 = vmatprep.subr.bf16.mxu0 %v22655_v48 }
 0xeba   : > { %10555 = vmatpush3.bf16.msra.mxu1 %v21679_v42 }
 0xebb   : > { %10589 = vmatprep.subr.bf16.mxu1 %v22658_v11 }
 0xf09   : > { %v8324_v9 = vpop.f32.mrb[96].mxu0 }
 0xf0a   : > { %v8325_v19 = vpop.f32.mrb[97].mxu0 }
 0xf0b   : > { %v8362_v50 = vpop.f32.mrb[112].mxu1  ;;  %v8326_v0 = vadd.f32 %v8325_v19, %v8324_v9 }
 0xf0c   : > { %v8363_v54 = vpop.f32.mrb[113].mxu1 }
 0xf0d   : > { %v8364_v2 = vadd.f32 %v8363_v54, %v8362_v50  ;;  %v8327_v35 = vpop.f32.mrb[98].mxu0 }
 0xf0e   : > { %v8328_v40 = vpop.f32.mrb[99].mxu0 }
 0xf0f   : > { %v5275_v33 = vadd.f32 %v8364_v2, %v8326_v0  ;;  %v8365_v6 = vpop.f32.mrb[114].mxu1  ;;  %v8329_v62 = vadd.f32 %v8328_v40, %v8327_v35 }
 0xf10   : > { %v8366_v60 = vpop.f32.mrb[115].mxu1 }
 0xf11   : > { %v8367_v23 = vadd.f32 %v8366_v60, %v8365_v6 }
 0xf13   : > { %v5280_v30 = vadd.f32 %v8367_v23, %v8329_v62 }
 0xf29   : > { %v8400_v12 = vpop.f32.mrb[100].mxu0 }
 0xf2a   : > { %v8401_v49 = vpop.f32.mrb[101].mxu0 }
 0xf2b   : > { %v8438_v17 = vpop.f32.mrb[116].mxu1  ;;  %v8402_v3 = vadd.f32 %v8401_v49, %v8400_v12  ;;  %v5433_v12 = vmax.f32 %v5275_v33, 1e-30  ;;  %v5434_v49 = vmax.f32 %v5280_v30, 1e-30 }
 0xf2c   : > { %v8439_v34 = vpop.f32.mrb[117].mxu1 }
 0xf2d   : > { %v8440_v56 = vadd.f32 %v8439_v34, %v8438_v17  ;;  %v8403_v57 = vpop.f32.mrb[102].mxu0  ;;  %11006 = vrcp.f32 %v5433_v12 }
 0xf2e   : > { %v8404_v28 = vpop.f32.mrb[103].mxu0  ;;  %11008 = vrcp.f32 %v5434_v49  ;;  %v22659_v49 = vld [vmem:[#allocation816_spill] sm:$0xff] }
 0xf2f   : > { %v5425_v31 = vadd.f32 %v8440_v56, %v8402_v3  ;;  %v8441_v58 = vpop.f32.mrb[118].mxu1  ;;  %v8405_v5 = vadd.f32 %v8404_v28, %v8403_v57 }
 0xf30   : > { %v8442_v4 = vpop.f32.mrb[119].mxu1 }
 0xf31   : > { %v8443_v48 = vadd.f32 %v8442_v4, %v8441_v58 }
 0xf33   : > { %v5430_v8 = vadd.f32 %v8443_v48, %v8405_v5 }
 0xf6e   : > { %v5645_v61 = vpop.f32.mrb[104].mxu0 }
 0xf6f   : > { %v5647_v11 = vpop.f32.mrb[105].mxu0 }
 0xf70   : > { %v5722_v9 = vpop.f32.mrb[120].mxu1 }
 0xf71   : > { %v5733_v19 = vmax.f32 %v5645_v61, %v5722_v9  ;;  %v5724_v50 = vpop.f32.mrb[121].mxu1 }
 0xf72   : > { %v5734_v0 = vmax.f32 %v5647_v11, %v5724_v50  ;;  %v5651_v54 = vpop.f32.mrb[106].mxu0 }
 0xf73   : > { %v5653_v2 = vpop.f32.mrb[107].mxu0 }
 0xf74   : > { %v5728_v35 = vpop.f32.mrb[122].mxu1  ;;  %v5735_v40 = vmax.f32 %v5733_v19, %v5734_v0 }
 0xf75   : > { %v5738_v6 = vmax.f32 %v5651_v54, %v5728_v35  ;;  %v5730_v62 = vpop.f32.mrb[123].mxu1 }
 0xf76   : > { %v5739_v60 = vmax.f32 %v5653_v2, %v5730_v62  ;;  %5736 = vmax.xlane.f32.xlu0 %v5735_v40 }
 0xf78   : > { %v5740_v23 = vmax.f32 %v5738_v6, %v5739_v60 }
 0xf7a   : > { %5741 = vmax.xlane.f32.xlu1 %v5740_v23 }
0x1003   : > { %v5737_v17 = vpop.xlane.xlu0 %5736 }
0x1004   : > { %v5743_v3 = vsub.f32 %v5645_v61, %v5737_v17  ;;  %v5744_v34 = vsub.f32 %v5647_v11, %v5737_v17  ;;  %v5745_v56 = vsub.f32 %v5722_v9, %v5737_v17  ;;  %v5746_v57 = vsub.f32 %v5724_v50, %v5737_v17  ;;  %v11007_v9 = vpop.eup %11006  ;;  %v22660_v17 = vld [vmem:[#allocation815_spill] sm:$0xff] }
0x1005   : > { %v11009_v50 = vpop.eup %11008  ;;  %v18770_v60 = vmul.f32 %v11007_v9, %v5425_v31  ;;  %v22677_v9 = vld [vmem:[#allocation826_spill] sm:$0xff] }
0x1006   : > { %v5751_v28 = vmul.f32 1.442695, %v5743_v3  ;;  %v5753_v58 = vmul.f32 1.442695, %v5744_v34  ;;  %v5755_v5 = vmul.f32 1.442695, %v5745_v56  ;;  %v22661_v3 = vpack.c.bf16 %v22659_v49, %v22660_v17 }
0x1007   : > { %v5757_v4 = vmul.f32 1.442695, %v5746_v57  ;;  %v5742_v48 = vpop.xlane.xlu1 %5741  ;;  %v22662_v56 = vld [vmem:[#allocation820_spill] sm:$0xff]  ;;  %v22663_v57 = vld [vmem:[#allocation819_spill] sm:$0xff]  ;;  %v22680_v17 = vld [vmem:[#allocation830_spill] sm:$0xff] }
0x1008   : > { %11010 = vpow2.f32 %v5751_v28  ;;  %v5747_v19 = vsub.f32 %v5651_v54, %v5742_v48  ;;  %v5748_v0 = vsub.f32 %v5653_v2, %v5742_v48  ;;  %v5749_v40 = vsub.f32 %v5728_v35, %v5742_v48 }
0x1009   : > { %11012 = vpow2.f32 %v5753_v58  ;;  %v5750_v6 = vsub.f32 %v5730_v62, %v5742_v48  ;;  %v18772_v62 = vmul.f32 %v11009_v50, %v5430_v8  ;;  %v22664_v31 = vpack.c.bf16 %v22662_v56, %v22663_v57  ;;  %v22665_v58 = vld [vmem:[#allocation818_spill] sm:$0xff]  ;;  %v22678_v50 = vld [vmem:[#allocation825_spill] sm:$0xff]  ;;  %v22683_v57 = vld [vmem:[#allocation832_spill] sm:$0xff] }
0x100a   : > { %11014 = vpow2.f32 %v5755_v5  ;;  %v5759_v33 = vmul.f32 1.442695, %v5747_v19  ;;  %v5761_v30 = vmul.f32 1.442695, %v5748_v0  ;;  %v5763_v61 = vmul.f32 1.442695, %v5749_v40 }
0x100b   : > { %11016 = vpow2.f32 %v5757_v4  ;;  %v5765_v11 = vmul.f32 1.442695, %v5750_v6  ;;  %v22666_v5 = vld [vmem:[#allocation817_spill] sm:$0xff]  ;;  %v22668_v48 = vld [vmem:[#allocation822_spill] sm:$0xff]  ;;  %v22671_v40 = vld [vmem:[#allocation824_spill] sm:$0xff]  ;;  %v22679_v49 = vpack.c.bf16 %v22677_v9, %v22678_v50 }
0x100c   : > { %11018 = vpow2.f32 %v5759_v33  ;;  %v22667_v4 = vpack.c.bf16 %v22665_v58, %v22666_v5  ;;  %v22669_v19 = vld [vmem:[#allocation821_spill] sm:$0xff]  ;;  %v22672_v6 = vld [vmem:[#allocation823_spill] sm:$0xff]  ;;  %v22686_v5 = vld [vmem:[#allocation836_spill] sm:$0xff] }
0x100d   : > { %11020 = vpow2.f32 %v5761_v30  ;;  %v22670_v0 = vpack.c.bf16 %v22668_v48, %v22669_v19  ;;  %v22673_v33 = vpack.c.bf16 %v22671_v40, %v22672_v6  ;;  %v22674_v30 = vld [vmem:[#allocation828_spill] sm:$0xff]  ;;  %v22689_v19 = vld [vmem:[#allocation834_spill] sm:$0xff]  ;;  %v22699_v9 = vld [vmem:[#allocation843_spill] sm:$0xff] }
0x100e   : > { %11022 = vpow2.f32 %v5763_v61  ;;  %v22675_v61 = vld [vmem:[#allocation827_spill] sm:$0xff]  ;;  %v22692_v6 = vld [vmem:[#allocation838_spill] sm:$0xff] }
0x100f   : > { %11024 = vpow2.f32 %v5765_v11  ;;  %v22676_v11 = vpack.c.bf16 %v22674_v30, %v22675_v61  ;;  %v22695_v30 = vld [vmem:[#allocation840_spill] sm:$0xff]  ;;  %v22696_v61 = vld [vmem:[#allocation839_spill] sm:$0xff] }
0x1012   : > { %v11011_v23 = vpop.eup %11010 }
0x1013   : > { %v11013_v54 = vpop.eup %11012 }
0x1014   : > { %v11015_v2 = vpop.eup %11014  ;;  %5831 = vmatprep.mubr.f32.mxu0 %v11013_v54 }
0x1015   : > { %v11017_v35 = vpop.eup %11016  ;;  %5832 = vmatmul.mubr.f32.vlgmr.msra.gmra.mrb[108].mxu0 %v11011_v23 }
0x1016   : > { %v11019_v12 = vpop.eup %11018  ;;  %5906 = vmatprep.mubr.f32.mxu1 %v11017_v35  ;;  %10559 = vmatpush3.bf16.msra.mxu0 %v22661_v3  ;;  %v22681_v3 = vld [vmem:[#allocation829_spill] sm:$0xff] }
0x1017   : > { %v11021_v34 = vpop.eup %11020  ;;  %5907 = vmatmul.mubr.f32.vlgmr.msra.gmra.mrb[124].mxu1 %v11015_v2  ;;  %10561 = vmatprep.subr.bf16.mxu0 %v22664_v31  ;;  %v22682_v56 = vpack.c.bf16 %v22680_v17, %v22681_v3  ;;  %v22684_v31 = vld [vmem:[#allocation831_spill] sm:$0xff]  ;;  %v22702_v17 = vld [vmem:[#allocation841_spill] sm:$0xff] }
0x1018   : > { %v11023_v28 = vpop.eup %11022  ;;  %10591 = vmatpush3.bf16.msra.mxu1 %v22667_v4  ;;  %5836 = vmatprep.mubr.f32.mxu0 %v11021_v34  ;;  %v22685_v58 = vpack.c.bf16 %v22683_v57, %v22684_v31  ;;  %v22687_v4 = vld [vmem:[#allocation835_spill] sm:$0xff]  ;;  %v22705_v57 = vld [vmem:[#allocation845_spill] sm:$0xff] }
0x1019   : > { %v11025_v8 = vpop.eup %11024  ;;  %10593 = vmatprep.subr.bf16.mxu1 %v22670_v0  ;;  %5837 = vmatmul.mubr.f32.gmra.mrb[110].mxu0 %v11019_v12  ;;  %v22688_v48 = vpack.c.bf16 %v22686_v5, %v22687_v4  ;;  %v22690_v0 = vld [vmem:[#allocation833_spill] sm:$0xff]  ;;  %v22708_v5 = vld [vmem:[#allocation847_spill] sm:$0xff] }
0x101a   : > { %5911 = vmatprep.mubr.f32.mxu1 %v11025_v8  ;;  %10563 = vmatpush3.bf16.msra.mxu0 %v22673_v33  ;;  %v22691_v40 = vpack.c.bf16 %v22689_v19, %v22690_v0  ;;  %v22693_v33 = vld [vmem:[#allocation837_spill] sm:$0xff]  ;;  %v22711_v19 = vld [vmem:[#allocation851_spill] sm:$0xff] }
0x101b   : > { %5912 = vmatmul.mubr.f32.gmra.mrb[126].mxu1 %v11023_v28  ;;  %10565 = vmatprep.subr.bf16.mxu0 %v22676_v11  ;;  %v22697_v11 = vpack.c.bf16 %v22695_v30, %v22696_v61  ;;  %v22717_v30 = vld [vmem:[#allocation853_spill] sm:$0xff] }
0x101c   : > { %10595 = vmatpush3.bf16.msra.mxu1 %v22679_v49  ;;  %5981 = vmatprep.mubr.f32.mxu0 %v11013_v54  ;;  %v22694_v54 = vpack.c.bf16 %v22692_v6, %v22693_v33  ;;  %v22701_v49 = vld [vmem:[#allocation842_spill] sm:$0xff]  ;;  %v22714_v6 = vld [vmem:[#allocation849_spill] sm:$0xff] }
0x101d   : > { %10597 = vmatprep.subr.bf16.mxu1 %v22682_v56  ;;  %6056 = vmatprep.mubr.f32.mxu1 %v11017_v35  ;;  %v22698_v35 = vld [vmem:[#allocation844_spill] sm:$0xff]  ;;  %v22703_v3 = vpack.c.bf16 %v22701_v49, %v22702_v17  ;;  %v22704_v56 = vld [vmem:[#allocation846_spill] sm:$0xff]  ;;  %v22723_v49 = vld [vmem:[#allocation859_spill] sm:$0xff] }
0x101e   : > { %10567 = vmatpush3.bf16.msra.mxu0 %v22685_v58  ;;  %v22700_v50 = vpack.c.bf16 %v22698_v35, %v22699_v9  ;;  %v22706_v31 = vpack.c.bf16 %v22704_v56, %v22705_v57  ;;  %v22707_v58 = vld [vmem:[#allocation848_spill] sm:$0xff]  ;;  %v22720_v35 = vld [vmem:[#allocation855_spill] sm:$0xff]  ;;  %v22726_v56 = vld [vmem:[#allocation857_spill] sm:$0xff] }
0x101f   : > { %10569 = vmatprep.subr.bf16.mxu0 %v22688_v48  ;;  %v22709_v4 = vpack.c.bf16 %v22707_v58, %v22708_v5  ;;  %v22710_v48 = vld [vmem:[#allocation852_spill] sm:$0xff]  ;;  %v22729_v58 = vld [vmem:[#allocation861_spill] sm:$0xff] }
0x1020   : > { %10599 = vmatpush3.bf16.msra.mxu1 %v22691_v40  ;;  %v22712_v0 = vpack.c.bf16 %v22710_v48, %v22711_v19  ;;  %v22713_v40 = vld [vmem:[#allocation850_spill] sm:$0xff]  ;;  %v22732_v48 = vld [vmem:[#allocation863_spill] sm:$0xff] }
0x1021   : > { %10601 = vmatprep.subr.bf16.mxu1 %v22694_v54  ;;  %v22715_v33 = vpack.c.bf16 %v22713_v40, %v22714_v6  ;;  %v22716_v54 = vld [vmem:[#allocation854_spill] sm:$0xff]  ;;  %v22735_v40 = vld [vmem:[#allocation867_spill] sm:$0xff] }
0x1022   : > { %10571 = vmatpush3.bf16.msra.mxu0 %v22697_v11  ;;  %v22718_v61 = vpack.c.bf16 %v22716_v54, %v22717_v30  ;;  %v22719_v11 = vld [vmem:[#allocation856_spill] sm:$0xff]  ;;  %v22738_v54 = vld [vmem:[#allocation865_spill] sm:$0xff] }
0x1023   : > { %10573 = vmatprep.subr.bf16.mxu0 %v22700_v50  ;;  %v22721_v9 = vpack.c.bf16 %v22719_v11, %v22720_v35  ;;  %v22722_v50 = vld [vmem:[#allocation860_spill] sm:$0xff]  ;;  %v22741_v11 = vld [vmem:[#allocation869_spill] sm:$0xff] }
0x1024   : > { %10603 = vmatpush3.bf16.msra.mxu1 %v22703_v3  ;;  %v22724_v17 = vpack.c.bf16 %v22722_v50, %v22723_v49  ;;  %v22725_v3 = vld [vmem:[#allocation858_spill] sm:$0xff]  ;;  %v22744_v50 = vld [vmem:[#allocation871_spill] sm:$0xff] }
0x1025   : > { %10605 = vmatprep.subr.bf16.mxu1 %v22706_v31  ;;  %v22727_v57 = vpack.c.bf16 %v22725_v3, %v22726_v56  ;;  %v22728_v31 = vld [vmem:[#allocation862_spill] sm:$0xff]  ;;  %v22747_v3 = vld [vmem:[#allocation875_spill] sm:$0xff] }
0x1026   : > { %10575 = vmatpush3.bf16.msra.mxu0 %v22709_v4  ;;  %v22730_v5 = vpack.c.bf16 %v22728_v31, %v22729_v58  ;;  %v22731_v4 = vld [vmem:[#allocation864_spill] sm:$0xff]  ;;  %v22750_v31 = vld [vmem:[#allocation873_spill] sm:$0xff] }
0x1027   : > { %10577 = vmatprep.subr.bf16.mxu0 %v22712_v0  ;;  %v22733_v19 = vpack.c.bf16 %v22731_v4, %v22732_v48  ;;  %v22734_v0 = vld [vmem:[#allocation868_spill] sm:$0xff]  ;;  %v22753_v4 = vld [vmem:[#allocation877_spill] sm:$0xff] }
0x1028   : > { %10607 = vmatpush3.bf16.msra.mxu1 %v22715_v33  ;;  %v22736_v6 = vpack.c.bf16 %v22734_v0, %v22735_v40  ;;  %v22737_v33 = vld [vmem:[#allocation866_spill] sm:$0xff]  ;;  %v22756_v0 = vld [vmem:[#allocation880_spill] sm:$0xff]  ;;  %v22757_v40 = vld [vmem:[#allocation879_spill] sm:$0xff] }
0x1029   : > { %10609 = vmatprep.subr.bf16.mxu1 %v22718_v61  ;;  %v22739_v30 = vpack.c.bf16 %v22737_v33, %v22738_v54  ;;  %v22740_v61 = vld [vmem:[#allocation870_spill] sm:$0xff]  ;;  %v22759_v33 = vld [vmem:[#allocation884_spill] sm:$0xff]  ;;  %v22760_v54 = vld [vmem:[#allocation883_spill] sm:$0xff] }
0x102a   : > { %10579 = vmatpush3.bf16.msra.mxu0 %v22721_v9  ;;  %v22742_v35 = vpack.c.bf16 %v22740_v61, %v22741_v11  ;;  %v22743_v9 = vld [vmem:[#allocation872_spill] sm:$0xff]  ;;  %v22762_v61 = vld [vmem:[#allocation882_spill] sm:$0xff]  ;;  %v22763_v11 = vld [vmem:[#allocation881_spill] sm:$0xff] }
0x102b   : > { %10581 = vmatprep.subr.bf16.mxu0 %v22724_v17  ;;  %v22745_v49 = vpack.c.bf16 %v22743_v9, %v22744_v50  ;;  %v22746_v17 = vld [vmem:[#allocation876_spill] sm:$0xff]  ;;  %v22772_v50 = vld [vmem:[#allocation891_spill] sm:$0xff] }
0x102c   : > { %10611 = vmatpush3.bf16.msra.mxu1 %v22727_v57  ;;  %v22748_v56 = vpack.c.bf16 %v22746_v17, %v22747_v3  ;;  %v22749_v57 = vld [vmem:[#allocation874_spill] sm:$0xff]  ;;  %v22771_v9 = vld [vmem:[#allocation892_spill] sm:$0xff]  ;;  %v22775_v3 = vld [vmem:[#allocation889_spill] sm:$0xff] }
0x102d   : > { %10613 = vmatprep.subr.bf16.mxu1 %v22730_v5  ;;  %v22751_v58 = vpack.c.bf16 %v22749_v57, %v22750_v31  ;;  %v22752_v5 = vld [vmem:[#allocation878_spill] sm:$0xff]  ;;  %v22778_v31 = vld [vmem:[#allocation893_spill] sm:$0xff] }
0x102e   : > { %10583 = vmatpush3.bf16.msra.mxu0 %v22733_v19  ;;  %v22754_v48 = vpack.c.bf16 %v22752_v5, %v22753_v4  ;;  %v22755_v19 = vld [vmem:[#allocation129_spill] sm:$0xff]  ;;  %v22774_v17 = vld [vmem:[#allocation890_spill] sm:$0xff]  ;;  %v22780_v5 = vld [vmem:[#allocation896_spill] sm:$0xff] }
0x102f   : > { %10585 = vmatprep.subr.bf16.mxu0 %v22736_v6  ;;  %v22758_v6 = vpack.c.bf16 %v22756_v0, %v22757_v40  ;;  %v22777_v57 = vld [vmem:[#allocation894_spill] sm:$0xff]  ;;  %v22781_v4 = vld [vmem:[#allocation895_spill] sm:$0xff]  ;;  %v22783_v0 = vld [vmem:[#allocation900_spill] sm:$0xff] }
0x1030   : > { %10615 = vmatpush3.bf16.msra.mxu1 %v22739_v30  ;;  %v22761_v30 = vpack.c.bf16 %v22759_v33, %v22760_v54  ;;  %v22784_v40 = vld [vmem:[#allocation899_spill] sm:$0xff]  ;;  %v22786_v33 = vld [vmem:[#allocation898_spill] sm:$0xff]  ;;  %v22787_v54 = vld [vmem:[#allocation897_spill] sm:$0xff] }
0x1031   : > { %10617 = vmatprep.subr.bf16.mxu1 %v22742_v35 }
0x1032   : > { %10587 = vmatpush3.bf16.msra.mxu0 %v22745_v49  ;;  %v22773_v49 = vpack.c.bf16 %v22771_v9, %v22772_v50  ;;  %v22798_v9 = vld [vmem:[#allocation906_spill] sm:$0xff]  ;;  %v22799_v50 = vld [vmem:[#allocation905_spill] sm:$0xff] }
0x1033   : > { %10621 = vmatprep.subr.bf16.mxu0 %v22748_v56  ;;  %v22776_v56 = vpack.c.bf16 %v22774_v17, %v22775_v3  ;;  %v22801_v17 = vld [vmem:[#allocation910_spill] sm:$0xff]  ;;  %v22802_v3 = vld [vmem:[#allocation909_spill] sm:$0xff] }
0x1034   : > { %10619 = vmatpush3.bf16.msra.mxu1 %v22751_v58  ;;  %v22779_v58 = vpack.c.bf16 %v22777_v57, %v22778_v31  ;;  %v22804_v57 = vld [vmem:[#allocation912_spill] sm:$0xff]  ;;  %v22805_v31 = vld [vmem:[#allocation911_spill] sm:$0xff] }
0x1035   : > { %10653 = vmatprep.subr.bf16.mxu1 %v22754_v48  ;;  %5982 = vmatmul.mubr.f32.vlgmr.msra.gmra.mrb[112].mxu0 %v11011_v23  ;;  %v22764_v23 = vpack.c.bf16 %v22762_v61, %v22763_v11  ;;  %v22782_v48 = vpack.c.bf16 %v22780_v5, %v22781_v4  ;;  %v22789_v61 = vld [vmem:[#allocation902_spill] sm:$0xff]  ;;  %v22790_v11 = vld [vmem:[#allocation901_spill] sm:$0xff]  ;;  %v22807_v5 = vld [vmem:[#allocation916_spill] sm:$0xff] }
0x1036   : > { %5986 = vmatprep.mubr.f32.mxu0 %v11021_v34  ;;  %v22766_v34 = vld [vmem:[#allocation885_spill] sm:$0xff]  ;;  %v22808_v4 = vld [vmem:[#allocation915_spill] sm:$0xff] }
0x1037   : > { %6057 = vmatmul.mubr.f32.vlgmr.msra.gmra.mrb[128].mxu1 %v11015_v2  ;;  %v22765_v2 = vld [vmem:[#allocation886_spill] sm:$0xff] }
0x1038   : > { %6061 = vmatprep.mubr.f32.mxu1 %v11025_v8  ;;  %v22768_v8 = vld [vmem:[#allocation888_spill] sm:$0xff] }
0x1039   : > { %5987 = vmatmul.mubr.f32.gmra.mrb[114].mxu0 %v11019_v12  ;;  %v22767_v12 = vpack.c.bf16 %v22765_v2, %v22766_v34  ;;  %v22792_v2 = vld [vmem:[#allocation904_spill] sm:$0xff]  ;;  %v22793_v34 = vld [vmem:[#allocation903_spill] sm:$0xff] }
0x103a   : > { %8700 = vmatprep.mubr.f32.mxu0 %v22755_v19 }
0x103b   : > { %6062 = vmatmul.mubr.f32.gmra.mrb[130].mxu1 %v11023_v28  ;;  %10623 = vmatpush3.bf16.xpose.msra.mxu0 %v22758_v6  ;;  %v22769_v28 = vld [vmem:[#allocation887_spill] sm:$0xff]  ;;  %v22785_v6 = vpack.c.bf16 %v22783_v0, %v22784_v40  ;;  %v22810_v0 = vld [vmem:[#allocation914_spill] sm:$0xff]  ;;  %v22811_v40 = vld [vmem:[#allocation913_spill] sm:$0xff] }
0x103c   : > { %8736 = vmatprep.mubr.f32.mxu1 %v22755_v19  ;;  %10625 = vmatprep.subr.bf16.mxu0 %v22761_v30  ;;  %v22770_v35 = vpack.c.bf16 %v22768_v8, %v22769_v28  ;;  %v22788_v30 = vpack.c.bf16 %v22786_v33, %v22787_v54  ;;  %v22795_v8 = vld [vmem:[#allocation908_spill] sm:$0xff]  ;;  %v22796_v28 = vld [vmem:[#allocation907_spill] sm:$0xff]  ;;  %v22813_v33 = vld [vmem:[#allocation918_spill] sm:$0xff] }
0x103d   : > { %10655 = vmatpush3.bf16.xpose.msra.mxu1 %v22764_v23  ;;  %v22791_v23 = vpack.c.bf16 %v22789_v61, %v22790_v11  ;;  %v22814_v54 = vld [vmem:[#allocation917_spill] sm:$0xff]  ;;  %v22816_v61 = vld [vmem:[#allocation920_spill] sm:$0xff]  ;;  %v22817_v11 = vld [vmem:[#allocation919_spill] sm:$0xff] }
0x103e   : > { %10657 = vmatprep.subr.bf16.mxu1 %v22767_v12  ;;  %v22794_v12 = vpack.c.bf16 %v22792_v2, %v22793_v34  ;;  %v22819_v2 = vld [vmem:[#allocation924_spill] sm:$0xff]  ;;  %v22820_v34 = vld [vmem:[#allocation923_spill] sm:$0xff] }
0x1043   : > { %10627 = vmatpush3.bf16.xpose.msra.mxu0 %v22770_v35  ;;  %v22797_v35 = vpack.c.bf16 %v22795_v8, %v22796_v28  ;;  %v22822_v8 = vld [vmem:[#allocation922_spill] sm:$0xff]  ;;  %v22823_v28 = vld [vmem:[#allocation921_spill] sm:$0xff] }
0x1044   : > { %10629 = vmatprep.subr.bf16.mxu0 %v22773_v49  ;;  %v22800_v49 = vpack.c.bf16 %v22798_v9, %v22799_v50  ;;  %v22825_v9 = vld [vmem:[#allocation926_spill] sm:$0xff]  ;;  %v22826_v50 = vld [vmem:[#allocation925_spill] sm:$0xff] }
0x1045   : > { %10659 = vmatpush3.bf16.xpose.msra.mxu1 %v22776_v56  ;;  %v22803_v56 = vpack.c.bf16 %v22801_v17, %v22802_v3  ;;  %v22828_v17 = vld [vmem:[#allocation928_spill] sm:$0xff]  ;;  %v22829_v3 = vld [vmem:[#allocation927_spill] sm:$0xff] }
0x1046   : > { %10661 = vmatprep.subr.bf16.mxu1 %v22779_v58  ;;  %v22806_v58 = vpack.c.bf16 %v22804_v57, %v22805_v31  ;;  %v22831_v57 = vld [vmem:[#allocation932_spill] sm:$0xff]  ;;  %v22832_v31 = vld [vmem:[#allocation931_spill] sm:$0xff] }
0x104b   : > { %10631 = vmatpush3.bf16.xpose.msra.mxu0 %v22782_v48  ;;  %v22809_v48 = vpack.c.bf16 %v22807_v5, %v22808_v4  ;;  %v22834_v5 = vld [vmem:[#allocation930_spill] sm:$0xff]  ;;  %v22835_v4 = vld [vmem:[#allocation929_spill] sm:$0xff] }
0x104c   : > { %10633 = vmatprep.subr.bf16.mxu0 %v22785_v6  ;;  %v22812_v6 = vpack.c.bf16 %v22810_v0, %v22811_v40  ;;  %v22837_v0 = vld [vmem:[#allocation934_spill] sm:$0xff]  ;;  %v22838_v40 = vld [vmem:[#allocation933_spill] sm:$0xff] }
0x104d   : > { %10663 = vmatpush3.bf16.xpose.msra.mxu1 %v22788_v30  ;;  %v22815_v30 = vpack.c.bf16 %v22813_v33, %v22814_v54  ;;  %v22840_v33 = vld [vmem:[#allocation936_spill] sm:$0xff]  ;;  %v22841_v54 = vld [vmem:[#allocation935_spill] sm:$0xff] }
0x104e   : > { %10665 = vmatprep.subr.bf16.mxu1 %v22791_v23  ;;  %v22818_v23 = vpack.c.bf16 %v22816_v61, %v22817_v11  ;;  %v22843_v61 = vld [vmem:[#allocation938_spill] sm:$0xff]  ;;  %v22844_v11 = vld [vmem:[#allocation937_spill] sm:$0xff] }
0x1053   : > { %10635 = vmatpush3.bf16.xpose.msra.mxu0 %v22794_v12  ;;  %v22821_v12 = vpack.c.bf16 %v22819_v2, %v22820_v34  ;;  %v22846_v2 = vld [vmem:[#allocation133_spill] sm:$0xff] }
0x1054   : > { %10637 = vmatprep.subr.bf16.mxu0 %v22797_v35  ;;  %v22824_v35 = vpack.c.bf16 %v22822_v8, %v22823_v28 }
0x1055   : > { %10667 = vmatpush3.bf16.xpose.msra.mxu1 %v22800_v49  ;;  %v22827_v49 = vpack.c.bf16 %v22825_v9, %v22826_v50 }
0x1056   : > { %10669 = vmatprep.subr.bf16.mxu1 %v22803_v56  ;;  %v22830_v56 = vpack.c.bf16 %v22828_v17, %v22829_v3 }
0x105b   : > { %10639 = vmatpush3.bf16.xpose.msra.mxu0 %v22806_v58  ;;  %v22833_v58 = vpack.c.bf16 %v22831_v57, %v22832_v31 }
0x105c   : > { %10641 = vmatprep.subr.bf16.mxu0 %v22809_v48  ;;  %v22836_v48 = vpack.c.bf16 %v22834_v5, %v22835_v4 }
0x105d   : > { %10671 = vmatpush3.bf16.xpose.msra.mxu1 %v22812_v6  ;;  %v22839_v6 = vpack.c.bf16 %v22837_v0, %v22838_v40 }
0x105e   : > { %10673 = vmatprep.subr.bf16.mxu1 %v22815_v30  ;;  %v22842_v30 = vpack.c.bf16 %v22840_v33, %v22841_v54 }
0x1063   : > { %10643 = vmatpush3.bf16.xpose.msra.mxu0 %v22818_v23  ;;  %v22845_v23 = vpack.c.bf16 %v22843_v61, %v22844_v11 }
0x1064   : > { %10645 = vmatprep.subr.bf16.mxu0 %v22821_v12 }
0x1065   : > { %10675 = vmatpush3.bf16.xpose.msra.mxu1 %v22824_v35 }
0x1066   : > { %10677 = vmatprep.subr.bf16.mxu1 %v22827_v49 }
0x106b   : > { %10647 = vmatpush3.bf16.xpose.msra.mxu0 %v22830_v56 }
0x106c   : > { %10649 = vmatprep.subr.bf16.mxu0 %v22833_v58 }
0x106d   : > { %10679 = vmatpush3.bf16.xpose.msra.mxu1 %v22836_v48 }
0x106e   : > { %10681 = vmatprep.subr.bf16.mxu1 %v22839_v6 }
0x1073   : > { %10651 = vmatpush3.bf16.xpose.msra.mxu0 %v22842_v30 }
0x1074   : > { %10685 = vmatprep.subr.bf16.mxu0 %v21641_v21  ;;  %v22847_v21 = vld [vmem:[#allocation75_spill] sm:$0xff] }
0x1075   : > { %10683 = vmatpush3.bf16.xpose.msra.mxu1 %v22845_v23 }
0x1076   : > { %10717 = vmatprep.subr.bf16.mxu1 %v21645_v44  ;;  %v22848_v44 = vld [vmem:[#allocation76_spill] sm:$0xff] }
0x107a   : > { %8701 = vmatmul.mubr.f32.vlgmr.msra.gmra.mrb[116].mxu0 %v22755_v19 }
0x107b   : > { %8702 = vmatprep.mubr.f32.mxu0 %v22846_v2  ;;  %10687 = vmatpush3.bf16.msra.mxu0 %v21647_v26  ;;  %v22849_v26 = vpack.c.bf16 %v22847_v21, %v22848_v44 }
0x107c   : > { %8737 = vmatmul.mubr.f32.vlgmr.msra.gmra.mrb[132].mxu1 %v22755_v19  ;;  %10689 = vmatprep.subr.bf16.mxu0 %v21648_v63  ;;  %v22850_v63 = vld [vmem:[#allocation940_spill] sm:$0xff] }
0x107d   : > { %8738 = vmatprep.mubr.f32.mxu1 %v22846_v2  ;;  %10719 = vmatpush3.bf16.msra.mxu1 %v21649_v46  ;;  %v22851_v46 = vld [vmem:[#allocation939_spill] sm:$0xff] }
0x107e   : > { %8703 = vmatmul.mubr.f32.gmra.mrb[118].mxu0 %v22846_v2  ;;  %10721 = vmatprep.subr.bf16.mxu1 %v21650_v55  ;;  %v22852_v55 = vpack.c.bf16 %v22850_v63, %v22851_v46 }
0x107f   : > { %10691 = vmatpush3.bf16.msra.mxu0 %v21651_v53 }
0x1080   : > { %8739 = vmatmul.mubr.f32.gmra.mrb[134].mxu1 %v22846_v2  ;;  %10693 = vmatprep.subr.bf16.mxu0 %v21652_v36 }
0x1081   : > { %10723 = vmatpush3.bf16.msra.mxu1 %v21653_v45 }
0x1082   : > { %10725 = vmatprep.subr.bf16.mxu1 %v21654_v15 }
0x1083   : > { %10695 = vmatpush3.bf16.msra.mxu0 %v21655_v51 }
0x1084   : > { %10697 = vmatprep.subr.bf16.mxu0 %v21656_v25 }
0x1085   : > { %10727 = vmatpush3.bf16.msra.mxu1 %v21657_v47 }
0x1086   : > { %10729 = vmatprep.subr.bf16.mxu1 %v21658_v7 }
0x1087   : > { %10699 = vmatpush3.bf16.msra.mxu0 %v21659_v59 }
0x1088   : > { %10701 = vmatprep.subr.bf16.mxu0 %v21660_v32 }
0x1089   : > { %10731 = vmatpush3.bf16.msra.mxu1 %v21661_v16 }
0x108a   : > { %10733 = vmatprep.subr.bf16.mxu1 %v21662_v24 }
0x108b   : > { %10703 = vmatpush3.bf16.msra.mxu0 %v21663_v52 }
0x108c   : > { %10705 = vmatprep.subr.bf16.mxu0 %v21664_v1 }
0x108d   : > { %10735 = vmatpush3.bf16.msra.mxu1 %v21665_v22 }
0x108e   : > { %10737 = vmatprep.subr.bf16.mxu1 %v21666_v27 }
0x108f   : > { %10707 = vmatpush3.bf16.msra.mxu0 %v21667_v14 }
0x1090   : > { %10709 = vmatprep.subr.bf16.mxu0 %v21668_v29 }
0x1091   : > { %10739 = vmatpush3.bf16.msra.mxu1 %v21669_v13 }
0x1092   : > { %10741 = vmatprep.subr.bf16.mxu1 %v21670_v10 }
0x1093   : > { %10711 = vmatpush3.bf16.msra.mxu0 %v21671_v37 }
0x1094   : > { %10713 = vmatprep.subr.bf16.mxu0 %v21672_v18 }
0x1095   : > { %10743 = vmatpush3.bf16.msra.mxu1 %v21673_v20 }
0x1096   : > { %10745 = vmatprep.subr.bf16.mxu1 %v21674_v43 }
0x1097   : > { %10715 = vmatpush3.bf16.msra.mxu0 %v21675_v38 }
0x1098   : > { %10749 = vmatprep.subr.bf16.mxu0 %v22849_v26 }
0x1099   : > { %10747 = vmatpush3.bf16.msra.mxu1 %v21679_v42 }
0x109a   : > { %10781 = vmatprep.subr.bf16.mxu1 %v22852_v55 }
0x10e8   : > { %v8548_v10 = vpop.f32.mrb[108].mxu0 }
0x10e9   : > { %v8549_v37 = vpop.f32.mrb[109].mxu0 }
0x10ea   : > { %v8586_v53 = vpop.f32.mrb[124].mxu1  ;;  %v8550_v18 = vadd.f32 %v8549_v37, %v8548_v10 }
0x10eb   : > { %v8587_v36 = vpop.f32.mrb[125].mxu1 }
0x10ec   : > { %v8588_v20 = vadd.f32 %v8587_v36, %v8586_v53  ;;  %v8551_v45 = vpop.f32.mrb[110].mxu0 }
0x10ed   : > { %v8552_v43 = vpop.f32.mrb[111].mxu0 }
0x10ee   : > { %v5909_v15 = vadd.f32 %v8588_v20, %v8550_v18  ;;  %v8589_v38 = vpop.f32.mrb[126].mxu1  ;;  %v8553_v51 = vadd.f32 %v8552_v43, %v8551_v45 }
0x10ef   : > { %v8590_v25 = vpop.f32.mrb[127].mxu1 }
0x10f0   : > { %v8591_v47 = vadd.f32 %v8590_v25, %v8589_v38  ;;  %v6067_v4 = vmax.f32 %v5909_v15, 1e-30  ;;  %v22853_v25 = vld [vmem:[#allocation942_spill] sm:$0xff] }
0x10f2   : > { %v5914_v7 = vadd.f32 %v8591_v47, %v8553_v51  ;;  %11026 = vrcp.f32 %v6067_v4  ;;  %v22854_v47 = vld [vmem:[#allocation941_spill] sm:$0xff] }
0x10f3   : > { %v22881_v4 = vld [vmem:[#allocation961_spill] sm:$0xff] }
0x10f4   : > { %v6068_v48 = vmax.f32 %v5914_v7, 1e-30  ;;  %v22855_v7 = vpack.c.bf16 %v22853_v25, %v22854_v47  ;;  %v22905_v25 = vld [vmem:[#allocation977_spill] sm:$0xff] }
0x10f6   : > { %11028 = vrcp.f32 %v6068_v48 }
0x10fc   : > { %v11027_v0 = vpop.eup %11026 }
0x1100   : > { %v11029_v40 = vpop.eup %11028 }
0x1108   : > { %v8624_v59 = vpop.f32.mrb[112].mxu0 }
0x1109   : > { %v8625_v42 = vpop.f32.mrb[113].mxu0 }
0x110a   : > { %v8662_v32 = vpop.f32.mrb[128].mxu1  ;;  %v8626_v16 = vadd.f32 %v8625_v42, %v8624_v59  ;;  %v22856_v42 = vld [vmem:[#allocation946_spill] sm:$0xff] }
0x110b   : > { %v8663_v24 = vpop.f32.mrb[129].mxu1 }
0x110c   : > { %v8664_v52 = vadd.f32 %v8663_v24, %v8662_v32  ;;  %v8627_v1 = vpop.f32.mrb[114].mxu0  ;;  %v22857_v32 = vld [vmem:[#allocation945_spill] sm:$0xff] }
0x110d   : > { %v8628_v22 = vpop.f32.mrb[115].mxu0 }
0x110e   : > { %v6059_v27 = vadd.f32 %v8664_v52, %v8626_v16  ;;  %v8665_v14 = vpop.f32.mrb[130].mxu1  ;;  %v8629_v29 = vadd.f32 %v8628_v22, %v8627_v1  ;;  %v22858_v16 = vpack.c.bf16 %v22856_v42, %v22857_v32  ;;  %v22859_v52 = vld [vmem:[#allocation944_spill] sm:$0xff]  ;;  %v22860_v1 = vld [vmem:[#allocation943_spill] sm:$0xff] }
0x110f   : > { %v8666_v13 = vpop.f32.mrb[131].mxu1  ;;  %v22861_v22 = vpack.c.bf16 %v22859_v52, %v22860_v1  ;;  %v22908_v42 = vld [vmem:[#allocation975_spill] sm:$0xff] }
0x1110   : > { %v8667_v19 = vadd.f32 %v8666_v13, %v8665_v14  ;;  %v19006_v6 = vmul.f32 %v11027_v0, %v6059_v27  ;;  %v22862_v14 = vld [vmem:[#allocation948_spill] sm:$0xff]  ;;  %v22911_v52 = vld [vmem:[#allocation979_spill] sm:$0xff] }
0x1111   : > { %v22883_v0 = vld [vmem:[#allocation960_spill] sm:$0xff] }
0x1112   : > { %v6064_v34 = vadd.f32 %v8667_v19, %v8629_v29  ;;  %v22863_v29 = vld [vmem:[#allocation947_spill] sm:$0xff]  ;;  %v22865_v19 = vld [vmem:[#allocation950_spill] sm:$0xff] }
0x1113   : > { %v22864_v13 = vpack.c.bf16 %v22862_v14, %v22863_v29  ;;  %v22914_v14 = vld [vmem:[#allocation981_spill] sm:$0xff] }
0x1114   : > { %v19008_v33 = vmul.f32 %v11029_v40, %v6064_v34  ;;  %v22866_v34 = vld [vmem:[#allocation949_spill] sm:$0xff]  ;;  %v22884_v40 = vld [vmem:[#allocation959_spill] sm:$0xff] }
0x114d   : > { %v6279_v12 = vpop.f32.mrb[116].mxu0 }
0x114e   : > { %v6281_v8 = vpop.f32.mrb[117].mxu0 }
0x114f   : > { %v6356_v28 = vpop.f32.mrb[132].mxu1 }
0x1150   : > { %v6367_v35 = vmax.f32 %v6279_v12, %v6356_v28  ;;  %v6358_v9 = vpop.f32.mrb[133].mxu1 }
0x1151   : > { %v6368_v50 = vmax.f32 %v6281_v8, %v6358_v9  ;;  %v6285_v49 = vpop.f32.mrb[118].mxu0 }
0x1152   : > { %v6287_v17 = vpop.f32.mrb[119].mxu0 }
0x1153   : > { %v6362_v3 = vpop.f32.mrb[134].mxu1  ;;  %v6369_v56 = vmax.f32 %v6367_v35, %v6368_v50  ;;  %v22872_v50 = vld [vmem:[#allocation951_spill] sm:$0xff] }
0x1154   : > { %v6372_v57 = vmax.f32 %v6285_v49, %v6362_v3  ;;  %v6364_v31 = vpop.f32.mrb[135].mxu1 }
0x1155   : > { %v6373_v58 = vmax.f32 %v6287_v17, %v6364_v31  ;;  %6370 = vmax.xlane.f32.xlu0 %v6369_v56 }
0x1157   : > { %v6374_v5 = vmax.f32 %v6372_v57, %v6373_v58  ;;  %v22877_v57 = vld [vmem:[#allocation958_spill] sm:$0xff] }
0x1159   : > { %6375 = vmax.xlane.f32.xlu1 %v6374_v5  ;;  %v22880_v5 = vld [vmem:[#allocation962_spill] sm:$0xff] }
0x115a   : > { %v22882_v48 = vpack.c.bf16 %v22880_v5, %v22881_v4 }
0x11e2   : > { %v6371_v54 = vpop.xlane.xlu0 %6370 }
0x11e3   : > { %v6377_v30 = vsub.f32 %v6279_v12, %v6371_v54  ;;  %v6378_v61 = vsub.f32 %v6281_v8, %v6371_v54  ;;  %v6379_v11 = vsub.f32 %v6356_v28, %v6371_v54  ;;  %v6380_v23 = vsub.f32 %v6358_v9, %v6371_v54  ;;  %v22868_v8 = vld [vmem:[#allocation954_spill] sm:$0xff]  ;;  %v22869_v28 = vld [vmem:[#allocation953_spill] sm:$0xff]  ;;  %v22871_v9 = vld [vmem:[#allocation952_spill] sm:$0xff] }
0x11e4   : > { %v22867_v12 = vpack.c.bf16 %v22865_v19, %v22866_v34  ;;  %v22870_v35 = vpack.c.bf16 %v22868_v8, %v22869_v28  ;;  %v22885_v54 = vpack.c.bf16 %v22883_v0, %v22884_v40  ;;  %v22917_v19 = vld [vmem:[#allocation985_spill] sm:$0xff]  ;;  %v22920_v8 = vld [vmem:[#allocation983_spill] sm:$0xff] }
0x11e5   : > { %v6385_v2 = vmul.f32 1.442695, %v6377_v30  ;;  %v6387_v21 = vmul.f32 1.442695, %v6378_v61  ;;  %v6389_v44 = vmul.f32 1.442695, %v6379_v11 }
0x11e6   : > { %v6391_v26 = vmul.f32 1.442695, %v6380_v23  ;;  %v6376_v63 = vpop.xlane.xlu1 %6375  ;;  %v22886_v30 = vld [vmem:[#allocation964_spill] sm:$0xff]  ;;  %v22887_v61 = vld [vmem:[#allocation963_spill] sm:$0xff]  ;;  %v22889_v23 = vld [vmem:[#allocation966_spill] sm:$0xff] }
0x11e7   : > { %11030 = vpow2.f32 %v6385_v2  ;;  %v6381_v46 = vsub.f32 %v6285_v49, %v6376_v63  ;;  %v6382_v55 = vsub.f32 %v6287_v17, %v6376_v63  ;;  %v6383_v10 = vsub.f32 %v6362_v3, %v6376_v63  ;;  %v22874_v17 = vld [vmem:[#allocation956_spill] sm:$0xff]  ;;  %v22875_v3 = vld [vmem:[#allocation955_spill] sm:$0xff]  ;;  %v22890_v2 = vld [vmem:[#allocation965_spill] sm:$0xff] }
0x11e8   : > { %11032 = vpow2.f32 %v6387_v21  ;;  %v6384_v37 = vsub.f32 %v6364_v31, %v6376_v63  ;;  %v22873_v49 = vpack.c.bf16 %v22871_v9, %v22872_v50  ;;  %v22876_v56 = vpack.c.bf16 %v22874_v17, %v22875_v3  ;;  %v22878_v31 = vld [vmem:[#allocation957_spill] sm:$0xff]  ;;  %v22922_v50 = vld [vmem:[#allocation988_spill] sm:$0xff]  ;;  %v22925_v3 = vld [vmem:[#allocation990_spill] sm:$0xff] }
0x11e9   : > { %11034 = vpow2.f32 %v6389_v44  ;;  %v6393_v53 = vmul.f32 1.442695, %v6381_v46  ;;  %v6395_v18 = vmul.f32 1.442695, %v6382_v55  ;;  %v6397_v36 = vmul.f32 1.442695, %v6383_v10 }
0x11ea   : > { %11036 = vpow2.f32 %v6391_v26  ;;  %v6399_v20 = vmul.f32 1.442695, %v6384_v37  ;;  %v22879_v58 = vpack.c.bf16 %v22877_v57, %v22878_v31  ;;  %v22888_v11 = vpack.c.bf16 %v22886_v30, %v22887_v61  ;;  %v22892_v44 = vld [vmem:[#allocation970_spill] sm:$0xff]  ;;  %v22893_v26 = vld [vmem:[#allocation969_spill] sm:$0xff]  ;;  %v22895_v46 = vld [vmem:[#allocation968_spill] sm:$0xff] }
0x11eb   : > { %11038 = vpow2.f32 %v6393_v53  ;;  %v22891_v21 = vpack.c.bf16 %v22889_v23, %v22890_v2  ;;  %v22894_v63 = vpack.c.bf16 %v22892_v44, %v22893_v26  ;;  %v22896_v55 = vld [vmem:[#allocation967_spill] sm:$0xff]  ;;  %v22898_v37 = vld [vmem:[#allocation972_spill] sm:$0xff]  ;;  %v6727_v9 = vld [vmem:[%s19233_s8 + $0x8] sm:$0xff] }
0x11ec   : > { %11040 = vpow2.f32 %v6395_v18  ;;  %v22897_v10 = vpack.c.bf16 %v22895_v46, %v22896_v55  ;;  %v22899_v53 = vld [vmem:[#allocation971_spill] sm:$0xff]  ;;  %v22928_v31 = vld [vmem:[#allocation994_spill] sm:$0xff]  ;;  %v22934_v61 = vld [vmem:[#allocation996_spill] sm:$0xff] }
0x11ed   : > { %11042 = vpow2.f32 %v6397_v36  ;;  %v22900_v18 = vpack.c.bf16 %v22898_v37, %v22899_v53  ;;  %v22901_v36 = vld [vmem:[#allocation974_spill] sm:$0xff]  ;;  %v22932_v0 = vld [vmem:[#allocation991_spill] sm:$0xff]  ;;  %v6731_v37 = vld [vmem:[%s19233_s8 + $0x28] sm:$0xff] }
0x11ee   : > { %11044 = vpow2.f32 %v6399_v20  ;;  %v22902_v20 = vld [vmem:[#allocation973_spill] sm:$0xff]  ;;  %v6729_v30 = vld [vmem:[%s19233_s8 + $0x18] sm:$0xff]  ;;  %v22937_v2 = vld [vmem:[#allocation998_spill] sm:$0xff] }
0x11ef   : > { %v22941_v46 = vld [vmem:[#allocation999_spill] sm:$0xff] }
0x11f1   : > { %v11031_v45 = vpop.eup %11030 }
0x11f2   : > { %v11033_v43 = vpop.eup %11032 }
0x11f3   : > { %v11035_v15 = vpop.eup %11034  ;;  %6465 = vmatprep.mubr.f32.mxu0 %v11033_v43 }
0x11f4   : > { %v11037_v38 = vpop.eup %11036  ;;  %6466 = vmatmul.mubr.f32.vlgmr.msra.gmra.mrb[120].mxu0 %v11031_v45 }
0x11f5   : > { %v11039_v51 = vpop.eup %11038  ;;  %6540 = vmatprep.mubr.f32.mxu1 %v11037_v38  ;;  %10751 = vmatpush3.bf16.msra.mxu0 %v22855_v7  ;;  %v22907_v7 = vld [vmem:[#allocation976_spill] sm:$0xff] }
0x11f6   : > { %v11041_v59 = vpop.eup %11040  ;;  %6541 = vmatmul.mubr.f32.vlgmr.msra.gmra.mrb[136].mxu1 %v11035_v15  ;;  %10753 = vmatprep.subr.bf16.mxu0 %v22858_v16  ;;  %v22909_v32 = vpack.c.bf16 %v22907_v7, %v22908_v42  ;;  %v22910_v16 = vld [vmem:[#allocation980_spill] sm:$0xff]  ;;  %v6740_v7 = vld [vmem:[%s19233_s8 + $0x70] sm:$0xff]  ;;  %v6741_v42 = vld [vmem:[%s19233_s8 + $0x78] sm:$0xff] }
0x11f7   : > { %v11043_v24 = vpop.eup %11042  ;;  %10783 = vmatpush3.bf16.msra.mxu1 %v22861_v22  ;;  %6470 = vmatprep.mubr.f32.mxu0 %v11041_v59  ;;  %v22912_v1 = vpack.c.bf16 %v22910_v16, %v22911_v52  ;;  %v22913_v22 = vld [vmem:[#allocation982_spill] sm:$0xff]  ;;  %v22944_v16 = vld [vmem:[#allocation88_spill] sm:$0xff] }
0x11f8   : > { %v11045_v27 = vpop.eup %11044  ;;  %10785 = vmatprep.subr.bf16.mxu1 %v22864_v13  ;;  %6471 = vmatmul.mubr.f32.gmra.mrb[122].mxu0 %v11039_v51  ;;  %v22915_v29 = vpack.c.bf16 %v22913_v22, %v22914_v14  ;;  %v22916_v13 = vld [vmem:[#allocation986_spill] sm:$0xff]  ;;  %v22945_v52 = vld [vmem:[#allocation92_spill] sm:$0xff]  ;;  %v22948_v14 = vld [vmem:[#allocation89_spill] sm:$0xff] }
0x11f9   : > { %6545 = vmatprep.mubr.f32.mxu1 %v11045_v27  ;;  %10755 = vmatpush3.bf16.msra.mxu0 %v22867_v12  ;;  %v22918_v34 = vpack.c.bf16 %v22916_v13, %v22917_v19  ;;  %v22919_v12 = vld [vmem:[#allocation984_spill] sm:$0xff]  ;;  %v22947_v22 = vld [vmem:[#allocation90_spill] sm:$0xff] }
0x11fa   : > { %6546 = vmatmul.mubr.f32.gmra.mrb[138].mxu1 %v11043_v24  ;;  %10757 = vmatprep.subr.bf16.mxu0 %v22870_v35  ;;  %v22921_v28 = vpack.c.bf16 %v22919_v12, %v22920_v8  ;;  %v6726_v35 = vld [vmem:[%s19233_s8] sm:$0xff]  ;;  %v22950_v13 = vld [vmem:[#allocation94_spill] sm:$0xff] }
0x11fb   : > { %10787 = vmatpush3.bf16.msra.mxu1 %v22873_v49  ;;  %6615 = vmatprep.mubr.f32.mxu0 %v11033_v43  ;;  %v22903_v43 = vpack.c.bf16 %v22901_v36, %v22902_v20  ;;  %v22923_v49 = vld [vmem:[#allocation987_spill] sm:$0xff]  ;;  %v10812_v4 = vpack.c.bf16 %v6727_v9, %v6726_v35 }
0x11fc   : > { %10789 = vmatprep.subr.bf16.mxu1 %v22876_v56  ;;  %6690 = vmatprep.mubr.f32.mxu1 %v11037_v38  ;;  %v22904_v38 = vld [vmem:[#allocation978_spill] sm:$0xff]  ;;  %v22924_v17 = vpack.c.bf16 %v22922_v50, %v22923_v49  ;;  %v22926_v56 = vld [vmem:[#allocation989_spill] sm:$0xff]  ;;  %v6733_v36 = vld [vmem:[%s19233_s8 + $0x38] sm:$0xff] }
0x11fd   : > { %10759 = vmatpush3.bf16.msra.mxu0 %v22879_v58  ;;  %v22906_v47 = vpack.c.bf16 %v22904_v38, %v22905_v25  ;;  %v22927_v57 = vpack.c.bf16 %v22925_v3, %v22926_v56  ;;  %v22929_v58 = vld [vmem:[#allocation993_spill] sm:$0xff]  ;;  %v22943_v20 = vld [vmem:[#allocation87_spill] sm:$0xff]  ;;  %v6738_v38 = vld [vmem:[%s19233_s8 + $0x60] sm:$0xff] }
0x11fe   : > { %10761 = vmatprep.subr.bf16.mxu0 %v22882_v48  ;;  %v22930_v5 = vpack.c.bf16 %v22928_v31, %v22929_v58  ;;  %v22931_v48 = vld [vmem:[#allocation992_spill] sm:$0xff]  ;;  %v6739_v25 = vld [vmem:[%s19233_s8 + $0x68] sm:$0xff] }
0x11ff   : > { %10791 = vmatpush3.bf16.msra.mxu1 %v22885_v54  ;;  %v22933_v40 = vpack.c.bf16 %v22931_v48, %v22932_v0  ;;  %v6728_v54 = vld [vmem:[%s19233_s8 + $0x10] sm:$0xff] }
0x1200   : > { %10793 = vmatprep.subr.bf16.mxu1 %v22888_v11  ;;  %v22935_v11 = vld [vmem:[#allocation995_spill] sm:$0xff]  ;;  %v10816_v26 = vpack.c.bf16 %v6729_v30, %v6728_v54 }
0x1201   : > { %10763 = vmatpush3.bf16.msra.mxu0 %v22891_v21  ;;  %v22936_v23 = vpack.c.bf16 %v22934_v61, %v22935_v11  ;;  %v22938_v21 = vld [vmem:[#allocation997_spill] sm:$0xff] }
0x1202   : > { %10765 = vmatprep.subr.bf16.mxu0 %v22894_v63  ;;  %v22939_v44 = vpack.c.bf16 %v22937_v2, %v22938_v21  ;;  %v22940_v63 = vld [vmem:[#allocation1000_spill] sm:$0xff] }
0x1203   : > { %10795 = vmatpush3.bf16.msra.mxu1 %v22897_v10  ;;  %v22942_v55 = vpack.c.bf16 %v22940_v63, %v22941_v46  ;;  %v6730_v10 = vld [vmem:[%s19233_s8 + $0x20] sm:$0xff] }
0x1204   : > { %10797 = vmatprep.subr.bf16.mxu1 %v22900_v18  ;;  %v10820_v53 = vpack.c.bf16 %v6731_v37, %v6730_v10  ;;  %v6732_v18 = vld [vmem:[%s19233_s8 + $0x30] sm:$0xff]  ;;  %v11050_v37 = vld [vmem:[%s11165_s30 + $0x8] sm:$0xff] }
0x1205   : > { %10767 = vmatpush3.bf16.msra.mxu0 %v22903_v43 }
0x1206   : > { %10769 = vmatprep.subr.bf16.mxu0 %v22906_v47  ;;  %v10836_v47 = vpack.c.bf16 %v6739_v25, %v6738_v38 }
0x1207   : > { %10799 = vmatpush3.bf16.msra.mxu1 %v22909_v32  ;;  %v10840_v32 = vpack.c.bf16 %v6741_v42, %v6740_v7  ;;  %v11054_v42 = vld [vmem:[%s11165_s30 + $0x28] sm:$0xff] }
0x1208   : > { %10801 = vmatprep.subr.bf16.mxu1 %v22912_v1  ;;  %v22946_v1 = vld [vmem:[#allocation91_spill] sm:$0xff] }
0x1209   : > { %10771 = vmatpush3.bf16.msra.mxu0 %v22915_v29  ;;  %v22949_v29 = vld [vmem:[#allocation96_spill] sm:$0xff] }
0x120a   : > { %10773 = vmatprep.subr.bf16.mxu0 %v22918_v34 }
0x120b   : > { %10803 = vmatpush3.bf16.msra.mxu1 %v22921_v28 }
0x120c   : > { %10805 = vmatprep.subr.bf16.mxu1 %v22924_v17 }
0x120d   : > { %10775 = vmatpush3.bf16.msra.mxu0 %v22927_v57 }
0x120e   : > { %10777 = vmatprep.subr.bf16.mxu0 %v22930_v5 }
0x120f   : > { %10807 = vmatpush3.bf16.msra.mxu1 %v22933_v40 }
0x1210   : > { %10809 = vmatprep.subr.bf16.mxu1 %v22936_v23 }
0x1211   : > { %10779 = vmatpush3.bf16.msra.mxu0 %v22939_v44 }
0x1212   : > { %10813 = vmatprep.subr.bf16.mxu0 %v10812_v4 }
0x1213   : > { %10811 = vmatpush3.bf16.msra.mxu1 %v22942_v55 }
0x1214   : > { %6616 = vmatmul.mubr.f32.vlgmr.msra.gmra.mrb[124].mxu0 %v11031_v45  ;;  %v10824_v45 = vpack.c.bf16 %v6733_v36, %v6732_v18  ;;  %v11051_v18 = vld [vmem:[%s11165_s30] sm:$0xff] }
0x1215   : > { %6620 = vmatprep.mubr.f32.mxu0 %v11041_v59  ;;  %10815 = vmatpush3.bf16.msra.mxu0 %v10812_v4  ;;  %v6735_v59 = vld [vmem:[%s19233_s8 + $0x48] sm:$0xff] }
0x1216   : > { %6691 = vmatmul.mubr.f32.vlgmr.msra.gmra.mrb[140].mxu1 %v11035_v15  ;;  %10817 = vmatprep.subr.bf16.mxu0 %v10816_v26  ;;  %v6734_v15 = vld [vmem:[%s19233_s8 + $0x40] sm:$0xff] }
0x1217   : > { %6695 = vmatprep.mubr.f32.mxu1 %v11045_v27  ;;  %v10828_v27 = vpack.c.bf16 %v6735_v59, %v6734_v15 }
0x1218   : > { %6621 = vmatmul.mubr.f32.gmra.mrb[126].mxu0 %v11039_v51  ;;  %v6736_v51 = vld [vmem:[%s19233_s8 + $0x50] sm:$0xff] }
0x1219   : > { %10819 = vmatpush3.bf16.msra.mxu0 %v10816_v26  ;;  %9124 = vmatprep.mubr.f32.mxu0 %v22943_v20  ;;  %v19165_v26 = vld [vmem:[%s19234_s9] ss:$0 sm:$0xff] }
0x121a   : > { %6696 = vmatmul.mubr.f32.gmra.mrb[142].mxu1 %v11043_v24  ;;  %10821 = vmatprep.subr.bf16.mxu0 %v10820_v53  ;;  %v6737_v24 = vld [vmem:[%s19233_s8 + $0x58] sm:$0xff] }
0x121b   : > { %v10832_v43 = vpack.c.bf16 %v6737_v24, %v6736_v51  ;;  %v11053_v24 = vld [vmem:[%s11165_s30 + $0x10] sm:$0xff] }
0x121d   : > { %10823 = vmatpush3.bf16.msra.mxu0 %v10820_v53 }
0x121e   : > { %10825 = vmatprep.subr.bf16.mxu0 %v10824_v45 }
0x1221   : > { %10827 = vmatpush3.bf16.msra.mxu0 %v10824_v45 }
0x1222   : > { %10829 = vmatprep.subr.bf16.mxu0 %v10828_v27 }
0x1225   : > { %10831 = vmatpush3.bf16.msra.mxu0 %v10828_v27  ;;  %v11052_v27 = vld [vmem:[%s11165_s30 + $0x18] sm:$0xff] }
0x1226   : > { %10833 = vmatprep.subr.bf16.mxu0 %v10832_v43 }
0x1229   : > { %10835 = vmatpush3.bf16.msra.mxu0 %v10832_v43 }
0x122a   : > { %10837 = vmatprep.subr.bf16.mxu0 %v10836_v47 }
0x122d   : > { %10839 = vmatpush3.bf16.msra.mxu0 %v10836_v47 }
0x122e   : > { %10841 = vmatprep.subr.bf16.mxu0 %v10840_v32 }
0x1231   : > { %10843 = vmatpush3.bf16.msra.mxu0 %v10840_v32 }
0x1234   : > { %9125 = vmatmul.mubr.f32.vlgmr.msra.gmra.mrb[128].mxu0 %v22944_v16  ;;  %v11055_v16 = vld [vmem:[%s11165_s30 + $0x20] sm:$0xff] }
0x1235   : > { %9127 = vmatprep.mubr.f32.mxu0 %v22945_v52 }
0x1238   : > { %9128 = vmatmul.mubr.f32.gmra.mrb[130].mxu0 %v22946_v1 }
0x1239   : > { %9130 = vmatprep.mubr.f32.mxu0 %v22947_v22 }
0x123c   : > { %9131 = vmatmul.mubr.f32.gmra.mrb[132].mxu0 %v22948_v14 }
0x123d   : > { %9133 = vmatprep.mubr.f32.mxu0 %v22949_v29 }
0x1240   : > { %9134 = vmatmul.mubr.f32.gmra.mrb[134].mxu0 %v22950_v13  ;;  %v11056_v13 = vld [vmem:[%s11165_s30 + $0x38] sm:$0xff] }
0x1241   : > { %9136 = vmatprep.mubr.f32.mxu0 %v18533_v41 }
0x1244   : > { %9137 = vmatmul.mubr.f32.gmra.mrb[136].mxu0 %v18548_v39 }
0x1245   : > { %9139 = vmatprep.mubr.f32.mxu0 %v18770_v60 }
0x1248   : > { %9140 = vmatmul.mubr.f32.gmra.mrb[138].mxu0 %v18772_v62 }
0x1249   : > { %9142 = vmatprep.mubr.f32.mxu0 %v19006_v6 }
0x124c   : > { %9143 = vmatmul.mubr.f32.gmra.mrb[140].mxu0 %v19008_v33 }
0x12c7   : > { %v8772_v19 = vpop.f32.mrb[120].mxu0 }
0x12c8   : > { %v8773_v34 = vpop.f32.mrb[121].mxu0 }
0x12c9   : > { %v8810_v12 = vpop.f32.mrb[136].mxu1  ;;  %v8774_v8 = vadd.f32 %v8773_v34, %v8772_v19  ;;  %v11057_v34 = vld [vmem:[%s11165_s30 + $0x30] sm:$0xff] }
0x12ca   : > { %v8811_v28 = vpop.f32.mrb[137].mxu1 }
0x12cb   : > { %v8812_v35 = vadd.f32 %v8811_v28, %v8810_v12  ;;  %v8775_v9 = vpop.f32.mrb[122].mxu0 }
0x12cc   : > { %v8776_v50 = vpop.f32.mrb[123].mxu0 }
0x12cd   : > { %v6543_v49 = vadd.f32 %v8812_v35, %v8774_v8  ;;  %v8813_v41 = vpop.f32.mrb[138].mxu1  ;;  %v8777_v17 = vadd.f32 %v8776_v50, %v8775_v9  ;;  %v11058_v50 = vld [vmem:[%s11165_s30 + $0x48] sm:$0xff] }
0x12ce   : > { %v8814_v39 = vpop.f32.mrb[139].mxu1 }
0x12cf   : > { %v8815_v3 = vadd.f32 %v8814_v39, %v8813_v41  ;;  %v6701_v56 = vmax.f32 %v6543_v49, 1e-30  ;;  %v11059_v41 = vld [vmem:[%s11165_s30 + $0x40] sm:$0xff] }
0x12d1   : > { %v6548_v60 = vadd.f32 %v8815_v3, %v8777_v17  ;;  %11046 = vrcp.f32 %v6701_v56 }
0x12d3   : > { %v6702_v62 = vmax.f32 %v6548_v60, 1e-30 }
0x12d5   : > { %11048 = vrcp.f32 %v6702_v62  ;;  %v11060_v62 = vld [vmem:[%s11165_s30 + $0x58] sm:$0xff] }
0x12db   : > { %v11047_v30 = vpop.eup %11046 }
0x12df   : > { %v11049_v21 = vpop.eup %11048 }
0x12e7   : > { %v8848_v6 = vpop.f32.mrb[124].mxu0 }
0x12e8   : > { %v8849_v33 = vpop.f32.mrb[125].mxu0 }
0x12e9   : > { %v8886_v57 = vpop.f32.mrb[140].mxu1  ;;  %v8850_v31 = vadd.f32 %v8849_v33, %v8848_v6  ;;  %v11061_v33 = vld [vmem:[%s11165_s30 + $0x50] sm:$0xff] }
0x12ea   : > { %v8887_v58 = vpop.f32.mrb[141].mxu1 }
0x12eb   : > { %v8888_v5 = vadd.f32 %v8887_v58, %v8886_v57  ;;  %v8851_v4 = vpop.f32.mrb[126].mxu0 }
0x12ec   : > { %v8852_v48 = vpop.f32.mrb[127].mxu0 }
0x12ed   : > { %v6693_v0 = vadd.f32 %v8888_v5, %v8850_v31  ;;  %v8889_v40 = vpop.f32.mrb[142].mxu1  ;;  %v8853_v54 = vadd.f32 %v8852_v48, %v8851_v4  ;;  %v11062_v48 = vld [vmem:[%s11165_s30 + $0x68] sm:$0xff] }
0x12ee   : > { %v8890_v61 = vpop.f32.mrb[143].mxu1 }
0x12ef   : > { %v8891_v11 = vadd.f32 %v8890_v61, %v8889_v40  ;;  %v6705_v23 = vmul.f32 %v11047_v30, %v6693_v0  ;;  %v11063_v40 = vld [vmem:[%s11165_s30 + $0x60] sm:$0xff] }
0x12f1   : > { %v6698_v2 = vadd.f32 %v8891_v11, %v8853_v54  ;;  %9145 = vmatprep.mubr.f32.mxu0 %v6705_v23 }
0x12f3   : > { %v6706_v44 = vmul.f32 %v11049_v21, %v6698_v2  ;;  %v11064_v2 = vld [vmem:[%s11165_s30 + $0x78] sm:$0xff] }
0x12f5   : > { %9146 = vmatmul.mubr.f32.gmra.mrb[142].mxu0 %v6706_v44  ;;  %v11065_v44 = vld [vmem:[%s11165_s30 + $0x70] sm:$0xff] }
0x1307   : > { %v9126_v63 = vpop.f32.mrb[128].mxu0 }
0x1308   : > { %v6821_v46 = vadd.f32 %v9126_v63, %v19165_v26  ;;  %v6815_v55 = vpop.f32.mrb[129].mxu0 }
0x1309   : > { %v6816_v10 = vadd.f32 %v19165_v26, %v6815_v55 }
0x130a   : > { %v6895_v53 = vadd.f32 %v11050_v37, %v6821_v46 }
0x130b   : > { %v6894_v36 = vadd.f32 %v11051_v18, %v6816_v10  ;;  %v9129_v20 = vpop.f32.mrb[130].mxu0 }
0x130c   : > { %6911 = vst [vmem:[%s19173_s19 + $0x8] sm:$0xff] %v6895_v53  ;;  %v6831_v45 = vadd.f32 %v9129_v20, %v19165_v26  ;;  %v6825_v15 = vpop.f32.mrb[131].mxu0 }
0x130d   : > { %6910 = vst [vmem:[%s19173_s19] sm:$0xff] %v6894_v36  ;;  %v6826_v59 = vadd.f32 %v19165_v26, %v6825_v15 }
0x130e   : > { %v6897_v51 = vadd.f32 %v11052_v27, %v6831_v45 }
0x130f   : > { %v6896_v43 = vadd.f32 %v11053_v24, %v6826_v59  ;;  %v9132_v38 = vpop.f32.mrb[132].mxu0 }
0x1310   : > { %6913 = vst [vmem:[%s19173_s19 + $0x18] sm:$0xff] %v6897_v51  ;;  %v6841_v25 = vadd.f32 %v9132_v38, %v19165_v26  ;;  %v6835_v47 = vpop.f32.mrb[133].mxu0 }
0x1311   : > { %6912 = vst [vmem:[%s19173_s19 + $0x10] sm:$0xff] %v6896_v43  ;;  %v6836_v7 = vadd.f32 %v19165_v26, %v6835_v47 }
0x1312   : > { %v6899_v32 = vadd.f32 %v11054_v42, %v6841_v25 }
0x1313   : > { %v6898_v52 = vadd.f32 %v11055_v16, %v6836_v7  ;;  %v9135_v1 = vpop.f32.mrb[134].mxu0 }
0x1314   : > { %6915 = vst [vmem:[%s19173_s19 + $0x28] sm:$0xff] %v6899_v32  ;;  %v6851_v22 = vadd.f32 %v9135_v1, %v19165_v26  ;;  %v6845_v14 = vpop.f32.mrb[135].mxu0 }
0x1315   : > { %6914 = vst [vmem:[%s19173_s19 + $0x20] sm:$0xff] %v6898_v52  ;;  %v6846_v29 = vadd.f32 %v19165_v26, %v6845_v14 }
0x1316   : > { %v6901_v19 = vadd.f32 %v11056_v13, %v6851_v22 }
0x1317   : > { %v6900_v12 = vadd.f32 %v11057_v34, %v6846_v29  ;;  %v9138_v8 = vpop.f32.mrb[136].mxu0 }
0x1318   : > { %6917 = vst [vmem:[%s19173_s19 + $0x38] sm:$0xff] %v6901_v19  ;;  %v6861_v28 = vadd.f32 %v9138_v8, %v19165_v26  ;;  %v6855_v35 = vpop.f32.mrb[137].mxu0 }
0x1319   : > { %6916 = vst [vmem:[%s19173_s19 + $0x30] sm:$0xff] %v6900_v12  ;;  %v6856_v9 = vadd.f32 %v19165_v26, %v6855_v35 }
0x131a   : > { %v6903_v49 = vadd.f32 %v11058_v50, %v6861_v28 }
0x131b   : > { %v6902_v17 = vadd.f32 %v11059_v41, %v6856_v9  ;;  %v9141_v39 = vpop.f32.mrb[138].mxu0 }
0x131c   : > { %6919 = vst [vmem:[%s19173_s19 + $0x48] sm:$0xff] %v6903_v49  ;;  %v6871_v3 = vadd.f32 %v9141_v39, %v19165_v26  ;;  %v6865_v60 = vpop.f32.mrb[139].mxu0 }
0x131d   : > { %6918 = vst [vmem:[%s19173_s19 + $0x40] sm:$0xff] %v6902_v17  ;;  %v6866_v56 = vadd.f32 %v19165_v26, %v6865_v60 }
0x131e   : > { %v6905_v6 = vadd.f32 %v11060_v62, %v6871_v3 }
0x131f   : > { %v6904_v57 = vadd.f32 %v11061_v33, %v6866_v56  ;;  %v9144_v31 = vpop.f32.mrb[140].mxu0 }
0x1320   : > { %6921 = vst [vmem:[%s19173_s19 + $0x58] sm:$0xff] %v6905_v6  ;;  %v6881_v58 = vadd.f32 %v9144_v31, %v19165_v26  ;;  %v6875_v5 = vpop.f32.mrb[141].mxu0 }
0x1321   : > { %6920 = vst [vmem:[%s19173_s19 + $0x50] sm:$0xff] %v6904_v57  ;;  %v6876_v4 = vadd.f32 %v19165_v26, %v6875_v5 }
0x1322   : > { %v6907_v0 = vadd.f32 %v11062_v48, %v6881_v58 }
0x1323   : > { %v6906_v54 = vadd.f32 %v11063_v40, %v6876_v4 }
0x1324   : > { %6923 = vst [vmem:[%s19173_s19 + $0x68] sm:$0xff] %v6907_v0 }
0x1325   : > { %6922 = vst [vmem:[%s19173_s19 + $0x60] sm:$0xff] %v6906_v54 }
0x13c8   : > { %v9147_v30 = vpop.f32.mrb[142].mxu0 }
0x13c9   : > { %v6891_v61 = vadd.f32 %v9147_v30, %v19165_v26  ;;  %v6885_v11 = vpop.f32.mrb[143].mxu0 }
0x13ca   : > { %v6886_v23 = vadd.f32 %v19165_v26, %v6885_v11 }
0x13cb   : > { %v6909_v21 = vadd.f32 %v11064_v2, %v6891_v61 }
0x13cc   : > { %v6908_v63 = vadd.f32 %v11065_v44, %v6886_v23 }
0x13cd   : > { %6925 = vst [vmem:[%s19173_s19 + $0x78] sm:$0xff] %v6909_v21 }
0x13ce   : > { %6924 = vst [vmem:[%s19173_s19 + $0x70] sm:$0xff] %v6908_v63 }
0x13cf PF: > { %s20_s13 = sadd.s32 1, %s11072_s13  }
0x13d0   : > { %p17_p4 = scmp.ge.s32.totalorder %s20_s13, 4  }
0x13d2   :  { %19 = sbr.rel (!%p17_p4) target bundleno = 1 (0x1), region = 105 }

</bundles_post_ra>
